<compile_context>
chip_gen: v7x
topology: tpu7x:2x2x1
jax: 0.10.0
libtpu: 0.0.40
codegen_flags: <defaults>
</compile_context>

<pallas_src>
import functools

import jax
import jax.numpy as jnp
from jax.experimental import pallas as pl
from jax.experimental.pallas import tpu as pltpu

# ------------------------------ configuration -------------------------------
IN_CH = 64          # UpBlock in_channels
OUT_CH = 64         # UpBlock out_channels
TIME_CH = 128       # time_channels
HAS_ATTN = True
N_GROUPS = 32       # GroupNorm groups (ResidualBlock default)
B, H, W = 2, 16, 16
EPS = 1e-5


# ================================ kernels ====================================

def _swish(y):
    # x * sigmoid(x); divide goes to the EUP via approx reciprocal.
    return y * pl.reciprocal(1.0 + jnp.exp(-y), approx=True)


def resblock_kernel(x_ref, t_ref,
                    g1_ref, be1_ref, s1_ref, s1t_ref, w1_ref, cb1_ref,
                    wt_ref, bt_ref,
                    g2_ref, be2_ref, s2_ref, s2t_ref, w2_ref, cb2_ref,
                    wsc_ref, bsc_ref,
                    o_ref,
                    pad1_ref, pad2_ref,
                    *, hh, ww, eps):
    """One full ResidualBlock for one batch element, NHWC-flat layout.

    x_ref:   [1, H*W, Cin]  f32
    t_ref:   [B, Tch]       f32 (full; current row selected with program_id)
    w*_ref:  conv weights reshaped to [9, Cin, Cout] (bf16)
    s*_ref:  one-hot group selection matrices [C, G] / [G, C] (f32)
    o_ref:   [1, H*W, Cout] f32
    pad*_ref: zero-padded VMEM scratch for the shift-accumulate convs.
    """
    hw = hh * ww
    x = x_ref[0]                                          # [HW, Cin] f32

    def groupnorm_swish(v, s_ref, st_ref, gamma_ref, beta_ref):
        # v: [HW, C].  Per-(batch, group) stats via tiny one-hot matmuls.
        c = v.shape[-1]
        g = s_ref.shape[-1]
        inv_cnt = 1.0 / float((c // g) * hw)
        sum_c = jnp.sum(v, axis=0, keepdims=True)                       # [1, C]
        sq_c = jnp.sum(v * v, axis=0, keepdims=True)                    # [1, C]
        gsum = jnp.dot(sum_c, s_ref[...], preferred_element_type=jnp.float32)
        gsq = jnp.dot(sq_c, s_ref[...], preferred_element_type=jnp.float32)
        gmean = gsum * inv_cnt                                          # [1, G]
        gvar = gsq * inv_cnt - gmean * gmean
        grstd = jax.lax.rsqrt(gvar + eps)
        mean_c = jnp.dot(gmean, st_ref[...], preferred_element_type=jnp.float32)
        rstd_c = jnp.dot(grstd, st_ref[...], preferred_element_type=jnp.float32)
        y = (v - mean_c) * rstd_c * gamma_ref[...] + beta_ref[...]
        return _swish(y)

    def conv3x3(v, pad_ref, w_ref):
        # v: [HW, C] f32 (pre-activated).  9 shift-accumulate MXU matmuls
        # over a zero-padded VMEM scratch (padding=1, stride=1).
        c = v.shape[-1]
        co = w_ref.shape[-1]
        pad_ref[...] = jnp.zeros_like(pad_ref)
        pad_ref[1:hh + 1, 1:ww + 1, :] = v.reshape(hh, ww, c)
        acc = jnp.zeros((hw, co), jnp.float32)
        for kk in range(9):
            dh, dw = kk // 3, kk % 3
            patch = pad_ref[dh:dh + hh, dw:dw + ww, :].reshape(hw, c)
            acc = acc + jnp.dot(patch.astype(jnp.bfloat16), w_ref[kk],
                                preferred_element_type=jnp.float32)
        return acc

    # ---- shortcut (1x1 conv) first, so x's live range ends at GroupNorm1 ----
    sc = jnp.dot(x.astype(jnp.bfloat16), wsc_ref[...],
                 preferred_element_type=jnp.float32) + bsc_ref[...]    # [HW, Cout]

    # ---- h = conv1(Swish(GroupNorm1(x))) ----
    h1 = groupnorm_swish(x, s1_ref, s1t_ref, g1_ref, be1_ref)
    h = conv3x3(h1, pad1_ref, w1_ref) + cb1_ref[...]

    # ---- h += time_emb(Swish(t))  (per-batch row, broadcast over HW) ----
    trow = t_ref[pl.ds(pl.program_id(0), 1), :]                        # [1, Tch]
    te = jnp.dot(_swish(trow).astype(jnp.bfloat16), wt_ref[...],
                 preferred_element_type=jnp.float32) + bt_ref[...]     # [1, Cout]
    h = h + te

    # ---- h = conv2(dropout(Swish(GroupNorm2(h))))  (dropout = identity) ----
    h2 = groupnorm_swish(h, s2_ref, s2t_ref, g2_ref, be2_ref)
    h = conv3x3(h2, pad2_ref, w2_ref) + cb2_ref[...]

    # ---- residual ----
    o_ref[0] = h + sc


def attention_kernel(x_ref, wqkv_ref, bqkv_ref, wo_ref, bo_ref, o_ref,
                     *, scale, n_ch):
    """Fused AttentionBlock (n_heads=1) for one batch element.

    qkv-proj -> scores -> softmax -> weighted sum -> out-proj -> residual,
    all resident in VMEM.  (The reference forward never applies its GroupNorm.)
    """
    xs = x_ref[0]                                                      # [S, C] f32
    qkv = jnp.dot(xs.astype(jnp.bfloat16), wqkv_ref[...],
                  preferred_element_type=jnp.float32) + bqkv_ref[...]  # [S, 3C]
    q = qkv[:, :n_ch].astype(jnp.bfloat16)
    k = qkv[:, n_ch:2 * n_ch].astype(jnp.bfloat16)
    v = qkv[:, 2 * n_ch:].astype(jnp.bfloat16)
    # scores: q @ k^T (contract last dims, f32 accumulation)
    s = jax.lax.dot_general(q, k, (((1,), (1,)), ((), ())),
                            preferred_element_type=jnp.float32) * scale
    s = s - jnp.max(s, axis=-1, keepdims=True)
    p = jnp.exp(s)
    p = p * pl.reciprocal(jnp.sum(p, axis=-1, keepdims=True), approx=True)
    r = jnp.dot(p.astype(jnp.bfloat16), v, preferred_element_type=jnp.float32)
    out = jnp.dot(r.astype(jnp.bfloat16), wo_ref[...],
                  preferred_element_type=jnp.float32) + bo_ref[...]
    o_ref[0] = out + xs


# ============================== pallas wrappers ==============================

def _group_select(c, g):
    """One-hot [C, G] matrix: column g selects channels of group g."""
    return jnp.repeat(jnp.eye(g, dtype=jnp.float32), c // g, axis=0)


def _full_spec(a):
    return pl.BlockSpec(a.shape, lambda i: (0,) * a.ndim)


def pallas_resblock(x_flat, t, p, *, hh, ww):
    """x_flat: [B, H*W, Cin] f32 (NHWC-flat); t: [B, Tch] f32 -> [B, H*W, Cout]."""
    b, hw, cin = x_flat.shape
    cout = p['conv1']['w'].shape[0]
    g = N_GROUPS

    # Weight / param layout prep (trace-time constants under jit; bf16 for MXU).
    w1 = p['conv1']['w'].transpose(2, 3, 1, 0).reshape(9, cin, cout).astype(jnp.bfloat16)
    cb1 = p['conv1']['b'].reshape(1, cout).astype(jnp.float32)
    w2 = p['conv2']['w'].transpose(2, 3, 1, 0).reshape(9, cout, cout).astype(jnp.bfloat16)
    cb2 = p['conv2']['b'].reshape(1, cout).astype(jnp.float32)
    wt = p['time_emb']['w'].T.astype(jnp.bfloat16)                    # [Tch, Cout]
    bt = p['time_emb']['b'].reshape(1, cout).astype(jnp.float32)
    wsc = p['shortcut']['w'][:, :, 0, 0].T.astype(jnp.bfloat16)       # [Cin, Cout]
    bsc = p['shortcut']['b'].reshape(1, cout).astype(jnp.float32)
    g1 = p['norm1']['g'].reshape(1, cin)
    be1 = p['norm1']['b'].reshape(1, cin)
    g2 = p['norm2']['g'].reshape(1, cout)
    be2 = p['norm2']['b'].reshape(1, cout)
    s1 = _group_select(cin, g)
    s1t = s1.T
    s2 = _group_select(cout, g)
    s2t = s2.T

    kernel = functools.partial(resblock_kernel, hh=hh, ww=ww, eps=EPS)
    return pl.pallas_call(
        kernel,
        out_shape=jax.ShapeDtypeStruct((b, hw, cout), jnp.float32),
        grid=(b,),
        in_specs=[
            pl.BlockSpec((1, hw, cin), lambda i: (i, 0, 0)),          # x (per batch)
            _full_spec(t),
            _full_spec(g1), _full_spec(be1), _full_spec(s1), _full_spec(s1t),
            _full_spec(w1), _full_spec(cb1),
            _full_spec(wt), _full_spec(bt),
            _full_spec(g2), _full_spec(be2), _full_spec(s2), _full_spec(s2t),
            _full_spec(w2), _full_spec(cb2),
            _full_spec(wsc), _full_spec(bsc),
        ],
        out_specs=pl.BlockSpec((1, hw, cout), lambda i: (i, 0, 0)),
        scratch_shapes=[pltpu.VMEM((hh + 2, ww + 2, cin), jnp.float32),
                        pltpu.VMEM((hh + 2, ww + 2, cout), jnp.float32)],
        compiler_params=pltpu.CompilerParams(
            dimension_semantics=("parallel",),
            internal_scratch_in_bytes=2 * 1024 * 1024),
    )(x_flat, t, g1, be1, s1, s1t, w1, cb1, wt, bt,
      g2, be2, s2, s2t, w2, cb2, wsc, bsc)


def pallas_attention(x_flat, p):
    """x_flat: [B, S, C] f32 -> [B, S, C] f32 (fully fused attention block)."""
    b, s, c = x_flat.shape
    wqkv = p['proj']['w'].T.astype(jnp.bfloat16)                      # [C, 3C]
    bqkv = p['proj']['b'].reshape(1, 3 * c).astype(jnp.float32)
    wo = p['out']['w'].T.astype(jnp.bfloat16)                         # [C, C]
    bo = p['out']['b'].reshape(1, c).astype(jnp.float32)
    scale = float(c) ** -0.5                                          # d_k = C

    kernel = functools.partial(attention_kernel, scale=scale, n_ch=c)
    return pl.pallas_call(
        kernel,
        out_shape=jax.ShapeDtypeStruct((b, s, c), jnp.float32),
        grid=(b,),
        in_specs=[
            pl.BlockSpec((1, s, c), lambda i: (i, 0, 0)),
            _full_spec(wqkv), _full_spec(bqkv), _full_spec(wo), _full_spec(bo),
        ],
        out_specs=pl.BlockSpec((1, s, c), lambda i: (i, 0, 0)),
        compiler_params=pltpu.CompilerParams(dimension_semantics=("parallel",)),
    )(x_flat, wqkv, bqkv, wo, bo)


# ========================== parameter initialization =========================

class ParamGen:
    def __init__(self, seed=0, scale=0.05):
        self.key = jax.random.PRNGKey(seed)
        self.scale = scale

    def next(self, shape):
        self.key, sub = jax.random.split(self.key)
        return self.scale * jax.random.normal(sub, shape, dtype=jnp.float32)


def init_conv(pg, cin, cout, k):
    return {'w': pg.next((cout, cin, k, k)), 'b': pg.next((cout,))}


def init_linear(pg, cin, cout):
    return {'w': pg.next((cout, cin)), 'b': pg.next((cout,))}


def init_gn(c):
    return {'g': jnp.ones((c,), jnp.float32), 'b': jnp.zeros((c,), jnp.float32)}


def init_upblock(pg, in_ch, out_ch, time_ch, has_attn):
    cin = in_ch + out_ch                       # UpBlock: ResidualBlock(in+out, out)
    res = {
        'norm1': init_gn(cin),
        'conv1': init_conv(pg, cin, out_ch, 3),
        'norm2': init_gn(out_ch),
        'conv2': init_conv(pg, out_ch, out_ch, 3),
        'time_emb': init_linear(pg, time_ch, out_ch),
        'shortcut': init_conv(pg, cin, out_ch, 1),   # cin != cout always for UpBlock
    }
    attn = None
    if has_attn:
        attn = {'proj': init_linear(pg, out_ch, 3 * out_ch),
                'out': init_linear(pg, out_ch, out_ch)}
    return {'res': res, 'attn': attn}


# =============================== forward pass ================================

def upblock_forward(params, x_nchw, t):
    """x: [B, in_ch+out_ch, H, W]; t: [B, time_ch] -> [B, out_ch, H, W]."""
    b, c, hh, ww = x_nchw.shape
    hw = hh * ww
    # NCHW -> NHWC-flat once (channels on the lane dim for every kernel).
    x = jnp.transpose(x_nchw, (0, 2, 3, 1)).reshape(b, hw, c)
    x = pallas_resblock(x, t, params['res'], hh=hh, ww=ww)
    if params['attn'] is not None:
        x = pallas_attention(x, params['attn'])
    cout = x.shape[-1]
    # NHWC-flat -> NCHW once at the module boundary.
    return jnp.transpose(x.reshape(b, hh, ww, cout), (0, 3, 1, 2))


# ==================================== main ===================================

if __name__ == "__main__":
    key = jax.random.PRNGKey(0)
    kx, kt = jax.random.split(key)
    x = jax.random.normal(kx, (B, IN_CH + OUT_CH, H, W), dtype=jnp.float32)
    t = jax.random.uniform(kt, (B, TIME_CH), dtype=jnp.float32,
                           minval=0.0, maxval=100.0)

    pg = ParamGen(seed=0)
    params = init_upblock(pg, IN_CH, OUT_CH, TIME_CH, HAS_ATTN)

    fwd = jax.jit(lambda xx, tt: upblock_forward(params, xx, tt))
    out = fwd(x, t)
    jax.block_until_ready(out)

    assert out.shape == (B, OUT_CH, H, W), out.shape
    assert bool(jnp.all(jnp.isfinite(out)))
    print("KERNEL_OK")
</pallas_src>

<mosaic_0001>
module attributes {stable_mosaic.version = 11 : i64} {
  func.func @attention_kernel(%arg0: i32, %arg1: memref<1x256x64xf32, #tpu.memory_space<vmem>>, %arg2: memref<64x192xbf16, #tpu.memory_space<vmem>>, %arg3: memref<1x192xf32, #tpu.memory_space<vmem>>, %arg4: memref<64x64xbf16, #tpu.memory_space<vmem>>, %arg5: memref<1x64xf32, #tpu.memory_space<vmem>>, %arg6: memref<1x256x64xf32, #tpu.memory_space<vmem>>) attributes {dimension_semantics = [#tpu.dimension_semantics<parallel>], iteration_bounds = array<i64: 2>, scalar_prefetch = 0 : i64, scratch_operands = 0 : i64, tpu.core_type = #tpu.core_type<tc>, window_params = [{transform_indices = @transform_0, window_bounds = array<i64: 1, 256, 64>}, {pipeline_mode = #tpu.pipeline_mode<synchronous>, transform_indices = @transform_1, window_bounds = array<i64: 64, 192>}, {pipeline_mode = #tpu.pipeline_mode<synchronous>, transform_indices = @transform_2, window_bounds = array<i64: 1, 192>}, {pipeline_mode = #tpu.pipeline_mode<synchronous>, transform_indices = @transform_3, window_bounds = array<i64: 64, 64>}, {pipeline_mode = #tpu.pipeline_mode<synchronous>, transform_indices = @transform_4, window_bounds = array<i64: 1, 64>}, {transform_indices = @transform_5, window_bounds = array<i64: 1, 256, 64>}]} {
    %c0 = arith.constant 0 : index
    %c0_0 = arith.constant 0 : index
    %c0_1 = arith.constant 0 : index
    %0 = vector.load %arg1[%c0, %c0_0, %c0_1] : memref<1x256x64xf32, #tpu.memory_space<vmem>>, vector<1x256x64xf32>
    %1 = vector.shape_cast %0 : vector<1x256x64xf32> to vector<256x64xf32>
    %2 = arith.truncf %1 : vector<256x64xf32> to vector<256x64xbf16>
    %c0_2 = arith.constant 0 : index
    %c0_3 = arith.constant 0 : index
    %3 = vector.load %arg2[%c0_2, %c0_3] : memref<64x192xbf16, #tpu.memory_space<vmem>>, vector<64x192xbf16>
    %cst = arith.constant dense<0.000000e+00> : vector<256x192xf32>
    %4 = tpu.matmul %2, %3, %cst {dimension_numbers = #tpu.dot_dimension_numbers<[1], [0], [0], [1], [0, 0, 1, 1], [], []>} : vector<256x64xbf16>, vector<64x192xbf16>, vector<256x192xf32> -> vector<256x192xf32>
    %c0_4 = arith.constant 0 : index
    %c0_5 = arith.constant 0 : index
    %5 = vector.load %arg3[%c0_4, %c0_5] : memref<1x192xf32, #tpu.memory_space<vmem>>, vector<1x192xf32>
    %6 = vector.broadcast %5 : vector<1x192xf32> to vector<256x192xf32>
    %7 = arith.addf %4, %6 : vector<256x192xf32>
    %8 = vector.extract_strided_slice %7 {offsets = [0, 0], sizes = [256, 64], strides = [1, 1]} : vector<256x192xf32> to vector<256x64xf32>
    %9 = arith.truncf %8 : vector<256x64xf32> to vector<256x64xbf16>
    %10 = vector.extract_strided_slice %7 {offsets = [0, 64], sizes = [256, 64], strides = [1, 1]} : vector<256x192xf32> to vector<256x64xf32>
    %11 = arith.truncf %10 : vector<256x64xf32> to vector<256x64xbf16>
    %12 = vector.extract_strided_slice %7 {offsets = [0, 128], sizes = [256, 64], strides = [1, 1]} : vector<256x192xf32> to vector<256x64xf32>
    %13 = arith.truncf %12 : vector<256x64xf32> to vector<256x64xbf16>
    %cst_6 = arith.constant dense<0.000000e+00> : vector<256x256xf32>
    %14 = tpu.matmul %9, %11, %cst_6 {dimension_numbers = #tpu.dot_dimension_numbers<[1], [1], [0], [0], [0, 0, 1, 0], [], []>} : vector<256x64xbf16>, vector<256x64xbf16>, vector<256x256xf32> -> vector<256x256xf32>
    %cst_7 = arith.constant 1.250000e-01 : f32
    %15 = vector.broadcast %cst_7 : f32 to vector<256x256xf32>
    %16 = arith.mulf %14, %15 : vector<256x256xf32>
    %cst_8 = arith.constant dense<0xFF800000> : vector<256xf32>
    %17 = vector.multi_reduction <maximumf>, %16, %cst_8 [1] : vector<256x256xf32> to vector<256xf32>
    %18 = vector.shape_cast %17 : vector<256xf32> to vector<256x1xf32>
    %19 = vector.broadcast %18 : vector<256x1xf32> to vector<256x256xf32>
    %20 = arith.subf %16, %19 : vector<256x256xf32>
    %21 = math.exp %20 : vector<256x256xf32>
    %cst_9 = arith.constant dense<0.000000e+00> : vector<256xf32>
    %22 = vector.multi_reduction <add>, %21, %cst_9 [1] : vector<256x256xf32> to vector<256xf32>
    %23 = vector.shape_cast %22 : vector<256xf32> to vector<256x1xf32>
    %24 = tpu.reciprocal %23 {approx = true} : vector<256x1xf32> -> vector<256x1xf32>
    %25 = vector.broadcast %24 : vector<256x1xf32> to vector<256x256xf32>
    %26 = arith.mulf %21, %25 : vector<256x256xf32>
    %27 = arith.truncf %26 : vector<256x256xf32> to vector<256x256xbf16>
    %cst_10 = arith.constant dense<0.000000e+00> : vector<256x64xf32>
    %28 = tpu.matmul %27, %13, %cst_10 {dimension_numbers = #tpu.dot_dimension_numbers<[1], [0], [0], [1], [0, 0, 1, 1], [], []>} : vector<256x256xbf16>, vector<256x64xbf16>, vector<256x64xf32> -> vector<256x64xf32>
    %29 = arith.truncf %28 : vector<256x64xf32> to vector<256x64xbf16>
    %c0_11 = arith.constant 0 : index
    %c0_12 = arith.constant 0 : index
    %30 = vector.load %arg4[%c0_11, %c0_12] : memref<64x64xbf16, #tpu.memory_space<vmem>>, vector<64x64xbf16>
    %cst_13 = arith.constant dense<0.000000e+00> : vector<256x64xf32>
    %31 = tpu.matmul %29, %30, %cst_13 {dimension_numbers = #tpu.dot_dimension_numbers<[1], [0], [0], [1], [0, 0, 1, 1], [], []>} : vector<256x64xbf16>, vector<64x64xbf16>, vector<256x64xf32> -> vector<256x64xf32>
    %c0_14 = arith.constant 0 : index
    %c0_15 = arith.constant 0 : index
    %32 = vector.load %arg5[%c0_14, %c0_15] : memref<1x64xf32, #tpu.memory_space<vmem>>, vector<1x64xf32>
    %33 = vector.broadcast %32 : vector<1x64xf32> to vector<256x64xf32>
    %34 = arith.addf %31, %33 : vector<256x64xf32>
    %35 = arith.addf %34, %1 : vector<256x64xf32>
    %c0_16 = arith.constant 0 : index
    %c0_17 = arith.constant 0 : index
    %c0_18 = arith.constant 0 : index
    %36 = vector.load %arg6[%c0_16, %c0_17, %c0_18] : memref<1x256x64xf32, #tpu.memory_space<vmem>>, vector<1x256x64xf32>
    %37 = vector.shape_cast %36 : vector<1x256x64xf32> to vector<256x64xf32>
    %38 = vector.shape_cast %35 : vector<256x64xf32> to vector<1x256x64xf32>
    tpu.vector_store %arg6[%c0_16, %c0_17, %c0_18], %38 {strides = array<i32>} : memref<1x256x64xf32, #tpu.memory_space<vmem>>, vector<1x256x64xf32>,
    return
  }
  func.func @transform_0(%arg0: i32) -> (i32, i32, i32) {
    %c0_i32 = arith.constant 0 : i32
    %c0_i32_0 = arith.constant 0 : i32
    %c0_i32_1 = arith.constant 0 : i32
    return %arg0, %c0_i32, %c0_i32_0 : i32, i32, i32
  }
  func.func @transform_1(%arg0: i32) -> (i32, i32) {
    %c0_i32 = arith.constant 0 : i32
    %c0_i32_0 = arith.constant 0 : i32
    %c0_i32_1 = arith.constant 0 : i32
    return %c0_i32, %c0_i32_0 : i32, i32
  }
  func.func @transform_2(%arg0: i32) -> (i32, i32) {
    %c0_i32 = arith.constant 0 : i32
    %c0_i32_0 = arith.constant 0 : i32
    %c0_i32_1 = arith.constant 0 : i32
    return %c0_i32, %c0_i32_0 : i32, i32
  }
  func.func @transform_3(%arg0: i32) -> (i32, i32) {
    %c0_i32 = arith.constant 0 : i32
    %c0_i32_0 = arith.constant 0 : i32
    %c0_i32_1 = arith.constant 0 : i32
    return %c0_i32, %c0_i32_0 : i32, i32
  }
  func.func @transform_4(%arg0: i32) -> (i32, i32) {
    %c0_i32 = arith.constant 0 : i32
    %c0_i32_0 = arith.constant 0 : i32
    %c0_i32_1 = arith.constant 0 : i32
    return %c0_i32, %c0_i32_0 : i32, i32
  }
  func.func @transform_5(%arg0: i32) -> (i32, i32, i32) {
    %c0_i32 = arith.constant 0 : i32
    %c0_i32_0 = arith.constant 0 : i32
    %c0_i32_1 = arith.constant 0 : i32
    return %arg0, %c0_i32, %c0_i32_0 : i32, i32, i32
  }
}

module attributes {stable_mosaic.version = 11 : i64} {
  func.func @resblock_kernel(%arg0: i32, %arg1: memref<1x256x128xf32, #tpu.memory_space<vmem>>, %arg2: memref<2x128xf32, #tpu.memory_space<vmem>>, %arg3: memref<1x128xf32, #tpu.memory_space<vmem>>, %arg4: memref<1x128xf32, #tpu.memory_space<vmem>>, %arg5: memref<128x32xf32, #tpu.memory_space<vmem>>, %arg6: memref<32x128xf32, #tpu.memory_space<vmem>>, %arg7: memref<9x128x64xbf16, #tpu.memory_space<vmem>>, %arg8: memref<1x64xf32, #tpu.memory_space<vmem>>, %arg9: memref<128x64xbf16, #tpu.memory_space<vmem>>, %arg10: memref<1x64xf32, #tpu.memory_space<vmem>>, %arg11: memref<1x64xf32, #tpu.memory_space<vmem>>, %arg12: memref<1x64xf32, #tpu.memory_space<vmem>>, %arg13: memref<64x32xf32, #tpu.memory_space<vmem>>, %arg14: memref<32x64xf32, #tpu.memory_space<vmem>>, %arg15: memref<9x64x64xbf16, #tpu.memory_space<vmem>>, %arg16: memref<1x64xf32, #tpu.memory_space<vmem>>, %arg17: memref<128x64xbf16, #tpu.memory_space<vmem>>, %arg18: memref<1x64xf32, #tpu.memory_space<vmem>>, %arg19: memref<1x256x64xf32, #tpu.memory_space<vmem>>, %arg20: memref<18x18x128xf32, #tpu.memory_space<vmem>>, %arg21: memref<18x18x64xf32, #tpu.memory_space<vmem>>) attributes {dimension_semantics = [#tpu.dimension_semantics<parallel>], iteration_bounds = array<i64: 2>, scalar_prefetch = 0 : i64, scratch_operands = 2 : i64, tpu.core_type = #tpu.core_type<tc>, window_params = [{transform_indices = @transform_0, window_bounds = array<i64: 1, 256, 128>}, {pipeline_mode = #tpu.pipeline_mode<synchronous>, transform_indices = @transform_1, window_bounds = array<i64: 2, 128>}, {pipeline_mode = #tpu.pipeline_mode<synchronous>, transform_indices = @transform_2, window_bounds = array<i64: 1, 128>}, {pipeline_mode = #tpu.pipeline_mode<synchronous>, transform_indices = @transform_3, window_bounds = array<i64: 1, 128>}, {pipeline_mode = #tpu.pipeline_mode<synchronous>, transform_indices = @transform_4, window_bounds = array<i64: 128, 32>}, {pipeline_mode = #tpu.pipeline_mode<synchronous>, transform_indices = @transform_5, window_bounds = array<i64: 32, 128>}, {pipeline_mode = #tpu.pipeline_mode<synchronous>, transform_indices = @transform_6, window_bounds = array<i64: 9, 128, 64>}, {pipeline_mode = #tpu.pipeline_mode<synchronous>, transform_indices = @transform_7, window_bounds = array<i64: 1, 64>}, {pipeline_mode = #tpu.pipeline_mode<synchronous>, transform_indices = @transform_8, window_bounds = array<i64: 128, 64>}, {pipeline_mode = #tpu.pipeline_mode<synchronous>, transform_indices = @transform_9, window_bounds = array<i64: 1, 64>}, {pipeline_mode = #tpu.pipeline_mode<synchronous>, transform_indices = @transform_10, window_bounds = array<i64: 1, 64>}, {pipeline_mode = #tpu.pipeline_mode<synchronous>, transform_indices = @transform_11, window_bounds = array<i64: 1, 64>}, {pipeline_mode = #tpu.pipeline_mode<synchronous>, transform_indices = @transform_12, window_bounds = array<i64: 64, 32>}, {pipeline_mode = #tpu.pipeline_mode<synchronous>, transform_indices = @transform_13, window_bounds = array<i64: 32, 64>}, {pipeline_mode = #tpu.pipeline_mode<synchronous>, transform_indices = @transform_14, window_bounds = array<i64: 9, 64, 64>}, {pipeline_mode = #tpu.pipeline_mode<synchronous>, transform_indices = @transform_15, window_bounds = array<i64: 1, 64>}, {pipeline_mode = #tpu.pipeline_mode<synchronous>, transform_indices = @transform_16, window_bounds = array<i64: 128, 64>}, {pipeline_mode = #tpu.pipeline_mode<synchronous>, transform_indices = @transform_17, window_bounds = array<i64: 1, 64>}, {transform_indices = @transform_18, window_bounds = array<i64: 1, 256, 64>}]} {
    %c0 = arith.constant 0 : index
    %c0_0 = arith.constant 0 : index
    %c0_1 = arith.constant 0 : index
    %0 = vector.load %arg1[%c0, %c0_0, %c0_1] : memref<1x256x128xf32, #tpu.memory_space<vmem>>, vector<1x256x128xf32>
    %1 = vector.shape_cast %0 : vector<1x256x128xf32> to vector<256x128xf32>
    %2 = arith.truncf %1 : vector<256x128xf32> to vector<256x128xbf16>
    %c0_2 = arith.constant 0 : index
    %c0_3 = arith.constant 0 : index
    %3 = vector.load %arg17[%c0_2, %c0_3] : memref<128x64xbf16, #tpu.memory_space<vmem>>, vector<128x64xbf16>
    %cst = arith.constant dense<0.000000e+00> : vector<256x64xf32>
    %4 = tpu.matmul %2, %3, %cst {dimension_numbers = #tpu.dot_dimension_numbers<[1], [0], [0], [1], [0, 0, 1, 1], [], []>} : vector<256x128xbf16>, vector<128x64xbf16>, vector<256x64xf32> -> vector<256x64xf32>
    %c0_4 = arith.constant 0 : index
    %c0_5 = arith.constant 0 : index
    %5 = vector.load %arg18[%c0_4, %c0_5] : memref<1x64xf32, #tpu.memory_space<vmem>>, vector<1x64xf32>
    %6 = vector.broadcast %5 : vector<1x64xf32> to vector<256x64xf32>
    %7 = arith.addf %4, %6 : vector<256x64xf32>
    %cst_6 = arith.constant dense<0.000000e+00> : vector<128xf32>
    %8 = vector.multi_reduction <add>, %1, %cst_6 [0] : vector<256x128xf32> to vector<128xf32>
    %9 = vector.shape_cast %8 : vector<128xf32> to vector<1x128xf32>
    %10 = arith.mulf %1, %1 : vector<256x128xf32>
    %cst_7 = arith.constant dense<0.000000e+00> : vector<128xf32>
    %11 = vector.multi_reduction <add>, %10, %cst_7 [0] : vector<256x128xf32> to vector<128xf32>
    %12 = vector.shape_cast %11 : vector<128xf32> to vector<1x128xf32>
    %c0_8 = arith.constant 0 : index
    %c0_9 = arith.constant 0 : index
    %13 = vector.load %arg5[%c0_8, %c0_9] : memref<128x32xf32, #tpu.memory_space<vmem>>, vector<128x32xf32>
    %cst_10 = arith.constant dense<0.000000e+00> : vector<1x32xf32>
    %14 = tpu.matmul %9, %13, %cst_10 {dimension_numbers = #tpu.dot_dimension_numbers<[1], [0], [0], [1], [0, 0, 1, 1], [], []>} : vector<1x128xf32>, vector<128x32xf32>, vector<1x32xf32> -> vector<1x32xf32>
    %c0_11 = arith.constant 0 : index
    %c0_12 = arith.constant 0 : index
    %15 = vector.load %arg5[%c0_11, %c0_12] : memref<128x32xf32, #tpu.memory_space<vmem>>, vector<128x32xf32>
    %cst_13 = arith.constant dense<0.000000e+00> : vector<1x32xf32>
    %16 = tpu.matmul %12, %15, %cst_13 {dimension_numbers = #tpu.dot_dimension_numbers<[1], [0], [0], [1], [0, 0, 1, 1], [], []>} : vector<1x128xf32>, vector<128x32xf32>, vector<1x32xf32> -> vector<1x32xf32>
    %cst_14 = arith.constant 9.765625E-4 : f32
    %17 = vector.broadcast %cst_14 : f32 to vector<1x32xf32>
    %18 = arith.mulf %14, %17 : vector<1x32xf32>
    %cst_15 = arith.constant 9.765625E-4 : f32
    %19 = vector.broadcast %cst_15 : f32 to vector<1x32xf32>
    %20 = arith.mulf %16, %19 : vector<1x32xf32>
    %21 = arith.mulf %18, %18 : vector<1x32xf32>
    %22 = arith.subf %20, %21 : vector<1x32xf32>
    %cst_16 = arith.constant 9.99999974E-6 : f32
    %23 = vector.broadcast %cst_16 : f32 to vector<1x32xf32>
    %24 = arith.addf %22, %23 : vector<1x32xf32>
    %25 = math.rsqrt %24 : vector<1x32xf32>
    %c0_17 = arith.constant 0 : index
    %c0_18 = arith.constant 0 : index
    %26 = vector.load %arg6[%c0_17, %c0_18] : memref<32x128xf32, #tpu.memory_space<vmem>>, vector<32x128xf32>
    %cst_19 = arith.constant dense<0.000000e+00> : vector<1x128xf32>
    %27 = tpu.matmul %18, %26, %cst_19 {dimension_numbers = #tpu.dot_dimension_numbers<[1], [0], [0], [1], [0, 0, 1, 1], [], []>} : vector<1x32xf32>, vector<32x128xf32>, vector<1x128xf32> -> vector<1x128xf32>
    %c0_20 = arith.constant 0 : index
    %c0_21 = arith.constant 0 : index
    %28 = vector.load %arg6[%c0_20, %c0_21] : memref<32x128xf32, #tpu.memory_space<vmem>>, vector<32x128xf32>
    %cst_22 = arith.constant dense<0.000000e+00> : vector<1x128xf32>
    %29 = tpu.matmul %25, %28, %cst_22 {dimension_numbers = #tpu.dot_dimension_numbers<[1], [0], [0], [1], [0, 0, 1, 1], [], []>} : vector<1x32xf32>, vector<32x128xf32>, vector<1x128xf32> -> vector<1x128xf32>
    %30 = vector.broadcast %27 : vector<1x128xf32> to vector<256x128xf32>
    %31 = arith.subf %1, %30 : vector<256x128xf32>
    %32 = vector.broadcast %29 : vector<1x128xf32> to vector<256x128xf32>
    %33 = arith.mulf %31, %32 : vector<256x128xf32>
    %c0_23 = arith.constant 0 : index
    %c0_24 = arith.constant 0 : index
    %34 = vector.load %arg3[%c0_23, %c0_24] : memref<1x128xf32, #tpu.memory_space<vmem>>, vector<1x128xf32>
    %35 = vector.broadcast %34 : vector<1x128xf32> to vector<256x128xf32>
    %36 = arith.mulf %33, %35 : vector<256x128xf32>
    %c0_25 = arith.constant 0 : index
    %c0_26 = arith.constant 0 : index
    %37 = vector.load %arg4[%c0_25, %c0_26] : memref<1x128xf32, #tpu.memory_space<vmem>>, vector<1x128xf32>
    %38 = vector.broadcast %37 : vector<1x128xf32> to vector<256x128xf32>
    %39 = arith.addf %36, %38 : vector<256x128xf32>
    %cst_27 = arith.constant 0.000000e+00 : f32
    %40 = vector.broadcast %cst_27 : f32 to vector<256x128xf32>
    %41 = arith.subf %40, %39 : vector<256x128xf32>
    %42 = math.exp %41 : vector<256x128xf32>
    %cst_28 = arith.constant 1.000000e+00 : f32
    %43 = vector.broadcast %cst_28 : f32 to vector<256x128xf32>
    %44 = arith.addf %43, %42 : vector<256x128xf32>
    %45 = tpu.reciprocal %44 {approx = true} : vector<256x128xf32> -> vector<256x128xf32>
    %46 = arith.mulf %39, %45 : vector<256x128xf32>
    %cst_29 = arith.constant 0.000000e+00 : f32
    %47 = vector.broadcast %cst_29 : f32 to vector<18x18x128xf32>
    %c0_30 = arith.constant 0 : index
    %c0_31 = arith.constant 0 : index
    %c0_32 = arith.constant 0 : index
    %48 = vector.load %arg20[%c0_30, %c0_31, %c0_32] : memref<18x18x128xf32, #tpu.memory_space<vmem>>, vector<18x18x128xf32>
    tpu.vector_store %arg20[%c0_30, %c0_31, %c0_32], %47 {strides = array<i32>} : memref<18x18x128xf32, #tpu.memory_space<vmem>>, vector<18x18x128xf32>,
    %49 = vector.shape_cast %46 : vector<256x128xf32> to vector<16x16x128xf32>
    %c1 = arith.constant 1 : index
    %c1_33 = arith.constant 1 : index
    %c0_34 = arith.constant 0 : index
    %50 = vector.load %arg20[%c1, %c1_33, %c0_34] : memref<18x18x128xf32, #tpu.memory_space<vmem>>, vector<16x16x128xf32>
    tpu.vector_store %arg20[%c1, %c1_33, %c0_34], %49 {strides = array<i32>} : memref<18x18x128xf32, #tpu.memory_space<vmem>>, vector<16x16x128xf32>,
    %cst_35 = arith.constant 0.000000e+00 : f32
    %51 = vector.broadcast %cst_35 : f32 to vector<256x64xf32>
    %c0_36 = arith.constant 0 : index
    %c0_37 = arith.constant 0 : index
    %c0_38 = arith.constant 0 : index
    %52 = vector.load %arg20[%c0_36, %c0_37, %c0_38] : memref<18x18x128xf32, #tpu.memory_space<vmem>>, vector<16x16x128xf32>
    %53 = vector.shape_cast %52 : vector<16x16x128xf32> to vector<256x128xf32>
    %54 = arith.truncf %53 : vector<256x128xf32> to vector<256x128xbf16>
    %c0_39 = arith.constant 0 : index
    %c0_40 = arith.constant 0 : index
    %c0_41 = arith.constant 0 : index
    %55 = vector.load %arg7[%c0_39, %c0_40, %c0_41] : memref<9x128x64xbf16, #tpu.memory_space<vmem>>, vector<1x128x64xbf16>
    %56 = vector.shape_cast %55 : vector<1x128x64xbf16> to vector<128x64xbf16>
    %cst_42 = arith.constant dense<0.000000e+00> : vector<256x64xf32>
    %57 = tpu.matmul %54, %56, %cst_42 {dimension_numbers = #tpu.dot_dimension_numbers<[1], [0], [0], [1], [0, 0, 1, 1], [], []>} : vector<256x128xbf16>, vector<128x64xbf16>, vector<256x64xf32> -> vector<256x64xf32>
    %58 = arith.addf %51, %57 : vector<256x64xf32>
    %c0_43 = arith.constant 0 : index
    %c1_44 = arith.constant 1 : index
    %c0_45 = arith.constant 0 : index
    %59 = vector.load %arg20[%c0_43, %c1_44, %c0_45] : memref<18x18x128xf32, #tpu.memory_space<vmem>>, vector<16x16x128xf32>
    %60 = vector.shape_cast %59 : vector<16x16x128xf32> to vector<256x128xf32>
    %61 = arith.truncf %60 : vector<256x128xf32> to vector<256x128xbf16>
    %c1_46 = arith.constant 1 : index
    %c0_47 = arith.constant 0 : index
    %c0_48 = arith.constant 0 : index
    %62 = vector.load %arg7[%c1_46, %c0_47, %c0_48] : memref<9x128x64xbf16, #tpu.memory_space<vmem>>, vector<1x128x64xbf16>
    %63 = vector.shape_cast %62 : vector<1x128x64xbf16> to vector<128x64xbf16>
    %cst_49 = arith.constant dense<0.000000e+00> : vector<256x64xf32>
    %64 = tpu.matmul %61, %63, %cst_49 {dimension_numbers = #tpu.dot_dimension_numbers<[1], [0], [0], [1], [0, 0, 1, 1], [], []>} : vector<256x128xbf16>, vector<128x64xbf16>, vector<256x64xf32> -> vector<256x64xf32>
    %65 = arith.addf %58, %64 : vector<256x64xf32>
    %c0_50 = arith.constant 0 : index
    %c2 = arith.constant 2 : index
    %c0_51 = arith.constant 0 : index
    %66 = vector.load %arg20[%c0_50, %c2, %c0_51] : memref<18x18x128xf32, #tpu.memory_space<vmem>>, vector<16x16x128xf32>
    %67 = vector.shape_cast %66 : vector<16x16x128xf32> to vector<256x128xf32>
    %68 = arith.truncf %67 : vector<256x128xf32> to vector<256x128xbf16>
    %c2_52 = arith.constant 2 : index
    %c0_53 = arith.constant 0 : index
    %c0_54 = arith.constant 0 : index
    %69 = vector.load %arg7[%c2_52, %c0_53, %c0_54] : memref<9x128x64xbf16, #tpu.memory_space<vmem>>, vector<1x128x64xbf16>
    %70 = vector.shape_cast %69 : vector<1x128x64xbf16> to vector<128x64xbf16>
    %cst_55 = arith.constant dense<0.000000e+00> : vector<256x64xf32>
    %71 = tpu.matmul %68, %70, %cst_55 {dimension_numbers = #tpu.dot_dimension_numbers<[1], [0], [0], [1], [0, 0, 1, 1], [], []>} : vector<256x128xbf16>, vector<128x64xbf16>, vector<256x64xf32> -> vector<256x64xf32>
    %72 = arith.addf %65, %71 : vector<256x64xf32>
    %c1_56 = arith.constant 1 : index
    %c0_57 = arith.constant 0 : index
    %c0_58 = arith.constant 0 : index
    %73 = vector.load %arg20[%c1_56, %c0_57, %c0_58] : memref<18x18x128xf32, #tpu.memory_space<vmem>>, vector<16x16x128xf32>
    %74 = vector.shape_cast %73 : vector<16x16x128xf32> to vector<256x128xf32>
    %75 = arith.truncf %74 : vector<256x128xf32> to vector<256x128xbf16>
    %c3 = arith.constant 3 : index
    %c0_59 = arith.constant 0 : index
    %c0_60 = arith.constant 0 : index
    %76 = vector.load %arg7[%c3, %c0_59, %c0_60] : memref<9x128x64xbf16, #tpu.memory_space<vmem>>, vector<1x128x64xbf16>
    %77 = vector.shape_cast %76 : vector<1x128x64xbf16> to vector<128x64xbf16>
    %cst_61 = arith.constant dense<0.000000e+00> : vector<256x64xf32>
    %78 = tpu.matmul %75, %77, %cst_61 {dimension_numbers = #tpu.dot_dimension_numbers<[1], [0], [0], [1], [0, 0, 1, 1], [], []>} : vector<256x128xbf16>, vector<128x64xbf16>, vector<256x64xf32> -> vector<256x64xf32>
    %79 = arith.addf %72, %78 : vector<256x64xf32>
    %c1_62 = arith.constant 1 : index
    %c1_63 = arith.constant 1 : index
    %c0_64 = arith.constant 0 : index
    %80 = vector.load %arg20[%c1_62, %c1_63, %c0_64] : memref<18x18x128xf32, #tpu.memory_space<vmem>>, vector<16x16x128xf32>
    %81 = vector.shape_cast %80 : vector<16x16x128xf32> to vector<256x128xf32>
    %82 = arith.truncf %81 : vector<256x128xf32> to vector<256x128xbf16>
    %c4 = arith.constant 4 : index
    %c0_65 = arith.constant 0 : index
    %c0_66 = arith.constant 0 : index
    %83 = vector.load %arg7[%c4, %c0_65, %c0_66] : memref<9x128x64xbf16, #tpu.memory_space<vmem>>, vector<1x128x64xbf16>
    %84 = vector.shape_cast %83 : vector<1x128x64xbf16> to vector<128x64xbf16>
    %cst_67 = arith.constant dense<0.000000e+00> : vector<256x64xf32>
    %85 = tpu.matmul %82, %84, %cst_67 {dimension_numbers = #tpu.dot_dimension_numbers<[1], [0], [0], [1], [0, 0, 1, 1], [], []>} : vector<256x128xbf16>, vector<128x64xbf16>, vector<256x64xf32> -> vector<256x64xf32>
    %86 = arith.addf %79, %85 : vector<256x64xf32>
    %c1_68 = arith.constant 1 : index
    %c2_69 = arith.constant 2 : index
    %c0_70 = arith.constant 0 : index
    %87 = vector.load %arg20[%c1_68, %c2_69, %c0_70] : memref<18x18x128xf32, #tpu.memory_space<vmem>>, vector<16x16x128xf32>
    %88 = vector.shape_cast %87 : vector<16x16x128xf32> to vector<256x128xf32>
    %89 = arith.truncf %88 : vector<256x128xf32> to vector<256x128xbf16>
    %c5 = arith.constant 5 : index
    %c0_71 = arith.constant 0 : index
    %c0_72 = arith.constant 0 : index
    %90 = vector.load %arg7[%c5, %c0_71, %c0_72] : memref<9x128x64xbf16, #tpu.memory_space<vmem>>, vector<1x128x64xbf16>
    %91 = vector.shape_cast %90 : vector<1x128x64xbf16> to vector<128x64xbf16>
    %cst_73 = arith.constant dense<0.000000e+00> : vector<256x64xf32>
    %92 = tpu.matmul %89, %91, %cst_73 {dimension_numbers = #tpu.dot_dimension_numbers<[1], [0], [0], [1], [0, 0, 1, 1], [], []>} : vector<256x128xbf16>, vector<128x64xbf16>, vector<256x64xf32> -> vector<256x64xf32>
    %93 = arith.addf %86, %92 : vector<256x64xf32>
    %c2_74 = arith.constant 2 : index
    %c0_75 = arith.constant 0 : index
    %c0_76 = arith.constant 0 : index
    %94 = vector.load %arg20[%c2_74, %c0_75, %c0_76] : memref<18x18x128xf32, #tpu.memory_space<vmem>>, vector<16x16x128xf32>
    %95 = vector.shape_cast %94 : vector<16x16x128xf32> to vector<256x128xf32>
    %96 = arith.truncf %95 : vector<256x128xf32> to vector<256x128xbf16>
    %c6 = arith.constant 6 : index
    %c0_77 = arith.constant 0 : index
    %c0_78 = arith.constant 0 : index
    %97 = vector.load %arg7[%c6, %c0_77, %c0_78] : memref<9x128x64xbf16, #tpu.memory_space<vmem>>, vector<1x128x64xbf16>
    %98 = vector.shape_cast %97 : vector<1x128x64xbf16> to vector<128x64xbf16>
    %cst_79 = arith.constant dense<0.000000e+00> : vector<256x64xf32>
    %99 = tpu.matmul %96, %98, %cst_79 {dimension_numbers = #tpu.dot_dimension_numbers<[1], [0], [0], [1], [0, 0, 1, 1], [], []>} : vector<256x128xbf16>, vector<128x64xbf16>, vector<256x64xf32> -> vector<256x64xf32>
    %100 = arith.addf %93, %99 : vector<256x64xf32>
    %c2_80 = arith.constant 2 : index
    %c1_81 = arith.constant 1 : index
    %c0_82 = arith.constant 0 : index
    %101 = vector.load %arg20[%c2_80, %c1_81, %c0_82] : memref<18x18x128xf32, #tpu.memory_space<vmem>>, vector<16x16x128xf32>
    %102 = vector.shape_cast %101 : vector<16x16x128xf32> to vector<256x128xf32>
    %103 = arith.truncf %102 : vector<256x128xf32> to vector<256x128xbf16>
    %c7 = arith.constant 7 : index
    %c0_83 = arith.constant 0 : index
    %c0_84 = arith.constant 0 : index
    %104 = vector.load %arg7[%c7, %c0_83, %c0_84] : memref<9x128x64xbf16, #tpu.memory_space<vmem>>, vector<1x128x64xbf16>
    %105 = vector.shape_cast %104 : vector<1x128x64xbf16> to vector<128x64xbf16>
    %cst_85 = arith.constant dense<0.000000e+00> : vector<256x64xf32>
    %106 = tpu.matmul %103, %105, %cst_85 {dimension_numbers = #tpu.dot_dimension_numbers<[1], [0], [0], [1], [0, 0, 1, 1], [], []>} : vector<256x128xbf16>, vector<128x64xbf16>, vector<256x64xf32> -> vector<256x64xf32>
    %107 = arith.addf %100, %106 : vector<256x64xf32>
    %c2_86 = arith.constant 2 : index
    %c2_87 = arith.constant 2 : index
    %c0_88 = arith.constant 0 : index
    %108 = vector.load %arg20[%c2_86, %c2_87, %c0_88] : memref<18x18x128xf32, #tpu.memory_space<vmem>>, vector<16x16x128xf32>
    %109 = vector.shape_cast %108 : vector<16x16x128xf32> to vector<256x128xf32>
    %110 = arith.truncf %109 : vector<256x128xf32> to vector<256x128xbf16>
    %c8 = arith.constant 8 : index
    %c0_89 = arith.constant 0 : index
    %c0_90 = arith.constant 0 : index
    %111 = vector.load %arg7[%c8, %c0_89, %c0_90] : memref<9x128x64xbf16, #tpu.memory_space<vmem>>, vector<1x128x64xbf16>
    %112 = vector.shape_cast %111 : vector<1x128x64xbf16> to vector<128x64xbf16>
    %cst_91 = arith.constant dense<0.000000e+00> : vector<256x64xf32>
    %113 = tpu.matmul %110, %112, %cst_91 {dimension_numbers = #tpu.dot_dimension_numbers<[1], [0], [0], [1], [0, 0, 1, 1], [], []>} : vector<256x128xbf16>, vector<128x64xbf16>, vector<256x64xf32> -> vector<256x64xf32>
    %114 = arith.addf %107, %113 : vector<256x64xf32>
    %c0_92 = arith.constant 0 : index
    %c0_93 = arith.constant 0 : index
    %115 = vector.load %arg8[%c0_92, %c0_93] : memref<1x64xf32, #tpu.memory_space<vmem>>, vector<1x64xf32>
    %116 = vector.broadcast %115 : vector<1x64xf32> to vector<256x64xf32>
    %117 = arith.addf %114, %116 : vector<256x64xf32>
    %118 = arith.index_cast %arg0 : i32 to index
    %c0_94 = arith.constant 0 : index
    %119 = vector.load %arg2[%118, %c0_94] : memref<2x128xf32, #tpu.memory_space<vmem>>, vector<1x128xf32>
    %cst_95 = arith.constant 0.000000e+00 : f32
    %120 = vector.broadcast %cst_95 : f32 to vector<1x128xf32>
    %121 = arith.subf %120, %119 : vector<1x128xf32>
    %122 = math.exp %121 : vector<1x128xf32>
    %cst_96 = arith.constant 1.000000e+00 : f32
    %123 = vector.broadcast %cst_96 : f32 to vector<1x128xf32>
    %124 = arith.addf %123, %122 : vector<1x128xf32>
    %125 = tpu.reciprocal %124 {approx = true} : vector<1x128xf32> -> vector<1x128xf32>
    %126 = arith.mulf %119, %125 : vector<1x128xf32>
    %127 = arith.truncf %126 : vector<1x128xf32> to vector<1x128xbf16>
    %c0_97 = arith.constant 0 : index
    %c0_98 = arith.constant 0 : index
    %128 = vector.load %arg9[%c0_97, %c0_98] : memref<128x64xbf16, #tpu.memory_space<vmem>>, vector<128x64xbf16>
    %cst_99 = arith.constant dense<0.000000e+00> : vector<1x64xf32>
    %129 = tpu.matmul %127, %128, %cst_99 {dimension_numbers = #tpu.dot_dimension_numbers<[1], [0], [0], [1], [0, 0, 1, 1], [], []>} : vector<1x128xbf16>, vector<128x64xbf16>, vector<1x64xf32> -> vector<1x64xf32>
    %c0_100 = arith.constant 0 : index
    %c0_101 = arith.constant 0 : index
    %130 = vector.load %arg10[%c0_100, %c0_101] : memref<1x64xf32, #tpu.memory_space<vmem>>, vector<1x64xf32>
    %131 = arith.addf %129, %130 : vector<1x64xf32>
    %132 = vector.broadcast %131 : vector<1x64xf32> to vector<256x64xf32>
    %133 = arith.addf %117, %132 : vector<256x64xf32>
    %cst_102 = arith.constant dense<0.000000e+00> : vector<64xf32>
    %134 = vector.multi_reduction <add>, %133, %cst_102 [0] : vector<256x64xf32> to vector<64xf32>
    %135 = vector.shape_cast %134 : vector<64xf32> to vector<1x64xf32>
    %136 = arith.mulf %133, %133 : vector<256x64xf32>
    %cst_103 = arith.constant dense<0.000000e+00> : vector<64xf32>
    %137 = vector.multi_reduction <add>, %136, %cst_103 [0] : vector<256x64xf32> to vector<64xf32>
    %138 = vector.shape_cast %137 : vector<64xf32> to vector<1x64xf32>
    %c0_104 = arith.constant 0 : index
    %c0_105 = arith.constant 0 : index
    %139 = vector.load %arg13[%c0_104, %c0_105] : memref<64x32xf32, #tpu.memory_space<vmem>>, vector<64x32xf32>
    %cst_106 = arith.constant dense<0.000000e+00> : vector<1x32xf32>
    %140 = tpu.matmul %135, %139, %cst_106 {dimension_numbers = #tpu.dot_dimension_numbers<[1], [0], [0], [1], [0, 0, 1, 1], [], []>} : vector<1x64xf32>, vector<64x32xf32>, vector<1x32xf32> -> vector<1x32xf32>
    %c0_107 = arith.constant 0 : index
    %c0_108 = arith.constant 0 : index
    %141 = vector.load %arg13[%c0_107, %c0_108] : memref<64x32xf32, #tpu.memory_space<vmem>>, vector<64x32xf32>
    %cst_109 = arith.constant dense<0.000000e+00> : vector<1x32xf32>
    %142 = tpu.matmul %138, %141, %cst_109 {dimension_numbers = #tpu.dot_dimension_numbers<[1], [0], [0], [1], [0, 0, 1, 1], [], []>} : vector<1x64xf32>, vector<64x32xf32>, vector<1x32xf32> -> vector<1x32xf32>
    %cst_110 = arith.constant 0.001953125 : f32
    %143 = vector.broadcast %cst_110 : f32 to vector<1x32xf32>
    %144 = arith.mulf %140, %143 : vector<1x32xf32>
    %cst_111 = arith.constant 0.001953125 : f32
    %145 = vector.broadcast %cst_111 : f32 to vector<1x32xf32>
    %146 = arith.mulf %142, %145 : vector<1x32xf32>
    %147 = arith.mulf %144, %144 : vector<1x32xf32>
    %148 = arith.subf %146, %147 : vector<1x32xf32>
    %cst_112 = arith.constant 9.99999974E-6 : f32
    %149 = vector.broadcast %cst_112 : f32 to vector<1x32xf32>
    %150 = arith.addf %148, %149 : vector<1x32xf32>
    %151 = math.rsqrt %150 : vector<1x32xf32>
    %c0_113 = arith.constant 0 : index
    %c0_114 = arith.constant 0 : index
    %152 = vector.load %arg14[%c0_113, %c0_114] : memref<32x64xf32, #tpu.memory_space<vmem>>, vector<32x64xf32>
    %cst_115 = arith.constant dense<0.000000e+00> : vector<1x64xf32>
    %153 = tpu.matmul %144, %152, %cst_115 {dimension_numbers = #tpu.dot_dimension_numbers<[1], [0], [0], [1], [0, 0, 1, 1], [], []>} : vector<1x32xf32>, vector<32x64xf32>, vector<1x64xf32> -> vector<1x64xf32>
    %c0_116 = arith.constant 0 : index
    %c0_117 = arith.constant 0 : index
    %154 = vector.load %arg14[%c0_116, %c0_117] : memref<32x64xf32, #tpu.memory_space<vmem>>, vector<32x64xf32>
    %cst_118 = arith.constant dense<0.000000e+00> : vector<1x64xf32>
    %155 = tpu.matmul %151, %154, %cst_118 {dimension_numbers = #tpu.dot_dimension_numbers<[1], [0], [0], [1], [0, 0, 1, 1], [], []>} : vector<1x32xf32>, vector<32x64xf32>, vector<1x64xf32> -> vector<1x64xf32>
    %156 = vector.broadcast %153 : vector<1x64xf32> to vector<256x64xf32>
    %157 = arith.subf %133, %156 : vector<256x64xf32>
    %158 = vector.broadcast %155 : vector<1x64xf32> to vector<256x64xf32>
    %159 = arith.mulf %157, %158 : vector<256x64xf32>
    %c0_119 = arith.constant 0 : index
    %c0_120 = arith.constant 0 : index
    %160 = vector.load %arg11[%c0_119, %c0_120] : memref<1x64xf32, #tpu.memory_space<vmem>>, vector<1x64xf32>
    %161 = vector.broadcast %160 : vector<1x64xf32> to vector<256x64xf32>
    %162 = arith.mulf %159, %161 : vector<256x64xf32>
    %c0_121 = arith.constant 0 : index
    %c0_122 = arith.constant 0 : index
    %163 = vector.load %arg12[%c0_121, %c0_122] : memref<1x64xf32, #tpu.memory_space<vmem>>, vector<1x64xf32>
    %164 = vector.broadcast %163 : vector<1x64xf32> to vector<256x64xf32>
    %165 = arith.addf %162, %164 : vector<256x64xf32>
    %cst_123 = arith.constant 0.000000e+00 : f32
    %166 = vector.broadcast %cst_123 : f32 to vector<256x64xf32>
    %167 = arith.subf %166, %165 : vector<256x64xf32>
    %168 = math.exp %167 : vector<256x64xf32>
    %cst_124 = arith.constant 1.000000e+00 : f32
    %169 = vector.broadcast %cst_124 : f32 to vector<256x64xf32>
    %170 = arith.addf %169, %168 : vector<256x64xf32>
    %171 = tpu.reciprocal %170 {approx = true} : vector<256x64xf32> -> vector<256x64xf32>
    %172 = arith.mulf %165, %171 : vector<256x64xf32>
    %cst_125 = arith.constant 0.000000e+00 : f32
    %173 = vector.broadcast %cst_125 : f32 to vector<18x18x64xf32>
    %c0_126 = arith.constant 0 : index
    %c0_127 = arith.constant 0 : index
    %c0_128 = arith.constant 0 : index
    %174 = vector.load %arg21[%c0_126, %c0_127, %c0_128] : memref<18x18x64xf32, #tpu.memory_space<vmem>>, vector<18x18x64xf32>
    tpu.vector_store %arg21[%c0_126, %c0_127, %c0_128], %173 {strides = array<i32>} : memref<18x18x64xf32, #tpu.memory_space<vmem>>, vector<18x18x64xf32>,
    %175 = vector.shape_cast %172 : vector<256x64xf32> to vector<16x16x64xf32>
    %c1_129 = arith.constant 1 : index
    %c1_130 = arith.constant 1 : index
    %c0_131 = arith.constant 0 : index
    %176 = vector.load %arg21[%c1_129, %c1_130, %c0_131] : memref<18x18x64xf32, #tpu.memory_space<vmem>>, vector<16x16x64xf32>
    tpu.vector_store %arg21[%c1_129, %c1_130, %c0_131], %175 {strides = array<i32>} : memref<18x18x64xf32, #tpu.memory_space<vmem>>, vector<16x16x64xf32>,
    %cst_132 = arith.constant 0.000000e+00 : f32
    %177 = vector.broadcast %cst_132 : f32 to vector<256x64xf32>
    %c0_133 = arith.constant 0 : index
    %c0_134 = arith.constant 0 : index
    %c0_135 = arith.constant 0 : index
    %178 = vector.load %arg21[%c0_133, %c0_134, %c0_135] : memref<18x18x64xf32, #tpu.memory_space<vmem>>, vector<16x16x64xf32>
    %179 = vector.shape_cast %178 : vector<16x16x64xf32> to vector<256x64xf32>
    %180 = arith.truncf %179 : vector<256x64xf32> to vector<256x64xbf16>
    %c0_136 = arith.constant 0 : index
    %c0_137 = arith.constant 0 : index
    %c0_138 = arith.constant 0 : index
    %181 = vector.load %arg15[%c0_136, %c0_137, %c0_138] : memref<9x64x64xbf16, #tpu.memory_space<vmem>>, vector<1x64x64xbf16>
    %182 = vector.shape_cast %181 : vector<1x64x64xbf16> to vector<64x64xbf16>
    %cst_139 = arith.constant dense<0.000000e+00> : vector<256x64xf32>
    %183 = tpu.matmul %180, %182, %cst_139 {dimension_numbers = #tpu.dot_dimension_numbers<[1], [0], [0], [1], [0, 0, 1, 1], [], []>} : vector<256x64xbf16>, vector<64x64xbf16>, vector<256x64xf32> -> vector<256x64xf32>
    %184 = arith.addf %177, %183 : vector<256x64xf32>
    %c0_140 = arith.constant 0 : index
    %c1_141 = arith.constant 1 : index
    %c0_142 = arith.constant 0 : index
    %185 = vector.load %arg21[%c0_140, %c1_141, %c0_142] : memref<18x18x64xf32, #tpu.memory_space<vmem>>, vector<16x16x64xf32>
    %186 = vector.shape_cast %185 : vector<16x16x64xf32> to vector<256x64xf32>
    %187 = arith.truncf %186 : vector<256x64xf32> to vector<256x64xbf16>
    %c1_143 = arith.constant 1 : index
    %c0_144 = arith.constant 0 : index
    %c0_145 = arith.constant 0 : index
    %188 = vector.load %arg15[%c1_143, %c0_144, %c0_145] : memref<9x64x64xbf16, #tpu.memory_space<vmem>>, vector<1x64x64xbf16>
    %189 = vector.shape_cast %188 : vector<1x64x64xbf16> to vector<64x64xbf16>
    %cst_146 = arith.constant dense<0.000000e+00> : vector<256x64xf32>
    %190 = tpu.matmul %187, %189, %cst_146 {dimension_numbers = #tpu.dot_dimension_numbers<[1], [0], [0], [1], [0, 0, 1, 1], [], []>} : vector<256x64xbf16>, vector<64x64xbf16>, vector<256x64xf32> -> vector<256x64xf32>
    %191 = arith.addf %184, %190 : vector<256x64xf32>
    %c0_147 = arith.constant 0 : index
    %c2_148 = arith.constant 2 : index
    %c0_149 = arith.constant 0 : index
    %192 = vector.load %arg21[%c0_147, %c2_148, %c0_149] : memref<18x18x64xf32, #tpu.memory_space<vmem>>, vector<16x16x64xf32>
    %193 = vector.shape_cast %192 : vector<16x16x64xf32> to vector<256x64xf32>
    %194 = arith.truncf %193 : vector<256x64xf32> to vector<256x64xbf16>
    %c2_150 = arith.constant 2 : index
    %c0_151 = arith.constant 0 : index
    %c0_152 = arith.constant 0 : index
    %195 = vector.load %arg15[%c2_150, %c0_151, %c0_152] : memref<9x64x64xbf16, #tpu.memory_space<vmem>>, vector<1x64x64xbf16>
    %196 = vector.shape_cast %195 : vector<1x64x64xbf16> to vector<64x64xbf16>
    %cst_153 = arith.constant dense<0.000000e+00> : vector<256x64xf32>
    %197 = tpu.matmul %194, %196, %cst_153 {dimension_numbers = #tpu.dot_dimension_numbers<[1], [0], [0], [1], [0, 0, 1, 1], [], []>} : vector<256x64xbf16>, vector<64x64xbf16>, vector<256x64xf32> -> vector<256x64xf32>
    %198 = arith.addf %191, %197 : vector<256x64xf32>
    %c1_154 = arith.constant 1 : index
    %c0_155 = arith.constant 0 : index
    %c0_156 = arith.constant 0 : index
    %199 = vector.load %arg21[%c1_154, %c0_155, %c0_156] : memref<18x18x64xf32, #tpu.memory_space<vmem>>, vector<16x16x64xf32>
    %200 = vector.shape_cast %199 : vector<16x16x64xf32> to vector<256x64xf32>
    %201 = arith.truncf %200 : vector<256x64xf32> to vector<256x64xbf16>
    %c3_157 = arith.constant 3 : index
    %c0_158 = arith.constant 0 : index
    %c0_159 = arith.constant 0 : index
    %202 = vector.load %arg15[%c3_157, %c0_158, %c0_159] : memref<9x64x64xbf16, #tpu.memory_space<vmem>>, vector<1x64x64xbf16>
    %203 = vector.shape_cast %202 : vector<1x64x64xbf16> to vector<64x64xbf16>
    %cst_160 = arith.constant dense<0.000000e+00> : vector<256x64xf32>
    %204 = tpu.matmul %201, %203, %cst_160 {dimension_numbers = #tpu.dot_dimension_numbers<[1], [0], [0], [1], [0, 0, 1, 1], [], []>} : vector<256x64xbf16>, vector<64x64xbf16>, vector<256x64xf32> -> vector<256x64xf32>
    %205 = arith.addf %198, %204 : vector<256x64xf32>
    %c1_161 = arith.constant 1 : index
    %c1_162 = arith.constant 1 : index
    %c0_163 = arith.constant 0 : index
    %206 = vector.load %arg21[%c1_161, %c1_162, %c0_163] : memref<18x18x64xf32, #tpu.memory_space<vmem>>, vector<16x16x64xf32>
    %207 = vector.shape_cast %206 : vector<16x16x64xf32> to vector<256x64xf32>
    %208 = arith.truncf %207 : vector<256x64xf32> to vector<256x64xbf16>
    %c4_164 = arith.constant 4 : index
    %c0_165 = arith.constant 0 : index
    %c0_166 = arith.constant 0 : index
    %209 = vector.load %arg15[%c4_164, %c0_165, %c0_166] : memref<9x64x64xbf16, #tpu.memory_space<vmem>>, vector<1x64x64xbf16>
    %210 = vector.shape_cast %209 : vector<1x64x64xbf16> to vector<64x64xbf16>
    %cst_167 = arith.constant dense<0.000000e+00> : vector<256x64xf32>
    %211 = tpu.matmul %208, %210, %cst_167 {dimension_numbers = #tpu.dot_dimension_numbers<[1], [0], [0], [1], [0, 0, 1, 1], [], []>} : vector<256x64xbf16>, vector<64x64xbf16>, vector<256x64xf32> -> vector<256x64xf32>
    %212 = arith.addf %205, %211 : vector<256x64xf32>
    %c1_168 = arith.constant 1 : index
    %c2_169 = arith.constant 2 : index
    %c0_170 = arith.constant 0 : index
    %213 = vector.load %arg21[%c1_168, %c2_169, %c0_170] : memref<18x18x64xf32, #tpu.memory_space<vmem>>, vector<16x16x64xf32>
    %214 = vector.shape_cast %213 : vector<16x16x64xf32> to vector<256x64xf32>
    %215 = arith.truncf %214 : vector<256x64xf32> to vector<256x64xbf16>
    %c5_171 = arith.constant 5 : index
    %c0_172 = arith.constant 0 : index
    %c0_173 = arith.constant 0 : index
    %216 = vector.load %arg15[%c5_171, %c0_172, %c0_173] : memref<9x64x64xbf16, #tpu.memory_space<vmem>>, vector<1x64x64xbf16>
    %217 = vector.shape_cast %216 : vector<1x64x64xbf16> to vector<64x64xbf16>
    %cst_174 = arith.constant dense<0.000000e+00> : vector<256x64xf32>
    %218 = tpu.matmul %215, %217, %cst_174 {dimension_numbers = #tpu.dot_dimension_numbers<[1], [0], [0], [1], [0, 0, 1, 1], [], []>} : vector<256x64xbf16>, vector<64x64xbf16>, vector<256x64xf32> -> vector<256x64xf32>
    %219 = arith.addf %212, %218 : vector<256x64xf32>
    %c2_175 = arith.constant 2 : index
    %c0_176 = arith.constant 0 : index
    %c0_177 = arith.constant 0 : index
    %220 = vector.load %arg21[%c2_175, %c0_176, %c0_177] : memref<18x18x64xf32, #tpu.memory_space<vmem>>, vector<16x16x64xf32>
    %221 = vector.shape_cast %220 : vector<16x16x64xf32> to vector<256x64xf32>
    %222 = arith.truncf %221 : vector<256x64xf32> to vector<256x64xbf16>
    %c6_178 = arith.constant 6 : index
    %c0_179 = arith.constant 0 : index
    %c0_180 = arith.constant 0 : index
    %223 = vector.load %arg15[%c6_178, %c0_179, %c0_180] : memref<9x64x64xbf16, #tpu.memory_space<vmem>>, vector<1x64x64xbf16>
    %224 = vector.shape_cast %223 : vector<1x64x64xbf16> to vector<64x64xbf16>
    %cst_181 = arith.constant dense<0.000000e+00> : vector<256x64xf32>
    %225 = tpu.matmul %222, %224, %cst_181 {dimension_numbers = #tpu.dot_dimension_numbers<[1], [0], [0], [1], [0, 0, 1, 1], [], []>} : vector<256x64xbf16>, vector<64x64xbf16>, vector<256x64xf32> -> vector<256x64xf32>
    %226 = arith.addf %219, %225 : vector<256x64xf32>
    %c2_182 = arith.constant 2 : index
    %c1_183 = arith.constant 1 : index
    %c0_184 = arith.constant 0 : index
    %227 = vector.load %arg21[%c2_182, %c1_183, %c0_184] : memref<18x18x64xf32, #tpu.memory_space<vmem>>, vector<16x16x64xf32>
    %228 = vector.shape_cast %227 : vector<16x16x64xf32> to vector<256x64xf32>
    %229 = arith.truncf %228 : vector<256x64xf32> to vector<256x64xbf16>
    %c7_185 = arith.constant 7 : index
    %c0_186 = arith.constant 0 : index
    %c0_187 = arith.constant 0 : index
    %230 = vector.load %arg15[%c7_185, %c0_186, %c0_187] : memref<9x64x64xbf16, #tpu.memory_space<vmem>>, vector<1x64x64xbf16>
    %231 = vector.shape_cast %230 : vector<1x64x64xbf16> to vector<64x64xbf16>
    %cst_188 = arith.constant dense<0.000000e+00> : vector<256x64xf32>
    %232 = tpu.matmul %229, %231, %cst_188 {dimension_numbers = #tpu.dot_dimension_numbers<[1], [0], [0], [1], [0, 0, 1, 1], [], []>} : vector<256x64xbf16>, vector<64x64xbf16>, vector<256x64xf32> -> vector<256x64xf32>
    %233 = arith.addf %226, %232 : vector<256x64xf32>
    %c2_189 = arith.constant 2 : index
    %c2_190 = arith.constant 2 : index
    %c0_191 = arith.constant 0 : index
    %234 = vector.load %arg21[%c2_189, %c2_190, %c0_191] : memref<18x18x64xf32, #tpu.memory_space<vmem>>, vector<16x16x64xf32>
    %235 = vector.shape_cast %234 : vector<16x16x64xf32> to vector<256x64xf32>
    %236 = arith.truncf %235 : vector<256x64xf32> to vector<256x64xbf16>
    %c8_192 = arith.constant 8 : index
    %c0_193 = arith.constant 0 : index
    %c0_194 = arith.constant 0 : index
    %237 = vector.load %arg15[%c8_192, %c0_193, %c0_194] : memref<9x64x64xbf16, #tpu.memory_space<vmem>>, vector<1x64x64xbf16>
    %238 = vector.shape_cast %237 : vector<1x64x64xbf16> to vector<64x64xbf16>
    %cst_195 = arith.constant dense<0.000000e+00> : vector<256x64xf32>
    %239 = tpu.matmul %236, %238, %cst_195 {dimension_numbers = #tpu.dot_dimension_numbers<[1], [0], [0], [1], [0, 0, 1, 1], [], []>} : vector<256x64xbf16>, vector<64x64xbf16>, vector<256x64xf32> -> vector<256x64xf32>
    %240 = arith.addf %233, %239 : vector<256x64xf32>
    %c0_196 = arith.constant 0 : index
    %c0_197 = arith.constant 0 : index
    %241 = vector.load %arg16[%c0_196, %c0_197] : memref<1x64xf32, #tpu.memory_space<vmem>>, vector<1x64xf32>
    %242 = vector.broadcast %241 : vector<1x64xf32> to vector<256x64xf32>
    %243 = arith.addf %240, %242 : vector<256x64xf32>
    %244 = arith.addf %243, %7 : vector<256x64xf32>
    %c0_198 = arith.constant 0 : index
    %c0_199 = arith.constant 0 : index
    %c0_200 = arith.constant 0 : index
    %245 = vector.load %arg19[%c0_198, %c0_199, %c0_200] : memref<1x256x64xf32, #tpu.memory_space<vmem>>, vector<1x256x64xf32>
    %246 = vector.shape_cast %245 : vector<1x256x64xf32> to vector<256x64xf32>
    %247 = vector.shape_cast %244 : vector<256x64xf32> to vector<1x256x64xf32>
    tpu.vector_store %arg19[%c0_198, %c0_199, %c0_200], %247 {strides = array<i32>} : memref<1x256x64xf32, #tpu.memory_space<vmem>>, vector<1x256x64xf32>,
    return
  }
  func.func @transform_0(%arg0: i32) -> (i32, i32, i32) {
    %c0_i32 = arith.constant 0 : i32
    %c0_i32_0 = arith.constant 0 : i32
    %c0_i32_1 = arith.constant 0 : i32
    return %arg0, %c0_i32, %c0_i32_0 : i32, i32, i32
  }
  func.func @transform_1(%arg0: i32) -> (i32, i32) {
    %c0_i32 = arith.constant 0 : i32
    %c0_i32_0 = arith.constant 0 : i32
    %c0_i32_1 = arith.constant 0 : i32
    return %c0_i32, %c0_i32_0 : i32, i32
  }
  func.func @transform_2(%arg0: i32) -> (i32, i32) {
    %c0_i32 = arith.constant 0 : i32
    %c0_i32_0 = arith.constant 0 : i32
    %c0_i32_1 = arith.constant 0 : i32
    return %c0_i32, %c0_i32_0 : i32, i32
  }
  func.func @transform_3(%arg0: i32) -> (i32, i32) {
    %c0_i32 = arith.constant 0 : i32
    %c0_i32_0 = arith.constant 0 : i32
    %c0_i32_1 = arith.constant 0 : i32
    return %c0_i32, %c0_i32_0 : i32, i32
  }
  func.func @transform_4(%arg0: i32) -> (i32, i32) {
    %c0_i32 = arith.constant 0 : i32
    %c0_i32_0 = arith.constant 0 : i32
    %c0_i32_1 = arith.constant 0 : i32
    return %c0_i32, %c0_i32_0 : i32, i32
  }
  func.func @transform_5(%arg0: i32) -> (i32, i32) {
    %c0_i32 = arith.constant 0 : i32
    %c0_i32_0 = arith.constant 0 : i32
    %c0_i32_1 = arith.constant 0 : i32
    return %c0_i32, %c0_i32_0 : i32, i32
  }
  func.func @transform_6(%arg0: i32) -> (i32, i32, i32) {
    %c0_i32 = arith.constant 0 : i32
    %c0_i32_0 = arith.constant 0 : i32
    %c0_i32_1 = arith.constant 0 : i32
    %c0_i32_2 = arith.constant 0 : i32
    return %c0_i32, %c0_i32_0, %c0_i32_1 : i32, i32, i32
  }
  func.func @transform_7(%arg0: i32) -> (i32, i32) {
    %c0_i32 = arith.constant 0 : i32
    %c0_i32_0 = arith.constant 0 : i32
    %c0_i32_1 = arith.constant 0 : i32
    return %c0_i32, %c0_i32_0 : i32, i32
  }
  func.func @transform_8(%arg0: i32) -> (i32, i32) {
    %c0_i32 = arith.constant 0 : i32
    %c0_i32_0 = arith.constant 0 : i32
    %c0_i32_1 = arith.constant 0 : i32
    return %c0_i32, %c0_i32_0 : i32, i32
  }
  func.func @transform_9(%arg0: i32) -> (i32, i32) {
    %c0_i32 = arith.constant 0 : i32
    %c0_i32_0 = arith.constant 0 : i32
    %c0_i32_1 = arith.constant 0 : i32
    return %c0_i32, %c0_i32_0 : i32, i32
  }
  func.func @transform_10(%arg0: i32) -> (i32, i32) {
    %c0_i32 = arith.constant 0 : i32
    %c0_i32_0 = arith.constant 0 : i32
    %c0_i32_1 = arith.constant 0 : i32
    return %c0_i32, %c0_i32_0 : i32, i32
  }
  func.func @transform_11(%arg0: i32) -> (i32, i32) {
    %c0_i32 = arith.constant 0 : i32
    %c0_i32_0 = arith.constant 0 : i32
    %c0_i32_1 = arith.constant 0 : i32
    return %c0_i32, %c0_i32_0 : i32, i32
  }
  func.func @transform_12(%arg0: i32) -> (i32, i32) {
    %c0_i32 = arith.constant 0 : i32
    %c0_i32_0 = arith.constant 0 : i32
    %c0_i32_1 = arith.constant 0 : i32
    return %c0_i32, %c0_i32_0 : i32, i32
  }
  func.func @transform_13(%arg0: i32) -> (i32, i32) {
    %c0_i32 = arith.constant 0 : i32
    %c0_i32_0 = arith.constant 0 : i32
    %c0_i32_1 = arith.constant 0 : i32
    return %c0_i32, %c0_i32_0 : i32, i32
  }
  func.func @transform_14(%arg0: i32) -> (i32, i32, i32) {
    %c0_i32 = arith.constant 0 : i32
    %c0_i32_0 = arith.constant 0 : i32
    %c0_i32_1 = arith.constant 0 : i32
    %c0_i32_2 = arith.constant 0 : i32
    return %c0_i32, %c0_i32_0, %c0_i32_1 : i32, i32, i32
  }
  func.func @transform_15(%arg0: i32) -> (i32, i32) {
    %c0_i32 = arith.constant 0 : i32
    %c0_i32_0 = arith.constant 0 : i32
    %c0_i32_1 = arith.constant 0 : i32
    return %c0_i32, %c0_i32_0 : i32, i32
  }
  func.func @transform_16(%arg0: i32) -> (i32, i32) {
    %c0_i32 = arith.constant 0 : i32
    %c0_i32_0 = arith.constant 0 : i32
    %c0_i32_1 = arith.constant 0 : i32
    return %c0_i32, %c0_i32_0 : i32, i32
  }
  func.func @transform_17(%arg0: i32) -> (i32, i32) {
    %c0_i32 = arith.constant 0 : i32
    %c0_i32_0 = arith.constant 0 : i32
    %c0_i32_1 = arith.constant 0 : i32
    return %c0_i32, %c0_i32_0 : i32, i32
  }
  func.func @transform_18(%arg0: i32) -> (i32, i32, i32) {
    %c0_i32 = arith.constant 0 : i32
    %c0_i32_0 = arith.constant 0 : i32
    %c0_i32_1 = arith.constant 0 : i32
    return %arg0, %c0_i32, %c0_i32_0 : i32, i32, i32
  }
}

</mosaic_0001>

<bundles_post_ra>
// kernel: _lambda_.3
= control target key start
LH: loop header
LB: loop body
LE: loop exit
PB: predicated region body
PF: predicated region fallthrough
CT: control target
= control target key end

     0   :  { %10 = vsyncpa [#allocation3], 0  ;;  %s3965_s0 = inlined_call_operand.vmem [shape: f32[2,256,64], index: 0, kind: input, shape index: {}]   ;;  %s3966_s1 = inlined_call_operand.vmem [shape: bf16[64,192], index: 1, kind: input, shape index: {}]   ;;  %s3967_s2 = inlined_call_operand.vmem [shape: f32[1,192], index: 2, kind: input, shape index: {}]   ;;  %s3968_s3 = inlined_call_operand.vmem [shape: bf16[64,64], index: 3, kind: input, shape index: {}]   ;;  %s3969_s4 = inlined_call_operand.vmem [shape: f32[1,64], index: 4, kind: input, shape index: {}]   ;;  %s3970_s5 = inlined_call_operand.hbm [shape: f32[2,256,64], index: 5, kind: output, shape index: {}]  }
   0x1   :  { %12 = vsyncpa [#allocation3 + $0x1], 0  ;;  %s2769_s18 = smov 0   ;;  %s2771_s19 = smov 0  }
   0x2   :  { %s2773_s20 = smov 0   ;;  %s2775_s21 = smov 0  }
   0x3 LB: > { %s2790_s22 = sadd.s32 4294967295, %s2732_s21   ;;  %s2084_s23 = sadd.s32 4294967294, %s2732_s21   ;;  %s2732_s21 = sphi %s2775_s21, %s4057_s21   ;;  %s2728_s20 = sphi %s2773_s20, %s4056_s20   ;;  %s2724_s19 = sphi %s2771_s19, %s4055_s19   ;;  %s2720_s18 = sphi %s2769_s18, %s4054_s18  }
   0x4   : > { %s2794_s24 = sadd.s32 1, %s2732_s21   ;;  %s135_s25 = sadd.s32 1, %s2728_s20 }
   0x5   : > { %s132_s26 = ssub.s32 %s2732_s21, %s2794_s24  ;;  %p145_p0 = scmp.ne.s32.totalorder %s2728_s20, %s2724_s19 }
   0x6   : > { %p133_p1 = scmp.eq.s32.totalorder %s132_s26, 0  ;;  %p146_p2 = scmp.eq.s32.totalorder %s2790_s22, 1 }
   0x7   : > { %p151_p3 = scmp.ne.s32.totalorder %s2724_s19, %s2720_s18  ;;  %p152_p4 = scmp.eq.s32.totalorder %s2084_s23, 1 }
   0x8   : > { %s2805_s27 = scalar_select %p133_p1, %s2728_s20, %s135_s25  }
   0x9   : > { %p2807_p5 = por %p146_p2, %p145_p0  ;;  %p2811_p6 = por %p152_p4, %p151_p3 }
   0xa   : > { %p2087_p7 = scmp.ge.s32.totalorder %s2732_s21, 1  ;;  %p190_p8 = scmp.lt.s32.totalorder %s2732_s21, 3 }
   0xc   : > { %p191_p9 = pnand %p2087_p7, %p190_p8 }
   0xe   : > { %194 = sbr.rel (%p191_p9) target bundleno = 1679 (0x68f), region = 40 }
  0x15   : > { %v2430_v0 = vld [vmem:[%s3966_s1 + $0x4] ss:$8 sps:$4 sm:$0xff]   ;;  %p218_p10 = scmp.lt.s32.totalorder %s2790_s22, 1  ;;  %v2432_v1 = vld [vmem:[%s3966_s1] ss:$8 sps:$4 sm:$0xff]   ;;  %v2734_v2 = vmov 0   ;;  %v282_v57 = vlaneseq }
  0x16   : > { %413 = vmatprep.mubr.bf16.mxu0 %v2734_v2  ;;  %381 = vmatprep.subr.bf16.mxu0 %v2430_v0  ;;  %v2433_v3 = vld [vmem:[%s3966_s1 + $0x14] ss:$8 sps:$4 sm:$0xff]   ;;  %v2435_v4 = vld [vmem:[%s3966_s1 + $0x10] ss:$8 sps:$4 sm:$0xff]   ;;  %v2436_v5 = vld [vmem:[%s3966_s1 + $0x24] ss:$8 sps:$4 sm:$0xff]  }
  0x17   : > { %s219_s11 = scalar_select %p218_p10, %s2790_s22, 1  ;;  %382 = vmatpush1.bf16.msra.mxu0 %v2432_v1  ;;  %v2438_v6 = vld [vmem:[%s3966_s1 + $0x20] ss:$8 sps:$4 sm:$0xff]   ;;  %v2439_v7 = vld [vmem:[%s3966_s1 + $0x34] ss:$8 sps:$4 sm:$0xff]   ;;  %vm332_vm0 = vcmask 523264  }
  0x18   : > { %383 = vmatprep.subr.bf16.mxu0 %v2433_v3  ;;  %v2441_v8 = vld [vmem:[%s3966_s1 + $0x30] ss:$8 sps:$4 sm:$0xff]   ;;  %v283_v58 = vshrl.u32 %v282_v57, 7  ;;  %v280_v60 = vld [vmem:[%s3967_s2] sm:$0x3]  ;;  %s2735_s12 = smov 64  }
  0x19   : > { %s2157_s16 = sshll.u32 %s219_s11, 8  ;;  %s215_s30 = sand.u32 1, %s2724_s19  }
  0x1a   : > { %s2844_s7 = scalar_lea.vmem %s3965_s0, %s2157_s16  ;;  %v284_v59 = vsub.s32 0, %v283_v58  ;;  %v288_v61 = vsub.s32 1, %v283_v58  ;;  %s2088_s9 = sshll.u32 %s215_s30, 8 }
  0x1b   : > { %384 = vmatpush1.bf16.msra.mxu0 %v2435_v4  ;;  %v224_v9 = vld [vmem:[%s2844_s7] sm:$0xff]  ;;  %v225_v10 = vld [vmem:[%s2844_s7 + $0x8] sm:$0xff]  ;;  %v226_v12 = vld [vmem:[%s2844_s7 + $0x10] sm:$0xff]  ;;  %s3789_s10 = scalar_lea.vmem [#allocation2], %s2088_s9  ;;  %s2158_s11 = sshll.u32 %s2790_s22, 12 }
  0x1c   : > { %385 = vmatprep.subr.bf16.mxu0 %v2436_v5  ;;  %v256_v11 = vpack.c.bf16 %v225_v10, %v224_v9  ;;  %v227_v13 = vld [vmem:[%s2844_s7 + $0x18] sm:$0xff]  ;;  %v228_v15 = vld [vmem:[%s2844_s7 + $0x20] sm:$0xff]  ;;  %v229_v16 = vld [vmem:[%s2844_s7 + $0x28] sm:$0xff]  ;;  %v2915_v62 = vrot.slane %v280_v60, %v284_v59  ;;  %v2917_v0 = vrot.slane %v280_v60, %v288_v61  ;;  %s3911_s14 = scalar_lea.hbm %s3970_s5, %s2158_s11  ;;  %s3924_s15 = scalar_lea.sflag [#allocation3], %s215_s30 }
  0x1d   : > { %v257_v14 = vpack.c.bf16 %v227_v13, %v226_v12  ;;  %v258_v17 = vpack.c.bf16 %v229_v16, %v228_v15  ;;  %v230_v18 = vld [vmem:[%s2844_s7 + $0x30] sm:$0xff]  ;;  %v231_v19 = vld [vmem:[%s2844_s7 + $0x38] sm:$0xff]  ;;  %v232_v21 = vld [vmem:[%s2844_s7 + $0x40] sm:$0xff]  ;;  %s2736_s17 = smov [#allocation2]  }
  0x1e   : > { %v259_v20 = vpack.c.bf16 %v231_v19, %v230_v18  ;;  %v233_v22 = vld [vmem:[%s2844_s7 + $0x48] sm:$0xff]  ;;  %v234_v24 = vld [vmem:[%s2844_s7 + $0x50] sm:$0xff]  ;;  %v235_v25 = vld [vmem:[%s2844_s7 + $0x58] sm:$0xff]  ;;  %s2674_s23 = sshll.u32 %s2736_s17, 4  ;;  %s2675_s23 = int_to_ptr.vmem [resolvable:$false] %s2674_s23 }
  0x1f   : > { %386 = vmatpush1.bf16.msra.mxu0 %v2438_v6  ;;  %v260_v23 = vpack.c.bf16 %v233_v22, %v232_v21  ;;  %v261_v26 = vpack.c.bf16 %v235_v25, %v234_v24  ;;  %v236_v27 = vld [vmem:[%s2844_s7 + $0x60] sm:$0xff]  ;;  %v237_v28 = vld [vmem:[%s2844_s7 + $0x68] sm:$0xff]  ;;  %v238_v30 = vld [vmem:[%s2844_s7 + $0x70] sm:$0xff]  ;;  %s2676_s25 = scalar_lea.vmem %s2675_s23, 8192 }
  0x20   : > { %387 = vmatprep.subr.bf16.mxu0 %v2439_v7  ;;  %v262_v29 = vpack.c.bf16 %v237_v28, %v236_v27  ;;  %v239_v31 = vld [vmem:[%s2844_s7 + $0x78] sm:$0xff]  ;;  %v240_v33 = vld [vmem:[%s2844_s7 + $0x80] sm:$0xff]  ;;  %v241_v34 = vld [vmem:[%s2844_s7 + $0x88] sm:$0xff] }
  0x21   : > { %v263_v32 = vpack.c.bf16 %v239_v31, %v238_v30  ;;  %v264_v35 = vpack.c.bf16 %v241_v34, %v240_v33  ;;  %v242_v36 = vld [vmem:[%s2844_s7 + $0x90] sm:$0xff]  ;;  %v243_v37 = vld [vmem:[%s2844_s7 + $0x98] sm:$0xff]  ;;  %v244_v39 = vld [vmem:[%s2844_s7 + $0xa0] sm:$0xff] }
  0x22   : > { %v265_v38 = vpack.c.bf16 %v243_v37, %v242_v36  ;;  %v245_v40 = vld [vmem:[%s2844_s7 + $0xa8] sm:$0xff]  ;;  %v246_v42 = vld [vmem:[%s2844_s7 + $0xb0] sm:$0xff]  ;;  %v247_v43 = vld [vmem:[%s2844_s7 + $0xb8] sm:$0xff] }
  0x23   : > { %388 = vmatpush1.bf16.msra.mxu0 %v2441_v8  ;;  %v266_v41 = vpack.c.bf16 %v245_v40, %v244_v39  ;;  %v267_v44 = vpack.c.bf16 %v247_v43, %v246_v42  ;;  %v248_v45 = vld [vmem:[%s2844_s7 + $0xc0] sm:$0xff]  ;;  %v249_v46 = vld [vmem:[%s2844_s7 + $0xc8] sm:$0xff]  ;;  %v250_v48 = vld [vmem:[%s2844_s7 + $0xd0] sm:$0xff] }
  0x24   : > { %v268_v47 = vpack.c.bf16 %v249_v46, %v248_v45  ;;  %v251_v49 = vld [vmem:[%s2844_s7 + $0xd8] sm:$0xff]  ;;  %v252_v51 = vld [vmem:[%s2844_s7 + $0xe0] sm:$0xff]  ;;  %v253_v52 = vld [vmem:[%s2844_s7 + $0xe8] sm:$0xff] }
  0x25   : > { %v269_v50 = vpack.c.bf16 %v251_v49, %v250_v48  ;;  %v270_v53 = vpack.c.bf16 %v253_v52, %v252_v51  ;;  %v254_v54 = vld [vmem:[%s2844_s7 + $0xf0] sm:$0xff]  ;;  %v255_v55 = vld [vmem:[%s2844_s7 + $0xf8] sm:$0xff] }
  0x26   : > { %2099 = vmatmul.mubr.msk.bf16.vlgmr.msra.gmra.mrb[0].mxu0 %vm332_vm0, %v256_v11  ;;  %v271_v56 = vpack.c.bf16 %v255_v55, %v254_v54 }
  0x27   : > { %423 = vmatprep.mubr.bf16.mxu0 %v2734_v2 }
  0x2e   : > { %2100 = vmatmul.mubr.msk.bf16.gmra.mrb[4].mxu0 %vm332_vm0, %v257_v14 }
  0x2f   : > { %433 = vmatprep.mubr.bf16.mxu0 %v2734_v2 }
  0x36   : > { %2101 = vmatmul.mubr.msk.bf16.gmra.mrb[8].mxu0 %vm332_vm0, %v258_v17 }
  0x37   : > { %443 = vmatprep.mubr.bf16.mxu0 %v2734_v2 }
  0x3e   : > { %2102 = vmatmul.mubr.msk.bf16.gmra.mrb[12].mxu0 %vm332_vm0, %v259_v20 }
  0x3f   : > { %453 = vmatprep.mubr.bf16.mxu0 %v2734_v2 }
  0x46   : > { %2103 = vmatmul.mubr.msk.bf16.gmra.mrb[16].mxu0 %vm332_vm0, %v260_v23 }
  0x47   : > { %463 = vmatprep.mubr.bf16.mxu0 %v2734_v2 }
  0x4e   : > { %2104 = vmatmul.mubr.msk.bf16.gmra.mrb[20].mxu0 %vm332_vm0, %v261_v26 }
  0x4f   : > { %473 = vmatprep.mubr.bf16.mxu0 %v2734_v2 }
  0x56   : > { %2105 = vmatmul.mubr.msk.bf16.gmra.mrb[24].mxu0 %vm332_vm0, %v262_v29 }
  0x57   : > { %483 = vmatprep.mubr.bf16.mxu0 %v2734_v2 }
  0x5e   : > { %2106 = vmatmul.mubr.msk.bf16.gmra.mrb[28].mxu0 %vm332_vm0, %v263_v32 }
  0x5f   : > { %493 = vmatprep.mubr.bf16.mxu0 %v2734_v2 }
  0x66   : > { %2107 = vmatmul.mubr.msk.bf16.gmra.mrb[32].mxu0 %vm332_vm0, %v264_v35 }
  0x67   : > { %503 = vmatprep.mubr.bf16.mxu0 %v2734_v2 }
  0x6e   : > { %2108 = vmatmul.mubr.msk.bf16.gmra.mrb[36].mxu0 %vm332_vm0, %v265_v38 }
  0x6f   : > { %513 = vmatprep.mubr.bf16.mxu0 %v2734_v2 }
  0x76   : > { %2109 = vmatmul.mubr.msk.bf16.gmra.mrb[40].mxu0 %vm332_vm0, %v266_v41 }
  0x77   : > { %523 = vmatprep.mubr.bf16.mxu0 %v2734_v2 }
  0x7e   : > { %2110 = vmatmul.mubr.msk.bf16.gmra.mrb[44].mxu0 %vm332_vm0, %v267_v44 }
  0x7f   : > { %533 = vmatprep.mubr.bf16.mxu0 %v2734_v2 }
  0x86   : > { %2111 = vmatmul.mubr.msk.bf16.gmra.mrb[48].mxu0 %vm332_vm0, %v268_v47 }
  0x87   : > { %543 = vmatprep.mubr.bf16.mxu0 %v2734_v2 }
  0x8e   : > { %2112 = vmatmul.mubr.msk.bf16.gmra.mrb[52].mxu0 %vm332_vm0, %v269_v50 }
  0x8f   : > { %553 = vmatprep.mubr.bf16.mxu0 %v2734_v2 }
  0x96   : > { %2113 = vmatmul.mubr.msk.bf16.gmra.mrb[56].mxu0 %vm332_vm0, %v270_v53 }
  0x97   : > { %563 = vmatprep.mubr.bf16.mxu0 %v2734_v2 }
  0x9e   : > { %2114 = vmatmul.mubr.msk.bf16.gmra.mrb[60].mxu0 %vm332_vm0, %v271_v56 }
  0xf9   : > { %v415_v63 = vpop.f32.mrb[0].mxu0 }
  0xfa   : > { %v417_v1 = vpop.f32.mrb[1].mxu0  ;;  %v416_v3 = vadd.f32 %v415_v63, %v2915_v62 }
  0xfb   : > { %v419_v2 = vpop.f32.mrb[2].mxu0  ;;  %v2922_v6 = vadd.f32 %v417_v1, %v2917_v0 }
  0xfc   : > { %v420_v4 = vadd.f32 %v419_v2, %v2915_v62  ;;  %v421_v5 = vpop.f32.mrb[3].mxu0 }
  0xfd   : > { %v2925_v7 = vadd.f32 %v421_v5, %v2917_v0 }
  0xfe   : > { %v2927_v8 = vpack.c.bf16 %v420_v4, %v416_v3 }
  0xff   : > { %v590_v9 = vpack.c.bf16 %v2925_v7, %v2922_v6 }
 0x100   : > { %622 = vrot.lane.b32.xlu0 %v2927_v8, %s2735_s12  ;;  %2175 = vmatprep.mubr.msk.bf16.mxu1 %vm332_vm0, %v2927_v8 }
 0x101   : > { %v425_v10 = vpop.f32.mrb[4].mxu0 }
 0x102   : > { %v427_v11 = vpop.f32.mrb[5].mxu0  ;;  %v426_v13 = vadd.f32 %v425_v10, %v2915_v62 }
 0x103   : > { %v429_v12 = vpop.f32.mrb[6].mxu0  ;;  %v2938_v16 = vadd.f32 %v427_v11, %v2917_v0 }
 0x104   : > { %v430_v14 = vadd.f32 %v429_v12, %v2915_v62  ;;  %v431_v15 = vpop.f32.mrb[7].mxu0 }
 0x105   : > { %v2941_v17 = vadd.f32 %v431_v15, %v2917_v0 }
 0x106   : > { %v2943_v18 = vpack.c.bf16 %v430_v14, %v426_v13 }
 0x107   : > { %v591_v19 = vpack.c.bf16 %v2941_v17, %v2938_v16 }
 0x108   : > { %624 = vrot.lane.b32.xlu1 %v2943_v18, %s2735_s12 }
 0x109   : > { %v435_v20 = vpop.f32.mrb[8].mxu0 }
 0x10a   : > { %v437_v21 = vpop.f32.mrb[9].mxu0  ;;  %v436_v23 = vadd.f32 %v435_v20, %v2915_v62 }
 0x10b   : > { %v439_v22 = vpop.f32.mrb[10].mxu0  ;;  %v2952_v26 = vadd.f32 %v437_v21, %v2917_v0 }
 0x10c   : > { %v440_v24 = vadd.f32 %v439_v22, %v2915_v62  ;;  %v441_v25 = vpop.f32.mrb[11].mxu0 }
 0x10d   : > { %v2955_v27 = vadd.f32 %v441_v25, %v2917_v0 }
 0x10e   : > { %v2957_v28 = vpack.c.bf16 %v440_v24, %v436_v23 }
 0x10f   : > { %v592_v29 = vpack.c.bf16 %v2955_v27, %v2952_v26 }
 0x111   : > { %v445_v30 = vpop.f32.mrb[12].mxu0 }
 0x112   : > { %v447_v31 = vpop.f32.mrb[13].mxu0  ;;  %v446_v33 = vadd.f32 %v445_v30, %v2915_v62 }
 0x113   : > { %v449_v32 = vpop.f32.mrb[14].mxu0  ;;  %v2964_v36 = vadd.f32 %v447_v31, %v2917_v0 }
 0x114   : > { %v450_v34 = vadd.f32 %v449_v32, %v2915_v62  ;;  %v451_v35 = vpop.f32.mrb[15].mxu0 }
 0x115   : > { %v2967_v37 = vadd.f32 %v451_v35, %v2917_v0 }
 0x116   : > { %v2969_v38 = vpack.c.bf16 %v450_v34, %v446_v33 }
 0x117   : > { %v593_v39 = vpack.c.bf16 %v2967_v37, %v2964_v36 }
 0x119   : > { %v455_v40 = vpop.f32.mrb[16].mxu0 }
 0x11a   : > { %v457_v41 = vpop.f32.mrb[17].mxu0  ;;  %v456_v43 = vadd.f32 %v455_v40, %v2915_v62 }
 0x11b   : > { %v459_v42 = vpop.f32.mrb[18].mxu0  ;;  %v2976_v46 = vadd.f32 %v457_v41, %v2917_v0 }
 0x11c   : > { %v460_v44 = vadd.f32 %v459_v42, %v2915_v62  ;;  %v461_v45 = vpop.f32.mrb[19].mxu0 }
 0x11d   : > { %v2979_v47 = vadd.f32 %v461_v45, %v2917_v0 }
 0x11e   : > { %v2981_v48 = vpack.c.bf16 %v460_v44, %v456_v43 }
 0x11f   : > { %v594_v49 = vpack.c.bf16 %v2979_v47, %v2976_v46 }
 0x121   : > { %v465_v50 = vpop.f32.mrb[20].mxu0 }
 0x122   : > { %v467_v51 = vpop.f32.mrb[21].mxu0  ;;  %v466_v53 = vadd.f32 %v465_v50, %v2915_v62 }
 0x123   : > { %v469_v52 = vpop.f32.mrb[22].mxu0  ;;  %v2988_v56 = vadd.f32 %v467_v51, %v2917_v0 }
 0x124   : > { %v470_v54 = vadd.f32 %v469_v52, %v2915_v62  ;;  %v471_v55 = vpop.f32.mrb[23].mxu0 }
 0x125   : > { %v2991_v57 = vadd.f32 %v471_v55, %v2917_v0 }
 0x126   : > { %v2993_v58 = vpack.c.bf16 %v470_v54, %v466_v53 }
 0x127   : > { %v595_v59 = vpack.c.bf16 %v2991_v57, %v2988_v56 }
 0x129   : > { %v475_v60 = vpop.f32.mrb[24].mxu0 }
 0x12a   : > { %v477_v61 = vpop.f32.mrb[25].mxu0  ;;  %v476_v1 = vadd.f32 %v475_v60, %v2915_v62 }
 0x12b   : > { %v479_v63 = vpop.f32.mrb[26].mxu0  ;;  %v3000_v4 = vadd.f32 %v477_v61, %v2917_v0 }
 0x12c   : > { %v480_v2 = vadd.f32 %v479_v63, %v2915_v62  ;;  %v481_v3 = vpop.f32.mrb[27].mxu0 }
 0x12d   : > { %v3003_v5 = vadd.f32 %v481_v3, %v2917_v0 }
 0x12e   : > { %v3005_v10 = vpack.c.bf16 %v480_v2, %v476_v1 }
 0x12f   : > { %v596_v11 = vpack.c.bf16 %v3003_v5, %v3000_v4 }
 0x131   : > { %v485_v12 = vpop.f32.mrb[28].mxu0 }
 0x132   : > { %v487_v13 = vpop.f32.mrb[29].mxu0  ;;  %v486_v15 = vadd.f32 %v485_v12, %v2915_v62 }
 0x133   : > { %v489_v14 = vpop.f32.mrb[30].mxu0  ;;  %v3012_v22 = vadd.f32 %v487_v13, %v2917_v0 }
 0x134   : > { %v490_v20 = vadd.f32 %v489_v14, %v2915_v62  ;;  %v491_v21 = vpop.f32.mrb[31].mxu0 }
 0x135   : > { %v3015_v23 = vadd.f32 %v491_v21, %v2917_v0 }
 0x136   : > { %v3017_v24 = vpack.c.bf16 %v490_v20, %v486_v15 }
 0x137   : > { %v597_v25 = vpack.c.bf16 %v3015_v23, %v3012_v22 }
 0x139   : > { %v495_v30 = vpop.f32.mrb[32].mxu0 }
 0x13a   : > { %v497_v31 = vpop.f32.mrb[33].mxu0  ;;  %v496_v33 = vadd.f32 %v495_v30, %v2915_v62 }
 0x13b   : > { %v499_v32 = vpop.f32.mrb[34].mxu0  ;;  %v498_v40 = vadd.f32 %v497_v31, %v2917_v0 }
 0x13c   : > { %v500_v34 = vadd.f32 %v499_v32, %v2915_v62  ;;  %v501_v35 = vpop.f32.mrb[35].mxu0 }
 0x13d   : > { %v502_v41 = vadd.f32 %v501_v35, %v2917_v0 }
 0x13e   : > { %v3025_v42 = vpack.c.bf16 %v500_v34, %v496_v33 }
 0x13f   : > { %v598_v43 = vpack.c.bf16 %v502_v41, %v498_v40 }
 0x140   : > { %638 = vrot.lane.b32.xlu0 %v3025_v42, %s2735_s12 }
 0x141   : > { %v505_v44 = vpop.f32.mrb[36].mxu0  ;;  %2207 = vmatprep.subr.bf16.mxu0 %v598_v43 }
 0x142   : > { %v507_v45 = vpop.f32.mrb[37].mxu0  ;;  %2208 = vmatpush3.bf16.msra.mxu0 %v590_v9  ;;  %v506_v51 = vadd.f32 %v505_v44, %v2915_v62 }
 0x143   : > { %v509_v50 = vpop.f32.mrb[38].mxu0  ;;  %v508_v54 = vadd.f32 %v507_v45, %v2917_v0 }
 0x144   : > { %v510_v52 = vadd.f32 %v509_v50, %v2915_v62  ;;  %v511_v53 = vpop.f32.mrb[39].mxu0  ;;  %626 = vrot.lane.b32.xlu0 %v2957_v28, %s2735_s12 }
 0x145   : > { %v512_v55 = vadd.f32 %v511_v53, %v2917_v0 }
 0x146   : > { %v3038_v60 = vpack.c.bf16 %v510_v52, %v506_v51 }
 0x147   : > { %v599_v61 = vpack.c.bf16 %v512_v55, %v508_v54 }
 0x148   : > { %640 = vrot.lane.b32.xlu1 %v3038_v60, %s2735_s12  ;;  %628 = vrot.lane.b32.xlu0 %v2969_v38, %s2735_s12 }
 0x149   : > { %v515_v6 = vpop.f32.mrb[40].mxu0  ;;  %2209 = vmatprep.subr.bf16.mxu0 %v599_v61 }
 0x14a   : > { %v517_v7 = vpop.f32.mrb[41].mxu0  ;;  %2210 = vmatpush3.bf16.msra.mxu0 %v591_v19  ;;  %v516_v63 = vadd.f32 %v515_v6, %v2915_v62 }
 0x14b   : > { %v519_v9 = vpop.f32.mrb[42].mxu0  ;;  %v518_v3 = vadd.f32 %v517_v7, %v2917_v0 }
 0x14c   : > { %v520_v1 = vadd.f32 %v519_v9, %v2915_v62  ;;  %v521_v2 = vpop.f32.mrb[43].mxu0  ;;  %630 = vrot.lane.b32.xlu0 %v2981_v48, %s2735_s12 }
 0x14d   : > { %v522_v12 = vadd.f32 %v521_v2, %v2917_v0 }
 0x14e   : > { %v3053_v13 = vpack.c.bf16 %v520_v1, %v516_v63 }
 0x14f   : > { %v600_v14 = vpack.c.bf16 %v522_v12, %v518_v3 }
 0x150   : > { %642 = vrot.lane.b32.xlu1 %v3053_v13, %s2735_s12  ;;  %632 = vrot.lane.b32.xlu0 %v2993_v58, %s2735_s12 }
 0x151   : > { %v525_v16 = vpop.f32.mrb[44].mxu0  ;;  %2211 = vmatprep.subr.bf16.mxu0 %v600_v14 }
 0x152   : > { %v527_v17 = vpop.f32.mrb[45].mxu0  ;;  %2212 = vmatpush3.bf16.msra.mxu0 %v592_v29  ;;  %v526_v15 = vadd.f32 %v525_v16, %v2915_v62 }
 0x153   : > { %v529_v19 = vpop.f32.mrb[46].mxu0  ;;  %v528_v30 = vadd.f32 %v527_v17, %v2917_v0 }
 0x154   : > { %v530_v20 = vadd.f32 %v529_v19, %v2915_v62  ;;  %v531_v21 = vpop.f32.mrb[47].mxu0  ;;  %634 = vrot.lane.b32.xlu0 %v3005_v10, %s2735_s12 }
 0x155   : > { %v532_v31 = vadd.f32 %v531_v21, %v2917_v0 }
 0x156   : > { %v3068_v32 = vpack.c.bf16 %v530_v20, %v526_v15 }
 0x157   : > { %v601_v33 = vpack.c.bf16 %v532_v31, %v528_v30 }
 0x158   : > { %644 = vrot.lane.b32.xlu1 %v3068_v32, %s2735_s12  ;;  %636 = vrot.lane.b32.xlu0 %v3017_v24, %s2735_s12 }
 0x159   : > { %v535_v26 = vpop.f32.mrb[48].mxu0  ;;  %2213 = vmatprep.subr.bf16.mxu0 %v601_v33 }
 0x15a   : > { %v537_v27 = vpop.f32.mrb[49].mxu0  ;;  %2214 = vmatpush3.bf16.msra.mxu0 %v593_v39  ;;  %v536_v34 = vadd.f32 %v535_v26, %v2915_v62 }
 0x15b   : > { %v539_v29 = vpop.f32.mrb[50].mxu0  ;;  %v538_v41 = vadd.f32 %v537_v27, %v2917_v0 }
 0x15c   : > { %v540_v35 = vadd.f32 %v539_v29, %v2915_v62  ;;  %v541_v40 = vpop.f32.mrb[51].mxu0 }
 0x15d   : > { %v542_v43 = vadd.f32 %v541_v40, %v2917_v0 }
 0x15e   : > { %v3081_v44 = vpack.c.bf16 %v540_v35, %v536_v34 }
 0x15f   : > { %v602_v45 = vpack.c.bf16 %v542_v43, %v538_v41 }
 0x160   : > { %646 = vrot.lane.b32.xlu1 %v3081_v44, %s2735_s12 }
 0x161   : > { %v545_v50 = vpop.f32.mrb[52].mxu0  ;;  %2215 = vmatprep.subr.bf16.mxu0 %v602_v45 }
 0x162   : > { %v547_v36 = vpop.f32.mrb[53].mxu0  ;;  %2216 = vmatpush3.bf16.msra.mxu0 %v594_v49  ;;  %v546_v39 = vadd.f32 %v545_v50, %v2915_v62 }
 0x163   : > { %v549_v37 = vpop.f32.mrb[54].mxu0  ;;  %v548_v53 = vadd.f32 %v547_v36, %v2917_v0 }
 0x164   : > { %v550_v51 = vadd.f32 %v549_v37, %v2915_v62  ;;  %v551_v52 = vpop.f32.mrb[55].mxu0 }
 0x165   : > { %v552_v54 = vadd.f32 %v551_v52, %v2917_v0 }
 0x166   : > { %v3092_v55 = vpack.c.bf16 %v550_v51, %v546_v39 }
 0x167   : > { %v603_v61 = vpack.c.bf16 %v552_v54, %v548_v53 }
 0x168   : > { %648 = vrot.lane.b32.xlu1 %v3092_v55, %s2735_s12 }
 0x169   : > { %v555_v6 = vpop.f32.mrb[56].mxu0  ;;  %2217 = vmatprep.subr.bf16.mxu0 %v603_v61 }
 0x16a   : > { %v557_v46 = vpop.f32.mrb[57].mxu0  ;;  %2218 = vmatpush3.bf16.msra.mxu0 %v595_v59  ;;  %v556_v49 = vadd.f32 %v555_v6, %v2915_v62 }
 0x16b   : > { %v559_v47 = vpop.f32.mrb[58].mxu0  ;;  %v558_v63 = vadd.f32 %v557_v46, %v2917_v0 }
 0x16c   : > { %v560_v7 = vadd.f32 %v559_v47, %v2915_v62  ;;  %v561_v9 = vpop.f32.mrb[59].mxu0 }
 0x16d   : > { %v562_v1 = vadd.f32 %v561_v9, %v2917_v0 }
 0x16e   : > { %v3103_v2 = vpack.c.bf16 %v560_v7, %v556_v49 }
 0x16f   : > { %v604_v3 = vpack.c.bf16 %v562_v1, %v558_v63 }
 0x170   : > { %650 = vrot.lane.b32.xlu1 %v3103_v2, %s2735_s12 }
 0x171   : > { %v565_v12 = vpop.f32.mrb[60].mxu0  ;;  %2219 = vmatprep.subr.bf16.mxu0 %v604_v3 }
 0x172   : > { %v567_v56 = vpop.f32.mrb[61].mxu0  ;;  %2220 = vmatpush3.bf16.msra.mxu0 %v596_v11  ;;  %v566_v59 = vadd.f32 %v565_v12, %v2915_v62  ;;  %v623_v4 = vpop.permute.xlu0 %622 }
 0x173   : > { %v569_v57 = vpop.f32.mrb[62].mxu0  ;;  %v568_v17 = vadd.f32 %v567_v56, %v2917_v0 }
 0x174   : > { %v570_v14 = vadd.f32 %v569_v57, %v2915_v62  ;;  %v571_v16 = vpop.f32.mrb[63].mxu0  ;;  %v703_v62 = vsel %vm332_vm0, %v623_v4, 0 }
 0x175   : > { %v572_v19 = vadd.f32 %v571_v16, %v2917_v0 }
 0x176   : > { %v3114_v15 = vpack.c.bf16 %v570_v14, %v566_v59 }
 0x177   : > { %v605_v20 = vpack.c.bf16 %v572_v19, %v568_v17 }
 0x178   : > { %652 = vrot.lane.b32.xlu1 %v3114_v15, %s2735_s12  ;;  %s2022_s12 = sshll.u32 %s3789_s10, 4  ;;  %s3913_s12 = int_to_ptr.vmem [resolvable:$true] %s2022_s12 }
 0x179   : > { %2221 = vmatprep.subr.bf16.mxu0 %v605_v20  ;;  %s2670_s16 = scalar_lea.vmem %s3913_s12, 4096  ;;  %p2677_p0 = scmp.lt.s32.totalorder %s3913_s12, %s2675_s23 }
 0x17a   : > { %2222 = vmatpush3.bf16.msra.mxu0 %v597_v25  ;;  %v625_v11 = vpop.permute.xlu1 %624  ;;  %p2671_p11 = scmp.ne.s32.totalorder %s3913_s12, %s2670_s16  ;;  %p2678_p1 = scmp.lt.s32.totalorder %s2676_s25, %s2670_s16 }
 0x17b   : > { %v706_v21 = vsel %vm332_vm0, %v625_v11, 0 }
 0x17c   : > { %p2672_p12 = pnand %p2671_p11, %p2807_p5  ;;  %p2679_p2 = por %p2678_p1, %p2677_p0 }
 0x17e   : > { %p2673_p13 = pneg %p2672_p12 }
 0x180   : > { %p2680_p3 = pnand %p2679_p2, %p2673_p13 }
 0x1b2   : > { %v639_v5 = vpop.permute.xlu0 %638 }
 0x1b3   : > { %2379 = vmatprep.subr.msk.bf16.mxu1 %vm332_vm0, %v639_v5 }
 0x1b4   : > { %2160 = vmatpush3.bf16.xpose.msra.mxu1 %v703_v62 }
 0x1b6   : > { %v627_v30 = vpop.permute.xlu0 %626 }
 0x1b7   : > { %v709_v33 = vsel %vm332_vm0, %v627_v30, 0 }
 0x1ba   : > { %v641_v0 = vpop.permute.xlu1 %640  ;;  %v629_v22 = vpop.permute.xlu0 %628 }
 0x1bb   : > { %2380 = vmatprep.subr.msk.bf16.mxu1 %vm332_vm0, %v641_v0  ;;  %v712_v25 = vsel %vm332_vm0, %v629_v22, 0 }
 0x1bc   : > { %2162 = vmatpush3.bf16.xpose.msra.mxu1 %v706_v21 }
 0x1be   : > { %v631_v26 = vpop.permute.xlu0 %630 }
 0x1bf   : > { %v715_v29 = vsel %vm332_vm0, %v631_v26, 0 }
 0x1c2   : > { %v643_v31 = vpop.permute.xlu1 %642  ;;  %v633_v34 = vpop.permute.xlu0 %632 }
 0x1c3   : > { %2381 = vmatprep.subr.msk.bf16.mxu1 %vm332_vm0, %v643_v31  ;;  %v718_v40 = vsel %vm332_vm0, %v633_v34, 0 }
 0x1c4   : > { %2164 = vmatpush3.bf16.xpose.msra.mxu1 %v709_v33 }
 0x1c6   : > { %v635_v41 = vpop.permute.xlu0 %634 }
 0x1c7   : > { %v721_v45 = vsel %vm332_vm0, %v635_v41, 0 }
 0x1ca   : > { %v645_v23 = vpop.permute.xlu1 %644  ;;  %v637_v50 = vpop.permute.xlu0 %636 }
 0x1cb   : > { %2382 = vmatprep.subr.msk.bf16.mxu1 %vm332_vm0, %v645_v23  ;;  %v724_v37 = vsel %vm332_vm0, %v637_v50, 0 }
 0x1cc   : > { %2166 = vmatpush3.bf16.xpose.msra.mxu1 %v712_v25 }
 0x1d2   : > { %v647_v27 = vpop.permute.xlu1 %646 }
 0x1d3   : > { %2383 = vmatprep.subr.msk.bf16.mxu1 %vm332_vm0, %v647_v27 }
 0x1d4   : > { %2168 = vmatpush3.bf16.xpose.msra.mxu1 %v715_v29 }
 0x1da   : > { %v649_v35 = vpop.permute.xlu1 %648 }
 0x1db   : > { %2384 = vmatprep.subr.msk.bf16.mxu1 %vm332_vm0, %v649_v35 }
 0x1dc   : > { %2170 = vmatpush3.bf16.xpose.msra.mxu1 %v718_v40 }
 0x1e2   : > { %v651_v43 = vpop.permute.xlu1 %650 }
 0x1e3   : > { %2385 = vmatprep.subr.msk.bf16.mxu1 %vm332_vm0, %v651_v43 }
 0x1e4   : > { %2172 = vmatpush3.bf16.xpose.msra.mxu1 %v721_v45 }
 0x1ea   : > { %v653_v36 = vpop.permute.xlu1 %652 }
 0x1eb   : > { %2386 = vmatprep.subr.msk.bf16.mxu1 %vm332_vm0, %v653_v36 }
 0x1ec   : > { %2174 = vmatpush3.bf16.xpose.msra.mxu1 %v724_v37 }
 0x1f3   : > { %2176 = vmatmul.mubr.msk.bf16.vlgmr.msra.gmra.mrb[0].mxu1 %vm332_vm0, %v2927_v8 }
 0x1f4   : > { %2177 = vmatprep.mubr.msk.bf16.mxu1 %vm332_vm0, %v2943_v18 }
 0x1fb   : > { %2178 = vmatmul.mubr.msk.bf16.gmra.mrb[4].mxu1 %vm332_vm0, %v2943_v18 }
 0x1fc   : > { %2179 = vmatprep.mubr.msk.bf16.mxu1 %vm332_vm0, %v2957_v28 }
 0x203   : > { %2180 = vmatmul.mubr.msk.bf16.gmra.mrb[8].mxu1 %vm332_vm0, %v2957_v28 }
 0x204   : > { %2181 = vmatprep.mubr.msk.bf16.mxu1 %vm332_vm0, %v2969_v38 }
 0x20b   : > { %2182 = vmatmul.mubr.msk.bf16.gmra.mrb[12].mxu1 %vm332_vm0, %v2969_v38 }
 0x20c   : > { %2183 = vmatprep.mubr.msk.bf16.mxu1 %vm332_vm0, %v2981_v48 }
 0x213   : > { %2184 = vmatmul.mubr.msk.bf16.gmra.mrb[16].mxu1 %vm332_vm0, %v2981_v48 }
 0x214   : > { %2185 = vmatprep.mubr.msk.bf16.mxu1 %vm332_vm0, %v2993_v58 }
 0x21b   : > { %2186 = vmatmul.mubr.msk.bf16.gmra.mrb[20].mxu1 %vm332_vm0, %v2993_v58 }
 0x21c   : > { %2187 = vmatprep.mubr.msk.bf16.mxu1 %vm332_vm0, %v3005_v10 }
 0x223   : > { %2188 = vmatmul.mubr.msk.bf16.gmra.mrb[24].mxu1 %vm332_vm0, %v3005_v10 }
 0x224   : > { %2189 = vmatprep.mubr.msk.bf16.mxu1 %vm332_vm0, %v3017_v24 }
 0x22b   : > { %2190 = vmatmul.mubr.msk.bf16.gmra.mrb[28].mxu1 %vm332_vm0, %v3017_v24 }
 0x22c   : > { %2191 = vmatprep.mubr.msk.bf16.mxu1 %vm332_vm0, %v3025_v42 }
 0x233   : > { %2192 = vmatmul.mubr.msk.bf16.gmra.mrb[32].mxu1 %vm332_vm0, %v3025_v42 }
 0x234   : > { %2193 = vmatprep.mubr.msk.bf16.mxu1 %vm332_vm0, %v3038_v60 }
 0x23b   : > { %2194 = vmatmul.mubr.msk.bf16.gmra.mrb[36].mxu1 %vm332_vm0, %v3038_v60 }
 0x23c   : > { %2195 = vmatprep.mubr.msk.bf16.mxu1 %vm332_vm0, %v3053_v13 }
 0x243   : > { %2196 = vmatmul.mubr.msk.bf16.gmra.mrb[40].mxu1 %vm332_vm0, %v3053_v13 }
 0x244   : > { %2197 = vmatprep.mubr.msk.bf16.mxu1 %vm332_vm0, %v3068_v32 }
 0x24b   : > { %2198 = vmatmul.mubr.msk.bf16.gmra.mrb[44].mxu1 %vm332_vm0, %v3068_v32 }
 0x24c   : > { %2199 = vmatprep.mubr.msk.bf16.mxu1 %vm332_vm0, %v3081_v44 }
 0x253   : > { %2200 = vmatmul.mubr.msk.bf16.gmra.mrb[48].mxu1 %vm332_vm0, %v3081_v44 }
 0x254   : > { %2201 = vmatprep.mubr.msk.bf16.mxu1 %vm332_vm0, %v3092_v55 }
 0x25b   : > { %2202 = vmatmul.mubr.msk.bf16.gmra.mrb[52].mxu1 %vm332_vm0, %v3092_v55 }
 0x25c   : > { %2203 = vmatprep.mubr.msk.bf16.mxu1 %vm332_vm0, %v3103_v2 }
 0x263   : > { %2204 = vmatmul.mubr.msk.bf16.gmra.mrb[56].mxu1 %vm332_vm0, %v3103_v2 }
 0x264   : > { %2205 = vmatprep.mubr.msk.bf16.mxu1 %vm332_vm0, %v3114_v15 }
 0x26b   : > { %2206 = vmatmul.mubr.msk.bf16.gmra.mrb[60].mxu1 %vm332_vm0, %v3114_v15 }
 0x2c6   : > { %v784_v8 = vpop.f32.mrb[0].mxu1 }
 0x2c7   : > { %v3199_v18 = vmul.f32 0.125, %v784_v8  ;;  %v786_v28 = vpop.f32.mrb[1].mxu1 }
 0x2c8   : > { %v3201_v38 = vmul.f32 0.125, %v786_v28  ;;  %v788_v48 = vpop.f32.mrb[2].mxu1 }
 0x2c9   : > { %v3203_v58 = vmul.f32 0.125, %v788_v48  ;;  %v790_v10 = vpop.f32.mrb[3].mxu1 }
 0x2ca   : > { %v3205_v24 = vmul.f32 0.125, %v790_v10  ;;  %v1007_v42 = vmax.f32 %v3199_v18, %v3201_v38 }
 0x2cc   : > { %1008 = vmax.xlane.f32.xlu0 %v1007_v42  ;;  %v1010_v60 = vmax.f32 %v3203_v58, %v3205_v24 }
 0x2ce   : > { %1011 = vmax.xlane.f32.xlu1 %v1010_v60  ;;  %v794_v13 = vpop.f32.mrb[4].mxu1 }
 0x2cf   : > { %v3211_v32 = vmul.f32 0.125, %v794_v13  ;;  %v796_v44 = vpop.f32.mrb[5].mxu1 }
 0x2d0   : > { %v3213_v39 = vmul.f32 0.125, %v796_v44  ;;  %v798_v51 = vpop.f32.mrb[6].mxu1 }
 0x2d1   : > { %v800_v52 = vpop.f32.mrb[7].mxu1  ;;  %v3215_v53 = vmul.f32 0.125, %v798_v51 }
 0x2d2   : > { %v3217_v54 = vmul.f32 0.125, %v800_v52  ;;  %v1013_v55 = vmax.f32 %v3211_v32, %v3213_v39 }
 0x2d4   : > { %1014 = vmax.xlane.f32.xlu0 %v1013_v55  ;;  %v1016_v6 = vmax.f32 %v3215_v53, %v3217_v54 }
 0x2d6   : > { %v804_v61 = vpop.f32.mrb[8].mxu1 }
 0x2d7   : > { %v3223_v46 = vmul.f32 0.125, %v804_v61  ;;  %v806_v47 = vpop.f32.mrb[9].mxu1 }
 0x2d8   : > { %v3225_v49 = vmul.f32 0.125, %v806_v47  ;;  %1017 = vmax.xlane.f32.xlu0 %v1016_v6  ;;  %v808_v7 = vpop.f32.mrb[10].mxu1 }
 0x2d9   : > { %v3227_v9 = vmul.f32 0.125, %v808_v7  ;;  %v810_v63 = vpop.f32.mrb[11].mxu1 }
 0x2da   : > { %v3229_v1 = vmul.f32 0.125, %v810_v63  ;;  %v1019_v2 = vmax.f32 %v3223_v46, %v3225_v49 }
 0x2dc   : > { %1020 = vmax.xlane.f32.xlu1 %v1019_v2  ;;  %v1022_v3 = vmax.f32 %v3227_v9, %v3229_v1 }
 0x2de   : > { %1023 = vmax.xlane.f32.xlu0 %v1022_v3  ;;  %v814_v12 = vpop.f32.mrb[12].mxu1 }
 0x2df   : > { %v3235_v56 = vmul.f32 0.125, %v814_v12  ;;  %v816_v57 = vpop.f32.mrb[13].mxu1 }
 0x2e0   : > { %v3237_v59 = vmul.f32 0.125, %v816_v57  ;;  %v818_v14 = vpop.f32.mrb[14].mxu1 }
 0x2e1   : > { %v3239_v16 = vmul.f32 0.125, %v818_v14  ;;  %v820_v17 = vpop.f32.mrb[15].mxu1 }
 0x2e2   : > { %v3241_v19 = vmul.f32 0.125, %v820_v17  ;;  %v1025_v15 = vmax.f32 %v3235_v56, %v3237_v59 }
 0x2e4   : > { %1026 = vmax.xlane.f32.xlu1 %v1025_v15  ;;  %v1028_v20 = vmax.f32 %v3239_v16, %v3241_v19 }
 0x2e6   : > { %1029 = vmax.xlane.f32.xlu0 %v1028_v20  ;;  %v824_v4 = vpop.f32.mrb[16].mxu1 }
 0x2e7   : > { %v3247_v5 = vmul.f32 0.125, %v824_v4  ;;  %v826_v62 = vpop.f32.mrb[17].mxu1 }
 0x2e8   : > { %v3249_v11 = vmul.f32 0.125, %v826_v62  ;;  %v828_v0 = vpop.f32.mrb[18].mxu1 }
 0x2e9   : > { %v3251_v21 = vmul.f32 0.125, %v828_v0  ;;  %v830_v30 = vpop.f32.mrb[19].mxu1 }
 0x2ea   : > { %v3253_v31 = vmul.f32 0.125, %v830_v30  ;;  %v1031_v33 = vmax.f32 %v3247_v5, %v3249_v11 }
 0x2ec   : > { %1032 = vmax.xlane.f32.xlu1 %v1031_v33  ;;  %v1034_v22 = vmax.f32 %v3251_v21, %v3253_v31 }
 0x2ee   : > { %1035 = vmax.xlane.f32.xlu0 %v1034_v22  ;;  %v834_v23 = vpop.f32.mrb[20].mxu1 }
 0x2ef   : > { %v3259_v25 = vmul.f32 0.125, %v834_v23  ;;  %v836_v26 = vpop.f32.mrb[21].mxu1 }
 0x2f0   : > { %v3261_v27 = vmul.f32 0.125, %v836_v26  ;;  %v838_v29 = vpop.f32.mrb[22].mxu1 }
 0x2f1   : > { %v3263_v34 = vmul.f32 0.125, %v838_v29  ;;  %v840_v35 = vpop.f32.mrb[23].mxu1 }
 0x2f2   : > { %v3265_v40 = vmul.f32 0.125, %v840_v35  ;;  %v1037_v41 = vmax.f32 %v3259_v25, %v3261_v27 }
 0x2f4   : > { %1038 = vmax.xlane.f32.xlu1 %v1037_v41  ;;  %v1040_v43 = vmax.f32 %v3263_v34, %v3265_v40 }
 0x2f6   : > { %1041 = vmax.xlane.f32.xlu0 %v1040_v43  ;;  %v844_v45 = vpop.f32.mrb[24].mxu1 }
 0x2f7   : > { %v3271_v50 = vmul.f32 0.125, %v844_v45  ;;  %v846_v36 = vpop.f32.mrb[25].mxu1 }
 0x2f8   : > { %v3273_v37 = vmul.f32 0.125, %v846_v36  ;;  %v848_v8 = vpop.f32.mrb[26].mxu1 }
 0x2f9   : > { %v3275_v28 = vmul.f32 0.125, %v848_v8  ;;  %v850_v48 = vpop.f32.mrb[27].mxu1 }
 0x2fa   : > { %v3277_v10 = vmul.f32 0.125, %v850_v48  ;;  %v1043_v42 = vmax.f32 %v3271_v50, %v3273_v37 }
 0x2fc   : > { %1044 = vmax.xlane.f32.xlu1 %v1043_v42  ;;  %v1046_v60 = vmax.f32 %v3275_v28, %v3277_v10 }
 0x2fe   : > { %1047 = vmax.xlane.f32.xlu0 %v1046_v60  ;;  %v854_v13 = vpop.f32.mrb[28].mxu1 }
 0x2ff   : > { %v3283_v44 = vmul.f32 0.125, %v854_v13  ;;  %v856_v51 = vpop.f32.mrb[29].mxu1 }
 0x300   : > { %v3285_v52 = vmul.f32 0.125, %v856_v51  ;;  %v858_v55 = vpop.f32.mrb[30].mxu1 }
 0x301   : > { %v3287_v61 = vmul.f32 0.125, %v858_v55  ;;  %v860_v6 = vpop.f32.mrb[31].mxu1 }
 0x302   : > { %v3289_v47 = vmul.f32 0.125, %v860_v6  ;;  %v1049_v7 = vmax.f32 %v3283_v44, %v3285_v52 }
 0x304   : > { %1050 = vmax.xlane.f32.xlu1 %v1049_v7  ;;  %v1052_v63 = vmax.f32 %v3287_v61, %v3289_v47 }
 0x306   : > { %1053 = vmax.xlane.f32.xlu0 %v1052_v63  ;;  %v864_v2 = vpop.f32.mrb[32].mxu1 }
 0x307   : > { %v3295_v3 = vmul.f32 0.125, %v864_v2  ;;  %v866_v12 = vpop.f32.mrb[33].mxu1 }
 0x308   : > { %v3297_v57 = vmul.f32 0.125, %v866_v12  ;;  %v868_v14 = vpop.f32.mrb[34].mxu1 }
 0x309   : > { %v3299_v17 = vmul.f32 0.125, %v868_v14  ;;  %v870_v15 = vpop.f32.mrb[35].mxu1 }
 0x30a   : > { %v3301_v20 = vmul.f32 0.125, %v870_v15  ;;  %v1055_v4 = vmax.f32 %v3295_v3, %v3297_v57 }
 0x30c   : > { %4000 = vst [vmem:[#allocation5_spill] sm:$0xff] %v3301_v20  ;;  %1056 = vmax.xlane.f32.xlu1 %v1055_v4  ;;  %v1058_v62 = vmax.f32 %v3299_v17, %v3301_v20 }
 0x30e   : > { %1059 = vmax.xlane.f32.xlu0 %v1058_v62  ;;  %v874_v0 = vpop.f32.mrb[36].mxu1 }
 0x30f   : > { %v3307_v30 = vmul.f32 0.125, %v874_v0  ;;  %v876_v33 = vpop.f32.mrb[37].mxu1 }
 0x310   : > { %v3309_v22 = vmul.f32 0.125, %v876_v33  ;;  %v878_v23 = vpop.f32.mrb[38].mxu1 }
 0x311   : > { %4001 = vst [vmem:[#allocation6_spill] sm:$0xff] %v3307_v30  ;;  %v3311_v26 = vmul.f32 0.125, %v878_v23  ;;  %v880_v29 = vpop.f32.mrb[39].mxu1 }
 0x312   : > { %4002 = vst [vmem:[#allocation7_spill] sm:$0xff] %v3309_v22  ;;  %v3313_v35 = vmul.f32 0.125, %v880_v29  ;;  %v1061_v41 = vmax.f32 %v3307_v30, %v3309_v22 }
 0x313   : > { %4003 = vst [vmem:[#allocation8_spill] sm:$0xff] %v3311_v26 }
 0x314   : > { %4004 = vst [vmem:[#allocation9_spill] sm:$0xff] %v3313_v35  ;;  %1062 = vmax.xlane.f32.xlu1 %v1061_v41  ;;  %v1064_v43 = vmax.f32 %v3311_v26, %v3313_v35 }
 0x316   : > { %1065 = vmax.xlane.f32.xlu0 %v1064_v43  ;;  %v884_v45 = vpop.f32.mrb[40].mxu1 }
 0x317   : > { %v3319_v36 = vmul.f32 0.125, %v884_v45  ;;  %v886_v8 = vpop.f32.mrb[41].mxu1 }
 0x318   : > { %v3321_v48 = vmul.f32 0.125, %v886_v8  ;;  %v888_v42 = vpop.f32.mrb[42].mxu1 }
 0x319   : > { %4005 = vst [vmem:[#allocation10_spill] sm:$0xff] %v3319_v36  ;;  %v3323_v60 = vmul.f32 0.125, %v888_v42  ;;  %v890_v13 = vpop.f32.mrb[43].mxu1 }
 0x31a   : > { %4006 = vst [vmem:[#allocation11_spill] sm:$0xff] %v3321_v48  ;;  %v3325_v51 = vmul.f32 0.125, %v890_v13  ;;  %v1067_v55 = vmax.f32 %v3319_v36, %v3321_v48 }
 0x31b   : > { %4007 = vst [vmem:[#allocation12_spill] sm:$0xff] %v3323_v60 }
 0x31c   : > { %4008 = vst [vmem:[#allocation13_spill] sm:$0xff] %v3325_v51  ;;  %1068 = vmax.xlane.f32.xlu1 %v1067_v55  ;;  %v1070_v6 = vmax.f32 %v3323_v60, %v3325_v51 }
 0x31e   : > { %1071 = vmax.xlane.f32.xlu0 %v1070_v6  ;;  %v894_v7 = vpop.f32.mrb[44].mxu1 }
 0x31f   : > { %v3331_v63 = vmul.f32 0.125, %v894_v7  ;;  %v896_v2 = vpop.f32.mrb[45].mxu1 }
 0x320   : > { %v3333_v12 = vmul.f32 0.125, %v896_v2  ;;  %v898_v14 = vpop.f32.mrb[46].mxu1 }
 0x321   : > { %4009 = vst [vmem:[#allocation14_spill] sm:$0xff] %v3331_v63  ;;  %v3335_v15 = vmul.f32 0.125, %v898_v14  ;;  %v900_v4 = vpop.f32.mrb[47].mxu1 }
 0x322   : > { %4010 = vst [vmem:[#allocation15_spill] sm:$0xff] %v3333_v12  ;;  %v3337_v62 = vmul.f32 0.125, %v900_v4  ;;  %v1073_v0 = vmax.f32 %v3331_v63, %v3333_v12 }
 0x323   : > { %4011 = vst [vmem:[#allocation16_spill] sm:$0xff] %v3335_v15 }
 0x324   : > { %4012 = vst [vmem:[#allocation17_spill] sm:$0xff] %v3337_v62  ;;  %1074 = vmax.xlane.f32.xlu1 %v1073_v0  ;;  %v1076_v33 = vmax.f32 %v3335_v15, %v3337_v62 }
 0x326   : > { %1077 = vmax.xlane.f32.xlu0 %v1076_v33  ;;  %v904_v23 = vpop.f32.mrb[48].mxu1 }
 0x327   : > { %v906_v29 = vpop.f32.mrb[49].mxu1 }
 0x328   : > { %v908_v41 = vpop.f32.mrb[50].mxu1 }
 0x329   : > { %v910_v43 = vpop.f32.mrb[51].mxu1 }
 0x32e   : > { %v3343_v45 = vpop.f32.mrb[52].mxu1 }
 0x32f   : > { %v3345_v8 = vpop.f32.mrb[53].mxu1 }
 0x330   : > { %v3347_v42 = vpop.f32.mrb[54].mxu1 }
 0x331   : > { %v3349_v13 = vpop.f32.mrb[55].mxu1 }
 0x336   : > { %v3351_v55 = vpop.f32.mrb[56].mxu1 }
 0x337   : > { %v3353_v6 = vpop.f32.mrb[57].mxu1 }
 0x338   : > { %v3355_v7 = vpop.f32.mrb[58].mxu1 }
 0x339   : > { %v3357_v2 = vpop.f32.mrb[59].mxu1 }
 0x33e   : > { %v3359_v14 = vpop.f32.mrb[60].mxu1 }
 0x33f   : > { %v3361_v4 = vpop.f32.mrb[61].mxu1 }
 0x340   : > { %v3363_v0 = vpop.f32.mrb[62].mxu1 }
 0x341   : > { %v3365_v33 = vpop.f32.mrb[63].mxu1 }
 0x359   : > { %v1009_v62 = vpop.xlane.xlu0 %1008 }
 0x35a   : > { %v1103_v15 = vsub.f32 %v3199_v18, %v1009_v62  ;;  %v1104_v12 = vsub.f32 %v3201_v38, %v1009_v62 }
 0x35b   : > { %v1012_v63 = vpop.xlane.xlu1 %1011 }
 0x35c   : > { %v1167_v51 = vmul.f32 1.442695, %v1103_v15  ;;  %v1169_v60 = vmul.f32 1.442695, %v1104_v12  ;;  %v1105_v48 = vsub.f32 %v3203_v58, %v1012_v63  ;;  %v1106_v36 = vsub.f32 %v3205_v24, %v1012_v63 }
 0x35e   : > { %2446 = vpow2.f32 %v1167_v51  ;;  %v1171_v35 = vmul.f32 1.442695, %v1105_v48  ;;  %v1173_v26 = vmul.f32 1.442695, %v1106_v36 }
 0x35f   : > { %2448 = vpow2.f32 %v1169_v60 }
 0x360   : > { %2450 = vpow2.f32 %v1171_v35 }
 0x361   : > { %2452 = vpow2.f32 %v1173_v26  ;;  %v1015_v22 = vpop.xlane.xlu0 %1014  ;;  %v3379_v26 = vmul.f32 0.125, %v904_v23 }
 0x362   : > { %v1107_v30 = vsub.f32 %v3211_v32, %v1015_v22  ;;  %v1108_v18 = vsub.f32 %v3213_v39, %v1015_v22  ;;  %v3381_v32 = vmul.f32 0.125, %v906_v29  ;;  %v3393_v29 = vmul.f32 0.125, %v908_v41 }
 0x363   : > { %v3409_v41 = vmul.f32 0.125, %v3345_v8 }
 0x364   : > { %v1175_v20 = vmul.f32 1.442695, %v1107_v30  ;;  %v1177_v38 = vmul.f32 1.442695, %v1108_v18  ;;  %v3395_v18 = vmul.f32 0.125, %v910_v43 }
 0x365   : > { %v1018_v62 = vpop.xlane.xlu0 %1017 }
 0x366   : > { %2454 = vpow2.f32 %v1175_v20  ;;  %v1109_v12 = vsub.f32 %v3215_v53, %v1018_v62  ;;  %v1110_v58 = vsub.f32 %v3217_v54, %v1018_v62  ;;  %v1079_v62 = vmax.f32 %v3379_v26, %v3381_v32 }
 0x367   : > { %2456 = vpow2.f32 %v1177_v38 }
 0x368   : > { %v3375_v24 = vpop.eup %2446  ;;  %v1179_v36 = vmul.f32 1.442695, %v1109_v12  ;;  %v1181_v48 = vmul.f32 1.442695, %v1110_v58  ;;  %v1082_v58 = vmax.f32 %v3393_v29, %v3395_v18 }
 0x369   : > { %v3377_v35 = vpop.eup %2448  ;;  %v1021_v39 = vpop.xlane.xlu1 %1020 }
 0x36a   : > { %v3383_v30 = vpop.eup %2450  ;;  %2458 = vpow2.f32 %v1179_v36  ;;  %v1111_v20 = vsub.f32 %v3223_v46, %v1021_v39  ;;  %v1112_v53 = vsub.f32 %v3225_v49, %v1021_v39  ;;  %v1295_v54 = vadd.f32 %v3377_v35, %v3375_v24 }
 0x36b   : > { %v3389_v22 = vpop.eup %2452  ;;  %2460 = vpow2.f32 %v1181_v48  ;;  %v1024_v60 = vpop.xlane.xlu0 %1023 }
 0x36c   : > { %v1183_v51 = vmul.f32 1.442695, %v1111_v20  ;;  %v1185_v63 = vmul.f32 1.442695, %v1112_v53  ;;  %v1113_v15 = vsub.f32 %v3227_v9, %v1024_v60  ;;  %v1114_v23 = vsub.f32 %v3229_v1, %v1024_v60  ;;  %1296 = vadd.xlane.f32.xlu1 %v1295_v54 }
 0x36d   : > { %v1298_v46 = vadd.f32 %v3389_v22, %v3383_v30  ;;  %v3406_v1 = vmul.f32 0.125, %v3343_v45 }
 0x36e   : > { %2462 = vpow2.f32 %v1183_v51  ;;  %v1187_v49 = vmul.f32 1.442695, %v1113_v15  ;;  %v1189_v38 = vmul.f32 1.442695, %v1114_v23 }
 0x36f   : > { %2464 = vpow2.f32 %v1185_v63  ;;  %1299 = vadd.xlane.f32.xlu0 %v1298_v46  ;;  %v1085_v63 = vmax.f32 %v3406_v1, %v3409_v41  ;;  %v3441_v46 = vmul.f32 0.125, %v3353_v6 }
 0x370   : > { %v3401_v12 = vpop.eup %2454  ;;  %2466 = vpow2.f32 %v1187_v49  ;;  %1080 = vmax.xlane.f32.xlu1 %v1079_v62 }
 0x371   : > { %v3403_v9 = vpop.eup %2456  ;;  %2468 = vpow2.f32 %v1189_v38  ;;  %v1027_v43 = vpop.xlane.xlu1 %1026 }
 0x372   : > { %v1115_v36 = vsub.f32 %v3235_v56, %v1027_v43  ;;  %v1116_v48 = vsub.f32 %v3237_v59, %v1027_v43  ;;  %v1301_v39 = vadd.f32 %v3403_v9, %v3401_v12  ;;  %v3424_v56 = vmul.f32 0.125, %v3347_v42 }
 0x373   : > { %1083 = vmax.xlane.f32.xlu0 %v1082_v58  ;;  %v1030_v20 = vpop.xlane.xlu0 %1029  ;;  %v3427_v59 = vmul.f32 0.125, %v3349_v13  ;;  %v3438_v13 = vmul.f32 0.125, %v3351_v55 }
 0x374   : > { %v3417_v53 = vpop.eup %2458  ;;  %v1191_v45 = vmul.f32 1.442695, %v1115_v36  ;;  %v1193_v54 = vmul.f32 1.442695, %v1116_v48  ;;  %v1117_v8 = vsub.f32 %v3239_v16, %v1030_v20  ;;  %v1118_v60 = vsub.f32 %v3241_v19, %v1030_v20  ;;  %1302 = vadd.xlane.f32.xlu1 %v1301_v39 }
 0x375   : > { %v3421_v51 = vpop.eup %2460  ;;  %v1088_v36 = vmax.f32 %v3424_v56, %v3427_v59 }
 0x376   : > { %2470 = vpow2.f32 %v1191_v45  ;;  %v1195_v15 = vmul.f32 1.442695, %v1117_v8  ;;  %v1197_v23 = vmul.f32 1.442695, %v1118_v60  ;;  %v1304_v16 = vadd.f32 %v3421_v51, %v3417_v53 }
 0x377   : > { %2472 = vpow2.f32 %v1193_v54  ;;  %v1091_v54 = vmax.f32 %v3438_v13, %v3441_v46 }
 0x378   : > { %v3433_v19 = vpop.eup %2462  ;;  %2474 = vpow2.f32 %v1195_v15  ;;  %1305 = vadd.xlane.f32.xlu0 %v1304_v16  ;;  %1086 = vmax.xlane.f32.xlu1 %v1085_v63 }
 0x379   : > { %v3435_v42 = vpop.eup %2464  ;;  %2476 = vpow2.f32 %v1197_v23  ;;  %v1033_v49 = vpop.xlane.xlu1 %1032 }
 0x37a   : > { %v3443_v38 = vpop.eup %2466  ;;  %v1119_v62 = vsub.f32 %v3247_v5, %v1033_v49  ;;  %v1120_v43 = vsub.f32 %v3249_v11, %v1033_v49  ;;  %v1307_v58 = vadd.f32 %v3435_v42, %v3433_v19  ;;  %v3456_v5 = vmul.f32 0.125, %v3355_v7 }
 0x37b   : > { %v3451_v48 = vpop.eup %2468  ;;  %v1036_v55 = vpop.xlane.xlu0 %1035  ;;  %v3459_v11 = vmul.f32 0.125, %v3357_v2  ;;  %v3470_v7 = vmul.f32 0.125, %v3359_v14  ;;  %v3473_v2 = vmul.f32 0.125, %v3361_v4 }
 0x37c   : > { %v1199_v39 = vmul.f32 1.442695, %v1119_v62  ;;  %v1201_v6 = vmul.f32 1.442695, %v1120_v43  ;;  %v1121_v20 = vsub.f32 %v3251_v21, %v1036_v55  ;;  %v1122_v45 = vsub.f32 %v3253_v31, %v1036_v55  ;;  %1308 = vadd.xlane.f32.xlu1 %v1307_v58  ;;  %1089 = vmax.xlane.f32.xlu0 %v1088_v36 }
 0x37d   : > { %v1310_v63 = vadd.f32 %v3451_v48, %v3443_v38  ;;  %v1094_v43 = vmax.f32 %v3456_v5, %v3459_v11 }
 0x37e   : > { %2478 = vpow2.f32 %v1199_v39  ;;  %v1203_v8 = vmul.f32 1.442695, %v1121_v20  ;;  %v1205_v60 = vmul.f32 1.442695, %v1122_v45 }
 0x37f   : > { %2480 = vpow2.f32 %v1201_v6  ;;  %v1097_v6 = vmax.f32 %v3470_v7, %v3473_v2 }
 0x380   : > { %v3465_v21 = vpop.eup %2470  ;;  %2482 = vpow2.f32 %v1203_v8  ;;  %1311 = vadd.xlane.f32.xlu0 %v1310_v63  ;;  %1092 = vmax.xlane.f32.xlu1 %v1091_v54 }
 0x381   : > { %v3467_v31 = vpop.eup %2472  ;;  %2484 = vpow2.f32 %v1205_v60  ;;  %v1039_v15 = vpop.xlane.xlu1 %1038 }
 0x382   : > { %v3475_v23 = vpop.eup %2474  ;;  %v1123_v16 = vsub.f32 %v3259_v25, %v1039_v15  ;;  %v1124_v49 = vsub.f32 %v3261_v27, %v1039_v15  ;;  %v1313_v62 = vadd.f32 %v3467_v31, %v3465_v21  ;;  %v3488_v25 = vmul.f32 0.125, %v3363_v0 }
 0x383   : > { %v3483_v58 = vpop.eup %2476  ;;  %v1042_v14 = vpop.xlane.xlu0 %1041  ;;  %v3491_v27 = vmul.f32 0.125, %v3365_v33 }
 0x384   : > { %v1207_v36 = vmul.f32 1.442695, %v1123_v16  ;;  %v1209_v4 = vmul.f32 1.442695, %v1124_v49  ;;  %v1125_v55 = vsub.f32 %v3263_v34, %v1042_v14  ;;  %v1126_v39 = vsub.f32 %v3265_v40, %v1042_v14  ;;  %1314 = vadd.xlane.f32.xlu1 %v1313_v62  ;;  %1095 = vmax.xlane.f32.xlu0 %v1094_v43 }
 0x385   : > { %v1316_v54 = vadd.f32 %v3483_v58, %v3475_v23  ;;  %v1100_v15 = vmax.f32 %v3488_v25, %v3491_v27 }
 0x386   : > { %2486 = vpow2.f32 %v1207_v36  ;;  %v1211_v20 = vmul.f32 1.442695, %v1125_v55  ;;  %v1213_v45 = vmul.f32 1.442695, %v1126_v39 }
 0x387   : > { %2488 = vpow2.f32 %v1209_v4 }
 0x388   : > { %v3497_v34 = vpop.eup %2478  ;;  %2490 = vpow2.f32 %v1211_v20  ;;  %1317 = vadd.xlane.f32.xlu0 %v1316_v54  ;;  %1098 = vmax.xlane.f32.xlu1 %v1097_v6 }
 0x389   : > { %v3499_v40 = vpop.eup %2480  ;;  %2492 = vpow2.f32 %v1213_v45  ;;  %v1045_v0 = vpop.xlane.xlu1 %1044 }
 0x38a   : > { %v3501_v33 = vpop.eup %2482  ;;  %v1127_v8 = vsub.f32 %v3271_v50, %v1045_v0  ;;  %v1128_v60 = vsub.f32 %v3273_v37, %v1045_v0  ;;  %v1319_v63 = vadd.f32 %v3499_v40, %v3497_v34 }
 0x38b   : > { %v3509_v16 = vpop.eup %2484  ;;  %v1048_v49 = vpop.xlane.xlu0 %1047 }
 0x38c   : > { %v1215_v62 = vmul.f32 1.442695, %v1127_v8  ;;  %v1217_v43 = vmul.f32 1.442695, %v1128_v60  ;;  %v1129_v14 = vsub.f32 %v3275_v28, %v1048_v49  ;;  %v1130_v36 = vsub.f32 %v3277_v10, %v1048_v49  ;;  %1320 = vadd.xlane.f32.xlu1 %v1319_v63  ;;  %1101 = vmax.xlane.f32.xlu0 %v1100_v15 }
 0x38d   : > { %v1322_v4 = vadd.f32 %v3509_v16, %v3501_v33 }
 0x38e   : > { %2494 = vpow2.f32 %v1215_v62  ;;  %v1219_v50 = vmul.f32 1.442695, %v1129_v14  ;;  %v1221_v37 = vmul.f32 1.442695, %v1130_v36 }
 0x38f   : > { %2496 = vpow2.f32 %v1217_v43 }
 0x390   : > { %v3515_v55 = vpop.eup %2486  ;;  %2498 = vpow2.f32 %v1219_v50  ;;  %1323 = vadd.xlane.f32.xlu0 %v1322_v4 }
 0x391   : > { %v3517_v39 = vpop.eup %2488  ;;  %2500 = vpow2.f32 %v1221_v37  ;;  %v1051_v6 = vpop.xlane.xlu1 %1050 }
 0x392   : > { %v3519_v28 = vpop.eup %2490  ;;  %v1131_v10 = vsub.f32 %v3283_v44, %v1051_v6  ;;  %v1132_v20 = vsub.f32 %v3285_v52, %v1051_v6  ;;  %v1325_v45 = vadd.f32 %v3517_v39, %v3515_v55 }
 0x393   : > { %v3525_v54 = vpop.eup %2492  ;;  %v1054_v0 = vpop.xlane.xlu0 %1053 }
 0x394   : > { %v1223_v8 = vmul.f32 1.442695, %v1131_v10  ;;  %v1225_v60 = vmul.f32 1.442695, %v1132_v20  ;;  %v1133_v63 = vsub.f32 %v3287_v61, %v1054_v0  ;;  %v1134_v15 = vsub.f32 %v3289_v47, %v1054_v0  ;;  %1326 = vadd.xlane.f32.xlu1 %v1325_v45  ;;  %v4013_v45 = vld [vmem:[#allocation5_spill] sm:$0xff] }
 0x395   : > { %v1328_v49 = vadd.f32 %v3525_v54, %v3519_v28 }
 0x396   : > { %2502 = vpow2.f32 %v1223_v8  ;;  %v1227_v44 = vmul.f32 1.442695, %v1133_v63  ;;  %v1229_v62 = vmul.f32 1.442695, %v1134_v15 }
 0x397   : > { %2504 = vpow2.f32 %v1225_v60  ;;  %1329 = vadd.xlane.f32.xlu0 %v1328_v49 }
 0x398   : > { %v3531_v52 = vpop.eup %2494  ;;  %2506 = vpow2.f32 %v1227_v44 }
 0x399   : > { %v3533_v43 = vpop.eup %2496  ;;  %2508 = vpow2.f32 %v1229_v62  ;;  %v1057_v14 = vpop.xlane.xlu1 %1056  ;;  %v4017_v62 = vld [vmem:[#allocation7_spill] sm:$0xff] }
 0x39a   : > { %v3535_v36 = vpop.eup %2498  ;;  %v1135_v61 = vsub.f32 %v3295_v3, %v1057_v14  ;;  %v1136_v47 = vsub.f32 %v3297_v57, %v1057_v14  ;;  %v1331_v50 = vadd.f32 %v3533_v43, %v3531_v52 }
 0x39b   : > { %v3541_v37 = vpop.eup %2500  ;;  %v1060_v4 = vpop.xlane.xlu0 %1059 }
 0x39c   : > { %v1231_v6 = vmul.f32 1.442695, %v1135_v61  ;;  %v1233_v10 = vmul.f32 1.442695, %v1136_v47  ;;  %v1137_v20 = vsub.f32 %v3299_v17, %v1060_v4  ;;  %v1138_v0 = vsub.f32 %v4013_v45, %v1060_v4  ;;  %1332 = vadd.xlane.f32.xlu1 %v1331_v50  ;;  %v4016_v17 = vld [vmem:[#allocation6_spill] sm:$0xff]  ;;  %v4020_v45 = vld [vmem:[#allocation9_spill] sm:$0xff] }
 0x39d   : > { %v1334_v8 = vadd.f32 %v3541_v37, %v3535_v36 }
 0x39e   : > { %2510 = vpow2.f32 %v1231_v6  ;;  %v1235_v3 = vmul.f32 1.442695, %v1137_v20  ;;  %v1237_v60 = vmul.f32 1.442695, %v1138_v0 }
 0x39f   : > { %2512 = vpow2.f32 %v1233_v10  ;;  %1335 = vadd.xlane.f32.xlu0 %v1334_v8  ;;  %v4019_v10 = vld [vmem:[#allocation8_spill] sm:$0xff] }
 0x3a0   : > { %v3547_v57 = vpop.eup %2502  ;;  %2514 = vpow2.f32 %v1235_v3 }
 0x3a1   : > { %4014 = vst [vmem:[#allocation5_spill] sm:$0xff] %v3547_v57  ;;  %v3549_v63 = vpop.eup %2504  ;;  %2516 = vpow2.f32 %v1237_v60  ;;  %v1063_v15 = vpop.xlane.xlu1 %1062 }
 0x3a2   : > { %v3551_v49 = vpop.eup %2506  ;;  %v1139_v44 = vsub.f32 %v4016_v17, %v1063_v15  ;;  %v1140_v14 = vsub.f32 %v4017_v62, %v1063_v15  ;;  %v1337_v61 = vadd.f32 %v3549_v63, %v3547_v57  ;;  %v4028_v57 = vld [vmem:[#allocation13_spill] sm:$0xff] }
 0x3a3   : > { %4015 = vst [vmem:[#allocation18_spill] sm:$0xff] %v3551_v49  ;;  %v3557_v47 = vpop.eup %2508  ;;  %v1066_v50 = vpop.xlane.xlu0 %1065 }
 0x3a4   : > { %4018 = vst [vmem:[#allocation6_spill] sm:$0xff] %v3557_v47  ;;  %v1239_v4 = vmul.f32 1.442695, %v1139_v44  ;;  %v1241_v6 = vmul.f32 1.442695, %v1140_v14  ;;  %v1141_v20 = vsub.f32 %v4019_v10, %v1066_v50  ;;  %v1142_v0 = vsub.f32 %v4020_v45, %v1066_v50  ;;  %1338 = vadd.xlane.f32.xlu1 %v1337_v61  ;;  %v4024_v14 = vld [vmem:[#allocation10_spill] sm:$0xff] }
 0x3a5   : > { %v1340_v8 = vadd.f32 %v3557_v47, %v3551_v49  ;;  %v4025_v61 = vld [vmem:[#allocation11_spill] sm:$0xff] }
 0x3a6   : > { %2518 = vpow2.f32 %v1239_v4  ;;  %v1243_v3 = vmul.f32 1.442695, %v1141_v20  ;;  %v1245_v60 = vmul.f32 1.442695, %v1142_v0 }
 0x3a7   : > { %2520 = vpow2.f32 %v1241_v6  ;;  %1341 = vadd.xlane.f32.xlu0 %v1340_v8  ;;  %v4027_v8 = vld [vmem:[#allocation12_spill] sm:$0xff] }
 0x3a8   : > { %v3563_v15 = vpop.eup %2510  ;;  %2522 = vpow2.f32 %v1243_v3 }
 0x3a9   : > { %4021 = vst [vmem:[#allocation7_spill] sm:$0xff] %v3563_v15  ;;  %v3565_v17 = vpop.eup %2512  ;;  %2524 = vpow2.f32 %v1245_v60  ;;  %v1069_v44 = vpop.xlane.xlu1 %1068 }
 0x3aa   : > { %4022 = vst [vmem:[#allocation8_spill] sm:$0xff] %v3565_v17  ;;  %v3567_v62 = vpop.eup %2514  ;;  %v1143_v50 = vsub.f32 %v4024_v14, %v1069_v44  ;;  %v1144_v10 = vsub.f32 %v4025_v61, %v1069_v44  ;;  %v1343_v4 = vadd.f32 %v3565_v17, %v3563_v15  ;;  %v4031_v15 = vld [vmem:[#allocation16_spill] sm:$0xff] }
 0x3ab   : > { %4023 = vst [vmem:[#allocation9_spill] sm:$0xff] %v3567_v62  ;;  %v3573_v20 = vpop.eup %2516  ;;  %v1072_v6 = vpop.xlane.xlu0 %1071 }
 0x3ac   : > { %4026 = vst [vmem:[#allocation10_spill] sm:$0xff] %v3573_v20  ;;  %v1247_v45 = vmul.f32 1.442695, %v1143_v50  ;;  %v1249_v0 = vmul.f32 1.442695, %v1144_v10  ;;  %v1145_v3 = vsub.f32 %v4027_v8, %v1072_v6  ;;  %v1146_v49 = vsub.f32 %v4028_v57, %v1072_v6  ;;  %1344 = vadd.xlane.f32.xlu1 %v1343_v4  ;;  %v4029_v8 = vld [vmem:[#allocation14_spill] sm:$0xff] }
 0x3ad   : > { %v1346_v60 = vadd.f32 %v3573_v20, %v3567_v62  ;;  %v4030_v4 = vld [vmem:[#allocation15_spill] sm:$0xff]  ;;  %v4032_v62 = vld [vmem:[#allocation17_spill] sm:$0xff] }
 0x3ae   : > { %2526 = vpow2.f32 %v1247_v45  ;;  %v1251_v14 = vmul.f32 1.442695, %v1145_v3  ;;  %v1253_v47 = vmul.f32 1.442695, %v1146_v49 }
 0x3af   : > { %2528 = vpow2.f32 %v1249_v0  ;;  %1347 = vadd.xlane.f32.xlu0 %v1346_v60 }
 0x3b0   : > { %v3579_v44 = vpop.eup %2518  ;;  %2530 = vpow2.f32 %v1251_v14 }
 0x3b1   : > { %v3581_v61 = vpop.eup %2520  ;;  %2532 = vpow2.f32 %v1253_v47  ;;  %v1075_v50 = vpop.xlane.xlu1 %1074 }
 0x3b2   : > { %v3583_v10 = vpop.eup %2522  ;;  %v1147_v57 = vsub.f32 %v4029_v8, %v1075_v50  ;;  %v1148_v6 = vsub.f32 %v4030_v4, %v1075_v50  ;;  %v1349_v45 = vadd.f32 %v3581_v61, %v3579_v44 }
 0x3b3   : > { %v3589_v3 = vpop.eup %2524  ;;  %v1078_v49 = vpop.xlane.xlu0 %1077 }
 0x3b4   : > { %v1255_v0 = vmul.f32 1.442695, %v1147_v57  ;;  %v1257_v60 = vmul.f32 1.442695, %v1148_v6  ;;  %v1149_v14 = vsub.f32 %v4031_v15, %v1078_v49  ;;  %v1150_v20 = vsub.f32 %v4032_v62, %v1078_v49  ;;  %1350 = vadd.xlane.f32.xlu1 %v1349_v45 }
 0x3b5   : > { %v1352_v47 = vadd.f32 %v3589_v3, %v3583_v10 }
 0x3b6   : > { %2534 = vpow2.f32 %v1255_v0  ;;  %v1259_v8 = vmul.f32 1.442695, %v1149_v14  ;;  %v1261_v17 = vmul.f32 1.442695, %v1150_v20 }
 0x3b7   : > { %2536 = vpow2.f32 %v1257_v60  ;;  %1353 = vadd.xlane.f32.xlu0 %v1352_v47 }
 0x3b8   : > { %v3595_v50 = vpop.eup %2526  ;;  %2538 = vpow2.f32 %v1259_v8 }
 0x3b9   : > { %4033 = vst [vmem:[#allocation11_spill] sm:$0xff] %v3595_v50  ;;  %v3597_v4 = vpop.eup %2528  ;;  %2540 = vpow2.f32 %v1261_v17 }
 0x3ba   : > { %v3599_v57 = vpop.eup %2530  ;;  %v1355_v15 = vadd.f32 %v3597_v4, %v3595_v50 }
 0x3bb   : > { %4034 = vst [vmem:[#allocation12_spill] sm:$0xff] %v3599_v57  ;;  %v3603_v62 = vpop.eup %2532 }
 0x3bc   : > { %4035 = vst [vmem:[#allocation13_spill] sm:$0xff] %v3603_v62  ;;  %1356 = vadd.xlane.f32.xlu1 %v1355_v15  ;;  %v1358_v6 = vadd.f32 %v3603_v62, %v3599_v57 }
 0x3be   : > { %1359 = vadd.xlane.f32.xlu0 %v1358_v6 }
 0x3c0   : > { %v3607_v20 = vpop.eup %2534 }
 0x3c1   : > { %4036 = vst [vmem:[#allocation14_spill] sm:$0xff] %v3607_v20  ;;  %v3609_v45 = vpop.eup %2536 }
 0x3c2   : > { %4037 = vst [vmem:[#allocation15_spill] sm:$0xff] %v3609_v45  ;;  %v3611_v49 = vpop.eup %2538  ;;  %v1361_v17 = vadd.f32 %v3609_v45, %v3607_v20 }
 0x3c3   : > { %4038 = vst [vmem:[#allocation16_spill] sm:$0xff] %v3611_v49  ;;  %v3615_v0 = vpop.eup %2540 }
 0x3c4   : > { %4039 = vst [vmem:[#allocation17_spill] sm:$0xff] %v3615_v0  ;;  %1362 = vadd.xlane.f32.xlu1 %v1361_v17  ;;  %v1364_v60 = vadd.f32 %v3615_v0, %v3611_v49 }
 0x3c6   : > { %1365 = vadd.xlane.f32.xlu0 %v1364_v60 }
 0x3f9   : > { %v1297_v14 = vpop.xlane.xlu1 %1296 }
 0x3fa   : > { %2542 = vrcp.f32 %v1297_v14 }
 0x3fc   : > { %v1300_v47 = vpop.xlane.xlu0 %1299 }
 0x3fd   : > { %2544 = vrcp.f32 %v1300_v47  ;;  %v1081_v8 = vpop.xlane.xlu1 %1080 }
 0x3fe   : > { %v1151_v15 = vsub.f32 %v3379_v26, %v1081_v8  ;;  %v1152_v6 = vsub.f32 %v3381_v32, %v1081_v8 }
 0x400   : > { %v1263_v50 = vmul.f32 1.442695, %v1151_v15  ;;  %v1265_v57 = vmul.f32 1.442695, %v1152_v6  ;;  %v1084_v62 = vpop.xlane.xlu0 %1083 }
 0x401   : > { %v1153_v20 = vsub.f32 %v3393_v29, %v1084_v62  ;;  %v1154_v17 = vsub.f32 %v3395_v18, %v1084_v62  ;;  %v1303_v45 = vpop.xlane.xlu1 %1302 }
 0x402   : > { %2546 = vpow2.f32 %v1263_v50 }
 0x403   : > { %2548 = vpow2.f32 %v1265_v57  ;;  %v1267_v60 = vmul.f32 1.442695, %v1153_v20  ;;  %v1269_v49 = vmul.f32 1.442695, %v1154_v17 }
 0x404   : > { %v2543_v14 = vpop.eup %2542  ;;  %2550 = vrcp.f32 %v1303_v45 }
 0x405   : > { %2552 = vpow2.f32 %v1267_v60  ;;  %v1306_v47 = vpop.xlane.xlu0 %1305  ;;  %v1087_v0 = vpop.xlane.xlu1 %1086  ;;  %v1424_v29 = vmul.f32 %v2543_v14, %v3377_v35  ;;  %v1423_v20 = vmul.f32 %v2543_v14, %v3375_v24 }
 0x406   : > { %2554 = vpow2.f32 %v1269_v49  ;;  %v1155_v26 = vsub.f32 %v3406_v1, %v1087_v0  ;;  %v1156_v32 = vsub.f32 %v3409_v41, %v1087_v0 }
 0x407   : > { %v2545_v8 = vpop.eup %2544  ;;  %2556 = vrcp.f32 %v1306_v47 }
 0x408   : > { %v1425_v18 = vmul.f32 %v2545_v8, %v3383_v30  ;;  %v1271_v50 = vmul.f32 1.442695, %v1155_v26  ;;  %v1273_v57 = vmul.f32 1.442695, %v1156_v32  ;;  %v1426_v62 = vmul.f32 %v2545_v8, %v3389_v22 }
 0x409   : > { %v1309_v45 = vpop.xlane.xlu1 %1308  ;;  %v1090_v15 = vpop.xlane.xlu0 %1089 }
 0x40a   : > { %2558 = vpow2.f32 %v1271_v50  ;;  %v1157_v49 = vsub.f32 %v3424_v56, %v1090_v15  ;;  %v1158_v1 = vsub.f32 %v3427_v59, %v1090_v15  ;;  %v1488_v41 = vpack.c.bf16 %v1426_v62, %v1424_v29 }
 0x40b   : > { %2560 = vpow2.f32 %v1273_v57  ;;  %v1487_v0 = vpack.c.bf16 %v1425_v18, %v1423_v20 }
 0x40c   : > { %v3631_v6 = vpop.eup %2546  ;;  %2562 = vrcp.f32 %v1309_v45  ;;  %v1275_v35 = vmul.f32 1.442695, %v1157_v49  ;;  %v1277_v30 = vmul.f32 1.442695, %v1158_v1  ;;  %1551 = vmatprep.mubr.bf16.mxu0 %v1488_v41 }
 0x40d   : > { %v3633_v17 = vpop.eup %2548  ;;  %1552 = vmatmul.mubr.bf16.vlgmr.msra.gmra.mrb[64].mxu0 %v1487_v0  ;;  %v1312_v24 = vpop.xlane.xlu0 %1311 }
 0x40e   : > { %v1093_v22 = vpop.xlane.xlu1 %1092  ;;  %v2551_v60 = vpop.eup %2550  ;;  %2564 = vpow2.f32 %v1275_v35  ;;  %v1367_v14 = vadd.f32 %v3633_v17, %v3631_v6 }
 0x40f   : > { %v1159_v56 = vsub.f32 %v3438_v13, %v1093_v22  ;;  %v1160_v59 = vsub.f32 %v3441_v46, %v1093_v22  ;;  %v3639_v47 = vpop.eup %2552  ;;  %2566 = vpow2.f32 %v1277_v30  ;;  %v1428_v46 = vmul.f32 %v2551_v60, %v3403_v9 }
 0x410   : > { %v3641_v26 = vpop.eup %2554  ;;  %2568 = vrcp.f32 %v1312_v24  ;;  %1368 = vadd.xlane.f32.xlu1 %v1367_v14  ;;  %v1427_v45 = vmul.f32 %v2551_v60, %v3401_v12 }
 0x411   : > { %v1279_v32 = vmul.f32 1.442695, %v1159_v56  ;;  %v1281_v8 = vmul.f32 1.442695, %v1160_v59  ;;  %v2557_v29 = vpop.eup %2556  ;;  %v1096_v50 = vpop.xlane.xlu0 %1095  ;;  %v1370_v13 = vadd.f32 %v3641_v26, %v3639_v47 }
 0x412   : > { %v1315_v18 = vpop.xlane.xlu1 %1314  ;;  %v1161_v57 = vsub.f32 %v3456_v5, %v1096_v50  ;;  %v1162_v62 = vsub.f32 %v3459_v11, %v1096_v50  ;;  %v1430_v20 = vmul.f32 %v2557_v29, %v3421_v51  ;;  %v1429_v15 = vmul.f32 %v2557_v29, %v3417_v53 }
 0x413   : > { %2570 = vpow2.f32 %v1279_v32  ;;  %1371 = vadd.xlane.f32.xlu0 %v1370_v13 }
 0x414   : > { %2572 = vpow2.f32 %v1281_v8  ;;  %v3651_v49 = vpop.eup %2558  ;;  %v1283_v1 = vmul.f32 1.442695, %v1161_v57  ;;  %v1285_v41 = vmul.f32 1.442695, %v1162_v62  ;;  %v1490_v0 = vpack.c.bf16 %v1430_v20, %v1428_v46 }
 0x415   : > { %v3653_v35 = vpop.eup %2560  ;;  %2574 = vrcp.f32 %v1315_v18  ;;  %v1318_v9 = vpop.xlane.xlu0 %1317  ;;  %v1489_v30 = vpack.c.bf16 %v1429_v15, %v1427_v45 }
 0x416   : > { %v1099_v5 = vpop.xlane.xlu1 %1098  ;;  %v2563_v11 = vpop.eup %2562  ;;  %2576 = vpow2.f32 %v1283_v1  ;;  %1559 = vmatprep.mubr.bf16.mxu0 %v1490_v0  ;;  %v1373_v53 = vadd.f32 %v3653_v35, %v3651_v49 }
 0x417   : > { %v1163_v51 = vsub.f32 %v3470_v7, %v1099_v5  ;;  %v1164_v12 = vsub.f32 %v3473_v2, %v1099_v5  ;;  %2578 = vpow2.f32 %v1285_v41  ;;  %1560 = vmatmul.mubr.bf16.gmra.mrb[68].mxu0 %v1489_v30  ;;  %v1432_v14 = vmul.f32 %v2563_v11, %v3435_v42 }
 0x418   : > { %v3659_v24 = vpop.eup %2564  ;;  %2580 = vrcp.f32 %v1318_v9  ;;  %1374 = vadd.xlane.f32.xlu1 %v1373_v53  ;;  %v1431_v50 = vmul.f32 %v2563_v11, %v3433_v19 }
 0x419   : > { %v1287_v22 = vmul.f32 1.442695, %v1163_v51  ;;  %v1289_v60 = vmul.f32 1.442695, %v1164_v12  ;;  %v3661_v56 = vpop.eup %2566  ;;  %v1102_v59 = vpop.xlane.xlu0 %1101 }
 0x41a   : > { %v2569_v32 = vpop.eup %2568  ;;  %v1321_v7 = vpop.xlane.xlu1 %1320  ;;  %v1165_v2 = vsub.f32 %v3488_v25, %v1102_v59  ;;  %v1166_v8 = vsub.f32 %v3491_v27, %v1102_v59  ;;  %v1376_v29 = vadd.f32 %v3661_v56, %v3659_v24 }
 0x41b   : > { %2582 = vpow2.f32 %v1287_v22  ;;  %v1434_v18 = vmul.f32 %v2569_v32, %v3451_v48  ;;  %v1433_v13 = vmul.f32 %v2569_v32, %v3443_v38 }
 0x41c   : > { %2584 = vpow2.f32 %v1289_v60  ;;  %v1291_v42 = vmul.f32 1.442695, %v1165_v2  ;;  %v1293_v57 = vmul.f32 1.442695, %v1166_v8  ;;  %1377 = vadd.xlane.f32.xlu0 %v1376_v29 }
 0x41d   : > { %v3671_v46 = vpop.eup %2570  ;;  %2586 = vrcp.f32 %v1321_v7  ;;  %v1492_v25 = vpack.c.bf16 %v1434_v18, %v1432_v14  ;;  %v1324_v27 = vpop.xlane.xlu0 %1323  ;;  %v1491_v20 = vpack.c.bf16 %v1433_v13, %v1431_v50 }
 0x41e   : > { %v3673_v62 = vpop.eup %2572  ;;  %2588 = vpow2.f32 %v1291_v42 }
 0x41f   : > { %v1379_v45 = vadd.f32 %v3673_v62, %v3671_v46  ;;  %v2575_v48 = vpop.eup %2574  ;;  %2590 = vpow2.f32 %v1293_v57  ;;  %1567 = vmatprep.mubr.bf16.mxu0 %v1492_v25 }
 0x420   : > { %v3677_v19 = vpop.eup %2576  ;;  %2592 = vrcp.f32 %v1324_v27  ;;  %1568 = vmatmul.mubr.bf16.gmra.mrb[72].mxu0 %v1491_v20  ;;  %v1436_v0 = vmul.f32 %v2575_v48, %v3467_v31  ;;  %v1435_v5 = vmul.f32 %v2575_v48, %v3465_v21 }
 0x421   : > { %1380 = vadd.xlane.f32.xlu1 %v1379_v45  ;;  %v3679_v38 = vpop.eup %2578  ;;  %v1327_v15 = vpop.xlane.xlu1 %1326 }
 0x422   : > { %v2581_v1 = vpop.eup %2580  ;;  %v1382_v41 = vadd.f32 %v3679_v38, %v3677_v19  ;;  %2594 = vrcp.f32 %v1327_v15 }
 0x423   : > { %v1438_v9 = vmul.f32 %v2581_v1, %v3483_v58  ;;  %v1437_v30 = vmul.f32 %v2581_v1, %v3475_v23 }
 0x424   : > { %1383 = vadd.xlane.f32.xlu0 %v1382_v41  ;;  %v1330_v51 = vpop.xlane.xlu0 %1329 }
 0x425   : > { %v3687_v11 = vpop.eup %2582  ;;  %2596 = vrcp.f32 %v1330_v51  ;;  %v1494_v53 = vpack.c.bf16 %v1438_v9, %v1436_v0  ;;  %v1493_v22 = vpack.c.bf16 %v1437_v30, %v1435_v5  ;;  %v4040_v51 = vld [vmem:[#allocation6_spill] sm:$0xff] }
 0x426   : > { %v3689_v12 = vpop.eup %2584 }
 0x427   : > { %v1385_v60 = vadd.f32 %v3689_v12, %v3687_v11  ;;  %v2587_v31 = vpop.eup %2586  ;;  %1575 = vmatprep.mubr.bf16.mxu0 %v1494_v53 }
 0x428   : > { %v3693_v59 = vpop.eup %2588  ;;  %1576 = vmatmul.mubr.bf16.gmra.mrb[76].mxu0 %v1493_v22  ;;  %v1440_v32 = vmul.f32 %v2587_v31, %v3499_v40  ;;  %v1439_v2 = vmul.f32 %v2587_v31, %v3497_v34  ;;  %v4041_v22 = vld [vmem:[#allocation18_spill] sm:$0xff]  ;;  %v4042_v31 = vld [vmem:[#allocation5_spill] sm:$0xff] }
 0x429   : > { %1386 = vadd.xlane.f32.xlu1 %v1385_v60  ;;  %v3695_v21 = vpop.eup %2590  ;;  %v1333_v23 = vpop.xlane.xlu1 %1332 }
 0x42a   : > { %v2593_v58 = vpop.eup %2592  ;;  %v1388_v14 = vadd.f32 %v3695_v21, %v3693_v59  ;;  %2598 = vrcp.f32 %v1333_v23 }
 0x42b   : > { %v1442_v7 = vmul.f32 %v2593_v58, %v3509_v16  ;;  %v1441_v8 = vmul.f32 %v2593_v58, %v3501_v33 }
 0x42c   : > { %1389 = vadd.xlane.f32.xlu0 %v1388_v14  ;;  %v1336_v29 = vpop.xlane.xlu0 %1335  ;;  %v2595_v18 = vpop.eup %2594 }
 0x42d   : > { %2600 = vrcp.f32 %v1336_v29  ;;  %v1496_v50 = vpack.c.bf16 %v1442_v7, %v1440_v32  ;;  %v1495_v13 = vpack.c.bf16 %v1441_v8, %v1439_v2  ;;  %v1444_v57 = vmul.f32 %v2595_v18, %v3517_v39  ;;  %v4043_v32 = vld [vmem:[#allocation8_spill] sm:$0xff]  ;;  %v4044_v2 = vld [vmem:[#allocation10_spill] sm:$0xff] }
 0x42e   : > { %v1443_v33 = vmul.f32 %v2595_v18, %v3515_v55  ;;  %v4045_v18 = vld [vmem:[#allocation9_spill] sm:$0xff] }
 0x42f   : > { %v2597_v42 = vpop.eup %2596  ;;  %1583 = vmatprep.mubr.bf16.mxu0 %v1496_v50 }
 0x430   : > { %1584 = vmatmul.mubr.bf16.gmra.mrb[80].mxu0 %v1495_v13  ;;  %v1446_v40 = vmul.f32 %v2597_v42, %v3525_v54  ;;  %v1445_v16 = vmul.f32 %v2597_v42, %v3519_v28  ;;  %v4046_v42 = vld [vmem:[#allocation7_spill] sm:$0xff] }
 0x431   : > { %v1339_v25 = vpop.xlane.xlu1 %1338 }
 0x432   : > { %v1498_v27 = vpack.c.bf16 %v1446_v40, %v1444_v57  ;;  %2602 = vrcp.f32 %v1339_v25  ;;  %v1497_v45 = vpack.c.bf16 %v1445_v16, %v1443_v33 }
 0x434   : > { %1591 = vmatprep.mubr.bf16.mxu0 %v1498_v27  ;;  %v1342_v34 = vpop.xlane.xlu0 %1341  ;;  %v2599_v20 = vpop.eup %2598 }
 0x435   : > { %2604 = vrcp.f32 %v1342_v34  ;;  %v1448_v15 = vmul.f32 %v2599_v20, %v3533_v43  ;;  %v1447_v0 = vmul.f32 %v2599_v20, %v3531_v52 }
 0x437   : > { %v2601_v48 = vpop.eup %2600 }
 0x438   : > { %1592 = vmatmul.mubr.bf16.gmra.mrb[84].mxu0 %v1497_v45  ;;  %v1450_v39 = vmul.f32 %v2601_v48, %v3541_v37  ;;  %v1449_v41 = vmul.f32 %v2601_v48, %v3535_v36 }
 0x439   : > { %v1345_v1 = vpop.xlane.xlu1 %1344 }
 0x43a   : > { %v1500_v54 = vpack.c.bf16 %v1450_v39, %v1448_v15  ;;  %2606 = vrcp.f32 %v1345_v1  ;;  %v1499_v55 = vpack.c.bf16 %v1449_v41, %v1447_v0 }
 0x43c   : > { %1599 = vmatprep.mubr.bf16.mxu0 %v1500_v54  ;;  %v1348_v28 = vpop.xlane.xlu0 %1347  ;;  %v2603_v9 = vpop.eup %2602 }
 0x43d   : > { %2608 = vrcp.f32 %v1348_v28  ;;  %v1452_v30 = vmul.f32 %v2603_v9, %v3549_v63  ;;  %v1451_v23 = vmul.f32 %v2603_v9, %v4042_v31  ;;  %v4047_v28 = vld [vmem:[#allocation13_spill] sm:$0xff]  ;;  %v4053_v31 = vld [vmem:[#allocation14_spill] sm:$0xff] }
 0x43f   : > { %v2605_v5 = vpop.eup %2604 }
 0x440   : > { %1600 = vmatmul.mubr.bf16.gmra.mrb[88].mxu0 %v1499_v55  ;;  %v1454_v43 = vmul.f32 %v2605_v5, %v4040_v51  ;;  %v1453_v60 = vmul.f32 %v2605_v5, %v4041_v22  ;;  %v4049_v5 = vld [vmem:[#allocation11_spill] sm:$0xff] }
 0x441   : > { %v1351_v53 = vpop.xlane.xlu1 %1350 }
 0x442   : > { %v1502_v37 = vpack.c.bf16 %v1454_v43, %v1452_v30  ;;  %2610 = vrcp.f32 %v1351_v53  ;;  %v1501_v52 = vpack.c.bf16 %v1453_v60, %v1451_v23  ;;  %v4050_v43 = vld [vmem:[#allocation15_spill] sm:$0xff]  ;;  %v4052_v60 = vld [vmem:[#allocation16_spill] sm:$0xff] }
 0x444   : > { %1607 = vmatprep.mubr.bf16.mxu0 %v1502_v37  ;;  %v1354_v36 = vpop.xlane.xlu0 %1353  ;;  %v2607_v58 = vpop.eup %2606  ;;  %v4051_v37 = vld [vmem:[#allocation17_spill] sm:$0xff] }
 0x445   : > { %2612 = vrcp.f32 %v1354_v36  ;;  %v1456_v7 = vmul.f32 %v2607_v58, %v4043_v32  ;;  %v1455_v57 = vmul.f32 %v2607_v58, %v4046_v42  ;;  %v2443_v58 = vld [vmem:[%s3968_s3 + $0x8] sm:$0xff]   ;;  %v2445_v32 = vld [vmem:[%s3968_s3 + $0x18] sm:$0xff]  }
 0x447   : > { %v2609_v14 = vpop.eup %2608 }
 0x448   : > { %1608 = vmatmul.mubr.bf16.gmra.mrb[92].mxu0 %v1501_v52  ;;  %v1458_v63 = vmul.f32 %v2609_v14, %v4044_v2  ;;  %v1457_v50 = vmul.f32 %v2609_v14, %v4045_v18  ;;  %v2444_v14 = vld [vmem:[%s3968_s3 + $0x10] sm:$0xff]  }
 0x449   : > { %v1357_v8 = vpop.xlane.xlu1 %1356 }
 0x44a   : > { %2614 = vrcp.f32 %v1357_v8  ;;  %v1504_v29 = vpack.c.bf16 %v1458_v63, %v1456_v7  ;;  %v1503_v25 = vpack.c.bf16 %v1457_v50, %v1455_v57 }
 0x44b   : > { %v1360_v13 = vpop.xlane.xlu0 %1359 }
 0x44c   : > { %1615 = vmatprep.mubr.bf16.mxu0 %v1504_v29  ;;  %2616 = vrcp.f32 %v1360_v13  ;;  %v2611_v40 = vpop.eup %2610 }
 0x44d   : > { %v1460_v16 = vmul.f32 %v2611_v40, %v3581_v61  ;;  %v1459_v39 = vmul.f32 %v2611_v40, %v3579_v44 }
 0x44f   : > { %v2613_v27 = vpop.eup %2612 }
 0x450   : > { %1616 = vmatmul.mubr.bf16.gmra.mrb[96].mxu0 %v1503_v25  ;;  %v1462_v34 = vmul.f32 %v2613_v27, %v3589_v3  ;;  %v1461_v45 = vmul.f32 %v2613_v27, %v3583_v10  ;;  %v4048_v3 = vld [vmem:[#allocation12_spill] sm:$0xff] }
 0x451   : > { %v1363_v33 = vpop.xlane.xlu1 %1362 }
 0x452   : > { %2618 = vrcp.f32 %v1363_v33  ;;  %v1506_v20 = vpack.c.bf16 %v1462_v34, %v1460_v16  ;;  %v1505_v54 = vpack.c.bf16 %v1461_v45, %v1459_v39 }
 0x453   : > { %v1366_v48 = vpop.xlane.xlu0 %1365 }
 0x454   : > { %v2615_v15 = vpop.eup %2614  ;;  %1623 = vmatprep.mubr.bf16.mxu0 %v1506_v20  ;;  %2620 = vrcp.f32 %v1366_v48 }
 0x455   : > { %v1464_v41 = vmul.f32 %v2615_v15, %v3597_v4  ;;  %v1463_v10 = vmul.f32 %v2615_v15, %v4049_v5  ;;  %v2442_v4 = vld [vmem:[%s3968_s3] sm:$0xff]  }
 0x456   : > { %v2617_v1 = vpop.eup %2616  ;;  %2339 = vmatprep.subr.bf16.mxu1 %v2442_v4 }
 0x457   : > { %v1466_v0 = vmul.f32 %v2617_v1, %v4047_v28  ;;  %v1465_v9 = vmul.f32 %v2617_v1, %v4048_v3  ;;  %2340 = vmatpush3.bf16.msra.mxu1 %v2442_v4 }
 0x458   : > { %1624 = vmatmul.mubr.bf16.gmra.mrb[100].mxu0 %v1505_v54  ;;  %2341 = vmatprep.subr.bf16.mxu1 %v2443_v58 }
 0x459   : > { %v1508_v61 = vpack.c.bf16 %v1466_v0, %v1464_v41  ;;  %v1507_v51 = vpack.c.bf16 %v1465_v9, %v1463_v10 }
 0x45b   : > { %1631 = vmatprep.mubr.bf16.mxu0 %v1508_v61  ;;  %2342 = vmatpush3.bf16.msra.mxu1 %v2443_v58 }
 0x45c   : > { %v2619_v55 = vpop.eup %2618  ;;  %2343 = vmatprep.subr.bf16.mxu1 %v2444_v14 }
 0x45d   : > { %v1468_v53 = vmul.f32 %v2619_v55, %v4050_v43  ;;  %v1467_v23 = vmul.f32 %v2619_v55, %v4053_v31 }
 0x45e   : > { %v2621_v30 = vpop.eup %2620 }
 0x45f   : > { %v1470_v44 = vmul.f32 %v2621_v30, %v4051_v37  ;;  %v1469_v36 = vmul.f32 %v2621_v30, %v4052_v60  ;;  %2344 = vmatpush3.bf16.msra.mxu1 %v2444_v14 }
 0x460   : > { %1632 = vmatmul.mubr.bf16.gmra.mrb[104].mxu0 %v1507_v51  ;;  %2345 = vmatprep.subr.bf16.mxu1 %v2445_v32 }
 0x461   : > { %v1510_v22 = vpack.c.bf16 %v1470_v44, %v1468_v53  ;;  %v1509_v52 = vpack.c.bf16 %v1469_v36, %v1467_v23 }
 0x463   : > { %1639 = vmatprep.mubr.bf16.mxu0 %v1510_v22  ;;  %2346 = vmatpush3.bf16.msra.mxu1 %v2445_v32 }
 0x468   : > { %1640 = vmatmul.mubr.bf16.gmra.mrb[108].mxu0 %v1509_v52 }
 0x49d   : > { %v1369_v7 = vpop.xlane.xlu1 %1368 }
 0x49e   : > { %2622 = vrcp.f32 %v1369_v7 }
 0x4a0   : > { %v1372_v2 = vpop.xlane.xlu0 %1371 }
 0x4a1   : > { %2624 = vrcp.f32 %v1372_v2 }
 0x4a5   : > { %v1375_v63 = vpop.xlane.xlu1 %1374 }
 0x4a6   : > { %2626 = vrcp.f32 %v1375_v63 }
 0x4a8   : > { %v2623_v8 = vpop.eup %2622 }
 0x4a9   : > { %v1378_v29 = vpop.xlane.xlu0 %1377  ;;  %v1472_v50 = vmul.f32 %v2623_v8, %v3633_v17  ;;  %v1471_v42 = vmul.f32 %v2623_v8, %v3631_v6 }
 0x4aa   : > { %2628 = vrcp.f32 %v1378_v29 }
 0x4ab   : > { %v2625_v18 = vpop.eup %2624 }
 0x4ac   : > { %v1474_v13 = vmul.f32 %v2625_v18, %v3641_v26  ;;  %v1473_v57 = vmul.f32 %v2625_v18, %v3639_v47 }
 0x4ae   : > { %v1381_v40 = vpop.xlane.xlu1 %1380  ;;  %v1512_v25 = vpack.c.bf16 %v1474_v13, %v1472_v50  ;;  %v1511_v27 = vpack.c.bf16 %v1473_v57, %v1471_v42 }
 0x4af   : > { %2630 = vrcp.f32 %v1381_v40 }
 0x4b0   : > { %1647 = vmatprep.mubr.bf16.mxu0 %v1512_v25  ;;  %v2627_v34 = vpop.eup %2626 }
 0x4b1   : > { %1648 = vmatmul.mubr.bf16.gmra.mrb[112].mxu0 %v1511_v27  ;;  %v1384_v16 = vpop.xlane.xlu0 %1383  ;;  %v1476_v45 = vmul.f32 %v2627_v34, %v3653_v35  ;;  %v1475_v26 = vmul.f32 %v2627_v34, %v3651_v49 }
 0x4b2   : > { %2632 = vrcp.f32 %v1384_v16 }
 0x4b4   : > { %v2629_v33 = vpop.eup %2628 }
 0x4b5   : > { %v1478_v17 = vmul.f32 %v2629_v33, %v3661_v56  ;;  %v1477_v6 = vmul.f32 %v2629_v33, %v3659_v24 }
 0x4b6   : > { %v1387_v20 = vpop.xlane.xlu1 %1386 }
 0x4b7   : > { %v1514_v47 = vpack.c.bf16 %v1478_v17, %v1476_v45  ;;  %v1513_v48 = vpack.c.bf16 %v1477_v6, %v1475_v26  ;;  %2634 = vrcp.f32 %v1387_v20 }
 0x4b9   : > { %1655 = vmatprep.mubr.bf16.mxu0 %v1514_v47  ;;  %v1390_v15 = vpop.xlane.xlu0 %1389  ;;  %v2631_v39 = vpop.eup %2630 }
 0x4ba   : > { %2636 = vrcp.f32 %v1390_v15  ;;  %1656 = vmatmul.mubr.bf16.gmra.mrb[116].mxu0 %v1513_v48  ;;  %v1480_v54 = vmul.f32 %v2631_v39, %v3673_v62  ;;  %v1479_v35 = vmul.f32 %v2631_v39, %v3671_v46 }
 0x4bc   : > { %v2633_v1 = vpop.eup %2632 }
 0x4bd   : > { %v1482_v41 = vmul.f32 %v2633_v1, %v3679_v38  ;;  %v1481_v56 = vmul.f32 %v2633_v1, %v3677_v19 }
 0x4bf   : > { %v1516_v49 = vpack.c.bf16 %v1482_v41, %v1480_v54  ;;  %v1515_v28 = vpack.c.bf16 %v1481_v56, %v1479_v35 }
 0x4c1   : > { %1663 = vmatprep.mubr.bf16.mxu0 %v1516_v49  ;;  %v2635_v24 = vpop.eup %2634 }
 0x4c2   : > { %1664 = vmatmul.mubr.bf16.gmra.mrb[120].mxu0 %v1515_v28  ;;  %v1484_v61 = vmul.f32 %v2635_v24, %v3689_v12  ;;  %v1483_v9 = vmul.f32 %v2635_v24, %v3687_v11 }
 0x4c4   : > { %v2637_v0 = vpop.eup %2636 }
 0x4c5   : > { %v1486_v3 = vmul.f32 %v2637_v0, %v3695_v21  ;;  %v1485_v62 = vmul.f32 %v2637_v0, %v3693_v59 }
 0x4c7   : > { %v1518_v55 = vpack.c.bf16 %v1486_v3, %v1484_v61  ;;  %v1517_v38 = vpack.c.bf16 %v1485_v62, %v1483_v9 }
 0x4c9   : > { %1671 = vmatprep.mubr.bf16.mxu0 %v1518_v55 }
 0x4ca   : > { %1672 = vmatmul.mubr.bf16.gmra.mrb[124].mxu0 %v1517_v38 }
 0x4e0   : > { %v2223_v46 = vpop.f32.mrb[64].mxu0 }
 0x4e1   : > { %v2224_v19 = vpop.f32.mrb[65].mxu0 }
 0x4e2   : > { %v2225_v5 = vadd.f32 %v2224_v19, %v2223_v46  ;;  %v2226_v10 = vpop.f32.mrb[66].mxu0 }
 0x4e3   : > { %v2227_v30 = vpop.f32.mrb[67].mxu0 }
 0x4e4   : > { %v2228_v51 = vadd.f32 %v2227_v30, %v2226_v10 }
 0x4e6   : > { %v1680_v43 = vpack.c.bf16 %v2228_v51, %v2225_v5 }
 0x4e8   : > { %2347 = vmatprep.mubr.msk.bf16.mxu1 %vm332_vm0, %v1680_v43 }
 0x4ea   : > { %v2229_v12 = vpop.f32.mrb[68].mxu0 }
 0x4eb   : > { %v2230_v53 = vpop.f32.mrb[69].mxu0 }
 0x4ec   : > { %v2231_v21 = vadd.f32 %v2230_v53, %v2229_v12  ;;  %v2232_v37 = vpop.f32.mrb[70].mxu0 }
 0x4ed   : > { %v2233_v11 = vpop.f32.mrb[71].mxu0 }
 0x4ee   : > { %v2234_v44 = vadd.f32 %v2233_v11, %v2232_v37 }
 0x4f0   : > { %v1681_v59 = vpack.c.bf16 %v2234_v44, %v2231_v21 }
 0x4f2   : > { %2348 = vmatmul.mubr.msk.bf16.vlgmr.msra.gmra.mrb[64].mxu1 %vm332_vm0, %v1681_v59 }
 0x4f3   : > { %v2235_v22 = vpop.f32.mrb[72].mxu0 }
 0x4f4   : > { %v2236_v4 = vpop.f32.mrb[73].mxu0 }
 0x4f5   : > { %v2237_v60 = vadd.f32 %v2236_v4, %v2235_v22  ;;  %v2238_v36 = vpop.f32.mrb[74].mxu0 }
 0x4f6   : > { %v2239_v31 = vpop.f32.mrb[75].mxu0 }
 0x4f7   : > { %v2240_v23 = vadd.f32 %v2239_v31, %v2238_v36 }
 0x4f9   : > { %v1682_v58 = vpack.c.bf16 %v2240_v23, %v2237_v60 }
 0x4fb   : > { %v2241_v52 = vpop.f32.mrb[76].mxu0  ;;  %2351 = vmatprep.mubr.msk.bf16.mxu1 %vm332_vm0, %v1682_v58 }
 0x4fc   : > { %v2242_v14 = vpop.f32.mrb[77].mxu0 }
 0x4fd   : > { %v2243_v32 = vadd.f32 %v2242_v14, %v2241_v52  ;;  %v2244_v7 = vpop.f32.mrb[78].mxu0 }
 0x4fe   : > { %v2245_v2 = vpop.f32.mrb[79].mxu0 }
 0x4ff   : > { %v2246_v63 = vadd.f32 %v2245_v2, %v2244_v7 }
 0x501   : > { %v1683_v8 = vpack.c.bf16 %v2246_v63, %v2243_v32 }
 0x503   : > { %v2247_v29 = vpop.f32.mrb[80].mxu0  ;;  %2352 = vmatmul.mubr.msk.bf16.gmra.mrb[68].mxu1 %vm332_vm0, %v1683_v8 }
 0x504   : > { %v2248_v18 = vpop.f32.mrb[81].mxu0 }
 0x505   : > { %v2249_v50 = vadd.f32 %v2248_v18, %v2247_v29  ;;  %v2250_v13 = vpop.f32.mrb[82].mxu0 }
 0x506   : > { %v2251_v42 = vpop.f32.mrb[83].mxu0 }
 0x507   : > { %v2252_v57 = vadd.f32 %v2251_v42, %v2250_v13 }
 0x509   : > { %v1684_v40 = vpack.c.bf16 %v2252_v57, %v2249_v50 }
 0x50b   : > { %v2253_v25 = vpop.f32.mrb[84].mxu0  ;;  %2355 = vmatprep.mubr.msk.bf16.mxu1 %vm332_vm0, %v1684_v40 }
 0x50c   : > { %v2254_v27 = vpop.f32.mrb[85].mxu0 }
 0x50d   : > { %v2255_v16 = vadd.f32 %v2254_v27, %v2253_v25  ;;  %v2256_v34 = vpop.f32.mrb[86].mxu0 }
 0x50e   : > { %v2257_v33 = vpop.f32.mrb[87].mxu0 }
 0x50f   : > { %v2258_v20 = vadd.f32 %v2257_v33, %v2256_v34 }
 0x511   : > { %v1685_v45 = vpack.c.bf16 %v2258_v20, %v2255_v16 }
 0x513   : > { %v2259_v17 = vpop.f32.mrb[88].mxu0  ;;  %2356 = vmatmul.mubr.msk.bf16.gmra.mrb[72].mxu1 %vm332_vm0, %v1685_v45 }
 0x514   : > { %v2260_v26 = vpop.f32.mrb[89].mxu0 }
 0x515   : > { %v2261_v6 = vadd.f32 %v2260_v26, %v2259_v17  ;;  %v2262_v47 = vpop.f32.mrb[90].mxu0 }
 0x516   : > { %v2263_v48 = vpop.f32.mrb[91].mxu0 }
 0x517   : > { %v2264_v15 = vadd.f32 %v2263_v48, %v2262_v47 }
 0x519   : > { %v1686_v39 = vpack.c.bf16 %v2264_v15, %v2261_v6 }
 0x51b   : > { %v2265_v1 = vpop.f32.mrb[92].mxu0  ;;  %2359 = vmatprep.mubr.msk.bf16.mxu1 %vm332_vm0, %v1686_v39  ;;  %v3779_v39 = vld [vmem:[%s3969_s4] ss:$0 sm:$0xff] }
 0x51c   : > { %v2266_v54 = vpop.f32.mrb[93].mxu0 }
 0x51d   : > { %v2267_v41 = vadd.f32 %v2266_v54, %v2265_v1  ;;  %v2268_v35 = vpop.f32.mrb[94].mxu0 }
 0x51e   : > { %v2269_v56 = vpop.f32.mrb[95].mxu0 }
 0x51f   : > { %v2270_v49 = vadd.f32 %v2269_v56, %v2268_v35 }
 0x521   : > { %v1687_v28 = vpack.c.bf16 %v2270_v49, %v2267_v41  ;;  %v2638_v49 = vld [vmem:[%s2844_s7 + $0x10] sm:$0xff] }
 0x523   : > { %v2271_v24 = vpop.f32.mrb[96].mxu0  ;;  %2360 = vmatmul.mubr.msk.bf16.gmra.mrb[76].mxu1 %vm332_vm0, %v1687_v28 }
 0x524   : > { %v2272_v0 = vpop.f32.mrb[97].mxu0 }
 0x525   : > { %v2273_v61 = vadd.f32 %v2272_v0, %v2271_v24  ;;  %v2274_v3 = vpop.f32.mrb[98].mxu0 }
 0x526   : > { %v2275_v9 = vpop.f32.mrb[99].mxu0 }
 0x527   : > { %v2276_v62 = vadd.f32 %v2275_v9, %v2274_v3 }
 0x529   : > { %v1688_v55 = vpack.c.bf16 %v2276_v62, %v2273_v61  ;;  %v2639_v61 = vld [vmem:[%s2844_s7] sm:$0xff]  ;;  %v2640_v62 = vld [vmem:[%s2844_s7 + $0x18] sm:$0xff] }
 0x52b   : > { %v2277_v38 = vpop.f32.mrb[100].mxu0  ;;  %2363 = vmatprep.mubr.msk.bf16.mxu1 %vm332_vm0, %v1688_v55 }
 0x52c   : > { %v2278_v46 = vpop.f32.mrb[101].mxu0 }
 0x52d   : > { %v2279_v19 = vadd.f32 %v2278_v46, %v2277_v38  ;;  %v2280_v5 = vpop.f32.mrb[102].mxu0  ;;  %v2641_v38 = vld [vmem:[%s2844_s7 + $0x8] sm:$0xff] }
 0x52e   : > { %v2281_v10 = vpop.f32.mrb[103].mxu0 }
 0x52f   : > { %v2282_v30 = vadd.f32 %v2281_v10, %v2280_v5 }
 0x531   : > { %v1689_v51 = vpack.c.bf16 %v2282_v30, %v2279_v19 }
 0x533   : > { %v2283_v43 = vpop.f32.mrb[104].mxu0  ;;  %2364 = vmatmul.mubr.msk.bf16.gmra.mrb[80].mxu1 %vm332_vm0, %v1689_v51 }
 0x534   : > { %v2284_v12 = vpop.f32.mrb[105].mxu0 }
 0x535   : > { %v2285_v53 = vadd.f32 %v2284_v12, %v2283_v43  ;;  %v2286_v21 = vpop.f32.mrb[106].mxu0  ;;  %v2642_v43 = vld [vmem:[%s2844_s7 + $0x30] sm:$0xff] }
 0x536   : > { %v2287_v37 = vpop.f32.mrb[107].mxu0 }
 0x537   : > { %v2288_v11 = vadd.f32 %v2287_v37, %v2286_v21  ;;  %v2643_v37 = vld [vmem:[%s2844_s7 + $0x20] sm:$0xff] }
 0x539   : > { %v1690_v44 = vpack.c.bf16 %v2288_v11, %v2285_v53 }
 0x53b   : > { %v2289_v59 = vpop.f32.mrb[108].mxu0  ;;  %2367 = vmatprep.mubr.msk.bf16.mxu1 %vm332_vm0, %v1690_v44 }
 0x53c   : > { %v2290_v22 = vpop.f32.mrb[109].mxu0 }
 0x53d   : > { %v2291_v4 = vadd.f32 %v2290_v22, %v2289_v59  ;;  %v2292_v60 = vpop.f32.mrb[110].mxu0  ;;  %v2644_v59 = vld [vmem:[%s2844_s7 + $0x38] sm:$0xff] }
 0x53e   : > { %v2293_v36 = vpop.f32.mrb[111].mxu0 }
 0x53f   : > { %v2294_v31 = vadd.f32 %v2293_v36, %v2292_v60 }
 0x541   : > { %v1691_v23 = vpack.c.bf16 %v2294_v31, %v2291_v4  ;;  %v2645_v4 = vld [vmem:[%s2844_s7 + $0x28] sm:$0xff] }
 0x543   : > { %2368 = vmatmul.mubr.msk.bf16.gmra.mrb[84].mxu1 %vm332_vm0, %v1691_v23 }
 0x584   : > { %v2295_v58 = vpop.f32.mrb[112].mxu0 }
 0x585   : > { %v2296_v52 = vpop.f32.mrb[113].mxu0 }
 0x586   : > { %v2297_v14 = vadd.f32 %v2296_v52, %v2295_v58  ;;  %v2298_v32 = vpop.f32.mrb[114].mxu0 }
 0x587   : > { %v2299_v7 = vpop.f32.mrb[115].mxu0 }
 0x588   : > { %v2300_v2 = vadd.f32 %v2299_v7, %v2298_v32 }
 0x58a   : > { %v1692_v63 = vpack.c.bf16 %v2300_v2, %v2297_v14  ;;  %v2646_v14 = vld [vmem:[%s2844_s7 + $0x50] sm:$0xff] }
 0x58c   : > { %2371 = vmatprep.mubr.msk.bf16.mxu1 %vm332_vm0, %v1692_v63  ;;  %v2647_v63 = vld [vmem:[%s2844_s7 + $0x40] sm:$0xff] }
 0x58d   : > { %v2301_v8 = vpop.f32.mrb[116].mxu0 }
 0x58e   : > { %v2302_v29 = vpop.f32.mrb[117].mxu0 }
 0x58f   : > { %v2303_v18 = vadd.f32 %v2302_v29, %v2301_v8  ;;  %v2304_v50 = vpop.f32.mrb[118].mxu0 }
 0x590   : > { %v2305_v13 = vpop.f32.mrb[119].mxu0 }
 0x591   : > { %v2306_v42 = vadd.f32 %v2305_v13, %v2304_v50  ;;  %v2649_v13 = vld [vmem:[%s2844_s7 + $0x48] sm:$0xff] }
 0x593   : > { %v1693_v57 = vpack.c.bf16 %v2306_v42, %v2303_v18  ;;  %v2648_v18 = vld [vmem:[%s2844_s7 + $0x58] sm:$0xff] }
 0x595   : > { %v2307_v40 = vpop.f32.mrb[120].mxu0  ;;  %2372 = vmatmul.mubr.msk.bf16.gmra.mrb[88].mxu1 %vm332_vm0, %v1693_v57 }
 0x596   : > { %v2308_v25 = vpop.f32.mrb[121].mxu0 }
 0x597   : > { %v2309_v27 = vadd.f32 %v2308_v25, %v2307_v40  ;;  %v2310_v16 = vpop.f32.mrb[122].mxu0 }
 0x598   : > { %v2311_v34 = vpop.f32.mrb[123].mxu0 }
 0x599   : > { %v2312_v33 = vadd.f32 %v2311_v34, %v2310_v16  ;;  %v2650_v34 = vld [vmem:[%s2844_s7 + $0x70] sm:$0xff] }
 0x59b   : > { %v1694_v20 = vpack.c.bf16 %v2312_v33, %v2309_v27 }
 0x59d   : > { %v2313_v45 = vpop.f32.mrb[124].mxu0  ;;  %2375 = vmatprep.mubr.msk.bf16.mxu1 %vm332_vm0, %v1694_v20 }
 0x59e   : > { %v2314_v17 = vpop.f32.mrb[125].mxu0 }
 0x59f   : > { %v2315_v26 = vadd.f32 %v2314_v17, %v2313_v45  ;;  %v2316_v6 = vpop.f32.mrb[126].mxu0  ;;  %v2651_v17 = vld [vmem:[%s2844_s7 + $0x60] sm:$0xff] }
 0x5a0   : > { %v2317_v47 = vpop.f32.mrb[127].mxu0 }
 0x5a1   : > { %v2318_v48 = vadd.f32 %v2317_v47, %v2316_v6  ;;  %v2652_v47 = vld [vmem:[%s2844_s7 + $0x78] sm:$0xff] }
 0x5a3   : > { %v1695_v15 = vpack.c.bf16 %v2318_v48, %v2315_v26 }
 0x5a5   : > { %2376 = vmatmul.mubr.msk.bf16.gmra.mrb[92].mxu1 %vm332_vm0, %v1695_v15  ;;  %v2653_v15 = vld [vmem:[%s2844_s7 + $0x68] sm:$0xff] }
 0x5c5   : > { %v2349_v1 = vpop.f32.mrb[64].mxu1 }
 0x5c6   : > { %v1826_v54 = vadd.f32 %v2349_v1, %v3779_v39  ;;  %v1817_v41 = vpop.f32.mrb[65].mxu1 }
 0x5c7   : > { %v1818_v35 = vadd.f32 %v3779_v39, %v1817_v41  ;;  %v2350_v56 = vpop.f32.mrb[66].mxu1 }
 0x5c8   : > { %v1946_v28 = vadd.f32 %v2638_v49, %v1826_v54  ;;  %v1829_v24 = vadd.f32 %v2350_v56, %v3779_v39  ;;  %v1820_v0 = vpop.f32.mrb[67].mxu1 }
 0x5c9   : > { %v1944_v3 = vadd.f32 %v2639_v61, %v1818_v35  ;;  %v1821_v9 = vadd.f32 %v3779_v39, %v1820_v0 }
 0x5ca   : > { %1978 = vst.msk [vmem:[%s3789_s10 + $0x10] sm:$0xff] %vm332_vm0, %v1946_v28  ;;  %v1947_v55 = vadd.f32 %v2640_v62, %v1829_v24  ;;  %v2654_v28 = vld [vmem:[%s2844_s7 + $0x90] sm:$0xff] }
 0x5cb   : > { %1976 = vst.msk [vmem:[%s3789_s10] sm:$0xff] %vm332_vm0, %v1944_v3  ;;  %v1945_v46 = vadd.f32 %v2641_v38, %v1821_v9  ;;  %v2655_v3 = vld [vmem:[%s2844_s7 + $0x80] sm:$0xff] }
 0x5cc   : > { %1979 = vst.msk [vmem:[%s3789_s10 + $0x18] sm:$0xff] %vm332_vm0, %v1947_v55  ;;  %v2656_v55 = vld [vmem:[%s2844_s7 + $0x98] sm:$0xff] }
 0x5cd   : > { %1977 = vst.msk [vmem:[%s3789_s10 + $0x8] sm:$0xff] %vm332_vm0, %v1945_v46  ;;  %v2657_v46 = vld [vmem:[%s2844_s7 + $0x88] sm:$0xff] }
 0x5d6   : > { %v2353_v19 = vpop.f32.mrb[68].mxu1 }
 0x5d7   : > { %v1842_v5 = vadd.f32 %v2353_v19, %v3779_v39  ;;  %v1833_v10 = vpop.f32.mrb[69].mxu1 }
 0x5d8   : > { %v1834_v30 = vadd.f32 %v3779_v39, %v1833_v10  ;;  %v2354_v51 = vpop.f32.mrb[70].mxu1 }
 0x5d9   : > { %v1950_v12 = vadd.f32 %v2642_v43, %v1842_v5  ;;  %v1845_v53 = vadd.f32 %v2354_v51, %v3779_v39  ;;  %v1836_v21 = vpop.f32.mrb[71].mxu1 }
 0x5da   : > { %v1948_v11 = vadd.f32 %v2643_v37, %v1834_v30  ;;  %v1837_v44 = vadd.f32 %v3779_v39, %v1836_v21 }
 0x5db   : > { %1982 = vst.msk [vmem:[%s3789_s10 + $0x30] sm:$0xff] %vm332_vm0, %v1950_v12  ;;  %v1951_v22 = vadd.f32 %v2644_v59, %v1845_v53  ;;  %v2658_v12 = vld [vmem:[%s2844_s7 + $0xb0] sm:$0xff] }
 0x5dc   : > { %1980 = vst.msk [vmem:[%s3789_s10 + $0x20] sm:$0xff] %vm332_vm0, %v1948_v11  ;;  %v1949_v60 = vadd.f32 %v2645_v4, %v1837_v44  ;;  %v2659_v11 = vld [vmem:[%s2844_s7 + $0xa0] sm:$0xff] }
 0x5dd   : > { %1983 = vst.msk [vmem:[%s3789_s10 + $0x38] sm:$0xff] %vm332_vm0, %v1951_v22  ;;  %v2660_v22 = vld [vmem:[%s2844_s7 + $0xb8] sm:$0xff] }
 0x5de   : > { %1981 = vst.msk [vmem:[%s3789_s10 + $0x28] sm:$0xff] %vm332_vm0, %v1949_v60  ;;  %v2661_v60 = vld [vmem:[%s2844_s7 + $0xa8] sm:$0xff] }
 0x5e6   : > { %v2357_v36 = vpop.f32.mrb[72].mxu1 }
 0x5e7   : > { %v1858_v31 = vadd.f32 %v2357_v36, %v3779_v39  ;;  %v1849_v23 = vpop.f32.mrb[73].mxu1 }
 0x5e8   : > { %v1850_v58 = vadd.f32 %v3779_v39, %v1849_v23  ;;  %v2358_v52 = vpop.f32.mrb[74].mxu1 }
 0x5e9   : > { %v1954_v32 = vadd.f32 %v2646_v14, %v1858_v31  ;;  %v1861_v7 = vadd.f32 %v2358_v52, %v3779_v39  ;;  %v1852_v2 = vpop.f32.mrb[75].mxu1 }
 0x5ea   : > { %v1952_v8 = vadd.f32 %v2647_v63, %v1850_v58  ;;  %v1853_v29 = vadd.f32 %v3779_v39, %v1852_v2 }
 0x5eb   : > { %1986 = vst.msk [vmem:[%s3789_s10 + $0x50] sm:$0xff] %vm332_vm0, %v1954_v32  ;;  %v1955_v50 = vadd.f32 %v2648_v18, %v1861_v7  ;;  %v2662_v32 = vld [vmem:[%s2844_s7 + $0xd0] sm:$0xff] }
 0x5ec   : > { %1984 = vst.msk [vmem:[%s3789_s10 + $0x40] sm:$0xff] %vm332_vm0, %v1952_v8  ;;  %v1953_v42 = vadd.f32 %v2649_v13, %v1853_v29  ;;  %v2663_v8 = vld [vmem:[%s2844_s7 + $0xc0] sm:$0xff] }
 0x5ed   : > { %1987 = vst.msk [vmem:[%s3789_s10 + $0x58] sm:$0xff] %vm332_vm0, %v1955_v50  ;;  %v2664_v50 = vld [vmem:[%s2844_s7 + $0xd8] sm:$0xff] }
 0x5ee   : > { %1985 = vst.msk [vmem:[%s3789_s10 + $0x48] sm:$0xff] %vm332_vm0, %v1953_v42  ;;  %v2665_v42 = vld [vmem:[%s2844_s7 + $0xc8] sm:$0xff] }
 0x5f6   : > { %v2361_v57 = vpop.f32.mrb[76].mxu1 }
 0x5f7   : > { %v1874_v40 = vadd.f32 %v2361_v57, %v3779_v39  ;;  %v1865_v25 = vpop.f32.mrb[77].mxu1 }
 0x5f8   : > { %v1866_v27 = vadd.f32 %v3779_v39, %v1865_v25  ;;  %v2362_v16 = vpop.f32.mrb[78].mxu1 }
 0x5f9   : > { %v1958_v33 = vadd.f32 %v2650_v34, %v1874_v40  ;;  %v1877_v20 = vadd.f32 %v2362_v16, %v3779_v39  ;;  %v1868_v45 = vpop.f32.mrb[79].mxu1 }
 0x5fa   : > { %v1956_v26 = vadd.f32 %v2651_v17, %v1866_v27  ;;  %v1869_v6 = vadd.f32 %v3779_v39, %v1868_v45 }
 0x5fb   : > { %1990 = vst.msk [vmem:[%s3789_s10 + $0x70] sm:$0xff] %vm332_vm0, %v1958_v33  ;;  %v1959_v48 = vadd.f32 %v2652_v47, %v1877_v20  ;;  %v2666_v33 = vld [vmem:[%s2844_s7 + $0xf0] sm:$0xff] }
 0x5fc   : > { %1988 = vst.msk [vmem:[%s3789_s10 + $0x60] sm:$0xff] %vm332_vm0, %v1956_v26  ;;  %v1957_v1 = vadd.f32 %v2653_v15, %v1869_v6  ;;  %v2667_v26 = vld [vmem:[%s2844_s7 + $0xe0] sm:$0xff] }
 0x5fd   : > { %1991 = vst.msk [vmem:[%s3789_s10 + $0x78] sm:$0xff] %vm332_vm0, %v1959_v48  ;;  %v2668_v48 = vld [vmem:[%s2844_s7 + $0xf8] sm:$0xff] }
 0x5fe   : > { %1989 = vst.msk [vmem:[%s3789_s10 + $0x68] sm:$0xff] %vm332_vm0, %v1957_v1  ;;  %v2669_v1 = vld [vmem:[%s2844_s7 + $0xe8] sm:$0xff] }
 0x606   : > { %v2365_v54 = vpop.f32.mrb[80].mxu1 }
 0x607   : > { %v1890_v41 = vadd.f32 %v2365_v54, %v3779_v39  ;;  %v1881_v35 = vpop.f32.mrb[81].mxu1 }
 0x608   : > { %v1882_v56 = vadd.f32 %v3779_v39, %v1881_v35  ;;  %v2366_v49 = vpop.f32.mrb[82].mxu1 }
 0x609   : > { %v1962_v24 = vadd.f32 %v2654_v28, %v1890_v41  ;;  %v1893_v0 = vadd.f32 %v2366_v49, %v3779_v39  ;;  %v1884_v61 = vpop.f32.mrb[83].mxu1 }
 0x60a   : > { %v1960_v9 = vadd.f32 %v2655_v3, %v1882_v56  ;;  %v1885_v62 = vadd.f32 %v3779_v39, %v1884_v61 }
 0x60b   : > { %1994 = vst.msk [vmem:[%s3789_s10 + $0x90] sm:$0xff] %vm332_vm0, %v1962_v24  ;;  %v1963_v38 = vadd.f32 %v2656_v55, %v1893_v0 }
 0x60c   : > { %1992 = vst.msk [vmem:[%s3789_s10 + $0x80] sm:$0xff] %vm332_vm0, %v1960_v9  ;;  %v1961_v19 = vadd.f32 %v2657_v46, %v1885_v62 }
 0x60d   : > { %1995 = vst.msk [vmem:[%s3789_s10 + $0x98] sm:$0xff] %vm332_vm0, %v1963_v38 }
 0x60e   : > { %1993 = vst.msk [vmem:[%s3789_s10 + $0x88] sm:$0xff] %vm332_vm0, %v1961_v19 }
 0x616   : > { %v2369_v5 = vpop.f32.mrb[84].mxu1 }
 0x617   : > { %v1906_v10 = vadd.f32 %v2369_v5, %v3779_v39  ;;  %v1897_v30 = vpop.f32.mrb[85].mxu1 }
 0x618   : > { %v1898_v51 = vadd.f32 %v3779_v39, %v1897_v30  ;;  %v2370_v43 = vpop.f32.mrb[86].mxu1 }
 0x619   : > { %v1966_v53 = vadd.f32 %v2658_v12, %v1906_v10  ;;  %v1909_v21 = vadd.f32 %v2370_v43, %v3779_v39  ;;  %v1900_v37 = vpop.f32.mrb[87].mxu1 }
 0x61a   : > { %v1964_v44 = vadd.f32 %v2659_v11, %v1898_v51  ;;  %v1901_v59 = vadd.f32 %v3779_v39, %v1900_v37 }
 0x61b   : > { %1998 = vst.msk [vmem:[%s3789_s10 + $0xb0] sm:$0xff] %vm332_vm0, %v1966_v53  ;;  %v1967_v4 = vadd.f32 %v2660_v22, %v1909_v21 }
 0x61c   : > { %1996 = vst.msk [vmem:[%s3789_s10 + $0xa0] sm:$0xff] %vm332_vm0, %v1964_v44  ;;  %v1965_v36 = vadd.f32 %v2661_v60, %v1901_v59 }
 0x61d   : > { %1999 = vst.msk [vmem:[%s3789_s10 + $0xb8] sm:$0xff] %vm332_vm0, %v1967_v4 }
 0x61e   : > { %1997 = vst.msk [vmem:[%s3789_s10 + $0xa8] sm:$0xff] %vm332_vm0, %v1965_v36 }
 0x668   : > { %v2373_v31 = vpop.f32.mrb[88].mxu1 }
 0x669   : > { %v1922_v23 = vadd.f32 %v2373_v31, %v3779_v39  ;;  %v1913_v58 = vpop.f32.mrb[89].mxu1 }
 0x66a   : > { %v1914_v52 = vadd.f32 %v3779_v39, %v1913_v58  ;;  %v2374_v14 = vpop.f32.mrb[90].mxu1 }
 0x66b   : > { %v1970_v7 = vadd.f32 %v2662_v32, %v1922_v23  ;;  %v1925_v2 = vadd.f32 %v2374_v14, %v3779_v39  ;;  %v1916_v63 = vpop.f32.mrb[91].mxu1 }
 0x66c   : > { %v1968_v29 = vadd.f32 %v2663_v8, %v1914_v52  ;;  %v1917_v18 = vadd.f32 %v3779_v39, %v1916_v63 }
 0x66d   : > { %2002 = vst.msk [vmem:[%s3789_s10 + $0xd0] sm:$0xff] %vm332_vm0, %v1970_v7  ;;  %v1971_v13 = vadd.f32 %v2664_v50, %v1925_v2 }
 0x66e   : > { %2000 = vst.msk [vmem:[%s3789_s10 + $0xc0] sm:$0xff] %vm332_vm0, %v1968_v29  ;;  %v1969_v57 = vadd.f32 %v2665_v42, %v1917_v18 }
 0x66f   : > { %2003 = vst.msk [vmem:[%s3789_s10 + $0xd8] sm:$0xff] %vm332_vm0, %v1971_v13 }
 0x670   : > { %2001 = vst.msk [vmem:[%s3789_s10 + $0xc8] sm:$0xff] %vm332_vm0, %v1969_v57 }
 0x678   : > { %v2377_v40 = vpop.f32.mrb[92].mxu1 }
 0x679   : > { %v1938_v25 = vadd.f32 %v2377_v40, %v3779_v39  ;;  %v1929_v27 = vpop.f32.mrb[93].mxu1 }
 0x67a   : > { %v1930_v16 = vadd.f32 %v3779_v39, %v1929_v27  ;;  %v2378_v34 = vpop.f32.mrb[94].mxu1 }
 0x67b   : > { %v1974_v20 = vadd.f32 %v2666_v33, %v1938_v25  ;;  %v1941_v45 = vadd.f32 %v2378_v34, %v3779_v39  ;;  %v1932_v17 = vpop.f32.mrb[95].mxu1 }
 0x67c   : > { %v1972_v6 = vadd.f32 %v2667_v26, %v1930_v16  ;;  %v1933_v47 = vadd.f32 %v3779_v39, %v1932_v17 }
 0x67d   : > { %2006 = vst.msk [vmem:[%s3789_s10 + $0xf0] sm:$0xff] %vm332_vm0, %v1974_v20  ;;  %v1975_v15 = vadd.f32 %v2668_v48, %v1941_v45 }
 0x67e   : > { %2004 = vst.msk [vmem:[%s3789_s10 + $0xe0] sm:$0xff] %vm332_vm0, %v1972_v6  ;;  %v1973_v54 = vadd.f32 %v2669_v1, %v1933_v47 }
 0x67f   : > { %2007 = vst.msk [vmem:[%s3789_s10 + $0xf8] sm:$0xff] %vm332_vm0, %v1975_v15 }
 0x680   : > { %2005 = vst.msk [vmem:[%s3789_s10 + $0xe8] sm:$0xff] %vm332_vm0, %v1973_v54 }
 0x681   : > { %2683 = shalt.err (!%p2680_p3)
}
 0x682   : > { %s2684_s7 = scalar_lea.hbm %s3911_s14, 4096  ;;  %s2688_s6 = scalar_lea.hbm %s3970_s5, 8192 }
 0x683   : > { %p2685_p4 = scmp.ne.s32.totalorder %s3911_s14, %s2684_s7  ;;  %p2689_p9 = scmp.lt.u32.totalorder %s3911_s14, %s3970_s5 }
 0x684   : > { %p2690_p10 = scmp.lt.u32.totalorder %s2688_s6, %s2684_s7  ;;  %p2692_p12 = scmp.lt.u32.totalorder %s2684_s7, %s3911_s14 }
 0x685   : > { %p2686_p7 = pnand %p2685_p4, %p2807_p5 }
 0x686   : > { %p2691_p11 = por %p2690_p10, %p2689_p9 }
 0x687   : > { %p2687_p8 = pneg %p2686_p7 }
 0x688   : > { %p2693_p13 = por %p2692_p12, %p2691_p11 }
 0x68a   : > { %p2694_p0 = pnand %p2693_p13, %p2687_p8 }
 0x68c   : > { %2697 = shalt.err (!%p2694_p0)
}
 0x68d   : > { %s2737_s10 = smov 128   ;;  %s2738_s11 = smov 8  }
 0x68e   : > { %2387 = dma.vmem_to_hbm [thread:$0]  (%p2807_p5), %s3913_s12, 4096, %s3911_s14, %s3924_s15, %s2737_s10, %s2737_s10, %s2738_s11  }
 0x68f PF: > { %p2393_p1 = scmp.ge.s32.totalorder %s2732_s21, 2  ;;  %s2037_s13 = sand.u32 1, %s2720_s18  }
 0x690   : > { %s2038_s22 = scalar_lea.sflag [#allocation3], %s2037_s13 }
 0x691   : > { %p2390_p2 = pnand %p2393_p1, %p2811_p6 }
 0x693   : > { %2715 = dma.done.wait (!%p2390_p2), %s2038_s22, 4096  }
 0x694   : > { %2717 = vsyncadd (!%p2390_p2), %s2038_s22, 4294963200  ;;  %p15_p3 = scmp.ge.s32.totalorder %s2794_s24, 4   ;;  %s4054_s18 = smov %s2724_s19 }
 0x695   : > { %s4055_s19 = smov %s2728_s20  ;;  %s4056_s20 = smov %s2805_s27 }
 0x696   : > { %s4057_s21 = smov %s2794_s24  ;;  %17 = sbr.rel (!%p15_p3) target bundleno = 3 (0x3), region = 75 }
 0x69d   :  { %2043 = vsyncpa [#allocation3], 1 }
 0x69e   :  { %2045 = vsyncpa [#allocation3 + $0x1], 1 }

// kernel: _lambda_.2
= control target key start
LH: loop header
LB: loop body
LE: loop exit
PB: predicated region body
PF: predicated region fallthrough
CT: control target
= control target key end

     0   :  { %s14839_s0 = inlined_call_operand.hbm [shape: f32[2,256,128], index: 0, kind: input, shape index: {}]   ;;  %s14840_s1 = inlined_call_operand.vmem [shape: f32[2,128], index: 1, kind: input, shape index: {}]   ;;  %s14841_s2 = inlined_call_operand.vmem [shape: f32[1,128], index: 2, kind: input, shape index: {}]   ;;  %s14842_s3 = inlined_call_operand.vmem [shape: f32[1,128], index: 3, kind: input, shape index: {}]   ;;  %s14843_s4 = inlined_call_operand.vmem [shape: f32[128,32], index: 4, kind: input, shape index: {}]   ;;  %s14844_s5 = inlined_call_operand.vmem [shape: f32[32,128], index: 5, kind: input, shape index: {}]   ;;  %s14845_s6 = inlined_call_operand.vmem [shape: bf16[9,128,64], index: 6, kind: input, shape index: {}]   ;;  %s14846_s7 = inlined_call_operand.vmem [shape: f32[1,64], index: 7, kind: input, shape index: {}]   ;;  %s14847_s8 = inlined_call_operand.vmem [shape: bf16[128,64], index: 8, kind: input, shape index: {}]   ;;  %s14848_s9 = inlined_call_operand.vmem [shape: f32[1,64], index: 9, kind: input, shape index: {}]   ;;  %s14849_s10 = inlined_call_operand.vmem [shape: f32[1,64], index: 10, kind: input, shape index: {}]   ;;  %s14850_s11 = inlined_call_operand.vmem [shape: f32[1,64], index: 11, kind: input, shape index: {}]   ;;  %s14851_s12 = inlined_call_operand.vmem [shape: f32[64,32], index: 12, kind: input, shape index: {}]   ;;  %s14852_s13 = inlined_call_operand.vmem [shape: f32[32,64], index: 13, kind: input, shape index: {}]   ;;  %s14853_s14 = inlined_call_operand.hbm [shape: bf16[9,64,64], index: 14, kind: input, shape index: {}]   ;;  %s14854_s15 = inlined_call_operand.vmem [shape: f32[1,64], index: 15, kind: input, shape index: {}]   ;;  %s14855_s16 = inlined_call_operand.vmem [shape: bf16[128,64], index: 16, kind: input, shape index: {}]   ;;  %s14856_s17 = inlined_call_operand.vmem [shape: f32[1,64], index: 17, kind: input, shape index: {}]   ;;  %s14857_s18 = inlined_call_operand.vmem [shape: f32[2,256,64], index: 18, kind: output, shape index: {}]  }
   0x1   :  { %14878 = sst [smem:[#allocation49_spill]] %s14839_s0 }
   0x2   :  { %14879 = sst [smem:[#allocation50_spill]] %s14840_s1 }
   0x3   :  { %14880 = sst [smem:[#allocation51_spill]] %s14841_s2 }
   0x4   :  { %14881 = sst [smem:[#allocation52_spill]] %s14848_s9 }
   0x5   :  { %14882 = sst [smem:[#allocation53_spill]] %s14849_s10 }
   0x6   :  { %14883 = sst [smem:[#allocation54_spill]] %s14850_s11 }
   0x7   :  { %14884 = sst [smem:[#allocation55_spill]] %s14852_s13 }
   0x8   :  { %14885 = sst [smem:[#allocation56_spill]] %s14854_s15 }
   0x9   :  { %14886 = sst [smem:[#allocation57_spill]] %s14856_s17 }
   0xa   :  { %14887 = sst [smem:[#allocation58_spill]] %s14857_s18 }
   0xb   :  { %23 = vsyncpa [#allocation5], 0 }
   0xc   :  { %25 = vsyncpa [#allocation5 + $0x1], 0 }
   0xd   :  { %26 = vsyncpa [#allocation7], 0  ;;  %s11877_s27 = smov 0   ;;  %s11879_s28 = smov 0  }
   0xe   :  { %s11881_s29 = smov 0   ;;  %s11883_s30 = smov 0  }
   0xf LB: > { %s11896_s0 = sadd.s32 4294967295, %s11771_s30   ;;  %p52_p0 = scmp.ne.s32.totalorder %s11763_s28, %s11759_s27  ;;  %s11771_s30 = sphi %s11883_s30, %s14992_s30   ;;  %s11767_s29 = sphi %s11881_s29, %s14995_s29   ;;  %s11763_s28 = sphi %s11879_s28, %s14994_s28   ;;  %s11759_s27 = sphi %s11877_s27, %s14993_s27  }
  0x10   : > { %p14859_p1 = scmp.eq.s32.totalorder %s11896_s0, 0  ;;  %p8546_p2 = scmp.ge.s32.totalorder %s11771_s30, 1 }
  0x11   : > { %p446_p3 = scmp.lt.s32.totalorder %s11771_s30, 3  ;;  %s11773_s20 = smov [#allocation6]  }
  0x12   : > { %p11904_p4 = por %p14859_p1, %p52_p0  ;;  %s497_s21 = sshll.u32 %s11773_s20, 4  ;;  %s498_s21 = int_to_ptr.vmem [resolvable:$true] %s497_s21 }
  0x13   : > { %p11908_p5 = pnand %p8546_p2, %p446_p3  ;;  %s11921_s2 = sadd.s32 1, %s11771_s30  }
  0x14   : > { %s14888_s19 = scalar_select %p11904_p4, 1, 0 }
  0x15   : > { %s14889_s1 = scalar_select %p11908_p5, 1, 0 }
  0x16   : > { %p11209_p6 = pneg %p11908_p5  ;;  %14891 = sst [smem:[#allocation10_spill]] %s11921_s2 }
  0x17   : > { %s39_s23 = sadd.s32 1, %s11767_s29  ;;  %s36_s24 = ssub.s32 %s11771_s30, %s11921_s2 }
  0x18   : > { %p11916_p7 = pnand %p11209_p6, %p14859_p1  ;;  %s11675_s27 = scalar_lea.hbm %s14853_s14, 4608 }
  0x19   : > { %p11676_p8 = scmp.ne.s32.totalorder %s14853_s14, %s11675_s27  ;;  %p11682_p12 = scmp.lt.u32.totalorder %s11675_s27, %s14853_s14 }
  0x1a   : > { %p11677_p9 = pneg %p11916_p7 }
  0x1c   : > { %p11678_p10 = pnand %p11677_p9, %p11676_p8 }
  0x1e   : > { %p11679_p11 = pneg %p11678_p10 }
  0x20   : > { %p11684_p13 = pnand %p11682_p12, %p11679_p11 }
  0x22   : > { %11687 = shalt.err (!%p11684_p13)
}
  0x23   : > { %s11688_s11 = scalar_lea.vmem %s498_s21, 4608  ;;  %p11696_p6 = scmp.lt.s32.totalorder %s498_s21, %s498_s21 }
  0x24   : > { %p11689_p0 = scmp.ne.s32.totalorder %s498_s21, %s11688_s11  ;;  %p11697_p1 = scmp.lt.s32.totalorder %s11688_s11, %s11688_s11 }
  0x26   : > { %p11691_p2 = pnand %p11689_p0, %p11677_p9  ;;  %p11698_p4 = por %p11697_p1, %p11696_p6 }
  0x28   : > { %p11692_p3 = pneg %p11691_p2 }
  0x2a   : > { %p11699_p5 = pnand %p11698_p4, %p11692_p3 }
  0x2c   : > { %11702 = shalt.err (!%p11699_p5)
}
  0x2d   : > { %s11774_s18 = smov 64   ;;  %s11775_s15 = smov 4  }
  0x2e   : > { %11212 = dma.hbm_to_vmem [thread:$0]  (!%p11916_p7), %s14853_s14, 4608, %s498_s21, [#allocation7], %s11774_s18, %s11774_s18, %s11775_s15  }
  0x2f   : > { %p37_p8 = scmp.eq.s32.totalorder %s36_s24, 0  ;;  %p46_p9 = scmp.ne.s32.totalorder %s11767_s29, %s11763_s28 }
  0x30   : > { %p47_p1 = scmp.eq.s32.totalorder %s11771_s30, 0  ;;  %p11218_p4 = scmp.lt.s32.totalorder %s11771_s30, 2 }
  0x31   : > { %s11947_s11 = scalar_select %p37_p8, %s11767_s29, %s39_s23  }
  0x32   : > { %p48_p5 = por %p47_p1, %p46_p9  ;;  %s520_s26 = sand.u32 1, %s11767_s29  }
  0x33   : > { %s8549_s27 = sshll.u32 %s520_s26, 8  ;;  %s8968_s20 = sshll.u32 %s11771_s30, 12 }
  0x34   : > { %s14892_s13 = sld [smem:[#allocation49_spill]]  ;;  %s524_s21 = scalar_lea.vmem [#allocation4], %s8549_s27 }
  0x35   : > { %s531_s22 = sshll.u32 %s524_s21, 4  ;;  %p11958_p7 = pnand %p11218_p4, %p48_p5  ;;  %s11956_s22 = int_to_ptr.vmem [resolvable:$true] %s531_s22 }
  0x36   : > { %s11962_s30 = scalar_lea.sflag [#allocation5], %s520_s26 }
  0x37   : > { %p11705_p11 = pneg %p11958_p7 }
  0x3a   : > { %s11954_s9 = scalar_lea.hbm %s14892_s13, %s8968_s20  ;;  %s11708_s18 = scalar_lea.hbm %s14892_s13, 8192 }
  0x3b   : > { %s11703_s24 = scalar_lea.hbm %s11954_s9, 4096  ;;  %p11709_p0 = scmp.lt.u32.totalorder %s11954_s9, %s14892_s13 }
  0x3c   : > { %p11704_p10 = scmp.ne.s32.totalorder %s11954_s9, %s11703_s24  ;;  %p11710_p2 = scmp.lt.u32.totalorder %s11708_s18, %s11703_s24 }
  0x3d   : > { %p11712_p6 = scmp.lt.u32.totalorder %s11703_s24, %s11954_s9 }
  0x3e   : > { %p11706_p12 = pnand %p11705_p11, %p11704_p10  ;;  %p11711_p3 = por %p11710_p2, %p11709_p0 }
  0x40   : > { %p11707_p13 = pneg %p11706_p12  ;;  %p11713_p8 = por %p11712_p6, %p11711_p3 }
  0x42   : > { %p11714_p9 = pnand %p11713_p8, %p11707_p13 }
  0x44   : > { %11717 = shalt.err (!%p11714_p9)
}
  0x45   : > { %s11718_s25 = scalar_lea.vmem %s11956_s22, 4096  ;;  %s11776_s26 = smov [#allocation4]  }
  0x46   : > { %p11719_p1 = scmp.ne.s32.totalorder %s11956_s22, %s11718_s25  ;;  %s11723_s27 = sshll.u32 %s11776_s26, 4  ;;  %s11724_s27 = int_to_ptr.vmem [resolvable:$false] %s11723_s27 }
  0x47   : > { %s11725_s20 = scalar_lea.vmem %s11724_s27, 8192  ;;  %p11726_p10 = scmp.lt.s32.totalorder %s11956_s22, %s11724_s27 }
  0x48   : > { %p11721_p4 = pnand %p11719_p1, %p11705_p11  ;;  %p11727_p12 = scmp.lt.s32.totalorder %s11725_s20, %s11718_s25 }
  0x4a   : > { %p11722_p5 = pneg %p11721_p4  ;;  %p11728_p0 = por %p11727_p12, %p11726_p10 }
  0x4c   : > { %p11729_p2 = pnand %p11728_p0, %p11722_p5 }
  0x4e   : > { %11732 = shalt.err (!%p11729_p2)
}
  0x4f   : > { %s11777_s21 = smov 128   ;;  %s11778_s24 = smov 8  }
  0x50   : > { %11216 = dma.hbm_to_vmem [thread:$0]  (!%p11958_p7), %s11954_s9, 4096, %s11956_s22, %s11962_s30, %s11777_s21, %s11777_s21, %s11778_s24  }
  0x51   : > { %p14894_p11 = scmp.ne.s32.totalorder %s14889_s1, 0 }
  0x53   : > { %543 = sbr.rel (%p14894_p11) target bundleno = 2843 (0xb1b), region = 92 }
  0x5a   : > { %s545_s10 = sand.u32 1, %s11763_s28   ;;  %p14895_p13 = scmp.ne.s32.totalorder %s14888_s19, 0 }
  0x5b   : > { %s8553_s2 = sshll.u32 %s545_s10, 8  ;;  %s546_s18 = scalar_lea.sflag [#allocation5], %s545_s10 }
  0x5c   : > { %s11993_s15 = scalar_lea.vmem [#allocation4], %s8553_s2 }
  0x5d   : > { %11750 = dma.done.wait (%p14895_p13), %s546_s18, 4096  }
  0x5e   : > { %11752 = vsyncadd (%p14895_p13), %s546_s18, 4294963200  ;;  %p14896_p3 = scmp.eq.s32.totalorder %s11896_s0, 0 }
  0x60   : > { %11754 = dma.done.wait (%p14896_p3), [#allocation7], 4608   ;;  %p14897_p7 = pmov %p14896_p3 }
  0x61   : > { %v11779_v0 = vmov 0.0   ;;  %v11260_v1 = vld [vmem:[%s14855_s16] sm:$0xff]   ;;  %v11261_v2 = vld [vmem:[%s14855_s16 + $0x8] sm:$0xff]   ;;  %v11262_v3 = vld [vmem:[%s14855_s16 + $0x10] sm:$0xff]   ;;  %vm11781_vm0 = vmmov 0   ;;  %vm1164_vm1 = vcmask 261120  }
  0x62   : > { %11756 = vsyncadd (%p14897_p7), [#allocation7], 4294962688  ;;  %1656 = vst [vmem:[#allocation2 + $0x18] sm:$0xff] %v11779_v0  ;;  %9471 = vmatprep.subr.bf16.mxu1 %v11260_v1  ;;  %v11263_v4 = vld [vmem:[%s14855_s16 + $0x18] sm:$0xff]   ;;  %v612_v5 = vld [vmem:[%s11993_s15] sm:$0xff]  ;;  %s14931_s10 = sld [smem:[#allocation51_spill]] }
  0x63   : > { %1657 = vst [vmem:[#allocation2 + $0x20] sm:$0xff] %v11779_v0  ;;  %1658 = vst [vmem:[#allocation2 + $0x28] sm:$0x3] %v11779_v0  ;;  %9472 = vmatpush3.bf16.msra.mxu1 %v11260_v1  ;;  %v613_v6 = vld [vmem:[%s11993_s15 + $0x8] sm:$0xff]  ;;  %v929_v9 = vmul.f32 %v612_v5, %v612_v5  ;;  %v12072_v11 = vld [vmem:[%s11993_s15 + $0x10] sm:$0xff]  ;;  %s14942_s25 = sld [smem:[#allocation50_spill]] }
  0x64   : > { %1653 = vst [vmem:[#allocation2] sm:$0xff] %v11779_v0  ;;  %1654 = vst [vmem:[#allocation2 + $0x8] sm:$0xff] %v11779_v0  ;;  %9473 = vmatprep.subr.bf16.mxu1 %v11261_v2  ;;  %v644_v7 = vpack.c.bf16 %v613_v6, %v612_v5  ;;  %v892_v8 = vadd.f32 %v613_v6, %v612_v5  ;;  %v930_v10 = vmul.f32 %v613_v6, %v613_v6  ;;  %v12075_v12 = vld [vmem:[%s11993_s15 + $0x18] sm:$0xff]  ;;  %v11264_v17 = vld [vmem:[%s14855_s16 + $0x20] sm:$0xff]   ;;  %v14865_v6 = vmov 0.0|0.0   ;;  %s14944_s21 = sld [smem:[#allocation52_spill]] }
  0x65   : > { %1655 = vst [vmem:[#allocation2 + $0x10] sm:$0x3] %v11779_v0  ;;  %1659 = vst [vmem:[#allocation2 + $0x30] sm:$0xff] %v11779_v0  ;;  %v931_v13 = vmul.f32 %v12072_v11, %v12072_v11  ;;  %v932_v16 = vmul.f32 %v12075_v12, %v12075_v12  ;;  %v12086_v18 = vld [vmem:[%s11993_s15 + $0x20] sm:$0xff]  ;;  %v12092_v22 = vld [vmem:[%s11993_s15 + $0x28] sm:$0xff]  ;;  %v645_v62 = vpack.c.bf16 %v12075_v12, %v12072_v11  ;;  %vm4619_vm2 = vcmask 523264  }
  0x66   : > { %1660 = vst [vmem:[#allocation2 + $0x38] sm:$0xff] %v11779_v0  ;;  %1661 = vst [vmem:[#allocation2 + $0x40] sm:$0x3] %v11779_v0  ;;  %9487 = vmatprep.mubr.bf16.mxu1 %v644_v7  ;;  %v961_v14 = vadd.f32 %v930_v10, %v929_v9  ;;  %v893_v15 = vadd.f32 %v892_v8, %v12072_v11  ;;  %v933_v21 = vmul.f32 %v12086_v18, %v12086_v18  ;;  %v11265_v26 = vld [vmem:[%s14855_s16 + $0x28] sm:$0xff]   ;;  %v12101_v27 = vld [vmem:[%s11993_s15 + $0x30] sm:$0xff]  ;;  %vm5444_vm3 = vcmask 517120  }
  0x67   : > { %1662 = vst [vmem:[#allocation2 + $0x48] sm:$0xff] %v11779_v0  ;;  %1663 = vst [vmem:[#allocation2 + $0x50] sm:$0xff] %v11779_v0  ;;  %9474 = vmatpush3.bf16.msra.mxu1 %v11261_v2  ;;  %v934_v25 = vmul.f32 %v12092_v22, %v12092_v22  ;;  %v935_v30 = vmul.f32 %v12101_v27, %v12101_v27  ;;  %v12107_v31 = vld [vmem:[%s11993_s15 + $0x38] sm:$0xff]  ;;  %v11266_v35 = vld [vmem:[%s14855_s16 + $0x30] sm:$0xff]   ;;  %v646_v2 = vpack.c.bf16 %v12092_v22, %v12086_v18  ;;  %s14947_s17 = sld [smem:[#allocation53_spill]]  ;;  %s14948_s27 = sld [smem:[#allocation54_spill]] }
  0x68   : > { %1664 = vst [vmem:[#allocation2 + $0x58] sm:$0x3] %v11779_v0  ;;  %1665 = vst [vmem:[#allocation2 + $0x60] sm:$0xff] %v11779_v0  ;;  %9475 = vmatprep.subr.bf16.mxu1 %v11262_v3  ;;  %v894_v19 = vadd.f32 %v893_v15, %v12075_v12  ;;  %v962_v20 = vadd.f32 %v961_v14, %v931_v13  ;;  %v936_v34 = vmul.f32 %v12107_v31, %v12107_v31  ;;  %v12116_v36 = vld [vmem:[%s11993_s15 + $0x40] sm:$0xff]  ;;  %v12122_v40 = vld [vmem:[%s11993_s15 + $0x48] sm:$0xff]  ;;  %p606_p6 = scmp.lt.s32.totalorder %s11896_s0, 1 }
  0x69   : > { %1666 = vst [vmem:[#allocation2 + $0x68] sm:$0xff] %v11779_v0  ;;  %1667 = vst [vmem:[#allocation2 + $0x70] sm:$0x3] %v11779_v0  ;;  %v937_v39 = vmul.f32 %v12116_v36, %v12116_v36  ;;  %v11267_v41 = vld [vmem:[%s14855_s16 + $0x38] sm:$0xff]   ;;  %v938_v44 = vmul.f32 %v12122_v40, %v12122_v40  ;;  %v12131_v45 = vld [vmem:[%s11993_s15 + $0x50] sm:$0xff]  ;;  %s4469_s26 = scalar_lea.vmem %s14942_s25, %s11896_s0  ;;  %s14960_s9 = sld [smem:[#allocation56_spill]] }
  0x6a   : > { %1668 = vst [vmem:[#allocation2 + $0x78] sm:$0xff] %v11779_v0  ;;  %1669 = vst [vmem:[#allocation2 + $0x80] sm:$0xff] %v11779_v0  ;;  %v963_v23 = vadd.f32 %v962_v20, %v932_v16  ;;  %v895_v24 = vadd.f32 %v894_v19, %v12086_v18  ;;  %v12134_v46 = vld [vmem:[%s11993_s15 + $0x58] sm:$0xff]  ;;  %v998_v47 = vld [vmem:[%s14843_s4] sm:$0xff]  ;;  %v939_v51 = vmul.f32 %v12131_v45, %v12131_v45  ;;  %s14997_s0 = smov (!%p606_p6, %s11896_s0), 1 }
  0x6b   : > { %1670 = vst [vmem:[#allocation2 + $0x88] sm:$0x3] %v11779_v0  ;;  %1671 = vst [vmem:[#allocation2 + $0x90] sm:$0xff] %v11779_v0  ;;  %9476 = vmatpush3.bf16.msra.mxu1 %v11262_v3  ;;  %v999_v48 = vld [vmem:[%s14843_s4 + $0x8] sm:$0xff]  ;;  %v12146_v52 = vld [vmem:[%s11993_s15 + $0x60] sm:$0xff]  ;;  %v940_v55 = vmul.f32 %v12134_v46, %v12134_v46  ;;  %s8969_s24 = sshll.u32 %s14997_s0, 8 }
  0x6c   : > { %1672 = vst [vmem:[#allocation2 + $0x98] sm:$0xff] %v11779_v0  ;;  %1673 = vst [vmem:[#allocation2 + $0xa0] sm:$0x3] %v11779_v0  ;;  %9477 = vmatprep.subr.bf16.mxu1 %v11263_v4  ;;  %v896_v28 = vadd.f32 %v895_v24, %v12092_v22  ;;  %v964_v29 = vadd.f32 %v963_v23, %v933_v21  ;;  %v12152_v56 = vld [vmem:[%s11993_s15 + $0x68] sm:$0xff]  ;;  %v1000_v57 = vld [vmem:[%s14843_s4 + $0x10] sm:$0xff]  ;;  %v941_v61 = vmul.f32 %v12146_v52, %v12146_v52  ;;  %s14963_s0 = sld [smem:[#allocation58_spill]] }
  0x6d   : > { %1674 = vst [vmem:[#allocation2 + $0xa8] sm:$0xff] %v11779_v0  ;;  %1675 = vst [vmem:[#allocation2 + $0xb0] sm:$0xff] %v11779_v0  ;;  %v1001_v58 = vld [vmem:[%s14843_s4 + $0x18] sm:$0xff]  ;;  %v12165_v63 = vpack.c.bf16 %v999_v48, %v998_v47  ;;  %v12168_v1 = vld [vmem:[%s11993_s15 + $0x70] sm:$0xff]  ;;  %v942_v5 = vmul.f32 %v12152_v56, %v12152_v56  ;;  %v647_v21 = vpack.c.bf16 %v12107_v31, %v12101_v27 }
  0x6e   : > { %1676 = vst [vmem:[#allocation2 + $0xb8] sm:$0x3] %v11779_v0  ;;  %1677 = vst [vmem:[#allocation2 + $0xc0] sm:$0xff] %v11779_v0  ;;  %v965_v32 = vadd.f32 %v964_v29, %v934_v25  ;;  %v897_v33 = vadd.f32 %v896_v28, %v12101_v27  ;;  %v12177_v7 = vld [vmem:[%s11993_s15 + $0x78] sm:$0xff]  ;;  %v943_v10 = vmul.f32 %v12168_v1, %v12168_v1  ;;  %v1002_v12 = vld [vmem:[%s14843_s4 + $0x20] sm:$0xff] }
  0x6f   : > { %1678 = vst [vmem:[#allocation2 + $0xc8] sm:$0xff] %v11779_v0  ;;  %1679 = vst [vmem:[#allocation2 + $0xd0] sm:$0x3] %v11779_v0  ;;  %9478 = vmatpush3.bf16.msra.mxu1 %v11263_v4  ;;  %v12182_v11 = vpack.c.bf16 %v1001_v58, %v1000_v57  ;;  %v1003_v13 = vld [vmem:[%s14843_s4 + $0x28] sm:$0xff]  ;;  %v12191_v14 = vld [vmem:[%s11993_s15 + $0x80] sm:$0xff] }
  0x70   : > { %1680 = vst [vmem:[#allocation2 + $0xd8] sm:$0xff] %v11779_v0  ;;  %1681 = vst [vmem:[#allocation2 + $0xe0] sm:$0xff] %v11779_v0  ;;  %9479 = vmatprep.subr.bf16.mxu1 %v11264_v17  ;;  %v898_v37 = vadd.f32 %v897_v33, %v12107_v31  ;;  %v966_v38 = vadd.f32 %v965_v32, %v935_v30  ;;  %v12199_v18 = vld [vmem:[%s11993_s15 + $0x88] sm:$0xff]  ;;  %v1004_v22 = vld [vmem:[%s14843_s4 + $0x30] sm:$0xff]  ;;  %v945_v24 = vmul.f32 %v12191_v14, %v12191_v14 }
  0x71   : > { %1682 = vst [vmem:[#allocation2 + $0xe8] sm:$0x3] %v11779_v0  ;;  %1683 = vst [vmem:[#allocation2 + $0xf0] sm:$0xff] %v11779_v0  ;;  %v1005_v23 = vld [vmem:[%s14843_s4 + $0x38] sm:$0xff]  ;;  %v12213_v25 = vld [vmem:[%s11993_s15 + $0x90] sm:$0xff]  ;;  %v12218_v27 = vpack.c.bf16 %v1003_v13, %v1002_v12  ;;  %v946_v32 = vmul.f32 %v12199_v18, %v12199_v18 }
  0x72   : > { %1684 = vst [vmem:[#allocation2 + $0xf8] sm:$0xff] %v11779_v0  ;;  %1685 = vst [vmem:[#allocation2 + $0x100] sm:$0x3] %v11779_v0  ;;  %v967_v42 = vadd.f32 %v966_v38, %v936_v34  ;;  %v899_v43 = vadd.f32 %v898_v37, %v12116_v36  ;;  %v12223_v30 = vld [vmem:[%s11993_s15 + $0x98] sm:$0xff]  ;;  %v1006_v34 = vld [vmem:[%s14843_s4 + $0x40] sm:$0xff]  ;;  %v12238_v37 = vpack.c.bf16 %v1005_v23, %v1004_v22  ;;  %s14672_s22 = scalar_lea.vmem %s14963_s0, %s8969_s24 }
  0x73   : > { %1686 = vst [vmem:[#allocation2 + $0x108] sm:$0xff] %v11779_v0  ;;  %1687 = vst [vmem:[#allocation2 + $0x110] sm:$0xff] %v11779_v0  ;;  %9480 = vmatpush3.bf16.msra.mxu1 %v11264_v17  ;;  %v944_v17 = vmul.f32 %v12177_v7, %v12177_v7  ;;  %v1008_v47 = vld [vmem:[%s14843_s4 + $0x50] sm:$0xff]  ;;  %v1009_v48 = vld [vmem:[%s14843_s4 + $0x58] sm:$0xff] }
  0x74   : > { %1688 = vst [vmem:[#allocation2 + $0x118] sm:$0x3] %v11779_v0  ;;  %1689 = vst [vmem:[#allocation2 + $0x120] sm:$0xff] %v11779_v0  ;;  %9481 = vmatprep.subr.bf16.mxu1 %v11265_v26  ;;  %v900_v49 = vadd.f32 %v899_v43, %v12122_v40  ;;  %v968_v50 = vadd.f32 %v967_v42, %v937_v39  ;;  %v12243_v39 = vld [vmem:[%s11993_s15 + $0xa8] sm:$0xff]  ;;  %v947_v43 = vmul.f32 %v12213_v25, %v12213_v25 }
  0x75   : > { %1690 = vst [vmem:[#allocation2 + $0x128] sm:$0xff] %v11779_v0  ;;  %1691 = vst [vmem:[#allocation2 + $0x130] sm:$0x3] %v11779_v0  ;;  %v12283_v58 = vpack.c.bf16 %v1009_v48, %v1008_v47  ;;  %v950_v12 = vmul.f32 %v12243_v39, %v12243_v39 }
  0x76   : > { %1692 = vst [vmem:[#allocation2 + $0x138] sm:$0xff] %v11779_v0  ;;  %1693 = vst [vmem:[#allocation2 + $0x140] sm:$0xff] %v11779_v0  ;;  %v969_v53 = vadd.f32 %v968_v50, %v938_v44  ;;  %v901_v54 = vadd.f32 %v900_v49, %v12131_v45  ;;  %v12251_v44 = vld [vmem:[%s11993_s15 + $0xb0] sm:$0xff]  ;;  %v650_v49 = vpack.c.bf16 %v12152_v56, %v12146_v52  ;;  %v12267_v50 = vld [vmem:[%s11993_s15 + $0xb8] sm:$0xff] }
  0x77   : > { %1694 = vst [vmem:[#allocation2 + $0x148] sm:$0x3] %v11779_v0  ;;  %1695 = vst [vmem:[#allocation2 + $0x150] sm:$0xff] %v11779_v0  ;;  %9482 = vmatpush3.bf16.msra.mxu1 %v11265_v26  ;;  %v648_v26 = vpack.c.bf16 %v12122_v40, %v12116_v36  ;;  %v12235_v36 = vld [vmem:[%s11993_s15 + $0xa0] sm:$0xff]  ;;  %v951_v23 = vmul.f32 %v12251_v44, %v12251_v44 }
  0x78   : > { %1696 = vst [vmem:[#allocation2 + $0x158] sm:$0xff] %v11779_v0  ;;  %1697 = vst [vmem:[#allocation2 + $0x160] sm:$0x3] %v11779_v0  ;;  %9483 = vmatprep.subr.bf16.mxu1 %v11266_v35  ;;  %v902_v59 = vadd.f32 %v901_v54, %v12134_v46  ;;  %v970_v60 = vadd.f32 %v969_v53, %v939_v51  ;;  %v948_v53 = vmul.f32 %v12223_v30, %v12223_v30 }
  0x79   : > { %1698 = vst [vmem:[#allocation2 + $0x168] sm:$0xff] %v11779_v0  ;;  %1699 = vst [vmem:[#allocation2 + $0x170] sm:$0xff] %v11779_v0 }
  0x7a   : > { %1700 = vst [vmem:[#allocation2 + $0x178] sm:$0x3] %v11779_v0  ;;  %1701 = vst [vmem:[#allocation2 + $0x180] sm:$0xff] %v11779_v0  ;;  %v971_v3 = vadd.f32 %v970_v60, %v940_v55  ;;  %v903_v4 = vadd.f32 %v902_v59, %v12146_v52  ;;  %v12273_v52 = vld [vmem:[%s11993_s15 + $0xc0] sm:$0xff]  ;;  %v12287_v59 = vld [vmem:[%s11993_s15 + $0xc8] sm:$0xff] }
  0x7b   : > { %1702 = vst [vmem:[#allocation2 + $0x188] sm:$0xff] %v11779_v0  ;;  %1703 = vst [vmem:[#allocation2 + $0x190] sm:$0x3] %v11779_v0  ;;  %9484 = vmatpush3.bf16.msra.mxu1 %v11266_v35  ;;  %v1007_v35 = vld [vmem:[%s14843_s4 + $0x48] sm:$0xff]  ;;  %v1010_v55 = vld [vmem:[%s14843_s4 + $0x60] sm:$0xff]  ;;  %v954_v48 = vmul.f32 %v12287_v59, %v12287_v59 }
  0x7c   : > { %1704 = vst [vmem:[#allocation2 + $0x198] sm:$0xff] %v11779_v0  ;;  %1705 = vst [vmem:[#allocation2 + $0x1a0] sm:$0xff] %v11779_v0  ;;  %9485 = vmatprep.subr.bf16.mxu1 %v11267_v41  ;;  %v904_v8 = vadd.f32 %v903_v4, %v12152_v56  ;;  %v972_v9 = vadd.f32 %v971_v3, %v941_v61  ;;  %v1011_v56 = vld [vmem:[%s14843_s4 + $0x68] sm:$0xff]  ;;  %v651_v61 = vpack.c.bf16 %v12177_v7, %v12168_v1  ;;  %v12295_v3 = vld [vmem:[%s11993_s15 + $0xd0] sm:$0xff] }
  0x7d   : > { %1706 = vst [vmem:[#allocation2 + $0x1a8] sm:$0x3] %v11779_v0  ;;  %v1012_v4 = vld [vmem:[%s14843_s4 + $0x70] sm:$0xff] }
  0x7e   : > { %v973_v15 = vadd.f32 %v972_v9, %v942_v5  ;;  %v905_v16 = vadd.f32 %v904_v8, %v12168_v1  ;;  %v1013_v5 = vld [vmem:[%s14843_s4 + $0x78] sm:$0xff]  ;;  %v652_v8 = vpack.c.bf16 %v12199_v18, %v12191_v14 }
  0x7f   : > { %9486 = vmatpush3.bf16.msra.mxu1 %v11267_v41  ;;  %v649_v41 = vpack.c.bf16 %v12134_v46, %v12131_v45  ;;  %v12262_v45 = vpack.c.bf16 %v1007_v35, %v1006_v34  ;;  %v12310_v9 = vld [vmem:[%s11993_s15 + $0xd8] sm:$0xff] }
  0x80   : > { %10483 = vmatprep.subr.bf16.mxu1 %v14865_v6  ;;  %v906_v19 = vadd.f32 %v905_v16, %v12177_v7  ;;  %v974_v20 = vadd.f32 %v973_v15, %v943_v10  ;;  %v12307_v7 = vpack.c.bf16 %v1011_v56, %v1010_v55  ;;  %v12317_v15 = vld [vmem:[%s11993_s15 + $0xe0] sm:$0xff]  ;;  %v955_v55 = vmul.f32 %v12295_v3, %v12295_v3 }
  0x82   : > { %9488 = vmatmul.mubr.bf16.vlgmr.msra.gmra.mrb[0].mxu1 %v645_v62  ;;  %v975_v28 = vadd.f32 %v974_v20, %v944_v17  ;;  %v907_v29 = vadd.f32 %v906_v19, %v12191_v14  ;;  %v12321_v17 = vpack.c.bf16 %v1013_v5, %v1012_v4  ;;  %v12324_v19 = vld [vmem:[%s11993_s15 + $0xe8] sm:$0xff] }
  0x83   : > { %10485 = vmatpush3.bf16.msra.mxu1 %v12165_v63  ;;  %9491 = vmatprep.mubr.bf16.mxu1 %v646_v2  ;;  %v949_v2 = vmul.f32 %v12235_v36, %v12235_v36  ;;  %v658_v56 = vpack.c.bf16 %v12324_v19, %v12317_v15  ;;  %v958_v5 = vmul.f32 %v12324_v19, %v12324_v19 }
  0x84   : > { %10486 = vmatprep.subr.bf16.mxu1 %v14865_v6  ;;  %v908_v31 = vadd.f32 %v907_v29, %v12199_v18  ;;  %v976_v33 = vadd.f32 %v975_v28, %v945_v24  ;;  %v12333_v24 = vld [vmem:[%s11993_s15 + $0xf0] sm:$0xff]  ;;  %v12340_v29 = vld [vmem:[%s11993_s15 + $0xf8] sm:$0xff] }
  0x85   : > { %v659_v4 = vpack.c.bf16 %v12340_v29, %v12333_v24 }
  0x86   : > { %v909_v38 = vadd.f32 %v908_v31, %v12213_v25  ;;  %v977_v42 = vadd.f32 %v976_v33, %v946_v32  ;;  %v952_v32 = vmul.f32 %v12267_v50, %v12267_v50 }
  0x87   : > { %10488 = vmatpush3.bf16.msra.mxu1 %v12182_v11 }
  0x88   : > { %10489 = vmatprep.subr.bf16.mxu1 %v14865_v6  ;;  %v910_v40 = vadd.f32 %v909_v38, %v12223_v30  ;;  %v978_v54 = vadd.f32 %v977_v42, %v947_v43  ;;  %v655_v38 = vpack.c.bf16 %v12267_v50, %v12251_v44  ;;  %v656_v42 = vpack.c.bf16 %v12287_v59, %v12273_v52 }
  0x8a   : > { %9492 = vmatmul.mubr.bf16.gmra.mrb[4].mxu1 %v647_v21  ;;  %v911_v46 = vadd.f32 %v910_v40, %v12235_v36  ;;  %v979_v62 = vadd.f32 %v978_v54, %v948_v53  ;;  %v653_v21 = vpack.c.bf16 %v12223_v30, %v12213_v25  ;;  %v657_v54 = vpack.c.bf16 %v12310_v9, %v12295_v3 }
  0x8b   : > { %9495 = vmatprep.mubr.bf16.mxu1 %v648_v26  ;;  %10491 = vmatpush3.bf16.msra.mxu1 %v12218_v27  ;;  %v654_v26 = vpack.c.bf16 %v12243_v39, %v12235_v36 }
  0x8c   : > { %10492 = vmatprep.subr.bf16.mxu1 %v14865_v6  ;;  %v912_v51 = vadd.f32 %v911_v46, %v12243_v39  ;;  %v980_v13 = vadd.f32 %v979_v62, %v949_v2  ;;  %v957_v2 = vmul.f32 %v12317_v15, %v12317_v15 }
  0x8e   : > { %v913_v57 = vadd.f32 %v912_v51, %v12251_v44  ;;  %v981_v22 = vadd.f32 %v980_v13, %v950_v12  ;;  %v960_v13 = vmul.f32 %v12340_v29, %v12340_v29 }
  0x8f   : > { %10494 = vmatpush3.bf16.msra.mxu1 %v12238_v37 }
  0x90   : > { %10495 = vmatprep.subr.bf16.mxu1 %v14865_v6  ;;  %v914_v60 = vadd.f32 %v913_v57, %v12267_v50  ;;  %v982_v33 = vadd.f32 %v981_v22, %v951_v23 }
  0x92   : > { %9496 = vmatmul.mubr.bf16.gmra.mrb[8].mxu1 %v649_v41  ;;  %v915_v1 = vadd.f32 %v914_v60, %v12273_v52  ;;  %v983_v40 = vadd.f32 %v982_v33, %v952_v32  ;;  %v953_v41 = vmul.f32 %v12273_v52, %v12273_v52  ;;  %v956_v60 = vmul.f32 %v12310_v9, %v12310_v9 }
  0x93   : > { %9499 = vmatprep.mubr.bf16.mxu1 %v650_v49  ;;  %10497 = vmatpush3.bf16.msra.mxu1 %v12262_v45 }
  0x94   : > { %10498 = vmatprep.subr.bf16.mxu1 %v14865_v6  ;;  %v916_v10 = vadd.f32 %v915_v1, %v12287_v59  ;;  %v984_v49 = vadd.f32 %v983_v40, %v953_v41 }
  0x96   : > { %v917_v16 = vadd.f32 %v916_v10, %v12295_v3  ;;  %v985_v53 = vadd.f32 %v984_v49, %v954_v48  ;;  %v959_v10 = vmul.f32 %v12333_v24, %v12333_v24 }
  0x97   : > { %10500 = vmatpush3.bf16.msra.mxu1 %v12283_v58 }
  0x98   : > { %10501 = vmatprep.subr.bf16.mxu1 %v14865_v6  ;;  %v918_v20 = vadd.f32 %v917_v16, %v12310_v9 }
  0x9a   : > { %9500 = vmatmul.mubr.bf16.gmra.mrb[12].mxu1 %v651_v61  ;;  %v919_v28 = vadd.f32 %v918_v20, %v12317_v15  ;;  %v986_v61 = vadd.f32 %v985_v53, %v955_v55  ;;  %v12377_v20 = vld [vmem:[#allocation2 + $0x18] sm:$0xff] }
  0x9b   : > { %9503 = vmatprep.mubr.bf16.mxu1 %v652_v8  ;;  %10503 = vmatpush3.bf16.msra.mxu1 %v12307_v7 }
  0x9c   : > { %10504 = vmatprep.subr.bf16.mxu1 %v14865_v6  ;;  %v920_v31 = vadd.f32 %v919_v28, %v12324_v19  ;;  %v987_v62 = vadd.f32 %v986_v61, %v956_v60 }
  0x9e   : > { %v921_v34 = vadd.f32 %v920_v31, %v12333_v24  ;;  %v988_v8 = vadd.f32 %v987_v62, %v957_v2 }
  0x9f   : > { %10506 = vmatpush3.bf16.msra.mxu1 %v12321_v17 }
  0xa0   : > { %10507 = vmatprep.subr.bf16.mxu1 %v14865_v6  ;;  %v922_v35 = vadd.f32 %v921_v34, %v12340_v29  ;;  %v989_v1 = vadd.f32 %v988_v8, %v958_v5 }
  0xa2   : > { %9504 = vmatmul.mubr.bf16.gmra.mrb[16].mxu1 %v653_v21  ;;  %v923_v43 = vrot.slane %v922_v35, 4  ;;  %v990_v16 = vadd.f32 %v989_v1, %v959_v10 }
  0xa3   : > { %9507 = vmatprep.mubr.bf16.mxu1 %v654_v26 }
  0xa4   : > { %v924_v47 = vadd.f32 %v923_v43, %v922_v35 }
  0xa6   : > { %v925_v46 = vrot.slane %v924_v47, 2 }
  0xa8   : > { %v926_v51 = vadd.f32 %v925_v46, %v924_v47 }
  0xaa   : > { %9508 = vmatmul.mubr.bf16.gmra.mrb[20].mxu1 %v655_v38  ;;  %v927_v57 = vrot.slane %v926_v51, 1 }
  0xab   : > { %9511 = vmatprep.mubr.bf16.mxu1 %v656_v42 }
  0xac   : > { %v928_v12 = vadd.f32 %v927_v57, %v926_v51 }
  0xb2   : > { %9512 = vmatmul.mubr.bf16.gmra.mrb[24].mxu1 %v657_v54 }
  0xb3   : > { %9515 = vmatprep.mubr.bf16.mxu1 %v658_v56 }
  0xba   : > { %9516 = vmatmul.mubr.bf16.gmra.mrb[28].mxu1 %v659_v4 }
  0xbb   : > { %9551 = vmatprep.mubr.msk.f32.mxu1 %vm11781_vm0, %v11779_v0  ;;  %v991_v0 = vadd.f32 %v990_v16, %v960_v13 }
  0xbd   : > { %v992_v21 = vrot.slane %v991_v0, 4 }
  0xbf   : > { %v993_v22 = vadd.f32 %v992_v21, %v991_v0 }
  0xc2   : > { %9552 = vmatmul.mubr.f32.vlgmr.msra.gmra.mrb[32].mxu1 %v928_v12 }
  0xc3   : > { %10509 = vmatpush3.bf16.msra.mxu1 %v12165_v63  ;;  %9586 = vmatprep.mubr.msk.f32.mxu1 %vm11781_vm0, %v12377_v20  ;;  %v994_v63 = vrot.slane %v993_v22, 2 }
  0xc4   : > { %10510 = vmatprep.subr.bf16.mxu1 %v14865_v6 }
  0xc5   : > { %v995_v23 = vadd.f32 %v994_v63, %v993_v22 }
  0xc7   : > { %10512 = vmatpush3.bf16.msra.mxu1 %v12182_v11  ;;  %v996_v11 = vrot.slane %v995_v23, 1 }
  0xc8   : > { %10513 = vmatprep.subr.bf16.mxu1 %v14865_v6 }
  0xcb   : > { %10515 = vmatpush3.bf16.msra.mxu1 %v12218_v27  ;;  %v997_v27 = vadd.f32 %v996_v11, %v995_v23 }
  0xcc   : > { %10516 = vmatprep.subr.bf16.mxu1 %v14865_v6 }
  0xcf   : > { %10518 = vmatpush3.bf16.msra.mxu1 %v12238_v37  ;;  %v1160_v37 = vld [vmem:[%s14844_s5] sm:$0xff] }
  0xd0   : > { %10519 = vmatprep.subr.bf16.mxu1 %v14865_v6 }
  0xd3   : > { %10521 = vmatpush3.bf16.msra.mxu1 %v12262_v45  ;;  %v1161_v45 = vld [vmem:[%s14844_s5 + $0x8] sm:$0xff] }
  0xd4   : > { %10522 = vmatprep.subr.bf16.mxu1 %v14865_v6 }
  0xd7   : > { %10524 = vmatpush3.bf16.msra.mxu1 %v12283_v58  ;;  %v10532_v58 = vpack.c.bf16 %v1161_v45, %v1160_v37 }
  0xd8   : > { %10525 = vmatprep.subr.bf16.mxu1 %v14865_v6 }
  0xdb   : > { %10527 = vmatpush3.bf16.msra.mxu1 %v12307_v7  ;;  %v1162_v7 = vld [vmem:[%s14844_s5 + $0x10] sm:$0xff] }
  0xdc   : > { %10528 = vmatprep.subr.bf16.mxu1 %v14865_v6 }
  0xdf   : > { %10530 = vmatpush3.bf16.msra.mxu1 %v12321_v17  ;;  %v1163_v17 = vld [vmem:[%s14844_s5 + $0x18] sm:$0xff] }
  0xe0   : > { %10531 = vmatprep.subr.bf16.mxu1 %v14865_v6  ;;  %v10535_v26 = vpack.c.bf16 %v1163_v17, %v1162_v7 }
  0xe2   : > { %9587 = vmatmul.mubr.f32.vlgmr.msra.gmra.mrb[34].mxu1 %v997_v27 }
  0xe3   : > { %9597 = vmatprep.mubr.msk.f32.mxu1 %vm11781_vm0, %v12377_v20  ;;  %10533 = vmatpush3.bf16.msra.mxu1 %v10532_v58 }
  0xe4   : > { %10534 = vmatprep.subr.bf16.mxu1 %v14865_v6 }
  0xe7   : > { %10536 = vmatpush3.bf16.msra.mxu1 %v10535_v26 }
  0xe8   : > { %10537 = vmatprep.subr.bf16.mxu1 %v14865_v6 }
 0x155   : > { %v12412_v28 = vpop.f32.mrb[0].mxu1 }
 0x156   : > { %14898 = vst [vmem:[#allocation11_spill] sm:$0xff] %v12412_v28  ;;  %v12414_v31 = vpop.f32.mrb[1].mxu1 }
 0x157   : > { %14899 = vst [vmem:[#allocation12_spill] sm:$0xff] %v12414_v31  ;;  %v12416_v32 = vpop.f32.mrb[2].mxu1 }
 0x158   : > { %14900 = vst [vmem:[#allocation13_spill] sm:$0xff] %v12416_v32  ;;  %v12418_v33 = vpop.f32.mrb[3].mxu1 }
 0x159   : > { %14901 = vst [vmem:[#allocation14_spill] sm:$0xff] %v12418_v33 }
 0x15d   : > { %v12420_v34 = vpop.f32.mrb[4].mxu1 }
 0x15e   : > { %14902 = vst [vmem:[#allocation15_spill] sm:$0xff] %v12420_v34  ;;  %v12422_v35 = vpop.f32.mrb[5].mxu1 }
 0x15f   : > { %14903 = vst [vmem:[#allocation16_spill] sm:$0xff] %v12422_v35  ;;  %v12424_v38 = vpop.f32.mrb[6].mxu1 }
 0x160   : > { %14904 = vst [vmem:[#allocation17_spill] sm:$0xff] %v12424_v38  ;;  %v12426_v40 = vpop.f32.mrb[7].mxu1 }
 0x161   : > { %14905 = vst [vmem:[#allocation18_spill] sm:$0xff] %v12426_v40 }
 0x165   : > { %v12428_v41 = vpop.f32.mrb[8].mxu1 }
 0x166   : > { %14906 = vst [vmem:[#allocation19_spill] sm:$0xff] %v12428_v41  ;;  %v12430_v42 = vpop.f32.mrb[9].mxu1 }
 0x167   : > { %14907 = vst [vmem:[#allocation20_spill] sm:$0xff] %v12430_v42  ;;  %v12432_v43 = vpop.f32.mrb[10].mxu1 }
 0x168   : > { %14908 = vst [vmem:[#allocation21_spill] sm:$0xff] %v12432_v43  ;;  %v12434_v47 = vpop.f32.mrb[11].mxu1 }
 0x169   : > { %14909 = vst [vmem:[#allocation22_spill] sm:$0xff] %v12434_v47 }
 0x16d   : > { %v12436_v48 = vpop.f32.mrb[12].mxu1 }
 0x16e   : > { %14910 = vst [vmem:[#allocation23_spill] sm:$0xff] %v12436_v48  ;;  %v12438_v49 = vpop.f32.mrb[13].mxu1 }
 0x16f   : > { %14911 = vst [vmem:[#allocation24_spill] sm:$0xff] %v12438_v49  ;;  %v12440_v46 = vpop.f32.mrb[14].mxu1 }
 0x170   : > { %14912 = vst [vmem:[#allocation25_spill] sm:$0xff] %v12440_v46  ;;  %v12442_v51 = vpop.f32.mrb[15].mxu1 }
 0x171   : > { %14913 = vst [vmem:[#allocation26_spill] sm:$0xff] %v12442_v51 }
 0x175   : > { %v12444_v53 = vpop.f32.mrb[16].mxu1 }
 0x176   : > { %14914 = vst [vmem:[#allocation27_spill] sm:$0xff] %v12444_v53  ;;  %v12446_v54 = vpop.f32.mrb[17].mxu1 }
 0x177   : > { %14915 = vst [vmem:[#allocation28_spill] sm:$0xff] %v12446_v54  ;;  %v12448_v55 = vpop.f32.mrb[18].mxu1 }
 0x178   : > { %14916 = vst [vmem:[#allocation29_spill] sm:$0xff] %v12448_v55  ;;  %v12450_v56 = vpop.f32.mrb[19].mxu1 }
 0x179   : > { %14917 = vst [vmem:[#allocation30_spill] sm:$0xff] %v12450_v56 }
 0x17d   : > { %v12452_v57 = vpop.f32.mrb[20].mxu1 }
 0x17e   : > { %14918 = vst [vmem:[#allocation31_spill] sm:$0xff] %v12452_v57  ;;  %v12454_v60 = vpop.f32.mrb[21].mxu1 }
 0x17f   : > { %14919 = vst [vmem:[#allocation32_spill] sm:$0xff] %v12454_v60  ;;  %v12456_v61 = vpop.f32.mrb[22].mxu1  ;;  %v11664_v60 = vld [vmem:[%s11993_s15 + $0x78] sm:$0xff] }
 0x180   : > { %14920 = vst [vmem:[#allocation33_spill] sm:$0xff] %v12456_v61  ;;  %v12458_v62 = vpop.f32.mrb[23].mxu1  ;;  %v11663_v61 = vld [vmem:[%s11993_s15 + $0x70] sm:$0xff] }
 0x181   : > { %14921 = vst [vmem:[#allocation34_spill] sm:$0xff] %v12458_v62 }
 0x185   : > { %v12460_v2 = vpop.f32.mrb[24].mxu1 }
 0x186   : > { %14922 = vst [vmem:[#allocation35_spill] sm:$0xff] %v12460_v2  ;;  %v12462_v4 = vpop.f32.mrb[25].mxu1 }
 0x187   : > { %14923 = vst [vmem:[#allocation36_spill] sm:$0xff] %v12462_v4  ;;  %v12464_v5 = vpop.f32.mrb[26].mxu1  ;;  %v11661_v4 = vld [vmem:[%s11993_s15 + $0x60] sm:$0xff] }
 0x188   : > { %14924 = vst [vmem:[#allocation37_spill] sm:$0xff] %v12464_v5  ;;  %v12466_v8 = vpop.f32.mrb[27].mxu1  ;;  %v11660_v5 = vld [vmem:[%s11993_s15 + $0x58] sm:$0xff] }
 0x189   : > { %14925 = vst [vmem:[#allocation38_spill] sm:$0xff] %v12466_v8  ;;  %v11659_v8 = vld [vmem:[%s11993_s15 + $0x50] sm:$0xff] }
 0x18d   : > { %v12468_v1 = vpop.f32.mrb[28].mxu1 }
 0x18e   : > { %14926 = vst [vmem:[#allocation39_spill] sm:$0xff] %v12468_v1  ;;  %v12470_v10 = vpop.f32.mrb[29].mxu1 }
 0x18f   : > { %14927 = vst [vmem:[#allocation40_spill] sm:$0xff] %v12470_v10  ;;  %v12472_v12 = vpop.f32.mrb[30].mxu1 }
 0x190   : > { %14928 = vst [vmem:[#allocation41_spill] sm:$0xff] %v12472_v12  ;;  %v12474_v13 = vpop.f32.mrb[31].mxu1  ;;  %v11657_v12 = vld [vmem:[%s11993_s15 + $0x40] sm:$0xff] }
 0x191   : > { %14929 = vst [vmem:[#allocation42_spill] sm:$0xff] %v12474_v13  ;;  %v11656_v13 = vld [vmem:[%s11993_s15 + $0x38] sm:$0xff] }
 0x195   : > { %v1080_v16 = vpop.f32.mrb[32].mxu1 }
 0x196   : > { %v1154_v0 = vmul.f32 0.0009765625, %v1080_v16  ;;  %v9553_v21 = vpop.f32.mrb[33].mxu1  ;;  %v11271_v16 = vld [vmem:[%s14845_s6 + $0x1c8] sm:$0xff]  }
 0x197   : > { %v11273_v21 = vld [vmem:[%s14845_s6 + $0x1d0] sm:$0xff]  }
 0x198   : > { %9598 = vmatmul.mubr.msk.f32.vlgmr.msra.gmra.mrb[36].mxu1 %vm1164_vm1, %v1154_v0  ;;  %v1156_v63 = vmul.f32 %v1154_v0, %v1154_v0  ;;  %v11272_v0 = vld [vmem:[%s14845_s6 + $0x50] sm:$0xff]  }
 0x199   : > { %10539 = vmatpush3.bf16.msra.mxu1 %v10532_v58  ;;  %9608 = vmatprep.mubr.msk.f32.mxu1 %vm11781_vm0, %v12377_v20  ;;  %v11268_v58 = vld [vmem:[%s14845_s6 + $0x40] sm:$0xff]  }
 0x19a   : > { %10540 = vmatprep.subr.bf16.mxu1 %v14865_v6  ;;  %v11269_v20 = vld [vmem:[%s14845_s6 + $0x1c0] sm:$0xff]   ;;  %v11655_v6 = vld [vmem:[%s11993_s15 + $0x30] sm:$0xff] }
 0x19b   : > { %9947 = vmatprep.subr.bf16.mxu0 %v11269_v20 }
 0x19c   : > { %9948 = vmatpush3.bf16.msra.mxu0 %v11269_v20  ;;  %v11282_v20 = vld [vmem:[%s14845_s6 + $0x78] sm:$0xff]  }
 0x19d   : > { %10542 = vmatpush3.bf16.msra.mxu1 %v10535_v26  ;;  %v11270_v26 = vld [vmem:[%s14845_s6 + $0x48] sm:$0xff]   ;;  %9949 = vmatprep.subr.bf16.mxu0 %v11271_v16 }
 0x19e   : > { %9611 = vmatprep.subr.bf16.mxu1 %v11268_v58 }
 0x1a0   : > { %9950 = vmatpush3.bf16.msra.mxu0 %v11271_v16  ;;  %v11283_v16 = vld [vmem:[%s14845_s6 + $0x1f8] sm:$0xff]  }
 0x1a1   : > { %9951 = vmatprep.subr.bf16.mxu0 %v11273_v21 }
 0x1a4   : > { %9952 = vmatpush3.bf16.msra.mxu0 %v11273_v21  ;;  %v1805_v21 = vld [vmem:[#allocation2 + $0x9] sm:$0xff] }
 0x1b5   : > { %v1150_v22 = vpop.f32.mrb[34].mxu1 }
 0x1b6   : > { %v1155_v23 = vmul.f32 0.0009765625, %v1150_v22  ;;  %v9588_v11 = vpop.f32.mrb[35].mxu1  ;;  %v11274_v22 = vld [vmem:[%s14845_s6 + $0x58] sm:$0xff]  }
 0x1b7   : > { %v11277_v11 = vld [vmem:[%s14845_s6 + $0x1e0] sm:$0xff]  }
 0x1b8   : > { %v1157_v27 = vsub.f32 %v1155_v23, %v1156_v63  ;;  %v11275_v63 = vld [vmem:[%s14845_s6 + $0x1d8] sm:$0xff]   ;;  %v11276_v23 = vld [vmem:[%s14845_s6 + $0x60] sm:$0xff]  }
 0x1b9   : > { %9953 = vmatprep.subr.bf16.mxu0 %v11275_v63 }
 0x1ba   : > { %v1158_v37 = vadd.f32 1e-05, %v1157_v27  ;;  %9954 = vmatpush3.bf16.msra.mxu0 %v11275_v63  ;;  %v11278_v27 = vld [vmem:[%s14845_s6 + $0x68] sm:$0xff]   ;;  %v12532_v63 = vld [vmem:[%s14845_s6] sm:$0xff]  }
 0x1bb   : > { %9955 = vmatprep.subr.bf16.mxu0 %v11277_v11 }
 0x1bc   : > { %11384 = vrsqrt.f32 %v1158_v37  ;;  %v11279_v37 = vld [vmem:[%s14845_s6 + $0x1e8] sm:$0xff]  }
 0x1be   : > { %9956 = vmatpush3.bf16.msra.mxu0 %v11277_v11 }
 0x1bf   : > { %9957 = vmatprep.subr.bf16.mxu0 %v11279_v37 }
 0x1c2   : > { %9958 = vmatpush3.bf16.msra.mxu0 %v11279_v37  ;;  %v11649_v37 = vld [vmem:[%s11993_s15] sm:$0xff] }
 0x1c6   : > { %v11385_v45 = vpop.eup %11384 }
 0x1c7   : > { %9609 = vmatmul.mubr.msk.f32.vlgmr.msra.gmra.mrb[38].mxu1 %vm1164_vm1, %v11385_v45  ;;  %v11280_v45 = vld [vmem:[%s14845_s6 + $0x70] sm:$0xff]  }
 0x1c8   : > { %9612 = vmatpush3.bf16.msra.mxu1 %v11268_v58  ;;  %v1311_v58 = vlaneseq }
 0x1c9   : > { %9613 = vmatprep.subr.bf16.mxu1 %v11270_v26 }
 0x1cc   : > { %9614 = vmatpush3.bf16.msra.mxu1 %v11270_v26  ;;  %v1312_v26 = vshrl.u32 %v1311_v58, 7  ;;  %v11650_v58 = vld [vmem:[%s11993_s15 + $0x8] sm:$0xff] }
 0x1cd   : > { %9615 = vmatprep.subr.bf16.mxu1 %v11272_v0 }
 0x1ce   : > { %v12539_v11 = vsub.s32 0, %v1312_v26 }
 0x1d0   : > { %9616 = vmatpush3.bf16.msra.mxu1 %v11272_v0  ;;  %v1804_v0 = vld [vmem:[#allocation2 + $0x1] sm:$0xff]  ;;  %14930 = vst [vmem:[#allocation43_spill] sm:$0xff] %v12539_v11 }
 0x1d1   : > { %9617 = vmatprep.subr.bf16.mxu1 %v11274_v22 }
 0x1d4   : > { %9618 = vmatpush3.bf16.msra.mxu1 %v11274_v22  ;;  %v1836_v22 = vpack.c.bf16 %v1805_v21, %v1804_v0  ;;  %v11653_v21 = vld [vmem:[%s11993_s15 + $0x20] sm:$0xff] }
 0x1d5   : > { %9619 = vmatprep.subr.bf16.mxu1 %v11276_v23 }
 0x1d6   : > { %9627 = vmatprep.mubr.bf16.mxu1 %v1836_v22  ;;  %v11654_v22 = vld [vmem:[%s11993_s15 + $0x28] sm:$0xff] }
 0x1d8   : > { %9620 = vmatpush3.bf16.msra.mxu1 %v11276_v23  ;;  %v12537_v23 = vld [vmem:[%s14845_s6 + $0x200] sm:$0xff]  }
 0x1d9   : > { %9621 = vmatprep.subr.bf16.mxu1 %v11278_v27 }
 0x1dc   : > { %9622 = vmatpush3.bf16.msra.mxu1 %v11278_v27 }
 0x1dd   : > { %9623 = vmatprep.subr.bf16.mxu1 %v11280_v45 }
 0x1e0   : > { %9624 = vmatpush3.bf16.msra.mxu1 %v11280_v45 }
 0x1e1   : > { %9625 = vmatprep.subr.bf16.mxu1 %v11282_v20 }
 0x1e4   : > { %9626 = vmatpush3.bf16.msra.mxu1 %v11282_v20  ;;  %v11651_v20 = vld [vmem:[%s11993_s15 + $0x10] sm:$0xff] }
 0x1e5   : > { %9659 = vmatprep.subr.bf16.mxu1 %v12532_v63 }
 0x26b   : > { %v1234_v7 = vpop.f32.mrb[36].mxu1 }
 0x26c   : > { %v9599_v17 = vpop.f32.mrb[37].mxu1  ;;  %v12544_v27 = vrot.slane %v1234_v7, %v12539_v11 }
 0x26d   : > { %v11281_v17 = vld [vmem:[%s14845_s6 + $0x1f0] sm:$0xff]  }
 0x26e   : > { %9959 = vmatprep.subr.bf16.mxu0 %v11281_v17  ;;  %v1315_v45 = vsub.f32 %v11649_v37, %v12544_v27  ;;  %v1317_v26 = vsub.f32 %v11651_v20, %v12544_v27  ;;  %v1319_v7 = vsub.f32 %v11653_v21, %v12544_v27  ;;  %v1320_v37 = vsub.f32 %v11654_v22, %v12544_v27 }
 0x26f   : > { %9960 = vmatpush3.bf16.msra.mxu0 %v11281_v17  ;;  %v1316_v17 = vsub.f32 %v11650_v58, %v12544_v27  ;;  %v1321_v58 = vsub.f32 %v11655_v6, %v12544_v27  ;;  %v1322_v20 = vsub.f32 %v11656_v13, %v12544_v27  ;;  %v1323_v10 = vsub.f32 %v11657_v12, %v12544_v27  ;;  %v11662_v6 = vld [vmem:[%s11993_s15 + $0x68] sm:$0xff] }
 0x270   : > { %9961 = vmatprep.subr.bf16.mxu0 %v11283_v16  ;;  %v1325_v21 = vsub.f32 %v11659_v8, %v12544_v27  ;;  %v1326_v22 = vsub.f32 %v11660_v5, %v12544_v27  ;;  %v1327_v2 = vsub.f32 %v11661_v4, %v12544_v27  ;;  %v1328_v62 = vsub.f32 %v11662_v6, %v12544_v27 }
 0x271   : > { %v1329_v13 = vsub.f32 %v11663_v61, %v12544_v27  ;;  %v1330_v12 = vsub.f32 %v11664_v60, %v12544_v27  ;;  %v1332_v8 = vsub.f32 %v12199_v18, %v12544_v27  ;;  %v1333_v5 = vsub.f32 %v12213_v25, %v12544_v27 }
 0x272   : > { %v1334_v4 = vsub.f32 %v12223_v30, %v12544_v27  ;;  %v1335_v6 = vsub.f32 %v12235_v36, %v12544_v27  ;;  %v1336_v61 = vsub.f32 %v12243_v39, %v12544_v27  ;;  %v1337_v60 = vsub.f32 %v12251_v44, %v12544_v27 }
 0x273   : > { %9962 = vmatpush3.bf16.msra.mxu0 %v11283_v16  ;;  %v11652_v16 = vld [vmem:[%s11993_s15 + $0x18] sm:$0xff]  ;;  %v1339_v18 = vsub.f32 %v12273_v52, %v12544_v27  ;;  %v1340_v25 = vsub.f32 %v12287_v59, %v12544_v27  ;;  %v1341_v30 = vsub.f32 %v12295_v3, %v12544_v27  ;;  %v1342_v36 = vsub.f32 %v12310_v9, %v12544_v27 }
 0x274   : > { %9995 = vmatprep.subr.bf16.mxu0 %v12537_v23  ;;  %v1318_v0 = vsub.f32 %v11652_v16, %v12544_v27  ;;  %v11658_v16 = vld [vmem:[%s11993_s15 + $0x48] sm:$0xff]  ;;  %v1343_v44 = vsub.f32 %v12317_v15, %v12544_v27  ;;  %v1345_v52 = vsub.f32 %v12333_v24, %v12544_v27  ;;  %v1346_v59 = vsub.f32 %v12340_v29, %v12544_v27  ;;  %s14957_s15 = sld [smem:[#allocation57_spill]] }
 0x275   : > { %v1324_v1 = vsub.f32 %v11658_v16, %v12544_v27  ;;  %v1331_v16 = vsub.f32 %v12191_v14, %v12544_v27  ;;  %v1338_v14 = vsub.f32 %v12267_v50, %v12544_v27  ;;  %v1344_v50 = vsub.f32 %v12324_v19, %v12544_v27 }
 0x29a   : > { %v1307_v57 = vpop.f32.mrb[38].mxu1 }
 0x29b   : > { %v1350_v39 = vrot.slane %v1307_v57, %v12539_v11  ;;  %v9610_v56 = vpop.f32.mrb[39].mxu1 }
 0x29d   : > { %v1351_v55 = vmul.f32 %v1350_v39, %v1315_v45  ;;  %v1352_v3 = vmul.f32 %v1350_v39, %v1316_v17  ;;  %v1353_v54 = vmul.f32 %v1350_v39, %v1317_v26  ;;  %v1354_v53 = vmul.f32 %v1350_v39, %v1318_v0 }
 0x29e   : > { %v1355_v9 = vmul.f32 %v1350_v39, %v1319_v7  ;;  %v1356_v51 = vmul.f32 %v1350_v39, %v1320_v37  ;;  %v1357_v57 = vmul.f32 %v1350_v39, %v1321_v58  ;;  %v1358_v56 = vmul.f32 %v1350_v39, %v1322_v20 }
 0x29f   : > { %v1359_v46 = vmul.f32 %v1350_v39, %v1323_v10  ;;  %v1360_v49 = vmul.f32 %v1350_v39, %v1324_v1  ;;  %v1361_v15 = vmul.f32 %v1350_v39, %v1325_v21  ;;  %v1362_v48 = vmul.f32 %v1350_v39, %v1326_v22 }
 0x2a0   : > { %v1363_v47 = vmul.f32 %v1350_v39, %v1327_v2  ;;  %v1364_v19 = vmul.f32 %v1350_v39, %v1328_v62  ;;  %v1365_v43 = vmul.f32 %v1350_v39, %v1329_v13  ;;  %v1366_v42 = vmul.f32 %v1350_v39, %v1330_v12  ;;  %v8568_v62 = vld [vmem:[%s14931_s10] ss:$0 sm:$0xff]  ;;  %s14946_s10 = sld [smem:[#allocation55_spill]] }
 0x2a1   : > { %v1367_v24 = vmul.f32 %v1350_v39, %v1331_v16  ;;  %v1368_v41 = vmul.f32 %v1350_v39, %v1332_v8  ;;  %v1369_v40 = vmul.f32 %v1350_v39, %v1333_v5  ;;  %v1370_v29 = vmul.f32 %v1350_v39, %v1334_v4  ;;  %v12617_v16 = vld [vmem:[%s14842_s3] ss:$0 sm:$0xff] }
 0x2a2   : > { %v1371_v27 = vmul.f32 %v1350_v39, %v1335_v6  ;;  %v1372_v45 = vmul.f32 %v1350_v39, %v1336_v61  ;;  %v1373_v17 = vmul.f32 %v1350_v39, %v1337_v60  ;;  %v1374_v26 = vmul.f32 %v1350_v39, %v1338_v14 }
 0x2a3   : > { %v1375_v0 = vmul.f32 %v1350_v39, %v1339_v18  ;;  %v1376_v7 = vmul.f32 %v1350_v39, %v1340_v25  ;;  %v1377_v37 = vmul.f32 %v1350_v39, %v1341_v30  ;;  %v1378_v58 = vmul.f32 %v1350_v39, %v1342_v36 }
 0x2a4   : > { %v1379_v10 = vmul.f32 %v1350_v39, %v1343_v44  ;;  %v1380_v1 = vmul.f32 %v1350_v39, %v1344_v50  ;;  %v1381_v20 = vmul.f32 %v1350_v39, %v1345_v52  ;;  %v1382_v21 = vmul.f32 %v1350_v39, %v1346_v59 }
 0x2a5   : > { %v1390_v2 = vmul.f32 %v8568_v62, %v1351_v55  ;;  %v1391_v22 = vmul.f32 %v8568_v62, %v1352_v3  ;;  %v1392_v13 = vmul.f32 %v8568_v62, %v1353_v54  ;;  %v1393_v12 = vmul.f32 %v8568_v62, %v1354_v53 }
 0x2a6   : > { %v1394_v8 = vmul.f32 %v8568_v62, %v1355_v9  ;;  %v1395_v5 = vmul.f32 %v8568_v62, %v1356_v51  ;;  %v1396_v4 = vmul.f32 %v8568_v62, %v1357_v57  ;;  %v1397_v6 = vmul.f32 %v8568_v62, %v1358_v56 }
 0x2a7   : > { %v1398_v61 = vmul.f32 %v8568_v62, %v1359_v46  ;;  %v1399_v60 = vmul.f32 %v8568_v62, %v1360_v49  ;;  %v1400_v14 = vmul.f32 %v8568_v62, %v1361_v15  ;;  %v1401_v18 = vmul.f32 %v8568_v62, %v1362_v48 }
 0x2a8   : > { %v1402_v25 = vmul.f32 %v8568_v62, %v1363_v47  ;;  %v1403_v30 = vmul.f32 %v8568_v62, %v1364_v19  ;;  %v1404_v36 = vmul.f32 %v8568_v62, %v1365_v43  ;;  %v1405_v55 = vmul.f32 %v8568_v62, %v1366_v42 }
 0x2a9   : > { %v1406_v39 = vmul.f32 %v8568_v62, %v1367_v24  ;;  %v12620_v53 = vadd.f32 %v12617_v16, %v1390_v2  ;;  %v12623_v54 = vadd.f32 %v12617_v16, %v1391_v22  ;;  %v12626_v44 = vadd.f32 %v12617_v16, %v1392_v13 }
 0x2aa   : > { %v1407_v51 = vmul.f32 %v8568_v62, %v1368_v41  ;;  %v1408_v50 = vmul.f32 %v8568_v62, %v1369_v40  ;;  %v1409_v46 = vmul.f32 %v8568_v62, %v1370_v29  ;;  %v12629_v49 = vadd.f32 %v12617_v16, %v1393_v12 }
 0x2ab   : > { %v12631_v47 = vmul.f32 %v8568_v62, %v1371_v27  ;;  %v12633_v43 = vmul.f32 %v8568_v62, %v1372_v45  ;;  %v12635_v42 = vmul.f32 %v8568_v62, %v1373_v17  ;;  %v12638_v48 = vadd.f32 %v12617_v16, %v1394_v8 }
 0x2ac   : > { %v12640_v52 = vmul.f32 %v8568_v62, %v1374_v26  ;;  %v12642_v59 = vmul.f32 %v8568_v62, %v1375_v0  ;;  %v12645_v41 = vadd.f32 %v12617_v16, %v1395_v5  ;;  %v12648_v40 = vadd.f32 %v12617_v16, %v1396_v4 }
 0x2ad   : > { %v12650_v3 = vmul.f32 %v8568_v62, %v1376_v7  ;;  %v1461_v9 = vsub.f32 0.0, %v12620_v53  ;;  %v1462_v57 = vsub.f32 0.0, %v12623_v54  ;;  %v1463_v56 = vsub.f32 0.0, %v12626_v44 }
 0x2ae   : > { %v12655_v15 = vmul.f32 %v8568_v62, %v1377_v37  ;;  %v12657_v19 = vmul.f32 %v8568_v62, %v1378_v58  ;;  %v12660_v24 = vadd.f32 %v12617_v16, %v1397_v6  ;;  %v1464_v29 = vsub.f32 0.0, %v12629_v49 }
 0x2af   : > { %v12663_v27 = vmul.f32 %v8568_v62, %v1379_v10  ;;  %v12665_v45 = vmul.f32 %v8568_v62, %v1380_v1  ;;  %v12668_v17 = vadd.f32 %v12617_v16, %v1398_v61  ;;  %v1465_v26 = vsub.f32 0.0, %v12638_v48 }
 0x2b0   : > { %v12671_v0 = vmul.f32 %v8568_v62, %v1381_v20  ;;  %v12674_v7 = vadd.f32 %v12617_v16, %v1399_v60  ;;  %v1466_v37 = vsub.f32 0.0, %v12645_v41  ;;  %v1467_v58 = vsub.f32 0.0, %v12648_v40 }
 0x2b1   : > { %v12679_v2 = vadd.f32 %v12617_v16, %v1400_v14  ;;  %v1493_v10 = vmul.f32 1.442695, %v1461_v9  ;;  %v1495_v1 = vmul.f32 1.442695, %v1462_v57  ;;  %v1497_v22 = vmul.f32 1.442695, %v1463_v56 }
 0x2b2   : > { %v12681_v13 = vmul.f32 %v8568_v62, %v1382_v21  ;;  %v12684_v12 = vadd.f32 %v12617_v16, %v1401_v18  ;;  %v1468_v20 = vsub.f32 0.0, %v12660_v24  ;;  %v1499_v8 = vmul.f32 1.442695, %v1464_v29 }
 0x2b3   : > { %v12688_v5 = vadd.f32 %v12617_v16, %v1402_v25  ;;  %v1469_v4 = vsub.f32 0.0, %v12668_v17  ;;  %11386 = vpow2.f32 %v1493_v10  ;;  %v1501_v6 = vmul.f32 1.442695, %v1465_v26 }
 0x2b4   : > { %v12692_v61 = vadd.f32 %v12617_v16, %v1403_v30  ;;  %v1470_v60 = vsub.f32 0.0, %v12674_v7  ;;  %11388 = vpow2.f32 %v1495_v1  ;;  %v1503_v21 = vmul.f32 1.442695, %v1466_v37 }
 0x2b5   : > { %v12696_v62 = vadd.f32 %v12617_v16, %v1404_v36  ;;  %v1471_v14 = vsub.f32 0.0, %v12679_v2  ;;  %11390 = vpow2.f32 %v1497_v22  ;;  %v1505_v18 = vmul.f32 1.442695, %v1467_v58 }
 0x2b6   : > { %v12700_v25 = vadd.f32 %v12617_v16, %v1405_v55  ;;  %v1472_v9 = vsub.f32 0.0, %v12684_v12  ;;  %11392 = vpow2.f32 %v1499_v8  ;;  %v1507_v57 = vmul.f32 1.442695, %v1468_v20 }
 0x2b7   : > { %v12704_v30 = vadd.f32 %v12617_v16, %v1406_v39  ;;  %v1473_v56 = vsub.f32 0.0, %v12688_v5  ;;  %11394 = vpow2.f32 %v1501_v6  ;;  %v1509_v29 = vmul.f32 1.442695, %v1469_v4 }
 0x2b8   : > { %v12708_v36 = vadd.f32 %v12617_v16, %v1407_v51  ;;  %v1474_v26 = vsub.f32 0.0, %v12692_v61  ;;  %11396 = vpow2.f32 %v1503_v21  ;;  %v1511_v37 = vmul.f32 1.442695, %v1470_v60 }
 0x2b9   : > { %v12712_v55 = vadd.f32 %v12617_v16, %v1408_v50  ;;  %v1475_v58 = vsub.f32 0.0, %v12696_v62  ;;  %11398 = vpow2.f32 %v1505_v18  ;;  %v1513_v10 = vmul.f32 1.442695, %v1471_v14 }
 0x2ba   : > { %v12716_v39 = vadd.f32 %v12617_v16, %v1409_v46  ;;  %v1476_v1 = vsub.f32 0.0, %v12700_v25  ;;  %11400 = vpow2.f32 %v1507_v57  ;;  %v1515_v22 = vmul.f32 1.442695, %v1472_v9 }
 0x2bb   : > { %v12721_v51 = vadd.f32 %v12617_v16, %v12631_v47  ;;  %v1477_v20 = vsub.f32 0.0, %v12704_v30  ;;  %11402 = vpow2.f32 %v1509_v29  ;;  %v1517_v50 = vmul.f32 1.442695, %v1473_v56 }
 0x2bc   : > { %v12726_v8 = vadd.f32 %v12617_v16, %v12633_v43  ;;  %v1478_v4 = vsub.f32 0.0, %v12708_v36  ;;  %11404 = vpow2.f32 %v1511_v37  ;;  %v1519_v46 = vmul.f32 1.442695, %v1474_v26 }
 0x2bd   : > { %v12729_v6 = vpop.eup %11386  ;;  %v12733_v60 = vadd.f32 %v12617_v16, %v12635_v42  ;;  %v1479_v47 = vsub.f32 0.0, %v12712_v55  ;;  %11406 = vpow2.f32 %v1513_v10  ;;  %v1521_v21 = vmul.f32 1.442695, %v1475_v58 }
 0x2be   : > { %v12736_v14 = vpop.eup %11388  ;;  %v12740_v43 = vadd.f32 %v12617_v16, %v12640_v52  ;;  %v1480_v18 = vsub.f32 0.0, %v12716_v39  ;;  %11408 = vpow2.f32 %v1515_v22  ;;  %v1523_v9 = vmul.f32 1.442695, %v1476_v1 }
 0x2bf   : > { %v12743_v57 = vpop.eup %11390  ;;  %v12747_v42 = vadd.f32 %v12617_v16, %v12642_v59  ;;  %v1481_v56 = vsub.f32 0.0, %v12721_v51  ;;  %11410 = vpow2.f32 %v1517_v50  ;;  %v1525_v29 = vmul.f32 1.442695, %v1477_v20 }
 0x2c0   : > { %v12750_v26 = vpop.eup %11392  ;;  %v12754_v52 = vadd.f32 %v12617_v16, %v12650_v3  ;;  %v1482_v37 = vsub.f32 0.0, %v12726_v8  ;;  %11412 = vpow2.f32 %v1519_v46  ;;  %v1527_v58 = vmul.f32 1.442695, %v1478_v4 }
 0x2c1   : > { %v12757_v10 = vpop.eup %11394  ;;  %v12761_v59 = vadd.f32 %v12617_v16, %v12655_v15  ;;  %v1483_v1 = vsub.f32 0.0, %v12733_v60  ;;  %11414 = vpow2.f32 %v1521_v21  ;;  %v1529_v22 = vmul.f32 1.442695, %v1479_v47 }
 0x2c2   : > { %v12764_v20 = vpop.eup %11396  ;;  %v12768_v3 = vadd.f32 %v12617_v16, %v12657_v19  ;;  %v1484_v50 = vsub.f32 0.0, %v12740_v43  ;;  %11416 = vpow2.f32 %v1523_v9  ;;  %v1531_v4 = vmul.f32 1.442695, %v1480_v18 }
 0x2c3   : > { %14932 = vst [vmem:[#allocation44_spill] sm:$0xff] %v12761_v59  ;;  %v12771_v46 = vpop.eup %11398  ;;  %v12775_v15 = vadd.f32 %v12617_v16, %v12663_v27  ;;  %v1485_v38 = vsub.f32 0.0, %v12747_v42  ;;  %11418 = vpow2.f32 %v1525_v29  ;;  %v1533_v47 = vmul.f32 1.442695, %v1481_v56 }
 0x2c4   : > { %14933 = vst [vmem:[#allocation45_spill] sm:$0xff] %v12768_v3  ;;  %v12778_v21 = vpop.eup %11400  ;;  %v12782_v19 = vadd.f32 %v12617_v16, %v12665_v45  ;;  %v1486_v35 = vsub.f32 0.0, %v12754_v52  ;;  %11420 = vpow2.f32 %v1527_v58  ;;  %v1535_v18 = vmul.f32 1.442695, %v1482_v37 }
 0x2c5   : > { %14934 = vst [vmem:[#allocation46_spill] sm:$0xff] %v12775_v15  ;;  %v11403_v9 = vpop.eup %11402  ;;  %v12787_v34 = vadd.f32 %v12617_v16, %v12671_v0  ;;  %v1487_v27 = vsub.f32 0.0, %v12761_v59  ;;  %11422 = vpow2.f32 %v1529_v22  ;;  %v1537_v29 = vmul.f32 1.442695, %v1483_v1 }
 0x2c6   : > { %14935 = vst [vmem:[#allocation47_spill] sm:$0xff] %v12782_v19  ;;  %v11405_v56 = vpop.eup %11404  ;;  %v12792_v33 = vadd.f32 %v12617_v16, %v12681_v13  ;;  %v1488_v45 = vsub.f32 0.0, %v12768_v3  ;;  %11424 = vpow2.f32 %v1531_v4  ;;  %v1539_v32 = vmul.f32 1.442695, %v1484_v50 }
 0x2c7   : > { %14936 = vst [vmem:[#allocation48_spill] sm:$0xff] %v12787_v34  ;;  %v11407_v58 = vpop.eup %11406  ;;  %v1489_v37 = vsub.f32 0.0, %v12775_v15  ;;  %11426 = vpow2.f32 %v1533_v47  ;;  %v1541_v31 = vmul.f32 1.442695, %v1485_v38  ;;  %v1490_v28 = vsub.f32 0.0, %v12782_v19 }
 0x2c8   : > { %v11409_v0 = vpop.eup %11408  ;;  %11428 = vpow2.f32 %v1535_v18  ;;  %v1543_v22 = vmul.f32 1.442695, %v1486_v35  ;;  %v1491_v11 = vsub.f32 0.0, %v12787_v34  ;;  %v1545_v16 = vmul.f32 1.442695, %v1487_v27 }
 0x2c9   : > { %v11411_v1 = vpop.eup %11410  ;;  %11430 = vpow2.f32 %v1537_v29  ;;  %v1492_v3 = vsub.f32 0.0, %v12792_v33  ;;  %v1547_v50 = vmul.f32 1.442695, %v1488_v45  ;;  %v1549_v15 = vmul.f32 1.442695, %v1489_v37 }
 0x2ca   : > { %v11413_v13 = vpop.eup %11412  ;;  %11432 = vpow2.f32 %v1539_v32  ;;  %v1551_v38 = vmul.f32 1.442695, %v1490_v28  ;;  %v1553_v18 = vmul.f32 1.442695, %v1491_v11  ;;  %v1557_v27 = vadd.f32 1.0, %v12729_v6 }
 0x2cb   : > { %v11415_v4 = vpop.eup %11414  ;;  %11434 = vpow2.f32 %v1541_v31  ;;  %v1555_v19 = vmul.f32 1.442695, %v1492_v3  ;;  %v1558_v32 = vadd.f32 1.0, %v12736_v14  ;;  %v1559_v31 = vadd.f32 1.0, %v12743_v57 }
 0x2cc   : > { %v11417_v47 = vpop.eup %11416  ;;  %11436 = vpow2.f32 %v1543_v22  ;;  %v1560_v11 = vadd.f32 1.0, %v12750_v26  ;;  %v1561_v3 = vadd.f32 1.0, %v12757_v10  ;;  %v1563_v22 = vadd.f32 1.0, %v12771_v46 }
 0x2cd   : > { %v11419_v59 = vpop.eup %11418  ;;  %11438 = vpow2.f32 %v1545_v16  ;;  %v1565_v16 = vadd.f32 1.0, %v11403_v9  ;;  %v1568_v46 = vadd.f32 1.0, %v11409_v0  ;;  %v1570_v9 = vadd.f32 1.0, %v11413_v13 }
 0x2ce   : > { %v11421_v35 = vpop.eup %11420  ;;  %11440 = vpow2.f32 %v1547_v50  ;;  %v1566_v50 = vadd.f32 1.0, %v11405_v56 }
 0x2cf   : > { %v11423_v34 = vpop.eup %11422  ;;  %11442 = vpow2.f32 %v1549_v15  ;;  %v1562_v15 = vadd.f32 1.0, %v12764_v20 }
 0x2d0   : > { %v11425_v29 = vpop.eup %11424  ;;  %11444 = vpow2.f32 %v1551_v38  ;;  %v1567_v38 = vadd.f32 1.0, %v11407_v58 }
 0x2d1   : > { %v12801_v45 = vpop.eup %11426  ;;  %11446 = vpow2.f32 %v1553_v18 }
 0x2d2   : > { %v12804_v28 = vpop.eup %11428  ;;  %11448 = vpow2.f32 %v1555_v19  ;;  %v1564_v19 = vadd.f32 1.0, %v12778_v21  ;;  %v1569_v21 = vadd.f32 1.0, %v11411_v1  ;;  %v1574_v1 = vadd.f32 1.0, %v11421_v35 }
 0x2d3   : > { %v12807_v37 = vpop.eup %11430  ;;  %11450 = vrcp.f32 %v1557_v27 }
 0x2d4   : > { %v12810_v6 = vpop.eup %11432  ;;  %11452 = vrcp.f32 %v1558_v32 }
 0x2d5   : > { %v12813_v14 = vpop.eup %11434  ;;  %11454 = vrcp.f32 %v1559_v31 }
 0x2d6   : > { %v12816_v57 = vpop.eup %11436  ;;  %11456 = vrcp.f32 %v1560_v11  ;;  %v1571_v11 = vadd.f32 1.0, %v11415_v4 }
 0x2d7   : > { %v12819_v26 = vpop.eup %11438  ;;  %11458 = vrcp.f32 %v1561_v3  ;;  %v1572_v3 = vadd.f32 1.0, %v11417_v47 }
 0x2d8   : > { %v12821_v10 = vpop.eup %11440  ;;  %11460 = vrcp.f32 %v1562_v15 }
 0x2d9   : > { %v12823_v20 = vpop.eup %11442  ;;  %11462 = vrcp.f32 %v1563_v22  ;;  %v1573_v22 = vadd.f32 1.0, %v11419_v59 }
 0x2da   : > { %v12825_v18 = vpop.eup %11444  ;;  %11464 = vrcp.f32 %v1564_v19 }
 0x2db   : > { %v12827_v27 = vpop.eup %11446  ;;  %11466 = vrcp.f32 %v1565_v16 }
 0x2dc   : > { %v12829_v32 = vpop.eup %11448  ;;  %11468 = vrcp.f32 %v1566_v50  ;;  %v1575_v50 = vadd.f32 1.0, %v11423_v34 }
 0x2dd   : > { %v11451_v31 = vpop.eup %11450  ;;  %11470 = vrcp.f32 %v1567_v38 }
 0x2de   : > { %v11453_v56 = vpop.eup %11452  ;;  %11472 = vrcp.f32 %v1568_v46  ;;  %v1621_v58 = vmul.f32 %v11451_v31, %v12620_v53  ;;  %v1576_v53 = vadd.f32 1.0, %v11425_v29  ;;  %v1578_v29 = vadd.f32 1.0, %v12804_v28  ;;  %v11286_v28 = vld [vmem:[%s14845_s6 + $0x208] sm:$0xff]  }
 0x2df   : > { %v11455_v15 = vpop.eup %11454  ;;  %11474 = vrcp.f32 %v1569_v21  ;;  %v1622_v0 = vmul.f32 %v11453_v56, %v12623_v54  ;;  %v11287_v54 = vld [vmem:[%s14845_s6 + $0x8] sm:$0xff]  }
 0x2e0   : > { %v11457_v19 = vpop.eup %11456  ;;  %11476 = vrcp.f32 %v1570_v9  ;;  %v1623_v16 = vmul.f32 %v11455_v15, %v12626_v44  ;;  %1708 = vst [vmem:[#allocation2 + $0x19] sm:$0xff] %v1621_v58  ;;  %v1577_v44 = vadd.f32 1.0, %v12801_v45  ;;  %v1579_v9 = vadd.f32 1.0, %v12807_v37 }
 0x2e1   : > { %v11459_v13 = vpop.eup %11458  ;;  %11478 = vrcp.f32 %v1571_v11  ;;  %v1624_v4 = vmul.f32 %v11457_v19, %v12629_v49  ;;  %1709 = vst [vmem:[#allocation2 + $0x21] sm:$0xff] %v1622_v0  ;;  %v1837_v47 = vpack.c.bf16 %v1622_v0, %v1621_v58  ;;  %v1581_v11 = vadd.f32 1.0, %v12813_v14 }
 0x2e2   : > { %v11461_v38 = vpop.eup %11460  ;;  %11480 = vrcp.f32 %v1572_v3  ;;  %v1625_v59 = vmul.f32 %v11459_v13, %v12638_v48  ;;  %1710 = vst [vmem:[#allocation2 + $0x31] sm:$0xff] %v1623_v16  ;;  %v1584_v0 = vadd.f32 1.0, %v12821_v10  ;;  %v1585_v19 = vadd.f32 1.0, %v12823_v20 }
 0x2e3   : > { %v11463_v35 = vpop.eup %11462  ;;  %11482 = vrcp.f32 %v1573_v22  ;;  %v1626_v34 = vmul.f32 %v11461_v38, %v12645_v41  ;;  %1711 = vst [vmem:[#allocation2 + $0x39] sm:$0xff] %v1624_v4  ;;  %9628 = vmatmul.mubr.bf16.vlgmr.msra.gmra.mrb[40].mxu1 %v1837_v47  ;;  %v3850_v49 = vpack.c.bf16 %v1624_v4, %v1623_v16  ;;  %v1583_v22 = vadd.f32 1.0, %v12819_v26 }
 0x2e4   : > { %v11465_v46 = vpop.eup %11464  ;;  %11484 = vrcp.f32 %v1574_v1  ;;  %v1627_v48 = vmul.f32 %v11463_v35, %v12648_v40  ;;  %1712 = vst [vmem:[#allocation2 + $0x49] sm:$0xff] %v1625_v59  ;;  %9660 = vmatpush3.bf16.msra.mxu1 %v12532_v63  ;;  %v1580_v40 = vadd.f32 1.0, %v12810_v6  ;;  %v1582_v6 = vadd.f32 1.0, %v12816_v57  ;;  %v11288_v57 = vld [vmem:[%s14845_s6 + $0x210] sm:$0xff]  }
 0x2e5   : > { %v11467_v21 = vpop.eup %11466  ;;  %11486 = vrcp.f32 %v1575_v50  ;;  %v1628_v45 = vmul.f32 %v11465_v46, %v12660_v24  ;;  %1713 = vst [vmem:[#allocation2 + $0x51] sm:$0xff] %v1626_v34  ;;  %9963 = vmatprep.mubr.bf16.mxu0 %v3850_v49  ;;  %9631 = vmatprep.mubr.bf16.mxu1 %v3850_v49  ;;  %v3851_v41 = vpack.c.bf16 %v1626_v34, %v1625_v59  ;;  %v11290_v24 = vld [vmem:[%s14845_s6 + $0x10] sm:$0xff]   ;;  %v1586_v10 = vadd.f32 1.0, %v12825_v18 }
 0x2e6   : > { %v11469_v31 = vpop.eup %11468  ;;  %11488 = vrcp.f32 %v1576_v53  ;;  %v1629_v63 = vmul.f32 %v11467_v21, %v12668_v17  ;;  %1714 = vst [vmem:[#allocation2 + $0x61] sm:$0xff] %v1627_v48  ;;  %9661 = vmatprep.subr.bf16.mxu1 %v11287_v54  ;;  %v1587_v4 = vadd.f32 1.0, %v12827_v27 }
 0x2e7   : > { %v11471_v37 = vpop.eup %11470  ;;  %11490 = vrcp.f32 %v1577_v44  ;;  %v1630_v56 = vmul.f32 %v11469_v31, %v12674_v7  ;;  %1715 = vst [vmem:[#allocation2 + $0x69] sm:$0xff] %v1628_v45  ;;  %9964 = vmatmul.mubr.bf16.vlgmr.msra.gmra.mrb[0].mxu0 %v3851_v41  ;;  %v3852_v3 = vpack.c.bf16 %v1628_v45, %v1627_v48 }
 0x2e8   : > { %v11473_v58 = vpop.eup %11472  ;;  %11492 = vrcp.f32 %v1578_v29  ;;  %v1631_v17 = vmul.f32 %v11471_v37, %v12679_v2  ;;  %1716 = vst [vmem:[#allocation2 + $0x79] sm:$0xff] %v1629_v63  ;;  %9996 = vmatpush3.bf16.msra.mxu0 %v12537_v23  ;;  %9662 = vmatpush3.bf16.msra.mxu1 %v11287_v54 }
 0x2e9   : > { %v11475_v15 = vpop.eup %11474  ;;  %11494 = vrcp.f32 %v1579_v9  ;;  %v1632_v14 = vmul.f32 %v11473_v58, %v12684_v12  ;;  %1717 = vst [vmem:[#allocation2 + $0x81] sm:$0xff] %v1630_v56  ;;  %9967 = vmatprep.mubr.bf16.mxu0 %v3852_v3  ;;  %9997 = vmatprep.subr.bf16.mxu0 %v11286_v28  ;;  %v12861_v7 = vpack.c.bf16 %v1630_v56, %v1629_v63  ;;  %v11293_v12 = vld [vmem:[%s14845_s6 + $0x18] sm:$0xff]   ;;  %v14937_v63 = vld [vmem:[#allocation44_spill] sm:$0xff]  ;;  %v11294_v56 = vld [vmem:[%s14845_s6 + $0x230] sm:$0xff]  }
 0x2ea   : > { %v11477_v2 = vpop.eup %11476  ;;  %11496 = vrcp.f32 %v1580_v40  ;;  %v1633_v23 = vmul.f32 %v11475_v15, %v12688_v5  ;;  %1718 = vst [vmem:[#allocation2 + $0x91] sm:$0xff] %v1631_v17  ;;  %9663 = vmatprep.subr.bf16.mxu1 %v11290_v24  ;;  %v11299_v15 = vld [vmem:[%s14845_s6 + $0x38] sm:$0xff]  }
 0x2eb   : > { %v11479_v26 = vpop.eup %11478  ;;  %11498 = vrcp.f32 %v1581_v11  ;;  %v1634_v1 = vmul.f32 %v11477_v2, %v12692_v61  ;;  %1719 = vst [vmem:[#allocation2 + $0x99] sm:$0xff] %v1632_v14  ;;  %9632 = vmatmul.mubr.bf16.gmra.mrb[44].mxu1 %v3851_v41  ;;  %v3854_v16 = vpack.c.bf16 %v1632_v14, %v1631_v17  ;;  %v11289_v61 = vld [vmem:[%s14845_s6 + $0x218] sm:$0xff]   ;;  %v14938_v11 = vld [vmem:[#allocation45_spill] sm:$0xff]  ;;  %v14940_v14 = vld [vmem:[#allocation47_spill] sm:$0xff] }
 0x2ec   : > { %v11481_v13 = vpop.eup %11480  ;;  %11500 = vrcp.f32 %v1582_v6  ;;  %v1635_v5 = vmul.f32 %v11479_v26, %v12696_v62  ;;  %1720 = vst [vmem:[#allocation2 + $0xa9] sm:$0xff] %v1633_v23  ;;  %9998 = vmatpush3.bf16.msra.mxu0 %v11286_v28  ;;  %9635 = vmatprep.mubr.bf16.mxu1 %v3852_v3  ;;  %v1588_v62 = vadd.f32 1.0, %v12829_v32  ;;  %v14939_v6 = vld [vmem:[#allocation46_spill] sm:$0xff] }
 0x2ed   : > { %v11483_v50 = vpop.eup %11482  ;;  %11502 = vrcp.f32 %v1583_v22  ;;  %v1636_v20 = vmul.f32 %v11481_v13, %v12700_v25  ;;  %1721 = vst [vmem:[#allocation2 + $0xb1] sm:$0xff] %v1634_v1  ;;  %9999 = vmatprep.subr.bf16.mxu0 %v11288_v57  ;;  %9664 = vmatpush3.bf16.msra.mxu1 %v11290_v24  ;;  %v12880_v18 = vpack.c.bf16 %v1634_v1, %v1633_v23  ;;  %v11296_v25 = vld [vmem:[%s14845_s6 + $0x20] sm:$0xff]   ;;  %v11295_v1 = vld [vmem:[%s14845_s6 + $0x238] sm:$0xff]  }
 0x2ee   : > { %v11485_v47 = vpop.eup %11484  ;;  %11504 = vrcp.f32 %v1584_v0  ;;  %v1637_v38 = vmul.f32 %v11483_v50, %v12704_v30  ;;  %1722 = vst [vmem:[#allocation2 + $0xc1] sm:$0xff] %v1635_v5  ;;  %9665 = vmatprep.subr.bf16.mxu1 %v11293_v12  ;;  %v4125_v2 = vld [vmem:[#allocation2 + $0x3a] sm:$0xff]  ;;  %v4128_v50 = vld [vmem:[#allocation2 + $0x62] sm:$0xff] }
 0x2ef   : > { %v11487_v27 = vpop.eup %11486  ;;  %11506 = vrcp.f32 %v1585_v19  ;;  %v1638_v53 = vmul.f32 %v11485_v47, %v12708_v36  ;;  %1723 = vst [vmem:[#allocation2 + $0xc9] sm:$0xff] %v1636_v20  ;;  %9968 = vmatmul.mubr.bf16.gmra.mrb[4].mxu0 %v12861_v7  ;;  %v12889_v59 = vpack.c.bf16 %v1636_v20, %v1635_v5  ;;  %v11291_v36 = vld [vmem:[%s14845_s6 + $0x220] sm:$0xff]   ;;  %v4127_v5 = vld [vmem:[#allocation2 + $0x52] sm:$0xff] }
 0x2f0   : > { %v11489_v54 = vpop.eup %11488  ;;  %11508 = vrcp.f32 %v1586_v10  ;;  %v12892_v32 = vmul.f32 %v11487_v27, %v12712_v55  ;;  %1724 = vst [vmem:[#allocation2 + $0xd9] sm:$0xff] %v1637_v38  ;;  %9971 = vmatprep.mubr.bf16.mxu0 %v3854_v16  ;;  %10000 = vmatpush3.bf16.msra.mxu0 %v11288_v57  ;;  %v4124_v57 = vld [vmem:[#allocation2 + $0x32] sm:$0xff]  ;;  %v12986_v10 = vld [vmem:[%s14845_s6 + $0x80] sm:$0xff]  }
 0x2f1   : > { %v11491_v30 = vpop.eup %11490  ;;  %11510 = vrcp.f32 %v1587_v4  ;;  %v12895_v35 = vmul.f32 %v11489_v54, %v12716_v39  ;;  %1725 = vst [vmem:[#allocation2 + $0xe1] sm:$0xff] %v1638_v53  ;;  %10001 = vmatprep.subr.bf16.mxu0 %v11289_v61  ;;  %9666 = vmatpush3.bf16.msra.mxu1 %v11293_v12  ;;  %v12900_v44 = vpack.c.bf16 %v1638_v53, %v1637_v38  ;;  %v11297_v39 = vld [vmem:[%s14845_s6 + $0x28] sm:$0xff]  }
 0x2f2   : > { %v11493_v34 = vpop.eup %11492  ;;  %11512 = vrcp.f32 %v1588_v62  ;;  %v12903_v55 = vmul.f32 %v11491_v30, %v12721_v51  ;;  %1726 = vst [vmem:[#allocation2 + $0xf1] sm:$0xff] %v12892_v32  ;;  %9667 = vmatprep.subr.bf16.mxu1 %v11296_v25  ;;  %v14941_v12 = vld [vmem:[#allocation48_spill] sm:$0xff]  ;;  %v12981_v13 = vpack.c.bf16 %v4125_v2, %v4124_v57  ;;  %v4132_v62 = vld [vmem:[#allocation2 + $0x92] sm:$0xff]  ;;  %v4133_v38 = vld [vmem:[#allocation2 + $0x9a] sm:$0xff] }
 0x2f3   : > { %v11495_v49 = vpop.eup %11494  ;;  %v12910_v46 = vmul.f32 %v11493_v34, %v12726_v8  ;;  %1727 = vst [vmem:[#allocation2 + $0xf9] sm:$0xff] %v12895_v35  ;;  %9636 = vmatmul.mubr.bf16.gmra.mrb[48].mxu1 %v12861_v7  ;;  %v1846_v29 = vpack.c.bf16 %v12895_v35, %v12892_v32  ;;  %v11292_v8 = vld [vmem:[%s14845_s6 + $0x228] sm:$0xff]   ;;  %v13006_v27 = vpack.c.bf16 %v4133_v38, %v4132_v62  ;;  %v1750_v2 = vld [vmem:[#allocation2 + $0x78] sm:$0xff] }
 0x2f4   : > { %v11497_v51 = vpop.eup %11496  ;;  %v12917_v48 = vmul.f32 %v11495_v49, %v12733_v60  ;;  %1728 = vst [vmem:[#allocation2 + $0x109] sm:$0xff] %v12903_v55  ;;  %10002 = vmatpush3.bf16.msra.mxu0 %v11289_v61  ;;  %9639 = vmatprep.mubr.bf16.mxu1 %v3854_v16  ;;  %v4129_v4 = vld [vmem:[#allocation2 + $0x6a] sm:$0xff]  ;;  %v4131_v47 = vld [vmem:[#allocation2 + $0x82] sm:$0xff] }
 0x2f5   : > { %v11499_v21 = vpop.eup %11498  ;;  %v12921_v9 = vmul.f32 %v11497_v51, %v12740_v43  ;;  %1729 = vst [vmem:[#allocation2 + $0x111] sm:$0xff] %v12910_v46  ;;  %10003 = vmatprep.subr.bf16.mxu0 %v11291_v36  ;;  %9668 = vmatpush3.bf16.msra.mxu1 %v11296_v25  ;;  %v1847_v60 = vpack.c.bf16 %v12910_v46, %v12903_v55  ;;  %v11298_v43 = vld [vmem:[%s14845_s6 + $0x30] sm:$0xff]   ;;  %v1742_v51 = vld [vmem:[#allocation2 + $0x18] sm:$0xff]  ;;  %v1756_v38 = vld [vmem:[#allocation2 + $0xc0] sm:$0xff] }
 0x2f6   : > { %v11501_v45 = vpop.eup %11500  ;;  %v12930_v41 = vmul.f32 %v11499_v21, %v12747_v42  ;;  %1730 = vst [vmem:[#allocation2 + $0x121] sm:$0xff] %v12917_v48  ;;  %9669 = vmatprep.subr.bf16.mxu1 %v11297_v39  ;;  %v12997_v61 = vpack.c.bf16 %v4129_v4, %v4128_v50  ;;  %v4134_v53 = vld [vmem:[#allocation2 + $0xaa] sm:$0xff]  ;;  %v4136_v54 = vld [vmem:[#allocation2 + $0xc2] sm:$0xff] }
 0x2f7   : > { %v11503_v28 = vpop.eup %11502  ;;  %v12937_v31 = vmul.f32 %v11501_v45, %v12754_v52  ;;  %1731 = vst [vmem:[#allocation2 + $0x129] sm:$0xff] %v12921_v9  ;;  %9972 = vmatmul.mubr.bf16.gmra.mrb[8].mxu0 %v12880_v18  ;;  %v1848_v40 = vpack.c.bf16 %v12921_v9, %v12917_v48  ;;  %v4137_v32 = vld [vmem:[#allocation2 + $0xca] sm:$0xff]  ;;  %v1743_v48 = vld [vmem:[#allocation2 + $0x20] sm:$0xff]  ;;  %v1745_v9 = vld [vmem:[#allocation2 + $0x38] sm:$0xff] }
 0x2f8   : > { %v11505_v42 = vpop.eup %11504  ;;  %v12944_v24 = vmul.f32 %v11503_v28, %v14937_v63  ;;  %1732 = vst [vmem:[#allocation2 + $0x139] sm:$0xff] %v12930_v41  ;;  %9975 = vmatprep.mubr.bf16.mxu0 %v12889_v59  ;;  %10004 = vmatpush3.bf16.msra.mxu0 %v11291_v36  ;;  %v13012_v35 = vpack.c.bf16 %v4137_v32, %v4136_v54  ;;  %v13016_v36 = vld [vmem:[#allocation2] sm:$0xff]  ;;  %v1744_v21 = vld [vmem:[#allocation2 + $0x30] sm:$0xff]  ;;  %v11307_v54 = vld [vmem:[%s14845_s6 + $0xb8] sm:$0xff]  }
 0x2f9   : > { %v11507_v37 = vpop.eup %11506  ;;  %v12949_v52 = vmul.f32 %v11505_v42, %v14938_v11  ;;  %1733 = vst [vmem:[#allocation2 + $0x141] sm:$0xff] %v12937_v31  ;;  %10005 = vmatprep.subr.bf16.mxu0 %v11292_v8  ;;  %9670 = vmatpush3.bf16.msra.mxu1 %v11297_v39  ;;  %v1849_v3 = vpack.c.bf16 %v12937_v31, %v12930_v41  ;;  %v4138_v34 = vld [vmem:[#allocation2 + $0xda] sm:$0xff]  ;;  %v4139_v55 = vld [vmem:[#allocation2 + $0xe2] sm:$0xff]  ;;  %v11302_v42 = vld [vmem:[%s14845_s6 + $0x90] sm:$0xff]  }
 0x2fa   : > { %v11509_v58 = vpop.eup %11508  ;;  %v12958_v17 = vmul.f32 %v11507_v37, %v14939_v6  ;;  %1734 = vst [vmem:[#allocation2 + $0x151] sm:$0xff] %v12944_v24  ;;  %9671 = vmatprep.subr.bf16.mxu1 %v11298_v43  ;;  %v4140_v39 = vld [vmem:[#allocation2 + $0xf2] sm:$0xff]  ;;  %v4141_v49 = vld [vmem:[#allocation2 + $0xfa] sm:$0xff]  ;;  %v13023_v46 = vpack.c.bf16 %v4139_v55, %v4138_v34  ;;  %v13034_v45 = vpack.c.bf16 %v1745_v9, %v1744_v21 }
 0x2fb   : > { %v11511_v22 = vpop.eup %11510  ;;  %v12965_v7 = vmul.f32 %v11509_v58, %v14940_v14  ;;  %1735 = vst [vmem:[#allocation2 + $0x159] sm:$0xff] %v12949_v52  ;;  %9640 = vmatmul.mubr.bf16.gmra.mrb[52].mxu1 %v12880_v18  ;;  %v1850_v0 = vpack.c.bf16 %v12949_v52, %v12944_v24  ;;  %v4130_v18 = vld [vmem:[#allocation2 + $0x7a] sm:$0xff]  ;;  %v1746_v24 = vld [vmem:[#allocation2 + $0x48] sm:$0xff]  ;;  %v1747_v37 = vld [vmem:[#allocation2 + $0x50] sm:$0xff] }
 0x2fc   : > { %v11513_v23 = vpop.eup %11512  ;;  %v1651_v26 = vmul.f32 %v11511_v22, %v14941_v12  ;;  %1736 = vst [vmem:[#allocation2 + $0x169] sm:$0xff] %v12958_v17  ;;  %10006 = vmatpush3.bf16.msra.mxu0 %v11292_v8  ;;  %9643 = vmatprep.mubr.bf16.mxu1 %v12889_v59  ;;  %v13004_v25 = vpack.c.bf16 %v4131_v47, %v4130_v18  ;;  %v4135_v59 = vld [vmem:[#allocation2 + $0xb2] sm:$0xff]  ;;  %v4142_v41 = vld [vmem:[#allocation2 + $0x10a] sm:$0xff]  ;;  %v1748_v11 = vld [vmem:[#allocation2 + $0x60] sm:$0xff] }
 0x2fd   : > { %v1652_v19 = vmul.f32 %v11513_v23, %v12792_v33  ;;  %1737 = vst [vmem:[#allocation2 + $0x171] sm:$0xff] %v12965_v7  ;;  %10007 = vmatprep.subr.bf16.mxu0 %v11294_v56  ;;  %9672 = vmatpush3.bf16.msra.mxu1 %v11298_v43  ;;  %v1851_v16 = vpack.c.bf16 %v12965_v7, %v12958_v17  ;;  %v4126_v33 = vld [vmem:[#allocation2 + $0x4a] sm:$0xff]  ;;  %v4143_v43 = vld [vmem:[#allocation2 + $0x112] sm:$0xff]  ;;  %v11304_v7 = vld [vmem:[%s14845_s6 + $0xa0] sm:$0xff]  }
 0x2fe   : > { %1738 = vst [vmem:[#allocation2 + $0x181] sm:$0xff] %v1651_v26  ;;  %9673 = vmatprep.subr.bf16.mxu1 %v11299_v15  ;;  %v12995_v20 = vpack.c.bf16 %v4127_v5, %v4126_v33  ;;  %v13010_v30 = vpack.c.bf16 %v4135_v59, %v4134_v53  ;;  %v13029_v8 = vpack.c.bf16 %v1743_v48, %v1742_v51  ;;  %v4144_v28 = vld [vmem:[#allocation2 + $0x122] sm:$0xff]  ;;  %v4145_v31 = vld [vmem:[#allocation2 + $0x12a] sm:$0xff]  ;;  %v1753_v12 = vld [vmem:[#allocation2 + $0x98] sm:$0xff] }
 0x2ff   : > { %1739 = vst [vmem:[#allocation2 + $0x189] sm:$0xff] %v1652_v19  ;;  %9976 = vmatmul.mubr.bf16.gmra.mrb[12].mxu0 %v12900_v44  ;;  %v13044_v63 = vpack.c.bf16 %v4145_v31, %v4144_v28  ;;  %v1749_v52 = vld [vmem:[#allocation2 + $0x68] sm:$0xff]  ;;  %v1752_v23 = vld [vmem:[#allocation2 + $0x90] sm:$0xff]  ;;  %v11308_v34 = vld [vmem:[%s14845_s6 + $0xc0] sm:$0xff]  }
 0x300   : > { %10008 = vmatpush3.bf16.msra.mxu0 %v11294_v56  ;;  %10011 = vmatprep.mubr.bf16.mxu0 %v12981_v13  ;;  %v13048_v56 = vpack.c.bf16 %v1747_v37, %v1746_v24  ;;  %v13053_v58 = vpack.c.bf16 %v1749_v52, %v1748_v11  ;;  %v4146_v6 = vld [vmem:[#allocation2 + $0x13a] sm:$0xff]  ;;  %v4147_v17 = vld [vmem:[#allocation2 + $0x142] sm:$0xff]  ;;  %v11306_v4 = vld [vmem:[%s14845_s6 + $0xb0] sm:$0xff]  }
 0x301   : > { %10009 = vmatprep.subr.bf16.mxu0 %v11295_v1  ;;  %9674 = vmatpush3.bf16.msra.mxu1 %v11299_v15  ;;  %v13057_v14 = vpack.c.bf16 %v4147_v17, %v4146_v6  ;;  %v11305_v19 = vld [vmem:[%s14845_s6 + $0xa8] sm:$0xff]   ;;  %v1755_v62 = vld [vmem:[#allocation2 + $0xb0] sm:$0xff]  ;;  %v1758_v55 = vld [vmem:[#allocation2 + $0xd8] sm:$0xff] }
 0x302   : > { %9707 = vmatprep.subr.bf16.mxu1 %v12986_v10  ;;  %v4148_v15 = vld [vmem:[#allocation2 + $0x152] sm:$0xff]  ;;  %v4149_v22 = vld [vmem:[#allocation2 + $0x15a] sm:$0xff]  ;;  %v1754_v47 = vld [vmem:[#allocation2 + $0xa8] sm:$0xff] }
 0x303   : > { %9644 = vmatmul.mubr.bf16.gmra.mrb[56].mxu1 %v12900_v44  ;;  %v13020_v44 = vpack.c.bf16 %v13016_v36, %v13016_v36  ;;  %v13062_v57 = vpack.c.bf16 %v4149_v22, %v4148_v15  ;;  %v1757_v53 = vld [vmem:[#allocation2 + $0xc8] sm:$0xff]  ;;  %v13084_v59 = vpack.c.bf16 %v1755_v62, %v1754_v47  ;;  %v1761_v51 = vld [vmem:[#allocation2 + $0xf8] sm:$0xff]  ;;  %v1767_v24 = vld [vmem:[#allocation2 + $0x140] sm:$0xff] }
 0x304   : > { %10010 = vmatpush3.bf16.msra.mxu0 %v11295_v1  ;;  %9647 = vmatprep.mubr.bf16.mxu1 %v1846_v29  ;;  %v13025_v29 = vpack.c.bf16 %v4141_v49, %v4140_v39  ;;  %v13071_v1 = vpack.c.bf16 %v1753_v12, %v1752_v23  ;;  %v13089_v32 = vpack.c.bf16 %v1757_v53, %v1756_v38  ;;  %v1759_v39 = vld [vmem:[#allocation2 + $0xe0] sm:$0xff]  ;;  %v1760_v49 = vld [vmem:[#allocation2 + $0xf0] sm:$0xff]  ;;  %v1762_v9 = vld [vmem:[#allocation2 + $0x108] sm:$0xff] }
 0x305   : > { %v13096_v48 = vpack.c.bf16 %v1759_v39, %v1758_v55  ;;  %v13098_v21 = vpack.c.bf16 %v1761_v51, %v1760_v49  ;;  %v1768_v37 = vld [vmem:[#allocation2 + $0x150] sm:$0xff]  ;;  %v1769_v11 = vld [vmem:[#allocation2 + $0x158] sm:$0xff]  ;;  %v2287_v6 = vld [vmem:[#allocation2 + $0x2] sm:$0xff] }
 0x306   : > { %v4152_v33 = vld [vmem:[#allocation2 + $0x182] sm:$0xff]  ;;  %v4153_v5 = vld [vmem:[#allocation2 + $0x18a] sm:$0xff] }
 0x307   : > { %10012 = vmatmul.mubr.bf16.vlgmr.msra.gmra.mrb[0].mxu0 %v12995_v20  ;;  %v13080_v18 = vpack.c.bf16 %v4153_v5, %v4152_v33  ;;  %v2288_v17 = vld [vmem:[#allocation2 + $0xa] sm:$0xff]  ;;  %v2290_v23 = vld [vmem:[#allocation2 + $0x22] sm:$0xff] }
 0x308   : > { %10015 = vmatprep.mubr.bf16.mxu0 %v12997_v61  ;;  %v1770_v15 = vld [vmem:[#allocation2 + $0x168] sm:$0xff]  ;;  %v1771_v22 = vld [vmem:[#allocation2 + $0x170] sm:$0xff] }
 0x309   : > { %v11313_v33 = vld [vmem:[%s14845_s6 + $0xe8] sm:$0xff]   ;;  %v2901_v53 = vld [vmem:[#allocation2 + $0x31] sm:$0xff] }
 0x30a   : > { %v11325_v55 = vld [vmem:[%s14845_s6 + $0x148] sm:$0xff]  }
 0x30b   : > { %9648 = vmatmul.mubr.bf16.gmra.mrb[60].mxu1 %v1847_v60  ;;  %v11301_v60 = vld [vmem:[%s14845_s6 + $0x88] sm:$0xff]  }
 0x30c   : > { %9651 = vmatprep.mubr.bf16.mxu1 %v1848_v40  ;;  %v13039_v40 = vpack.c.bf16 %v4143_v43, %v4142_v41  ;;  %v1764_v41 = vld [vmem:[#allocation2 + $0x120] sm:$0xff]  ;;  %v1765_v43 = vld [vmem:[#allocation2 + $0x128] sm:$0xff] }
 0x30d   : > { %v13104_v31 = vpack.c.bf16 %v1765_v43, %v1764_v41  ;;  %v2906_v41 = vld [vmem:[#allocation2 + $0x69] sm:$0xff]  ;;  %v2907_v43 = vld [vmem:[#allocation2 + $0x79] sm:$0xff] }
 0x30f   : > { %10016 = vmatmul.mubr.bf16.gmra.mrb[4].mxu0 %v13004_v25 }
 0x310   : > { %10019 = vmatprep.mubr.bf16.mxu0 %v13006_v27 }
 0x313   : > { %9652 = vmatmul.mubr.bf16.gmra.mrb[64].mxu1 %v1849_v3  ;;  %v11303_v3 = vld [vmem:[%s14845_s6 + $0x98] sm:$0xff]  }
 0x314   : > { %9655 = vmatprep.mubr.bf16.mxu1 %v1850_v0  ;;  %v1751_v0 = vld [vmem:[#allocation2 + $0x80] sm:$0xff] }
 0x315   : > { %v13066_v26 = vpack.c.bf16 %v1751_v0, %v1750_v2  ;;  %v13114_v2 = vpack.c.bf16 %v1771_v22, %v1770_v15  ;;  %v2289_v0 = vld [vmem:[#allocation2 + $0x1a] sm:$0xff]  ;;  %v2911_v22 = vld [vmem:[#allocation2 + $0xa9] sm:$0xff] }
 0x316   : > { %v13117_v12 = vpack.c.bf16 %v2290_v23, %v2289_v0  ;;  %v2910_v15 = vld [vmem:[#allocation2 + $0x99] sm:$0xff]  ;;  %v11329_v0 = vld [vmem:[%s14845_s6 + $0x168] sm:$0xff]  }
 0x317   : > { %10020 = vmatmul.mubr.bf16.gmra.mrb[8].mxu0 %v13010_v30 }
 0x318   : > { %10023 = vmatprep.mubr.bf16.mxu0 %v13012_v35 }
 0x31b   : > { %9656 = vmatmul.mubr.bf16.gmra.mrb[68].mxu1 %v1851_v16  ;;  %v4150_v16 = vld [vmem:[#allocation2 + $0x16a] sm:$0xff] }
 0x31c   : > { %9675 = vmatprep.mubr.bf16.mxu1 %v13020_v44 }
 0x31f   : > { %10024 = vmatmul.mubr.bf16.gmra.mrb[12].mxu0 %v13023_v46 }
 0x320   : > { %10027 = vmatprep.mubr.bf16.mxu0 %v13025_v29 }
 0x323   : > { %9676 = vmatmul.mubr.bf16.vlgmr.msra.gmra.mrb[40].mxu1 %v13029_v8 }
 0x324   : > { %9679 = vmatprep.mubr.bf16.mxu1 %v13034_v45  ;;  %9708 = vmatpush3.bf16.msra.mxu1 %v12986_v10  ;;  %v4151_v10 = vld [vmem:[#allocation2 + $0x172] sm:$0xff] }
 0x325   : > { %9709 = vmatprep.subr.bf16.mxu1 %v11301_v60  ;;  %v13075_v50 = vpack.c.bf16 %v4151_v10, %v4150_v16  ;;  %v11310_v16 = vld [vmem:[%s14845_s6 + $0xd0] sm:$0xff]   ;;  %v11311_v10 = vld [vmem:[%s14845_s6 + $0xd8] sm:$0xff]  }
 0x327   : > { %10028 = vmatmul.mubr.bf16.gmra.mrb[16].mxu0 %v13039_v40 }
 0x328   : > { %10031 = vmatprep.mubr.bf16.mxu0 %v13044_v63  ;;  %9710 = vmatpush3.bf16.msra.mxu1 %v11301_v60  ;;  %v1763_v60 = vld [vmem:[#allocation2 + $0x110] sm:$0xff] }
 0x329   : > { %9711 = vmatprep.subr.bf16.mxu1 %v11302_v42  ;;  %v13102_v28 = vpack.c.bf16 %v1763_v60, %v1762_v9  ;;  %v11326_v9 = vld [vmem:[%s14845_s6 + $0x150] sm:$0xff]   ;;  %v2905_v60 = vld [vmem:[#allocation2 + $0x61] sm:$0xff] }
 0x32b   : > { %9680 = vmatmul.mubr.bf16.gmra.mrb[44].mxu1 %v13048_v56 }
 0x32c   : > { %9683 = vmatprep.mubr.bf16.mxu1 %v13053_v58  ;;  %9712 = vmatpush3.bf16.msra.mxu1 %v11302_v42  ;;  %v1766_v42 = vld [vmem:[#allocation2 + $0x138] sm:$0xff] }
 0x32d   : > { %9713 = vmatprep.subr.bf16.mxu1 %v11303_v3  ;;  %v13108_v52 = vpack.c.bf16 %v1767_v24, %v1766_v42  ;;  %v11327_v42 = vld [vmem:[%s14845_s6 + $0x158] sm:$0xff]  }
 0x32f   : > { %10032 = vmatmul.mubr.bf16.gmra.mrb[20].mxu0 %v13057_v14 }
 0x330   : > { %10035 = vmatprep.mubr.bf16.mxu0 %v13062_v57  ;;  %9714 = vmatpush3.bf16.msra.mxu1 %v11303_v3  ;;  %v13110_v3 = vpack.c.bf16 %v1769_v11, %v1768_v37 }
 0x331   : > { %9715 = vmatprep.subr.bf16.mxu1 %v11304_v7 }
 0x333   : > { %9684 = vmatmul.mubr.bf16.gmra.mrb[48].mxu1 %v13066_v26 }
 0x334   : > { %9687 = vmatprep.mubr.bf16.mxu1 %v13071_v1  ;;  %9716 = vmatpush3.bf16.msra.mxu1 %v11304_v7  ;;  %v2319_v7 = vpack.c.bf16 %v2288_v17, %v2287_v6  ;;  %v11328_v6 = vld [vmem:[%s14845_s6 + $0x160] sm:$0xff]   ;;  %v2909_v17 = vld [vmem:[#allocation2 + $0x91] sm:$0xff] }
 0x335   : > { %9717 = vmatprep.subr.bf16.mxu1 %v11305_v19 }
 0x337   : > { %10036 = vmatmul.mubr.bf16.gmra.mrb[24].mxu0 %v13075_v50 }
 0x338   : > { %10039 = vmatprep.mubr.bf16.mxu0 %v13080_v18  ;;  %9718 = vmatpush3.bf16.msra.mxu1 %v11305_v19  ;;  %v11309_v19 = vld [vmem:[%s14845_s6 + $0xc8] sm:$0xff]  }
 0x339   : > { %9719 = vmatprep.subr.bf16.mxu1 %v11306_v4 }
 0x33b   : > { %9688 = vmatmul.mubr.bf16.gmra.mrb[52].mxu1 %v13084_v59 }
 0x33c   : > { %9691 = vmatprep.mubr.bf16.mxu1 %v13089_v32  ;;  %9720 = vmatpush3.bf16.msra.mxu1 %v11306_v4 }
 0x33d   : > { %9721 = vmatprep.subr.bf16.mxu1 %v11307_v54 }
 0x340   : > { %9722 = vmatpush3.bf16.msra.mxu1 %v11307_v54  ;;  %v2903_v54 = vld [vmem:[#allocation2 + $0x49] sm:$0xff] }
 0x341   : > { %9755 = vmatprep.subr.bf16.mxu1 %v11308_v34 }
 0x343   : > { %9692 = vmatmul.mubr.bf16.gmra.mrb[56].mxu1 %v13096_v48 }
 0x344   : > { %9695 = vmatprep.mubr.bf16.mxu1 %v13098_v21 }
 0x34b   : > { %9696 = vmatmul.mubr.bf16.gmra.mrb[60].mxu1 %v13102_v28 }
 0x34c   : > { %9699 = vmatprep.mubr.bf16.mxu1 %v13104_v31 }
 0x353   : > { %9700 = vmatmul.mubr.bf16.gmra.mrb[64].mxu1 %v13108_v52 }
 0x354   : > { %9703 = vmatprep.mubr.bf16.mxu1 %v13110_v3 }
 0x35b   : > { %9704 = vmatmul.mubr.bf16.gmra.mrb[68].mxu1 %v13114_v2 }
 0x35c   : > { %9723 = vmatprep.mubr.bf16.mxu1 %v2319_v7  ;;  %v2912_v7 = vld [vmem:[#allocation2 + $0xb1] sm:$0xff] }
 0x363   : > { %9724 = vmatmul.mubr.bf16.vlgmr.msra.gmra.mrb[40].mxu1 %v13117_v12 }
 0x364   : > { %9727 = vmatprep.mubr.bf16.mxu1 %v12981_v13  ;;  %9756 = vmatpush3.bf16.msra.mxu1 %v11308_v34  ;;  %v11312_v13 = vld [vmem:[%s14845_s6 + $0xe0] sm:$0xff]  }
 0x365   : > { %9757 = vmatprep.subr.bf16.mxu1 %v11309_v19 }
 0x368   : > { %9758 = vmatpush3.bf16.msra.mxu1 %v11309_v19  ;;  %v2937_v19 = vpack.c.bf16 %v2912_v7, %v2911_v22  ;;  %v2927_v22 = vld [vmem:[#allocation2 + $0x169] sm:$0xff]  ;;  %v2928_v7 = vld [vmem:[#allocation2 + $0x171] sm:$0xff] }
 0x369   : > { %9759 = vmatprep.subr.bf16.mxu1 %v11310_v16 }
 0x36b   : > { %9728 = vmatmul.mubr.bf16.gmra.mrb[44].mxu1 %v12995_v20  ;;  %v11314_v20 = vld [vmem:[%s14845_s6 + $0xf0] sm:$0xff]  }
 0x36c   : > { %9731 = vmatprep.mubr.bf16.mxu1 %v12997_v61  ;;  %9760 = vmatpush3.bf16.msra.mxu1 %v11310_v16  ;;  %v11315_v61 = vld [vmem:[%s14845_s6 + $0xf8] sm:$0xff]  }
 0x36d   : > { %9761 = vmatprep.subr.bf16.mxu1 %v11311_v10 }
 0x370   : > { %9762 = vmatpush3.bf16.msra.mxu1 %v11311_v10 }
 0x371   : > { %9763 = vmatprep.subr.bf16.mxu1 %v11312_v13 }
 0x373   : > { %9732 = vmatmul.mubr.bf16.gmra.mrb[48].mxu1 %v13004_v25  ;;  %v11316_v25 = vld [vmem:[%s14845_s6 + $0x100] sm:$0xff]  }
 0x374   : > { %9735 = vmatprep.mubr.bf16.mxu1 %v13006_v27  ;;  %9764 = vmatpush3.bf16.msra.mxu1 %v11312_v13  ;;  %v11317_v27 = vld [vmem:[%s14845_s6 + $0x108] sm:$0xff]  }
 0x375   : > { %9765 = vmatprep.subr.bf16.mxu1 %v11313_v33 }
 0x378   : > { %9766 = vmatpush3.bf16.msra.mxu1 %v11313_v33  ;;  %v11330_v33 = vld [vmem:[%s14845_s6 + $0x170] sm:$0xff]  }
 0x379   : > { %9767 = vmatprep.subr.bf16.mxu1 %v11314_v20 }
 0x37b   : > { %9736 = vmatmul.mubr.bf16.gmra.mrb[52].mxu1 %v13010_v30  ;;  %v11318_v30 = vld [vmem:[%s14845_s6 + $0x110] sm:$0xff]  }
 0x37c   : > { %9739 = vmatprep.mubr.bf16.mxu1 %v13012_v35  ;;  %9768 = vmatpush3.bf16.msra.mxu1 %v11314_v20  ;;  %v11319_v35 = vld [vmem:[%s14845_s6 + $0x118] sm:$0xff]   ;;  %v2913_v20 = vld [vmem:[#allocation2 + $0xc1] sm:$0xff] }
 0x37d   : > { %9769 = vmatprep.subr.bf16.mxu1 %v11315_v61 }
 0x380   : > { %9770 = vmatpush3.bf16.msra.mxu1 %v11315_v61  ;;  %v2914_v61 = vld [vmem:[#allocation2 + $0xc9] sm:$0xff] }
 0x381   : > { %9803 = vmatprep.subr.bf16.mxu1 %v11316_v25 }
 0x383   : > { %9740 = vmatmul.mubr.bf16.gmra.mrb[56].mxu1 %v13023_v46  ;;  %v11320_v46 = vld [vmem:[%s14845_s6 + $0x120] sm:$0xff]  }
 0x384   : > { %9743 = vmatprep.mubr.bf16.mxu1 %v13025_v29  ;;  %v11321_v29 = vld [vmem:[%s14845_s6 + $0x128] sm:$0xff]  }
 0x38b   : > { %9744 = vmatmul.mubr.bf16.gmra.mrb[60].mxu1 %v13039_v40  ;;  %v11324_v40 = vld [vmem:[%s14845_s6 + $0x140] sm:$0xff]  }
 0x38c   : > { %9747 = vmatprep.mubr.bf16.mxu1 %v13044_v63  ;;  %v2623_v63 = vld [vmem:[#allocation2 + $0x180] sm:$0xff] }
 0x393   : > { %9748 = vmatmul.mubr.bf16.gmra.mrb[64].mxu1 %v13057_v14 }
 0x394   : > { %9751 = vmatprep.mubr.bf16.mxu1 %v13062_v57 }
 0x39b   : > { %9752 = vmatmul.mubr.bf16.gmra.mrb[68].mxu1 %v13075_v50 }
 0x39c   : > { %9771 = vmatprep.mubr.bf16.mxu1 %v13029_v8  ;;  %v11322_v8 = vld [vmem:[%s14845_s6 + $0x130] sm:$0xff]  }
 0x3a3   : > { %9772 = vmatmul.mubr.bf16.vlgmr.msra.gmra.mrb[40].mxu1 %v13034_v45  ;;  %v11323_v45 = vld [vmem:[%s14845_s6 + $0x138] sm:$0xff]  }
 0x3a4   : > { %9775 = vmatprep.mubr.bf16.mxu1 %v13048_v56  ;;  %9804 = vmatpush3.bf16.msra.mxu1 %v11316_v25  ;;  %v2624_v56 = vld [vmem:[#allocation2 + $0x188] sm:$0xff]  ;;  %v2915_v25 = vld [vmem:[#allocation2 + $0xd9] sm:$0xff] }
 0x3a5   : > { %9805 = vmatprep.subr.bf16.mxu1 %v11317_v27 }
 0x3a8   : > { %9806 = vmatpush3.bf16.msra.mxu1 %v11317_v27  ;;  %v2916_v27 = vld [vmem:[#allocation2 + $0xe1] sm:$0xff] }
 0x3a9   : > { %9807 = vmatprep.subr.bf16.mxu1 %v11318_v30 }
 0x3ab   : > { %9776 = vmatmul.mubr.bf16.gmra.mrb[44].mxu1 %v13053_v58  ;;  %v2899_v58 = vld [vmem:[#allocation2 + $0x19] sm:$0xff] }
 0x3ac   : > { %9779 = vmatprep.mubr.bf16.mxu1 %v13066_v26  ;;  %9808 = vmatpush3.bf16.msra.mxu1 %v11318_v30  ;;  %v2900_v26 = vld [vmem:[#allocation2 + $0x21] sm:$0xff]  ;;  %v2938_v30 = vpack.c.bf16 %v2914_v61, %v2913_v20  ;;  %v3207_v61 = vld [vmem:[#allocation2 + $0x32] sm:$0xff] }
 0x3ad   : > { %9809 = vmatprep.subr.bf16.mxu1 %v11319_v35  ;;  %v2931_v4 = vpack.c.bf16 %v2900_v26, %v2899_v58  ;;  %v2918_v58 = vld [vmem:[#allocation2 + $0xf9] sm:$0xff]  ;;  %v2919_v26 = vld [vmem:[#allocation2 + $0x109] sm:$0xff] }
 0x3b0   : > { %9810 = vmatpush3.bf16.msra.mxu1 %v11319_v35  ;;  %v11331_v35 = vld [vmem:[%s14845_s6 + $0x178] sm:$0xff]  }
 0x3b1   : > { %9811 = vmatprep.subr.bf16.mxu1 %v11320_v46 }
 0x3b3   : > { %9780 = vmatmul.mubr.bf16.gmra.mrb[48].mxu1 %v13071_v1  ;;  %v13197_v1 = vpack.c.bf16 %v2624_v56, %v2623_v63  ;;  %v11332_v63 = vld [vmem:[%s14845_s6 + $0x180] sm:$0xff]   ;;  %v2917_v56 = vld [vmem:[#allocation2 + $0xf1] sm:$0xff] }
 0x3b4   : > { %9783 = vmatprep.mubr.bf16.mxu1 %v13084_v59  ;;  %9812 = vmatpush3.bf16.msra.mxu1 %v11320_v46  ;;  %v2902_v59 = vld [vmem:[#allocation2 + $0x39] sm:$0xff] }
 0x3b5   : > { %9813 = vmatprep.subr.bf16.mxu1 %v11321_v29  ;;  %v2932_v34 = vpack.c.bf16 %v2902_v59, %v2901_v53  ;;  %v13264_v53 = vpack.c.bf16 %v2918_v58, %v2917_v56  ;;  %v11334_v58 = vld [vmem:[%s14845_s6 + $0x190] sm:$0xff]  }
 0x3b8   : > { %9814 = vmatpush3.bf16.msra.mxu1 %v11321_v29  ;;  %v2939_v29 = vpack.c.bf16 %v2916_v27, %v2915_v25  ;;  %v3208_v25 = vld [vmem:[#allocation2 + $0x3a] sm:$0xff]  ;;  %v3209_v27 = vld [vmem:[#allocation2 + $0x4a] sm:$0xff] }
 0x3b9   : > { %9815 = vmatprep.subr.bf16.mxu1 %v11322_v8 }
 0x3bb   : > { %9784 = vmatmul.mubr.bf16.gmra.mrb[52].mxu1 %v13089_v32  ;;  %v2904_v32 = vld [vmem:[#allocation2 + $0x51] sm:$0xff] }
 0x3bc   : > { %9787 = vmatprep.mubr.bf16.mxu1 %v13096_v48  ;;  %9816 = vmatpush3.bf16.msra.mxu1 %v11322_v8  ;;  %v2933_v49 = vpack.c.bf16 %v2904_v32, %v2903_v54 }
 0x3bd   : > { %9817 = vmatprep.subr.bf16.mxu1 %v11323_v45 }
 0x3c0   : > { %9818 = vmatpush3.bf16.msra.mxu1 %v11323_v45 }
 0x3c1   : > { %9851 = vmatprep.subr.bf16.mxu1 %v11324_v40 }
 0x3c3   : > { %9788 = vmatmul.mubr.bf16.gmra.mrb[56].mxu1 %v13098_v21 }
 0x3c4   : > { %9791 = vmatprep.mubr.bf16.mxu1 %v13102_v28  ;;  %v2908_v28 = vld [vmem:[#allocation2 + $0x81] sm:$0xff] }
 0x3c5   : > { %v2935_v37 = vpack.c.bf16 %v2908_v28, %v2907_v43 }
 0x3cb   : > { %9792 = vmatmul.mubr.bf16.gmra.mrb[60].mxu1 %v13104_v31  ;;  %v2934_v31 = vpack.c.bf16 %v2906_v41, %v2905_v60  ;;  %v2923_v60 = vld [vmem:[#allocation2 + $0x139] sm:$0xff]  ;;  %v2924_v41 = vld [vmem:[#allocation2 + $0x141] sm:$0xff] }
 0x3cc   : > { %9795 = vmatprep.mubr.bf16.mxu1 %v13108_v52 }
 0x3d3   : > { %9796 = vmatmul.mubr.bf16.gmra.mrb[64].mxu1 %v13110_v3 }
 0x3d4   : > { %9799 = vmatprep.mubr.bf16.mxu1 %v13114_v2  ;;  %v2936_v2 = vpack.c.bf16 %v2910_v15, %v2909_v17  ;;  %v2925_v17 = vld [vmem:[#allocation2 + $0x151] sm:$0xff]  ;;  %v2926_v15 = vld [vmem:[#allocation2 + $0x159] sm:$0xff] }
 0x3da   : > { %v13199_v5 = vpop.f32.mrb[0].mxu0 }
 0x3db   : > { %v13201_v47 = vpop.f32.mrb[1].mxu0  ;;  %9800 = vmatmul.mubr.bf16.gmra.mrb[68].mxu1 %v13197_v1 }
 0x3dc   : > { %v13204_v62 = vpop.f32.mrb[2].mxu0  ;;  %9819 = vmatprep.mubr.bf16.mxu1 %v2931_v4  ;;  %v2920_v4 = vld [vmem:[#allocation2 + $0x111] sm:$0xff] }
 0x3dd   : > { %v13206_v38 = vpop.f32.mrb[3].mxu0  ;;  %v13268_v54 = vpack.c.bf16 %v2920_v4, %v2919_v26  ;;  %v3211_v26 = vld [vmem:[#allocation2 + $0x62] sm:$0xff]  ;;  %v3213_v4 = vld [vmem:[#allocation2 + $0x7a] sm:$0xff] }
 0x3e2   : > { %v13211_v39 = vpop.f32.mrb[4].mxu0 }
 0x3e3   : > { %v13213_v51 = vpop.f32.mrb[5].mxu0  ;;  %9820 = vmatmul.mubr.bf16.vlgmr.msra.gmra.mrb[40].mxu1 %v2932_v34 }
 0x3e4   : > { %v13215_v48 = vpop.f32.mrb[6].mxu0  ;;  %9823 = vmatprep.mubr.bf16.mxu1 %v2933_v49  ;;  %9852 = vmatpush3.bf16.msra.mxu1 %v11324_v40  ;;  %v2921_v49 = vld [vmem:[#allocation2 + $0x121] sm:$0xff] }
 0x3e5   : > { %v13217_v21 = vpop.f32.mrb[7].mxu0  ;;  %9853 = vmatprep.subr.bf16.mxu1 %v11325_v55 }
 0x3e8   : > { %9854 = vmatpush3.bf16.msra.mxu1 %v11325_v55 }
 0x3e9   : > { %9855 = vmatprep.subr.bf16.mxu1 %v11326_v9 }
 0x3ea   : > { %v13225_v24 = vpop.f32.mrb[8].mxu0 }
 0x3eb   : > { %v13227_v11 = vpop.f32.mrb[9].mxu0  ;;  %9824 = vmatmul.mubr.bf16.gmra.mrb[44].mxu1 %v2934_v31  ;;  %v13282_v31 = vpack.c.bf16 %v2924_v41, %v2923_v60  ;;  %v11335_v60 = vld [vmem:[%s14845_s6 + $0x198] sm:$0xff]  }
 0x3ec   : > { %v13229_v52 = vpop.f32.mrb[10].mxu0  ;;  %9827 = vmatprep.mubr.bf16.mxu1 %v2935_v37  ;;  %9856 = vmatpush3.bf16.msra.mxu1 %v11326_v9  ;;  %v2922_v9 = vld [vmem:[#allocation2 + $0x129] sm:$0xff] }
 0x3ed   : > { %v13231_v3 = vpop.f32.mrb[11].mxu0  ;;  %9857 = vmatprep.subr.bf16.mxu1 %v11327_v42  ;;  %v13278_v43 = vpack.c.bf16 %v2922_v9, %v2921_v49  ;;  %v3214_v49 = vld [vmem:[#allocation2 + $0x82] sm:$0xff] }
 0x3ee   : > { %v3241_v41 = vpack.c.bf16 %v3214_v49, %v3213_v4  ;;  %v4155_v4 = vld [vmem:[#allocation2 + $0x1a2] sm:$0xff] }
 0x3f0   : > { %9858 = vmatpush3.bf16.msra.mxu1 %v11327_v42 }
 0x3f1   : > { %9859 = vmatprep.subr.bf16.mxu1 %v11328_v6 }
 0x3f2   : > { %v13239_v23 = vpop.f32.mrb[12].mxu0 }
 0x3f3   : > { %v13241_v16 = vpop.f32.mrb[13].mxu0  ;;  %9828 = vmatmul.mubr.bf16.gmra.mrb[48].mxu1 %v2936_v2  ;;  %v13292_v2 = vpack.c.bf16 %v2926_v15, %v2925_v17  ;;  %v3215_v17 = vld [vmem:[#allocation2 + $0x92] sm:$0xff]  ;;  %v3216_v15 = vld [vmem:[#allocation2 + $0x9a] sm:$0xff] }
 0x3f4   : > { %v13243_v10 = vpop.f32.mrb[14].mxu0  ;;  %9831 = vmatprep.mubr.bf16.mxu1 %v2937_v19  ;;  %9860 = vmatpush3.bf16.msra.mxu1 %v11328_v6  ;;  %v2929_v19 = vld [vmem:[#allocation2 + $0x181] sm:$0xff] }
 0x3f5   : > { %v13245_v13 = vpop.f32.mrb[15].mxu0  ;;  %9861 = vmatprep.subr.bf16.mxu1 %v11329_v0 }
 0x3f8   : > { %9862 = vmatpush3.bf16.msra.mxu1 %v11329_v0  ;;  %v13294_v0 = vpack.c.bf16 %v2928_v7, %v2927_v22  ;;  %v3217_v22 = vld [vmem:[#allocation2 + $0xaa] sm:$0xff]  ;;  %v3218_v7 = vld [vmem:[#allocation2 + $0xb2] sm:$0xff] }
 0x3f9   : > { %9863 = vmatprep.subr.bf16.mxu1 %v11330_v33 }
 0x3fa   : > { %v13253_v46 = vpop.f32.mrb[16].mxu0 }
 0x3fb   : > { %v13255_v8 = vpop.f32.mrb[17].mxu0  ;;  %9832 = vmatmul.mubr.bf16.gmra.mrb[52].mxu1 %v2938_v30  ;;  %v3210_v30 = vld [vmem:[#allocation2 + $0x52] sm:$0xff] }
 0x3fc   : > { %v13257_v45 = vpop.f32.mrb[18].mxu0  ;;  %9835 = vmatprep.mubr.bf16.mxu1 %v2939_v29  ;;  %9864 = vmatpush3.bf16.msra.mxu1 %v11330_v33  ;;  %v2930_v33 = vld [vmem:[#allocation2 + $0x189] sm:$0xff]  ;;  %v3239_v56 = vpack.c.bf16 %v3210_v30, %v3209_v27 }
 0x3fd   : > { %v13259_v40 = vpop.f32.mrb[19].mxu0  ;;  %9865 = vmatprep.subr.bf16.mxu1 %v11331_v35  ;;  %v13298_v20 = vpack.c.bf16 %v2930_v33, %v2929_v19  ;;  %v11333_v29 = vld [vmem:[%s14845_s6 + $0x188] sm:$0xff]   ;;  %v3242_v19 = vpack.c.bf16 %v3216_v15, %v3215_v17  ;;  %v11666_v15 = vld [vmem:[%s14845_s6 + $0x1c0] sm:$0xff]  }
 0x3fe   : > { %v11337_v33 = vld [vmem:[%s14845_s6 + $0x1a8] sm:$0xff]  }
 0x3ff   : > { %v3219_v27 = vld [vmem:[#allocation2 + $0xc2] sm:$0xff]  ;;  %v3220_v30 = vld [vmem:[#allocation2 + $0xca] sm:$0xff] }
 0x400   : > { %9866 = vmatpush3.bf16.msra.mxu1 %v11331_v35  ;;  %v3238_v35 = vpack.c.bf16 %v3208_v25, %v3207_v61  ;;  %v3243_v61 = vpack.c.bf16 %v3218_v7, %v3217_v22  ;;  %v11338_v25 = vld [vmem:[%s14845_s6 + $0x1b0] sm:$0xff]   ;;  %v3227_v7 = vld [vmem:[#allocation2 + $0x122] sm:$0xff] }
 0x401   : > { %9899 = vmatprep.subr.bf16.mxu1 %v11332_v63 }
 0x402   : > { %v13266_v59 = vpop.f32.mrb[20].mxu0 }
 0x403   : > { %v13270_v32 = vpop.f32.mrb[21].mxu0  ;;  %9836 = vmatmul.mubr.bf16.gmra.mrb[56].mxu1 %v13264_v53 }
 0x404   : > { %v13273_v34 = vpop.f32.mrb[22].mxu0  ;;  %9839 = vmatprep.mubr.bf16.mxu1 %v13268_v54 }
 0x405   : > { %v13276_v55 = vpop.f32.mrb[23].mxu0 }
 0x40a   : > { %v13280_v28 = vpop.f32.mrb[24].mxu0 }
 0x40b   : > { %v13284_v42 = vpop.f32.mrb[25].mxu0  ;;  %9840 = vmatmul.mubr.bf16.gmra.mrb[60].mxu1 %v13278_v43 }
 0x40c   : > { %v13287_v37 = vpop.f32.mrb[26].mxu0  ;;  %9843 = vmatprep.mubr.bf16.mxu1 %v13282_v31 }
 0x40d   : > { %v13290_v6 = vpop.f32.mrb[27].mxu0 }
 0x413   : > { %9844 = vmatmul.mubr.bf16.gmra.mrb[64].mxu1 %v13292_v2 }
 0x414   : > { %9847 = vmatprep.mubr.bf16.mxu1 %v13294_v0 }
 0x41b   : > { %9848 = vmatmul.mubr.bf16.gmra.mrb[68].mxu1 %v13298_v20 }
 0x41c   : > { %9867 = vmatprep.mubr.bf16.mxu1 %v13117_v12  ;;  %v3212_v12 = vld [vmem:[#allocation2 + $0x6a] sm:$0xff] }
 0x41d   : > { %v3240_v9 = vpack.c.bf16 %v3212_v12, %v3211_v26  ;;  %v4154_v12 = vld [vmem:[#allocation2 + $0x19a] sm:$0xff] }
 0x41e   : > { %v4171_v49 = vpack.c.bf16 %v4155_v4, %v4154_v12  ;;  %v3520_v12 = vld [vmem:[#allocation2 + $0x90] sm:$0xff]  ;;  %v3521_v4 = vld [vmem:[#allocation2 + $0x98] sm:$0xff] }
 0x420   : > { %10040 = vmatmul.mubr.bf16.gmra.mrb[28].mxu0 %v4171_v49  ;;  %v11668_v49 = vld [vmem:[%s14845_s6 + $0x1d0] sm:$0xff]  }
 0x423   : > { %9868 = vmatmul.mubr.bf16.vlgmr.msra.gmra.mrb[40].mxu1 %v3238_v35  ;;  %v3221_v35 = vld [vmem:[#allocation2 + $0xda] sm:$0xff] }
 0x424   : > { %9871 = vmatprep.mubr.bf16.mxu1 %v3239_v56  ;;  %9900 = vmatpush3.bf16.msra.mxu1 %v11332_v63  ;;  %v11336_v63 = vld [vmem:[%s14845_s6 + $0x1a0] sm:$0xff]   ;;  %v3244_v56 = vpack.c.bf16 %v3220_v30, %v3219_v27  ;;  %v3514_v30 = vld [vmem:[#allocation2 + $0x48] sm:$0xff] }
 0x425   : > { %9901 = vmatprep.subr.bf16.mxu1 %v11333_v29 }
 0x428   : > { %9902 = vmatpush3.bf16.msra.mxu1 %v11333_v29  ;;  %v3222_v29 = vld [vmem:[#allocation2 + $0xe2] sm:$0xff] }
 0x429   : > { %9903 = vmatprep.subr.bf16.mxu1 %v11334_v58  ;;  %v3245_v26 = vpack.c.bf16 %v3222_v29, %v3221_v35  ;;  %v3515_v35 = vld [vmem:[#allocation2 + $0x50] sm:$0xff]  ;;  %v3516_v29 = vld [vmem:[#allocation2 + $0x60] sm:$0xff] }
 0x42b   : > { %9872 = vmatmul.mubr.bf16.gmra.mrb[44].mxu1 %v3240_v9  ;;  %v3223_v9 = vld [vmem:[#allocation2 + $0xf2] sm:$0xff] }
 0x42c   : > { %9875 = vmatprep.mubr.bf16.mxu1 %v3241_v41  ;;  %9904 = vmatpush3.bf16.msra.mxu1 %v11334_v58  ;;  %v11339_v58 = vld [vmem:[%s14845_s6 + $0x1b8] sm:$0xff]   ;;  %v3225_v41 = vld [vmem:[#allocation2 + $0x10a] sm:$0xff] }
 0x42d   : > { %9905 = vmatprep.subr.bf16.mxu1 %v11335_v60 }
 0x430   : > { %9906 = vmatpush3.bf16.msra.mxu1 %v11335_v60  ;;  %v3224_v60 = vld [vmem:[#allocation2 + $0xfa] sm:$0xff] }
 0x431   : > { %9907 = vmatprep.subr.bf16.mxu1 %v11336_v63  ;;  %v3246_v17 = vpack.c.bf16 %v3224_v60, %v3223_v9  ;;  %v3548_v9 = vpack.c.bf16 %v3521_v4, %v3520_v12  ;;  %v11669_v60 = vld [vmem:[%s14845_s6 + $0x1d8] sm:$0xff]  }
 0x433   : > { %9876 = vmatmul.mubr.bf16.gmra.mrb[48].mxu1 %v3242_v19  ;;  %v3228_v19 = vld [vmem:[#allocation2 + $0x12a] sm:$0xff] }
 0x434   : > { %9879 = vmatprep.mubr.bf16.mxu1 %v3243_v61  ;;  %9908 = vmatpush3.bf16.msra.mxu1 %v11336_v63  ;;  %v3226_v63 = vld [vmem:[#allocation2 + $0x112] sm:$0xff] }
 0x435   : > { %9909 = vmatprep.subr.bf16.mxu1 %v11337_v33  ;;  %v3247_v22 = vpack.c.bf16 %v3226_v63, %v3225_v41  ;;  %v3512_v61 = vld [vmem:[#allocation2 + $0x30] sm:$0xff]  ;;  %v3522_v41 = vld [vmem:[#allocation2 + $0xa8] sm:$0xff] }
 0x436   : > { %v3523_v63 = vld [vmem:[#allocation2 + $0xb0] sm:$0xff] }
 0x438   : > { %9910 = vmatpush3.bf16.msra.mxu1 %v11337_v33  ;;  %v3248_v33 = vpack.c.bf16 %v3228_v19, %v3227_v7  ;;  %v11670_v7 = vld [vmem:[%s14845_s6 + $0x1e0] sm:$0xff]  }
 0x439   : > { %9911 = vmatprep.subr.bf16.mxu1 %v11338_v25 }
 0x43b   : > { %9880 = vmatmul.mubr.bf16.gmra.mrb[52].mxu1 %v3244_v56  ;;  %v3517_v56 = vld [vmem:[#allocation2 + $0x68] sm:$0xff] }
 0x43c   : > { %9883 = vmatprep.mubr.bf16.mxu1 %v3245_v26  ;;  %9912 = vmatpush3.bf16.msra.mxu1 %v11338_v25  ;;  %v3513_v25 = vld [vmem:[#allocation2 + $0x38] sm:$0xff]  ;;  %v3546_v26 = vpack.c.bf16 %v3517_v56, %v3516_v29  ;;  %v11672_v29 = vld [vmem:[%s14845_s6 + $0x1f0] sm:$0xff]  }
 0x43d   : > { %9913 = vmatprep.subr.bf16.mxu1 %v11339_v58  ;;  %v3544_v27 = vpack.c.bf16 %v3513_v25, %v3512_v61  ;;  %v3526_v61 = vld [vmem:[#allocation2 + $0xd8] sm:$0xff]  ;;  %v3527_v25 = vld [vmem:[#allocation2 + $0xe0] sm:$0xff] }
 0x440   : > { %9914 = vmatpush3.bf16.msra.mxu1 %v11339_v58  ;;  %v3545_v58 = vpack.c.bf16 %v3515_v35, %v3514_v30  ;;  %v3529_v30 = vld [vmem:[#allocation2 + $0xf8] sm:$0xff]  ;;  %v3551_v35 = vpack.c.bf16 %v3527_v25, %v3526_v61  ;;  %v11340_v61 = vld [vmem:[%s14847_s8] sm:$0xff]  }
 0x441   : > { %10579 = vmatprep.subr.bf16.mxu1 %v11666_v15 }
 0x443   : > { %9884 = vmatmul.mubr.bf16.gmra.mrb[56].mxu1 %v3246_v17  ;;  %v3524_v17 = vld [vmem:[#allocation2 + $0xc0] sm:$0xff] }
 0x444   : > { %9887 = vmatprep.mubr.bf16.mxu1 %v3247_v22  ;;  %v3549_v22 = vpack.c.bf16 %v3523_v63, %v3522_v41 }
 0x44b   : > { %9888 = vmatmul.mubr.bf16.gmra.mrb[60].mxu1 %v3248_v33  ;;  %v11671_v33 = vld [vmem:[%s14845_s6 + $0x1e8] sm:$0xff]  }
 0x44c   : > { %9891 = vmatprep.mubr.bf16.mxu1 %v13057_v14  ;;  %v11667_v14 = vld [vmem:[%s14845_s6 + $0x1c8] sm:$0xff]  }
 0x453   : > { %9892 = vmatmul.mubr.bf16.gmra.mrb[64].mxu1 %v13062_v57  ;;  %v3518_v57 = vld [vmem:[#allocation2 + $0x78] sm:$0xff] }
 0x454   : > { %9895 = vmatprep.mubr.bf16.mxu1 %v13075_v50  ;;  %v3519_v50 = vld [vmem:[#allocation2 + $0x80] sm:$0xff] }
 0x45b   : > { %9896 = vmatmul.mubr.bf16.gmra.mrb[68].mxu1 %v13080_v18  ;;  %v3547_v18 = vpack.c.bf16 %v3519_v50, %v3518_v57  ;;  %v3532_v57 = vld [vmem:[#allocation2 + $0x120] sm:$0xff]  ;;  %v3533_v50 = vld [vmem:[#allocation2 + $0x128] sm:$0xff] }
 0x45c   : > { %9915 = vmatprep.mubr.bf16.mxu1 %v3544_v27  ;;  %v3528_v27 = vld [vmem:[#allocation2 + $0xf0] sm:$0xff]  ;;  %v3554_v4 = vpack.c.bf16 %v3533_v50, %v3532_v57 }
 0x45d   : > { %v3552_v56 = vpack.c.bf16 %v3529_v30, %v3528_v27  ;;  %v3849_v27 = vld [vmem:[#allocation2 + $0x1a1] sm:$0xff] }
 0x463   : > { %9916 = vmatmul.mubr.bf16.vlgmr.msra.gmra.mrb[40].mxu1 %v3545_v58  ;;  %v11673_v58 = vld [vmem:[%s14845_s6 + $0x1f8] sm:$0xff]  }
 0x464   : > { %9919 = vmatprep.mubr.bf16.mxu1 %v3546_v26  ;;  %10587 = vmatpush3.bf16.msra.mxu1 %v11666_v15  ;;  %v3525_v15 = vld [vmem:[#allocation2 + $0xc8] sm:$0xff] }
 0x465   : > { %10580 = vmatprep.subr.bf16.mxu1 %v11667_v14  ;;  %v3550_v19 = vpack.c.bf16 %v3525_v15, %v3524_v17  ;;  %v3530_v26 = vld [vmem:[#allocation2 + $0x108] sm:$0xff]  ;;  %v3539_v15 = vld [vmem:[#allocation2 + $0x170] sm:$0xff] }
 0x466   : > { %v3538_v17 = vld [vmem:[#allocation2 + $0x168] sm:$0xff] }
 0x468   : > { %10588 = vmatpush3.bf16.msra.mxu1 %v11667_v14  ;;  %v3531_v14 = vld [vmem:[#allocation2 + $0x110] sm:$0xff] }
 0x469   : > { %10581 = vmatprep.subr.bf16.mxu1 %v11668_v49  ;;  %v3553_v12 = vpack.c.bf16 %v3531_v14, %v3530_v26 }
 0x46b   : > { %9920 = vmatmul.mubr.bf16.gmra.mrb[44].mxu1 %v3547_v18  ;;  %v3534_v18 = vld [vmem:[#allocation2 + $0x138] sm:$0xff] }
 0x46c   : > { %9923 = vmatprep.mubr.bf16.mxu1 %v3548_v9  ;;  %10589 = vmatpush3.bf16.msra.mxu1 %v11668_v49  ;;  %v3535_v49 = vld [vmem:[#allocation2 + $0x140] sm:$0xff]  ;;  %v3536_v9 = vld [vmem:[#allocation2 + $0x150] sm:$0xff] }
 0x46d   : > { %10582 = vmatprep.subr.bf16.mxu1 %v11669_v60  ;;  %v3555_v41 = vpack.c.bf16 %v3535_v49, %v3534_v18 }
 0x470   : > { %10590 = vmatpush3.bf16.msra.mxu1 %v11669_v60  ;;  %v3537_v60 = vld [vmem:[#allocation2 + $0x158] sm:$0xff] }
 0x471   : > { %10583 = vmatprep.subr.bf16.mxu1 %v11670_v7  ;;  %v3556_v63 = vpack.c.bf16 %v3537_v60, %v3536_v9 }
 0x473   : > { %9924 = vmatmul.mubr.bf16.gmra.mrb[48].mxu1 %v3549_v22  ;;  %v3557_v22 = vpack.c.bf16 %v3539_v15, %v3538_v17 }
 0x474   : > { %9927 = vmatprep.mubr.bf16.mxu1 %v3550_v19  ;;  %10591 = vmatpush3.bf16.msra.mxu1 %v11670_v7  ;;  %v13356_v7 = vld [vmem:[%s4469_s26] sm:$0x1] }
 0x475   : > { %10584 = vmatprep.subr.bf16.mxu1 %v11671_v33  ;;  %v4471_v19 = vsub.f32 0.0, %v13356_v7 }
 0x478   : > { %10592 = vmatpush3.bf16.msra.mxu1 %v11671_v33  ;;  %v4472_v33 = vmul.f32 1.442695, %v4471_v19 }
 0x479   : > { %10585 = vmatprep.subr.bf16.mxu1 %v11672_v29 }
 0x47a   : > { %11514 = vpow2.f32 %v4472_v33 }
 0x47b   : > { %9928 = vmatmul.mubr.bf16.gmra.mrb[52].mxu1 %v3551_v35 }
 0x47c   : > { %9931 = vmatprep.mubr.bf16.mxu1 %v3552_v56  ;;  %10593 = vmatpush3.bf16.msra.mxu1 %v11672_v29  ;;  %v11346_v29 = vld [vmem:[%s14847_s8 + $0x30] sm:$0xff]   ;;  %v13394_v56 = vld [vmem:[#allocation2] sm:$0xff] }
 0x47d   : > { %10586 = vmatprep.subr.bf16.mxu1 %v11673_v58  ;;  %5449 = vst.msk [vmem:[#allocation3 + $0x30] sm:$0xff] %vm4619_vm2, %v13394_v56  ;;  %5450 = vst.msk [vmem:[#allocation3 + $0x38] sm:$0xff] %vm4619_vm2, %v13394_v56 }
 0x47e   : > { %5442 = vst.msk [vmem:[#allocation3] sm:$0xff] %vm4619_vm2, %v13394_v56  ;;  %5443 = vst.msk [vmem:[#allocation3 + $0x8] sm:$0xff] %vm4619_vm2, %v13394_v56 }
 0x47f   : > { %5446 = vst.msk [vmem:[#allocation3 + $0x18] sm:$0xff] %vm4619_vm2, %v13394_v56  ;;  %5447 = vst.msk [vmem:[#allocation3 + $0x20] sm:$0xff] %vm4619_vm2, %v13394_v56 }
 0x480   : > { %10594 = vmatpush3.bf16.msra.mxu1 %v11673_v58  ;;  %5452 = vst.msk [vmem:[#allocation3 + $0x48] sm:$0xff] %vm4619_vm2, %v13394_v56  ;;  %5453 = vst.msk [vmem:[#allocation3 + $0x50] sm:$0xff] %vm4619_vm2, %v13394_v56  ;;  %v14943_v58 = vmov 0.0|0.0  }
 0x481   : > { %10043 = vmatprep.subr.bf16.mxu1 %v13016_v36  ;;  %5455 = vst.msk [vmem:[#allocation3 + $0x60] sm:$0xff] %vm4619_vm2, %v13394_v56  ;;  %5456 = vst.msk [vmem:[#allocation3 + $0x68] sm:$0xff] %vm4619_vm2, %v13394_v56 }
 0x482   : > { %5458 = vst.msk [vmem:[#allocation3 + $0x78] sm:$0xff] %vm4619_vm2, %v13394_v56  ;;  %5459 = vst.msk [vmem:[#allocation3 + $0x80] sm:$0xff] %vm4619_vm2, %v13394_v56 }
 0x483   : > { %9932 = vmatmul.mubr.bf16.gmra.mrb[56].mxu1 %v3553_v12  ;;  %5461 = vst.msk [vmem:[#allocation3 + $0x90] sm:$0xff] %vm4619_vm2, %v13394_v56  ;;  %5462 = vst.msk [vmem:[#allocation3 + $0x98] sm:$0xff] %vm4619_vm2, %v13394_v56 }
 0x484   : > { %9935 = vmatprep.mubr.bf16.mxu1 %v3554_v4  ;;  %v11515_v25 = vpop.eup %11514  ;;  %5464 = vst.msk [vmem:[#allocation3 + $0xa8] sm:$0xff] %vm4619_vm2, %v13394_v56  ;;  %5465 = vst.msk [vmem:[#allocation3 + $0xb0] sm:$0xff] %vm4619_vm2, %v13394_v56 }
 0x485   : > { %5467 = vst.msk [vmem:[#allocation3 + $0xc0] sm:$0xff] %vm4619_vm2, %v13394_v56  ;;  %5468 = vst.msk [vmem:[#allocation3 + $0xc8] sm:$0xff] %vm4619_vm2, %v13394_v56 }
 0x486   : > { %5470 = vst.msk [vmem:[#allocation3 + $0xd8] sm:$0xff] %vm4619_vm2, %v13394_v56  ;;  %5471 = vst.msk [vmem:[#allocation3 + $0xe0] sm:$0xff] %vm4619_vm2, %v13394_v56 }
 0x487   : > { %5473 = vst.msk [vmem:[#allocation3 + $0xf0] sm:$0xff] %vm4619_vm2, %v13394_v56  ;;  %5474 = vst.msk [vmem:[#allocation3 + $0xf8] sm:$0xff] %vm4619_vm2, %v13394_v56 }
 0x488   : > { %5476 = vst.msk [vmem:[#allocation3 + $0x108] sm:$0xff] %vm4619_vm2, %v13394_v56  ;;  %5477 = vst.msk [vmem:[#allocation3 + $0x110] sm:$0xff] %vm4619_vm2, %v13394_v56 }
 0x489   : > { %5479 = vst.msk [vmem:[#allocation3 + $0x120] sm:$0xff] %vm4619_vm2, %v13394_v56  ;;  %5480 = vst.msk [vmem:[#allocation3 + $0x128] sm:$0xff] %vm4619_vm2, %v13394_v56 }
 0x48a   : > { %5482 = vst.msk [vmem:[#allocation3 + $0x138] sm:$0xff] %vm4619_vm2, %v13394_v56  ;;  %5483 = vst.msk [vmem:[#allocation3 + $0x140] sm:$0xff] %vm4619_vm2, %v13394_v56 }
 0x48b   : > { %9936 = vmatmul.mubr.bf16.gmra.mrb[60].mxu1 %v3555_v41  ;;  %5485 = vst.msk [vmem:[#allocation3 + $0x150] sm:$0xff] %vm4619_vm2, %v13394_v56  ;;  %5486 = vst.msk [vmem:[#allocation3 + $0x158] sm:$0xff] %vm4619_vm2, %v13394_v56 }
 0x48c   : > { %9939 = vmatprep.mubr.bf16.mxu1 %v3556_v63  ;;  %5488 = vst.msk [vmem:[#allocation3 + $0x168] sm:$0xff] %vm4619_vm2, %v13394_v56  ;;  %5489 = vst.msk [vmem:[#allocation3 + $0x170] sm:$0xff] %vm4619_vm2, %v13394_v56 }
 0x48d   : > { %5491 = vst.msk [vmem:[#allocation3 + $0x180] sm:$0xff] %vm4619_vm2, %v13394_v56  ;;  %5492 = vst.msk [vmem:[#allocation3 + $0x188] sm:$0xff] %vm4619_vm2, %v13394_v56 }
 0x48e   : > { %5494 = vst.msk [vmem:[#allocation3 + $0x198] sm:$0xff] %vm4619_vm2, %v13394_v56  ;;  %5495 = vst.msk [vmem:[#allocation3 + $0x1a0] sm:$0xff] %vm4619_vm2, %v13394_v56 }
 0x48f   : > { %5451 = vst.msk [vmem:[#allocation3 + $0x40] sm:$0x3] %vm5444_vm3, %v13394_v56  ;;  %5445 = vst.msk [vmem:[#allocation3 + $0x10] sm:$0x3] %vm5444_vm3, %v13394_v56 }
 0x490   : > { %5448 = vst.msk [vmem:[#allocation3 + $0x28] sm:$0x3] %vm5444_vm3, %v13394_v56  ;;  %5454 = vst.msk [vmem:[#allocation3 + $0x58] sm:$0x3] %vm5444_vm3, %v13394_v56 }
 0x491   : > { %5457 = vst.msk [vmem:[#allocation3 + $0x70] sm:$0x3] %vm5444_vm3, %v13394_v56  ;;  %5460 = vst.msk [vmem:[#allocation3 + $0x88] sm:$0x3] %vm5444_vm3, %v13394_v56 }
 0x492   : > { %5463 = vst.msk [vmem:[#allocation3 + $0xa0] sm:$0x3] %vm5444_vm3, %v13394_v56  ;;  %5466 = vst.msk [vmem:[#allocation3 + $0xb8] sm:$0x3] %vm5444_vm3, %v13394_v56 }
 0x493   : > { %9940 = vmatmul.mubr.bf16.gmra.mrb[64].mxu1 %v3557_v22  ;;  %5469 = vst.msk [vmem:[#allocation3 + $0xd0] sm:$0x3] %vm5444_vm3, %v13394_v56  ;;  %5472 = vst.msk [vmem:[#allocation3 + $0xe8] sm:$0x3] %vm5444_vm3, %v13394_v56 }
 0x494   : > { %9943 = vmatprep.mubr.bf16.mxu1 %v13197_v1  ;;  %v11341_v1 = vld [vmem:[%s14847_s8 + $0x8] sm:$0xff]   ;;  %5475 = vst.msk [vmem:[#allocation3 + $0x100] sm:$0x3] %vm5444_vm3, %v13394_v56  ;;  %5478 = vst.msk [vmem:[#allocation3 + $0x118] sm:$0x3] %vm5444_vm3, %v13394_v56 }
 0x495   : > { %5481 = vst.msk [vmem:[#allocation3 + $0x130] sm:$0x3] %vm5444_vm3, %v13394_v56  ;;  %5484 = vst.msk [vmem:[#allocation3 + $0x148] sm:$0x3] %vm5444_vm3, %v13394_v56 }
 0x496   : > { %5487 = vst.msk [vmem:[#allocation3 + $0x160] sm:$0x3] %vm5444_vm3, %v13394_v56  ;;  %5490 = vst.msk [vmem:[#allocation3 + $0x178] sm:$0x3] %vm5444_vm3, %v13394_v56 }
 0x497   : > { %5493 = vst.msk [vmem:[#allocation3 + $0x190] sm:$0x3] %vm5444_vm3, %v13394_v56  ;;  %5496 = vst.msk [vmem:[#allocation3 + $0x1a8] sm:$0x3] %vm5444_vm3, %v13394_v56 }
 0x49b   : > { %9944 = vmatmul.mubr.bf16.gmra.mrb[68].mxu1 %v13020_v44  ;;  %v11342_v44 = vld [vmem:[%s14847_s8 + $0x10] sm:$0xff]  }
 0x49c   : > { %9979 = vmatprep.mubr.bf16.mxu1 %v13264_v53  ;;  %v4474_v53 = vadd.f32 1.0, %v11515_v25 }
 0x49e   : > { %11516 = vrcp.f32 %v4474_v53 }
 0x4a3   : > { %9980 = vmatmul.mubr.bf16.vlgmr.msra.gmra.mrb[56].mxu1 %v13268_v54  ;;  %v11343_v54 = vld [vmem:[%s14847_s8 + $0x18] sm:$0xff]  }
 0x4a4   : > { %9983 = vmatprep.mubr.bf16.mxu1 %v13278_v43  ;;  %10044 = vmatpush3.bf16.msra.mxu1 %v11340_v61  ;;  %v11344_v43 = vld [vmem:[%s14847_s8 + $0x20] sm:$0xff]  }
 0x4a5   : > { %10045 = vmatprep.subr.bf16.mxu1 %v13016_v36 }
 0x4a8   : > { %10046 = vmatpush3.bf16.msra.mxu1 %v11341_v1  ;;  %v11517_v35 = vpop.eup %11516 }
 0x4a9   : > { %10047 = vmatprep.subr.bf16.mxu1 %v13016_v36 }
 0x4ab   : > { %9984 = vmatmul.mubr.bf16.gmra.mrb[60].mxu1 %v13282_v31  ;;  %v11345_v31 = vld [vmem:[%s14847_s8 + $0x28] sm:$0xff]  }
 0x4ac   : > { %9987 = vmatprep.mubr.bf16.mxu1 %v13292_v2  ;;  %10048 = vmatpush3.bf16.msra.mxu1 %v11342_v44  ;;  %v3848_v2 = vld [vmem:[#allocation2 + $0x199] sm:$0xff] }
 0x4ad   : > { %10049 = vmatprep.subr.bf16.mxu1 %v13016_v36  ;;  %v3865_v30 = vpack.c.bf16 %v3849_v27, %v3848_v2 }
 0x4b0   : > { %10050 = vmatpush3.bf16.msra.mxu1 %v11343_v54 }
 0x4b1   : > { %10051 = vmatprep.subr.bf16.mxu1 %v13016_v36 }
 0x4b3   : > { %9988 = vmatmul.mubr.bf16.gmra.mrb[64].mxu1 %v13294_v0  ;;  %v11347_v0 = vld [vmem:[%s14847_s8 + $0x38] sm:$0xff]  }
 0x4b4   : > { %9991 = vmatprep.mubr.bf16.mxu1 %v13298_v20  ;;  %10052 = vmatpush3.bf16.msra.mxu1 %v11344_v43 }
 0x4b5   : > { %10053 = vmatprep.subr.bf16.mxu1 %v13016_v36  ;;  %v4476_v36 = vmul.f32 %v11517_v35, %v13356_v7 }
 0x4b7   : > { %v4477_v20 = vpack.c.bf16 %v4476_v36, %v4476_v36 }
 0x4b8   : > { %10054 = vmatpush3.bf16.msra.mxu1 %v11345_v31 }
 0x4b9   : > { %10055 = vmatprep.subr.bf16.mxu1 %v13394_v56 }
 0x4bb   : > { %9992 = vmatmul.mubr.bf16.gmra.mrb[68].mxu1 %v3865_v30 }
 0x4bc   : > { %10056 = vmatpush3.bf16.msra.mxu1 %v11346_v29  ;;  %10059 = vmatprep.mubr.msk.bf16.mxu1 %vm11781_vm0, %v13394_v56 }
 0x4bd   : > { %10057 = vmatprep.subr.bf16.mxu1 %v13394_v56 }
 0x4c0   : > { %10058 = vmatpush3.bf16.msra.mxu1 %v11347_v0 }
 0x4c1   : > { %10543 = vmatprep.subr.bf16.mxu1 %v14943_v58 }
 0x4c3   : > { %10060 = vmatmul.mubr.bf16.vlgmr.msra.gmra.mrb[72].mxu1 %v4477_v20  ;;  %v4795_v20 = vld [vmem:[%s14851_s12 + $0x28] sm:$0xff] }
 0x4c4   : > { %10079 = vmatprep.mubr.msk.f32.mxu1 %vm11781_vm0, %v13394_v56 }
 0x4f3   : > { %v13515_v26 = vpop.f32.mrb[28].mxu0 }
 0x4f4   : > { %v13517_v14 = vpop.f32.mrb[29].mxu0 }
 0x4f5   : > { %v13519_v57 = vpop.f32.mrb[30].mxu0 }
 0x4f6   : > { %v13521_v50 = vpop.f32.mrb[31].mxu0 }
 0x536   : > { %v9917_v12 = vpop.f32.mrb[40].mxu1 }
 0x537   : > { %v13524_v4 = vadd.f32 %v13199_v5, %v9917_v12  ;;  %v3659_v18 = vpop.f32.mrb[41].mxu1 }
 0x538   : > { %v13527_v49 = vadd.f32 %v13201_v47, %v3659_v18  ;;  %v9918_v9 = vpop.f32.mrb[42].mxu1 }
 0x539   : > { %v13530_v60 = vadd.f32 %v13204_v62, %v9918_v9  ;;  %v3662_v41 = vpop.f32.mrb[43].mxu1  ;;  %v4796_v9 = vld [vmem:[%s14851_s12 + $0x30] sm:$0xff] }
 0x53a   : > { %v13533_v63 = vadd.f32 %v13206_v38, %v3662_v41  ;;  %v4797_v41 = vld [vmem:[%s14851_s12 + $0x38] sm:$0xff] }
 0x53e   : > { %v9921_v17 = vpop.f32.mrb[44].mxu1 }
 0x53f   : > { %v13536_v15 = vadd.f32 %v13211_v39, %v9921_v17  ;;  %v3675_v22 = vpop.f32.mrb[45].mxu1 }
 0x540   : > { %v13539_v5 = vadd.f32 %v13213_v51, %v3675_v22  ;;  %v9922_v7 = vpop.f32.mrb[46].mxu1 }
 0x541   : > { %v13542_v47 = vadd.f32 %v13215_v48, %v9922_v7  ;;  %v3678_v19 = vpop.f32.mrb[47].mxu1 }
 0x542   : > { %v13545_v62 = vadd.f32 %v13217_v21, %v3678_v19 }
 0x546   : > { %v9925_v33 = vpop.f32.mrb[48].mxu1 }
 0x547   : > { %v13548_v38 = vadd.f32 %v13225_v24, %v9925_v33  ;;  %v3691_v61 = vpop.f32.mrb[49].mxu1 }
 0x548   : > { %v13551_v39 = vadd.f32 %v13227_v11, %v3691_v61  ;;  %v9926_v1 = vpop.f32.mrb[50].mxu1 }
 0x549   : > { %v13554_v51 = vadd.f32 %v13229_v52, %v9926_v1  ;;  %v3694_v25 = vpop.f32.mrb[51].mxu1 }
 0x54a   : > { %v13557_v48 = vadd.f32 %v13231_v3, %v3694_v25 }
 0x54e   : > { %v9929_v44 = vpop.f32.mrb[52].mxu1 }
 0x54f   : > { %v13560_v21 = vadd.f32 %v13239_v23, %v9929_v44  ;;  %v3707_v53 = vpop.f32.mrb[53].mxu1  ;;  %v4790_v23 = vld [vmem:[%s14851_s12] sm:$0xff] }
 0x550   : > { %v13563_v24 = vadd.f32 %v13241_v16, %v3707_v53  ;;  %v9930_v54 = vpop.f32.mrb[54].mxu1  ;;  %v4791_v16 = vld [vmem:[%s14851_s12 + $0x8] sm:$0xff] }
 0x551   : > { %v13566_v11 = vadd.f32 %v13243_v10, %v9930_v54  ;;  %v3710_v43 = vpop.f32.mrb[55].mxu1  ;;  %v4792_v10 = vld [vmem:[%s14851_s12 + $0x10] sm:$0xff]  ;;  %v13586_v30 = vpack.c.bf16 %v4791_v16, %v4790_v23 }
 0x552   : > { %v13569_v52 = vadd.f32 %v13245_v13, %v3710_v43  ;;  %v8770_v43 = vld [vmem:[%s14846_s7] ss:$0 sm:$0xff] }
 0x553   : > { %10545 = vmatpush3.bf16.msra.mxu1 %v13586_v30 }
 0x554   : > { %10546 = vmatprep.subr.bf16.mxu1 %v14943_v58 }
 0x576   : > { %v9981_v31 = vpop.f32.mrb[56].mxu1 }
 0x577   : > { %v13572_v3 = vadd.f32 %v13253_v46, %v9981_v31  ;;  %v4029_v2 = vpop.f32.mrb[57].mxu1  ;;  %v4793_v46 = vld [vmem:[%s14851_s12 + $0x18] sm:$0xff] }
 0x578   : > { %v13584_v13 = vadd.f32 %v13255_v8, %v4029_v2  ;;  %v9982_v27 = vpop.f32.mrb[58].mxu1  ;;  %v13596_v0 = vpack.c.bf16 %v4793_v46, %v4792_v10  ;;  %v4794_v8 = vld [vmem:[%s14851_s12 + $0x20] sm:$0xff]  ;;  %v4439_v10 = vadd.f32 %v13524_v4, %v8770_v43  ;;  %v4438_v46 = vadd.f32 %v13533_v63, %v8770_v43 }
 0x579   : > { %v13592_v35 = vadd.f32 %v13257_v45, %v9982_v27  ;;  %v4032_v29 = vpop.f32.mrb[59].mxu1  ;;  %v13606_v45 = vpack.c.bf16 %v4795_v20, %v4794_v8  ;;  %v4440_v27 = vadd.f32 %v13530_v60, %v8770_v43  ;;  %v4442_v8 = vadd.f32 %v13545_v62, %v8770_v43 }
 0x57a   : > { %v10710_v36 = vadd.f32 %v13259_v40, %v4032_v29  ;;  %10548 = vmatpush3.bf16.msra.mxu1 %v13596_v0  ;;  %v4443_v29 = vadd.f32 %v13536_v15, %v8770_v43  ;;  %v4445_v4 = vadd.f32 %v13551_v39, %v8770_v43  ;;  %v4446_v60 = vadd.f32 %v13557_v48, %v8770_v43 }
 0x57b   : > { %10549 = vmatprep.subr.bf16.mxu1 %v14943_v58  ;;  %v4451_v63 = vadd.f32 %v13560_v21, %v8770_v43  ;;  %v4449_v15 = vadd.f32 %v13563_v24, %v8770_v43  ;;  %v4455_v62 = vadd.f32 %v13572_v3, %v8770_v43  ;;  %v4456_v20 = vadd.f32 %v13592_v35, %v8770_v43 }
 0x57e   : > { %v9985_v12 = vpop.f32.mrb[60].mxu1  ;;  %10551 = vmatpush3.bf16.msra.mxu1 %v13606_v45 }
 0x57f   : > { %v10711_v40 = vadd.f32 %v13266_v59, %v9985_v12  ;;  %v4045_v18 = vpop.f32.mrb[61].mxu1  ;;  %v13620_v59 = vpack.c.bf16 %v4797_v41, %v4796_v9  ;;  %10552 = vmatprep.subr.bf16.mxu1 %v14943_v58  ;;  %v4454_v12 = vadd.f32 %v10710_v36, %v8770_v43 }
 0x580   : > { %v10712_v17 = vadd.f32 %v13270_v32, %v4045_v18  ;;  %v9986_v22 = vpop.f32.mrb[62].mxu1 }
 0x581   : > { %v10713_v7 = vadd.f32 %v13273_v34, %v9986_v22  ;;  %v4048_v19 = vpop.f32.mrb[63].mxu1  ;;  %v4459_v18 = vadd.f32 %v10711_v40, %v8770_v43 }
 0x582   : > { %v10714_v33 = vadd.f32 %v13276_v55, %v4048_v19  ;;  %10554 = vmatpush3.bf16.msra.mxu1 %v13620_v59  ;;  %v4457_v48 = vadd.f32 %v10712_v17, %v8770_v43 }
 0x583   : > { %10555 = vmatprep.subr.bf16.mxu1 %v14943_v58  ;;  %v4460_v41 = vadd.f32 %v10713_v7, %v8770_v43 }
 0x584   : > { %v4458_v21 = vadd.f32 %v10714_v33, %v8770_v43 }
 0x586   : > { %v9989_v61 = vpop.f32.mrb[64].mxu1 }
 0x587   : > { %v10715_v1 = vadd.f32 %v13280_v28, %v9989_v61  ;;  %v4061_v25 = vpop.f32.mrb[65].mxu1 }
 0x588   : > { %v10716_v32 = vadd.f32 %v13284_v42, %v4061_v25  ;;  %v9990_v34 = vpop.f32.mrb[66].mxu1 }
 0x589   : > { %v10717_v44 = vadd.f32 %v13287_v37, %v9990_v34  ;;  %v4064_v55 = vpop.f32.mrb[67].mxu1  ;;  %v4437_v37 = vadd.f32 %v13527_v49, %v8770_v43  ;;  %v4448_v49 = vadd.f32 %v13554_v51, %v8770_v43  ;;  %v4463_v22 = vadd.f32 %v10715_v1, %v8770_v43 }
 0x58a   : > { %v10718_v53 = vadd.f32 %v13290_v6, %v4064_v55  ;;  %v4461_v19 = vadd.f32 %v10716_v32, %v8770_v43 }
 0x58c   : > { %v4462_v61 = vadd.f32 %v10718_v53, %v8770_v43 }
 0x58e   : > { %v9993_v54 = vpop.f32.mrb[68].mxu1 }
 0x58f   : > { %v10719_v31 = vadd.f32 %v13515_v26, %v9993_v54  ;;  %v4077_v2 = vpop.f32.mrb[69].mxu1  ;;  %v4441_v26 = vadd.f32 %v13539_v5, %v8770_v43  ;;  %v4452_v5 = vadd.f32 %v13566_v11, %v8770_v43  ;;  %v4464_v11 = vadd.f32 %v10717_v44, %v8770_v43 }
 0x590   : > { %v10720_v28 = vadd.f32 %v13517_v14, %v4077_v2  ;;  %v9994_v23 = vpop.f32.mrb[70].mxu1  ;;  %v4444_v14 = vadd.f32 %v13542_v47, %v8770_v43  ;;  %v4450_v47 = vadd.f32 %v13569_v52, %v8770_v43  ;;  %v14945_v52 = vld [vmem:[#allocation43_spill] sm:$0xff] }
 0x591   : > { %v10721_v16 = vadd.f32 %v13519_v57, %v9994_v23  ;;  %v4080_v42 = vpop.f32.mrb[71].mxu1  ;;  %v4447_v57 = vadd.f32 %v13548_v38, %v8770_v43  ;;  %v4453_v38 = vadd.f32 %v13584_v13, %v8770_v43  ;;  %v4467_v34 = vadd.f32 %v10719_v31, %v8770_v43 }
 0x592   : > { %v10722_v6 = vadd.f32 %v13521_v50, %v4080_v42  ;;  %v4494_v50 = vld [vmem:[%s14944_s21] sm:$0x1]  ;;  %v4465_v13 = vadd.f32 %v10720_v28, %v8770_v43 }
 0x593   : > { %v4468_v55 = vadd.f32 %v10721_v16, %v8770_v43 }
 0x594   : > { %v4466_v54 = vadd.f32 %v10722_v6, %v8770_v43 }
 0x596   : > { %v4577_v39 = vpop.f32.mrb[72].mxu1 }
 0x597   : > { %v4578_v51 = vadd.f32 %v4577_v39, %v4494_v50  ;;  %v10061_v9 = vpop.f32.mrb[73].mxu1 }
 0x598   : > { %v4580_v24 = vpop.f32.mrb[74].mxu1 }
 0x599   : > { %v4586_v25 = vrot.slane %v4578_v51, %v14945_v52  ;;  %v10062_v3 = vpop.f32.mrb[75].mxu1 }
 0x59b   : > { %v13659_v35 = vadd.f32 %v4586_v25, %v4437_v37  ;;  %v13661_v36 = vadd.f32 %v4586_v25, %v4438_v46  ;;  %v13663_v40 = vadd.f32 %v4586_v25, %v4439_v10  ;;  %v13665_v17 = vadd.f32 %v4586_v25, %v4440_v27 }
 0x59c   : > { %v13667_v7 = vadd.f32 %v4586_v25, %v4441_v26  ;;  %v13669_v33 = vadd.f32 %v4586_v25, %v4442_v8  ;;  %v13671_v1 = vadd.f32 %v4586_v25, %v4443_v29  ;;  %v13673_v32 = vadd.f32 %v4586_v25, %v4444_v14 }
 0x59d   : > { %v13675_v44 = vadd.f32 %v4586_v25, %v4445_v4  ;;  %v13677_v53 = vadd.f32 %v4586_v25, %v4446_v60  ;;  %v13679_v43 = vadd.f32 %v4586_v25, %v4447_v57  ;;  %v13681_v31 = vadd.f32 %v4586_v25, %v4448_v49 }
 0x59e   : > { %v13683_v2 = vadd.f32 %v4586_v25, %v4449_v15  ;;  %v13685_v28 = vadd.f32 %v4586_v25, %v4450_v47  ;;  %v13687_v23 = vadd.f32 %v4586_v25, %v4451_v63  ;;  %v13689_v16 = vadd.f32 %v4586_v25, %v4452_v5 }
 0x59f   : > { %v13691_v42 = vadd.f32 %v4586_v25, %v4453_v38  ;;  %v13693_v10 = vadd.f32 %v4586_v25, %v4454_v12  ;;  %v13695_v37 = vadd.f32 %v4586_v25, %v4455_v62  ;;  %v13697_v6 = vadd.f32 %v4586_v25, %v4456_v20 }
 0x5a0   : > { %v13699_v27 = vadd.f32 %v4586_v25, %v4457_v48  ;;  %v13701_v46 = vadd.f32 %v4586_v25, %v4458_v21  ;;  %v13703_v29 = vadd.f32 %v4586_v25, %v4459_v18  ;;  %v13705_v26 = vadd.f32 %v4586_v25, %v4460_v41 }
 0x5a1   : > { %v13707_v14 = vadd.f32 %v4586_v25, %v4461_v19  ;;  %v13709_v8 = vadd.f32 %v4586_v25, %v4462_v61  ;;  %v13711_v57 = vadd.f32 %v4586_v25, %v4463_v22  ;;  %v13713_v4 = vadd.f32 %v4586_v25, %v4464_v11 }
 0x5a2   : > { %v13715_v50 = vadd.f32 %v4586_v25, %v4465_v13  ;;  %v13717_v49 = vadd.f32 %v4586_v25, %v4466_v54  ;;  %v13719_v60 = vadd.f32 %v4586_v25, %v4467_v34  ;;  %v13721_v63 = vadd.f32 %v4586_v25, %v4468_v55 }
 0x5a3   : > { %v4620_v15 = vsel %vm4619_vm2, %v13659_v35, 0.0  ;;  %v4621_v5 = vsel %vm4619_vm2, %v13661_v36, 0.0  ;;  %v4689_v47 = vmul.f32 %v13659_v35, %v13659_v35  ;;  %v4690_v62 = vmul.f32 %v13661_v36, %v13661_v36 }
 0x5a4   : > { %v4622_v38 = vadd.f32 %v4621_v5, %v4620_v15  ;;  %v4691_v39 = vmul.f32 %v13663_v40, %v13663_v40  ;;  %v4623_v18 = vsel %vm4619_vm2, %v13663_v40, 0.0  ;;  %v4692_v51 = vmul.f32 %v13665_v17, %v13665_v17 }
 0x5a5   : > { %v4721_v20 = vsel %vm4619_vm2, %v4689_v47, 0.0  ;;  %v4722_v12 = vsel %vm4619_vm2, %v4690_v62, 0.0  ;;  %v4625_v41 = vsel %vm4619_vm2, %v13665_v17, 0.0  ;;  %v4693_v21 = vmul.f32 %v13667_v7, %v13667_v7 }
 0x5a6   : > { %v4624_v9 = vadd.f32 %v4623_v18, %v4622_v38  ;;  %v4723_v48 = vadd.f32 %v4722_v12, %v4721_v20  ;;  %v4724_v22 = vsel %vm4619_vm2, %v4691_v39, 0.0  ;;  %v4627_v11 = vsel %vm4619_vm2, %v13667_v7, 0.0 }
 0x5a7   : > { %v4694_v61 = vmul.f32 %v13669_v33, %v13669_v33  ;;  %v4726_v25 = vsel %vm4619_vm2, %v4692_v51, 0.0  ;;  %v4629_v13 = vsel %vm4619_vm2, %v13669_v33, 0.0  ;;  %v4695_v55 = vmul.f32 %v13671_v1, %v13671_v1 }
 0x5a8   : > { %v4626_v24 = vadd.f32 %v4625_v41, %v4624_v9  ;;  %v4725_v19 = vadd.f32 %v4724_v22, %v4723_v48  ;;  %v4728_v54 = vsel %vm4619_vm2, %v4693_v21, 0.0  ;;  %v4631_v47 = vsel %vm4619_vm2, %v13671_v1, 0.0 }
 0x5a9   : > { %v4696_v62 = vmul.f32 %v13673_v32, %v13673_v32  ;;  %v4730_v38 = vsel %vm4619_vm2, %v4694_v61, 0.0  ;;  %v4633_v12 = vsel %vm4619_vm2, %v13673_v32, 0.0  ;;  %v4697_v18 = vmul.f32 %v13675_v44, %v13675_v44 }
 0x5aa   : > { %v4628_v3 = vadd.f32 %v4627_v11, %v4626_v24  ;;  %v4727_v34 = vadd.f32 %v4726_v25, %v4725_v19  ;;  %v4732_v51 = vsel %vm4619_vm2, %v4695_v55, 0.0  ;;  %v4635_v41 = vsel %vm4619_vm2, %v13675_v44, 0.0 }
 0x5ab   : > { %v4698_v21 = vmul.f32 %v13677_v53, %v13677_v53  ;;  %v4734_v22 = vsel %vm4619_vm2, %v4696_v62, 0.0  ;;  %v4637_v11 = vsel %vm4619_vm2, %v13677_v53, 0.0  ;;  %v4699_v61 = vmul.f32 %v13679_v43, %v13679_v43 }
 0x5ac   : > { %v4630_v15 = vadd.f32 %v4629_v13, %v4628_v3  ;;  %v4729_v5 = vadd.f32 %v4728_v54, %v4727_v34  ;;  %v4736_v25 = vsel %vm4619_vm2, %v4697_v18, 0.0  ;;  %v4639_v13 = vsel %vm4619_vm2, %v13679_v43, 0.0 }
 0x5ad   : > { %v4700_v55 = vmul.f32 %v13681_v31, %v13681_v31  ;;  %v4738_v54 = vsel %vm4619_vm2, %v4698_v21, 0.0  ;;  %v4701_v62 = vmul.f32 %v13683_v2, %v13683_v2  ;;  %v4702_v18 = vmul.f32 %v13685_v28, %v13685_v28 }
 0x5ae   : > { %v4632_v39 = vadd.f32 %v4631_v47, %v4630_v15  ;;  %v4731_v20 = vadd.f32 %v4730_v38, %v4729_v5  ;;  %v4641_v47 = vsel %vm4619_vm2, %v13681_v31, 0.0  ;;  %v4740_v38 = vsel %vm4619_vm2, %v4699_v61, 0.0 }
 0x5af   : > { %v4703_v21 = vmul.f32 %v13687_v23, %v13687_v23  ;;  %v4704_v61 = vmul.f32 %v13689_v16, %v13689_v16 }
 0x5b0   : > { %v4634_v9 = vadd.f32 %v4633_v12, %v4632_v39  ;;  %v4733_v48 = vadd.f32 %v4732_v51, %v4731_v20  ;;  %v4643_v12 = vsel %vm4619_vm2, %v13683_v2, 0.0  ;;  %v4742_v51 = vsel %vm4619_vm2, %v4700_v55, 0.0 }
 0x5b1   : > { %v4705_v55 = vmul.f32 %v13691_v42, %v13691_v42 }
 0x5b2   : > { %v4636_v24 = vadd.f32 %v4635_v41, %v4634_v9  ;;  %v4735_v19 = vadd.f32 %v4734_v22, %v4733_v48  ;;  %v4645_v41 = vsel %vm4619_vm2, %v13685_v28, 0.0  ;;  %v4744_v22 = vsel %vm4619_vm2, %v4701_v62, 0.0 }
 0x5b3   : > { %v4706_v62 = vmul.f32 %v13693_v10, %v13693_v10 }
 0x5b4   : > { %v4638_v3 = vadd.f32 %v4637_v11, %v4636_v24  ;;  %v4737_v34 = vadd.f32 %v4736_v25, %v4735_v19  ;;  %v4647_v11 = vsel %vm4619_vm2, %v13687_v23, 0.0  ;;  %v4746_v25 = vsel %vm4619_vm2, %v4702_v18, 0.0 }
 0x5b5   : > { %v4707_v18 = vmul.f32 %v13695_v37, %v13695_v37 }
 0x5b6   : > { %v4640_v15 = vadd.f32 %v4639_v13, %v4638_v3  ;;  %v4739_v5 = vadd.f32 %v4738_v54, %v4737_v34  ;;  %v4649_v13 = vsel %vm4619_vm2, %v13689_v16, 0.0  ;;  %v4748_v54 = vsel %vm4619_vm2, %v4703_v21, 0.0 }
 0x5b7   : > { %v4708_v21 = vmul.f32 %v13697_v6, %v13697_v6 }
 0x5b8   : > { %v4642_v39 = vadd.f32 %v4641_v47, %v4640_v15  ;;  %v4741_v20 = vadd.f32 %v4740_v38, %v4739_v5  ;;  %v4651_v47 = vsel %vm4619_vm2, %v13691_v42, 0.0  ;;  %v4750_v38 = vsel %vm4619_vm2, %v4704_v61, 0.0 }
 0x5b9   : > { %v4709_v61 = vmul.f32 %v13699_v27, %v13699_v27 }
 0x5ba   : > { %v4644_v9 = vadd.f32 %v4643_v12, %v4642_v39  ;;  %v4743_v48 = vadd.f32 %v4742_v51, %v4741_v20  ;;  %v4653_v12 = vsel %vm4619_vm2, %v13693_v10, 0.0  ;;  %v4752_v51 = vsel %vm4619_vm2, %v4705_v55, 0.0 }
 0x5bb   : > { %v4710_v55 = vmul.f32 %v13701_v46, %v13701_v46 }
 0x5bc   : > { %v4646_v24 = vadd.f32 %v4645_v41, %v4644_v9  ;;  %v4745_v19 = vadd.f32 %v4744_v22, %v4743_v48  ;;  %v4655_v41 = vsel %vm4619_vm2, %v13695_v37, 0.0  ;;  %v4754_v22 = vsel %vm4619_vm2, %v4706_v62, 0.0 }
 0x5bd   : > { %v4711_v62 = vmul.f32 %v13703_v29, %v13703_v29 }
 0x5be   : > { %v4648_v3 = vadd.f32 %v4647_v11, %v4646_v24  ;;  %v4747_v34 = vadd.f32 %v4746_v25, %v4745_v19  ;;  %v4657_v11 = vsel %vm4619_vm2, %v13697_v6, 0.0  ;;  %v4756_v25 = vsel %vm4619_vm2, %v4707_v18, 0.0 }
 0x5bf   : > { %v4712_v18 = vmul.f32 %v13705_v26, %v13705_v26 }
 0x5c0   : > { %v4650_v15 = vadd.f32 %v4649_v13, %v4648_v3  ;;  %v4749_v5 = vadd.f32 %v4748_v54, %v4747_v34  ;;  %v4659_v13 = vsel %vm4619_vm2, %v13699_v27, 0.0  ;;  %v4758_v54 = vsel %vm4619_vm2, %v4708_v21, 0.0 }
 0x5c1   : > { %v4713_v21 = vmul.f32 %v13707_v14, %v13707_v14 }
 0x5c2   : > { %v4652_v39 = vadd.f32 %v4651_v47, %v4650_v15  ;;  %v4751_v20 = vadd.f32 %v4750_v38, %v4749_v5  ;;  %v4661_v47 = vsel %vm4619_vm2, %v13701_v46, 0.0  ;;  %v4760_v38 = vsel %vm4619_vm2, %v4709_v61, 0.0 }
 0x5c3   : > { %v4714_v61 = vmul.f32 %v13709_v8, %v13709_v8 }
 0x5c4   : > { %v4654_v9 = vadd.f32 %v4653_v12, %v4652_v39  ;;  %v4753_v48 = vadd.f32 %v4752_v51, %v4751_v20  ;;  %v4663_v12 = vsel %vm4619_vm2, %v13703_v29, 0.0  ;;  %v4762_v51 = vsel %vm4619_vm2, %v4710_v55, 0.0 }
 0x5c5   : > { %v4715_v55 = vmul.f32 %v13711_v57, %v13711_v57 }
 0x5c6   : > { %v4656_v24 = vadd.f32 %v4655_v41, %v4654_v9  ;;  %v4755_v19 = vadd.f32 %v4754_v22, %v4753_v48  ;;  %v4665_v41 = vsel %vm4619_vm2, %v13705_v26, 0.0  ;;  %v4764_v22 = vsel %vm4619_vm2, %v4711_v62, 0.0 }
 0x5c7   : > { %v4716_v62 = vmul.f32 %v13713_v4, %v13713_v4 }
 0x5c8   : > { %v4658_v3 = vadd.f32 %v4657_v11, %v4656_v24  ;;  %v4757_v34 = vadd.f32 %v4756_v25, %v4755_v19  ;;  %v4667_v11 = vsel %vm4619_vm2, %v13707_v14, 0.0  ;;  %v4766_v25 = vsel %vm4619_vm2, %v4712_v18, 0.0 }
 0x5c9   : > { %v4717_v18 = vmul.f32 %v13715_v50, %v13715_v50 }
 0x5ca   : > { %v4660_v15 = vadd.f32 %v4659_v13, %v4658_v3  ;;  %v4759_v5 = vadd.f32 %v4758_v54, %v4757_v34  ;;  %v4669_v13 = vsel %vm4619_vm2, %v13709_v8, 0.0  ;;  %v4768_v54 = vsel %vm4619_vm2, %v4713_v21, 0.0 }
 0x5cb   : > { %v4718_v21 = vmul.f32 %v13717_v49, %v13717_v49 }
 0x5cc   : > { %v4662_v39 = vadd.f32 %v4661_v47, %v4660_v15  ;;  %v4761_v20 = vadd.f32 %v4760_v38, %v4759_v5  ;;  %v4671_v47 = vsel %vm4619_vm2, %v13711_v57, 0.0  ;;  %v4770_v38 = vsel %vm4619_vm2, %v4714_v61, 0.0 }
 0x5cd   : > { %v4719_v61 = vmul.f32 %v13719_v60, %v13719_v60 }
 0x5ce   : > { %v4664_v9 = vadd.f32 %v4663_v12, %v4662_v39  ;;  %v4763_v48 = vadd.f32 %v4762_v51, %v4761_v20  ;;  %v4673_v12 = vsel %vm4619_vm2, %v13713_v4, 0.0  ;;  %v4772_v51 = vsel %vm4619_vm2, %v4715_v55, 0.0 }
 0x5cf   : > { %v4778_v55 = vsel %vm4619_vm2, %v4718_v21, 0.0 }
 0x5d0   : > { %v4666_v24 = vadd.f32 %v4665_v41, %v4664_v9  ;;  %v4765_v19 = vadd.f32 %v4764_v22, %v4763_v48  ;;  %v4675_v41 = vsel %vm4619_vm2, %v13715_v50, 0.0  ;;  %v4774_v22 = vsel %vm4619_vm2, %v4716_v62, 0.0 }
 0x5d1   : > { %v4780_v62 = vsel %vm4619_vm2, %v4719_v61, 0.0 }
 0x5d2   : > { %v4668_v3 = vadd.f32 %v4667_v11, %v4666_v24  ;;  %v4767_v34 = vadd.f32 %v4766_v25, %v4765_v19  ;;  %v4677_v11 = vsel %vm4619_vm2, %v13717_v49, 0.0  ;;  %v4776_v25 = vsel %vm4619_vm2, %v4717_v18, 0.0 }
 0x5d4   : > { %v4670_v15 = vadd.f32 %v4669_v13, %v4668_v3  ;;  %v4769_v5 = vadd.f32 %v4768_v54, %v4767_v34  ;;  %v4679_v13 = vsel %vm4619_vm2, %v13719_v60, 0.0 }
 0x5d6   : > { %v4672_v39 = vadd.f32 %v4671_v47, %v4670_v15  ;;  %v4771_v20 = vadd.f32 %v4770_v38, %v4769_v5  ;;  %v4681_v5 = vsel %vm4619_vm2, %v13721_v63, 0.0  ;;  %v4720_v47 = vmul.f32 %v13721_v63, %v13721_v63 }
 0x5d8   : > { %v4674_v9 = vadd.f32 %v4673_v12, %v4672_v39  ;;  %v4773_v48 = vadd.f32 %v4772_v51, %v4771_v20  ;;  %v4782_v12 = vsel %vm4619_vm2, %v4720_v47, 0.0 }
 0x5da   : > { %v4676_v24 = vadd.f32 %v4675_v41, %v4674_v9  ;;  %v4775_v19 = vadd.f32 %v4774_v22, %v4773_v48 }
 0x5dc   : > { %v4678_v3 = vadd.f32 %v4677_v11, %v4676_v24  ;;  %v4777_v34 = vadd.f32 %v4776_v25, %v4775_v19  ;;  %v4951_v25 = vld [vmem:[%s14946_s10 + $0x8] sm:$0xff] }
 0x5de   : > { %v4680_v54 = vadd.f32 %v4679_v13, %v4678_v3  ;;  %v4779_v15 = vadd.f32 %v4778_v55, %v4777_v34 }
 0x5e0   : > { %v4682_v38 = vadd.f32 %v4681_v5, %v4680_v54  ;;  %v4781_v39 = vadd.f32 %v4780_v62, %v4779_v15 }
 0x5e2   : > { %v4683_v20 = vrot.slane %v4682_v38, 4  ;;  %v4783_v18 = vadd.f32 %v4782_v12, %v4781_v39  ;;  %v11348_v12 = vld [vmem:[#allocation6 + $0x20] sm:$0xff]  }
 0x5e3   : > { %10123 = vmatprep.subr.bf16.mxu0 %v11348_v12 }
 0x5e4   : > { %v4684_v51 = vadd.f32 %v4683_v20, %v4682_v38  ;;  %v4784_v41 = vrot.slane %v4783_v18, 4  ;;  %10124 = vmatpush3.bf16.msra.mxu0 %v11348_v12 }
 0x5e6   : > { %v4685_v9 = vrot.slane %v4684_v51, 2  ;;  %v4785_v24 = vadd.f32 %v4784_v41, %v4783_v18  ;;  %v5587_v41 = vld [vmem:[#allocation3 + $0x9] sm:$0xff] }
 0x5e8   : > { %v4686_v48 = vadd.f32 %v4685_v9, %v4684_v51  ;;  %v4786_v19 = vrot.slane %v4785_v24, 2  ;;  %v11349_v9 = vld [vmem:[#allocation6 + $0x28] sm:$0xff]  }
 0x5e9   : > { %10125 = vmatprep.subr.bf16.mxu0 %v11349_v9 }
 0x5ea   : > { %v4687_v21 = vrot.slane %v4686_v48, 1  ;;  %v4787_v11 = vadd.f32 %v4786_v19, %v4785_v24  ;;  %10126 = vmatpush3.bf16.msra.mxu0 %v11349_v9 }
 0x5ec   : > { %v4688_v22 = vadd.f32 %v4687_v21, %v4686_v48  ;;  %v4788_v61 = vrot.slane %v4787_v11, 1  ;;  %v5586_v48 = vld [vmem:[#allocation3 + $0x1] sm:$0xff] }
 0x5ed   : > { %v5618_v21 = vpack.c.bf16 %v5587_v41, %v5586_v48 }
 0x5ee   : > { %10080 = vmatmul.mubr.msk.f32.vlgmr.msra.gmra.mrb[76].mxu1 %vm4619_vm2, %v4688_v22  ;;  %v13917_v22 = vld [vmem:[#allocation6] sm:$0xff]  }
 0x5ef   : > { %10557 = vmatpush3.bf16.msra.mxu1 %v13586_v30  ;;  %10098 = vmatprep.mubr.msk.f32.mxu1 %vm11781_vm0, %v13394_v56  ;;  %v4950_v30 = vld [vmem:[%s14946_s10] sm:$0xff] }
 0x5f0   : > { %10558 = vmatprep.subr.bf16.mxu1 %v14943_v58  ;;  %v10568_v3 = vpack.c.bf16 %v4951_v25, %v4950_v30  ;;  %10131 = vmatprep.mubr.msk.bf16.mxu0 %vm4619_vm2, %v5618_v21 }
 0x5f3   : > { %10560 = vmatpush3.bf16.msra.mxu1 %v13596_v0  ;;  %v4789_v0 = vadd.f32 %v4788_v61, %v4787_v11 }
 0x5f4   : > { %10561 = vmatprep.subr.bf16.mxu1 %v14943_v58 }
 0x5f7   : > { %10563 = vmatpush3.bf16.msra.mxu1 %v13606_v45  ;;  %v4952_v45 = vld [vmem:[%s14946_s10 + $0x10] sm:$0xff] }
 0x5f8   : > { %10564 = vmatprep.subr.bf16.mxu1 %v14943_v58 }
 0x5fb   : > { %10566 = vmatpush3.bf16.msra.mxu1 %v13620_v59  ;;  %v4953_v59 = vld [vmem:[%s14946_s10 + $0x18] sm:$0xff] }
 0x5fc   : > { %10567 = vmatprep.subr.bf16.mxu1 %v14943_v58  ;;  %v10571_v34 = vpack.c.bf16 %v4953_v59, %v4952_v45 }
 0x5fe   : > { %10099 = vmatmul.mubr.msk.f32.vlgmr.msra.gmra.mrb[78].mxu1 %vm4619_vm2, %v4789_v0 }
 0x5ff   : > { %10569 = vmatpush3.bf16.msra.mxu1 %v10568_v3  ;;  %10109 = vmatprep.mubr.msk.f32.mxu1 %vm11781_vm0, %v13394_v56 }
 0x600   : > { %10570 = vmatprep.subr.bf16.mxu1 %v14943_v58 }
 0x603   : > { %10572 = vmatpush3.bf16.msra.mxu1 %v10571_v34 }
 0x604   : > { %10573 = vmatprep.subr.bf16.mxu1 %v14943_v58 }
 0x6c1   : > { %v4867_v13 = vpop.f32.mrb[76].mxu1 }
 0x6c2   : > { %v4944_v55 = vmul.f32 0.001953125, %v4867_v13  ;;  %v10081_v54 = vpop.f32.mrb[77].mxu1 }
 0x6c4   : > { %10110 = vmatmul.mubr.msk.f32.vlgmr.msra.gmra.mrb[80].mxu1 %vm1164_vm1, %v4944_v55  ;;  %v4946_v5 = vmul.f32 %v4944_v55, %v4944_v55 }
 0x6c5   : > { %10575 = vmatpush3.bf16.msra.mxu1 %v10568_v3  ;;  %10120 = vmatprep.mubr.msk.f32.mxu1 %vm11781_vm0, %v13394_v56  ;;  %v11350_v56 = vld [vmem:[#allocation6 + $0x30] sm:$0xff]  }
 0x6c6   : > { %10576 = vmatprep.subr.bf16.mxu1 %v14943_v58  ;;  %v11351_v58 = vld [vmem:[#allocation6 + $0x38] sm:$0xff]   ;;  %10127 = vmatprep.subr.bf16.mxu0 %v11350_v56 }
 0x6c7   : > { %10128 = vmatpush3.bf16.msra.mxu0 %v11350_v56 }
 0x6c8   : > { %10129 = vmatprep.subr.bf16.mxu0 %v11351_v58 }
 0x6c9   : > { %10578 = vmatpush3.bf16.msra.mxu1 %v10571_v34 }
 0x6cb   : > { %10130 = vmatpush3.bf16.msra.mxu0 %v11351_v58 }
 0x6cc   : > { %10163 = vmatprep.subr.bf16.mxu0 %v13917_v22 }
 0x6d1   : > { %v4940_v15 = vpop.f32.mrb[78].mxu1 }
 0x6d2   : > { %v4945_v47 = vmul.f32 0.001953125, %v4940_v15  ;;  %v10100_v62 = vpop.f32.mrb[79].mxu1 }
 0x6d4   : > { %v4947_v38 = vsub.f32 %v4945_v47, %v4946_v5 }
 0x6d6   : > { %v4948_v39 = vadd.f32 1e-05, %v4947_v38 }
 0x6d8   : > { %11518 = vrsqrt.f32 %v4948_v39 }
 0x6e2   : > { %v11519_v20 = vpop.eup %11518 }
 0x6e3   : > { %10121 = vmatmul.mubr.msk.f32.vlgmr.msra.gmra.mrb[82].mxu1 %vm1164_vm1, %v11519_v20 }
 0x797   : > { %v5023_v18 = vpop.f32.mrb[80].mxu1 }
 0x798   : > { %v10111_v51 = vpop.f32.mrb[81].mxu1  ;;  %v13920_v24 = vrot.slane %v5023_v18, %v14945_v52 }
 0x79a   : > { %v5104_v19 = vsub.f32 %v13659_v35, %v13920_v24  ;;  %v5105_v11 = vsub.f32 %v13661_v36, %v13920_v24  ;;  %v5106_v61 = vsub.f32 %v13663_v40, %v13920_v24  ;;  %v5107_v30 = vsub.f32 %v13665_v17, %v13920_v24 }
 0x79b   : > { %v5108_v25 = vsub.f32 %v13667_v7, %v13920_v24  ;;  %v5109_v3 = vsub.f32 %v13669_v33, %v13920_v24  ;;  %v5110_v0 = vsub.f32 %v13671_v1, %v13920_v24  ;;  %v5111_v35 = vsub.f32 %v13673_v32, %v13920_v24 }
 0x79c   : > { %v5112_v36 = vsub.f32 %v13675_v44, %v13920_v24  ;;  %v5113_v40 = vsub.f32 %v13677_v53, %v13920_v24  ;;  %v5114_v17 = vsub.f32 %v13679_v43, %v13920_v24  ;;  %v5115_v7 = vsub.f32 %v13681_v31, %v13920_v24 }
 0x79d   : > { %v5116_v33 = vsub.f32 %v13683_v2, %v13920_v24  ;;  %v5117_v1 = vsub.f32 %v13685_v28, %v13920_v24  ;;  %v5118_v32 = vsub.f32 %v13687_v23, %v13920_v24  ;;  %v5119_v44 = vsub.f32 %v13689_v16, %v13920_v24 }
 0x79e   : > { %v5120_v53 = vsub.f32 %v13691_v42, %v13920_v24  ;;  %v5121_v43 = vsub.f32 %v13693_v10, %v13920_v24  ;;  %v5122_v31 = vsub.f32 %v13695_v37, %v13920_v24  ;;  %v5123_v2 = vsub.f32 %v13697_v6, %v13920_v24 }
 0x79f   : > { %v5124_v28 = vsub.f32 %v13699_v27, %v13920_v24  ;;  %v5125_v23 = vsub.f32 %v13701_v46, %v13920_v24  ;;  %v5126_v16 = vsub.f32 %v13703_v29, %v13920_v24  ;;  %v5127_v42 = vsub.f32 %v13705_v26, %v13920_v24 }
 0x7a0   : > { %v5128_v10 = vsub.f32 %v13707_v14, %v13920_v24  ;;  %v5129_v37 = vsub.f32 %v13709_v8, %v13920_v24  ;;  %v5130_v6 = vsub.f32 %v13711_v57, %v13920_v24  ;;  %v5131_v27 = vsub.f32 %v13713_v4, %v13920_v24 }
 0x7a1   : > { %v5132_v29 = vsub.f32 %v13715_v50, %v13920_v24  ;;  %v5133_v26 = vsub.f32 %v13717_v49, %v13920_v24  ;;  %v5134_v14 = vsub.f32 %v13719_v60, %v13920_v24  ;;  %v5135_v8 = vsub.f32 %v13721_v63, %v13920_v24 }
 0x7b6   : > { %v5096_v45 = vpop.f32.mrb[82].mxu1 }
 0x7b7   : > { %v5139_v46 = vrot.slane %v5096_v45, %v14945_v52  ;;  %v10122_v59 = vpop.f32.mrb[83].mxu1 }
 0x7b9   : > { %v5140_v34 = vmul.f32 %v5139_v46, %v5104_v19  ;;  %v5141_v57 = vmul.f32 %v5139_v46, %v5105_v11  ;;  %v5142_v13 = vmul.f32 %v5139_v46, %v5106_v61  ;;  %v5143_v55 = vmul.f32 %v5139_v46, %v5107_v30 }
 0x7ba   : > { %v5144_v4 = vmul.f32 %v5139_v46, %v5108_v25  ;;  %v5145_v54 = vmul.f32 %v5139_v46, %v5109_v3  ;;  %v5146_v52 = vmul.f32 %v5139_v46, %v5110_v0  ;;  %v5147_v15 = vmul.f32 %v5139_v46, %v5111_v35  ;;  %v8783_v25 = vld [vmem:[%s14947_s17] ss:$0 sm:$0xff] }
 0x7bb   : > { %v5148_v5 = vmul.f32 %v5139_v46, %v5112_v36  ;;  %v5149_v47 = vmul.f32 %v5139_v46, %v5113_v40  ;;  %v5150_v50 = vmul.f32 %v5139_v46, %v5114_v17  ;;  %v5151_v62 = vmul.f32 %v5139_v46, %v5115_v7  ;;  %v13994_v40 = vld [vmem:[%s14948_s27] ss:$0 sm:$0xff] }
 0x7bc   : > { %v5152_v38 = vmul.f32 %v5139_v46, %v5116_v33  ;;  %v5153_v49 = vmul.f32 %v5139_v46, %v5117_v1  ;;  %v5154_v39 = vmul.f32 %v5139_v46, %v5118_v32  ;;  %v5155_v20 = vmul.f32 %v5139_v46, %v5119_v44 }
 0x7bd   : > { %v5156_v60 = vmul.f32 %v5139_v46, %v5120_v53  ;;  %v5157_v12 = vmul.f32 %v5139_v46, %v5121_v43  ;;  %v5158_v18 = vmul.f32 %v5139_v46, %v5122_v31  ;;  %v5159_v63 = vmul.f32 %v5139_v46, %v5123_v2 }
 0x7be   : > { %v5160_v51 = vmul.f32 %v5139_v46, %v5124_v28  ;;  %v5161_v9 = vmul.f32 %v5139_v46, %v5125_v23  ;;  %v5162_v56 = vmul.f32 %v5139_v46, %v5126_v16  ;;  %v5163_v58 = vmul.f32 %v5139_v46, %v5127_v42 }
 0x7bf   : > { %v5164_v48 = vmul.f32 %v5139_v46, %v5128_v10  ;;  %v5165_v41 = vmul.f32 %v5139_v46, %v5129_v37  ;;  %v5166_v21 = vmul.f32 %v5139_v46, %v5130_v6  ;;  %v5167_v24 = vmul.f32 %v5139_v46, %v5131_v27 }
 0x7c0   : > { %v5168_v19 = vmul.f32 %v5139_v46, %v5132_v29  ;;  %v5169_v11 = vmul.f32 %v5139_v46, %v5133_v26  ;;  %v5170_v61 = vmul.f32 %v5139_v46, %v5134_v14  ;;  %v5171_v30 = vmul.f32 %v5139_v46, %v5135_v8 }
 0x7c1   : > { %v5179_v3 = vmul.f32 %v8783_v25, %v5140_v34  ;;  %v5180_v0 = vmul.f32 %v8783_v25, %v5141_v57  ;;  %v5181_v35 = vmul.f32 %v8783_v25, %v5142_v13  ;;  %v5182_v36 = vmul.f32 %v8783_v25, %v5143_v55 }
 0x7c2   : > { %v5183_v17 = vmul.f32 %v8783_v25, %v5144_v4  ;;  %v5184_v7 = vmul.f32 %v8783_v25, %v5145_v54  ;;  %v5185_v33 = vmul.f32 %v8783_v25, %v5146_v52  ;;  %v5186_v1 = vmul.f32 %v8783_v25, %v5147_v15 }
 0x7c3   : > { %v5187_v32 = vmul.f32 %v8783_v25, %v5148_v5  ;;  %v5188_v44 = vmul.f32 %v8783_v25, %v5149_v47  ;;  %v5189_v53 = vmul.f32 %v8783_v25, %v5150_v50  ;;  %v5190_v43 = vmul.f32 %v8783_v25, %v5151_v62 }
 0x7c4   : > { %v5191_v31 = vmul.f32 %v8783_v25, %v5152_v38  ;;  %v5192_v2 = vmul.f32 %v8783_v25, %v5153_v49  ;;  %v5193_v28 = vmul.f32 %v8783_v25, %v5154_v39  ;;  %v5194_v23 = vmul.f32 %v8783_v25, %v5155_v20 }
 0x7c5   : > { %v5195_v16 = vmul.f32 %v8783_v25, %v5156_v60  ;;  %v13997_v42 = vadd.f32 %v13994_v40, %v5179_v3  ;;  %v14000_v10 = vadd.f32 %v13994_v40, %v5180_v0  ;;  %v14003_v45 = vadd.f32 %v13994_v40, %v5181_v35 }
 0x7c6   : > { %v5196_v37 = vmul.f32 %v8783_v25, %v5157_v12  ;;  %v5197_v6 = vmul.f32 %v8783_v25, %v5158_v18  ;;  %v5198_v27 = vmul.f32 %v8783_v25, %v5159_v63  ;;  %v14006_v46 = vadd.f32 %v13994_v40, %v5182_v36 }
 0x7c7   : > { %v14008_v59 = vmul.f32 %v8783_v25, %v5160_v51  ;;  %v14010_v29 = vmul.f32 %v8783_v25, %v5161_v9  ;;  %v14012_v26 = vmul.f32 %v8783_v25, %v5162_v56  ;;  %v14015_v14 = vadd.f32 %v13994_v40, %v5183_v17 }
 0x7c8   : > { %v14017_v8 = vmul.f32 %v8783_v25, %v5163_v58  ;;  %v14019_v34 = vmul.f32 %v8783_v25, %v5164_v48  ;;  %v14022_v57 = vadd.f32 %v13994_v40, %v5184_v7  ;;  %v14025_v13 = vadd.f32 %v13994_v40, %v5185_v33 }
 0x7c9   : > { %v14027_v55 = vmul.f32 %v8783_v25, %v5165_v41  ;;  %v5250_v4 = vsub.f32 0.0, %v13997_v42  ;;  %v5251_v54 = vsub.f32 0.0, %v14000_v10  ;;  %v5252_v52 = vsub.f32 0.0, %v14003_v45 }
 0x7ca   : > { %v14032_v15 = vmul.f32 %v8783_v25, %v5166_v21  ;;  %v14034_v5 = vmul.f32 %v8783_v25, %v5167_v24  ;;  %v14037_v47 = vadd.f32 %v13994_v40, %v5186_v1  ;;  %v5253_v50 = vsub.f32 0.0, %v14006_v46 }
 0x7cb   : > { %v14040_v62 = vmul.f32 %v8783_v25, %v5168_v19  ;;  %v14042_v38 = vmul.f32 %v8783_v25, %v5169_v11  ;;  %v14045_v49 = vadd.f32 %v13994_v40, %v5187_v32  ;;  %v5254_v39 = vsub.f32 0.0, %v14015_v14 }
 0x7cc   : > { %v14048_v20 = vmul.f32 %v8783_v25, %v5170_v61  ;;  %v14051_v60 = vadd.f32 %v13994_v40, %v5188_v44  ;;  %v5255_v12 = vsub.f32 0.0, %v14022_v57  ;;  %v5256_v18 = vsub.f32 0.0, %v14025_v13 }
 0x7cd   : > { %v14056_v63 = vadd.f32 %v13994_v40, %v5189_v53  ;;  %v5282_v51 = vmul.f32 1.442695, %v5250_v4  ;;  %v5284_v9 = vmul.f32 1.442695, %v5251_v54  ;;  %v5286_v56 = vmul.f32 1.442695, %v5252_v52 }
 0x7ce   : > { %v14058_v58 = vmul.f32 %v8783_v25, %v5171_v30  ;;  %v14061_v48 = vadd.f32 %v13994_v40, %v5190_v43  ;;  %v5257_v41 = vsub.f32 0.0, %v14037_v47  ;;  %v5288_v21 = vmul.f32 1.442695, %v5253_v50 }
 0x7cf   : > { %v14065_v24 = vadd.f32 %v13994_v40, %v5191_v31  ;;  %v5258_v19 = vsub.f32 0.0, %v14045_v49  ;;  %11520 = vpow2.f32 %v5282_v51  ;;  %v5290_v11 = vmul.f32 1.442695, %v5254_v39 }
 0x7d0   : > { %v14069_v61 = vadd.f32 %v13994_v40, %v5192_v2  ;;  %v5259_v3 = vsub.f32 0.0, %v14051_v60  ;;  %11522 = vpow2.f32 %v5284_v9  ;;  %v5292_v30 = vmul.f32 1.442695, %v5255_v12 }
 0x7d1   : > { %v14073_v25 = vadd.f32 %v13994_v40, %v5193_v28  ;;  %v5260_v0 = vsub.f32 0.0, %v14056_v63  ;;  %11524 = vpow2.f32 %v5286_v56  ;;  %v5294_v35 = vmul.f32 1.442695, %v5256_v18 }
 0x7d2   : > { %v14077_v36 = vadd.f32 %v13994_v40, %v5194_v23  ;;  %v5261_v17 = vsub.f32 0.0, %v14061_v48  ;;  %11526 = vpow2.f32 %v5288_v21  ;;  %v5296_v7 = vmul.f32 1.442695, %v5257_v41 }
 0x7d3   : > { %v14081_v33 = vadd.f32 %v13994_v40, %v5195_v16  ;;  %v5262_v1 = vsub.f32 0.0, %v14065_v24  ;;  %11528 = vpow2.f32 %v5290_v11  ;;  %v5298_v32 = vmul.f32 1.442695, %v5258_v19 }
 0x7d4   : > { %v14085_v44 = vadd.f32 %v13994_v40, %v5196_v37  ;;  %v5263_v53 = vsub.f32 0.0, %v14069_v61  ;;  %11530 = vpow2.f32 %v5292_v30  ;;  %v5300_v43 = vmul.f32 1.442695, %v5259_v3 }
 0x7d5   : > { %v14089_v31 = vadd.f32 %v13994_v40, %v5197_v6  ;;  %v5264_v2 = vsub.f32 0.0, %v14073_v25  ;;  %11532 = vpow2.f32 %v5294_v35  ;;  %v5302_v28 = vmul.f32 1.442695, %v5260_v0 }
 0x7d6   : > { %v14093_v23 = vadd.f32 %v13994_v40, %v5198_v27  ;;  %v5265_v16 = vsub.f32 0.0, %v14077_v36  ;;  %11534 = vpow2.f32 %v5296_v7  ;;  %v5304_v4 = vmul.f32 1.442695, %v5261_v17 }
 0x7d7   : > { %v14098_v37 = vadd.f32 %v13994_v40, %v14008_v59  ;;  %v5266_v54 = vsub.f32 0.0, %v14081_v33  ;;  %11536 = vpow2.f32 %v5298_v32  ;;  %v5306_v6 = vmul.f32 1.442695, %v5262_v1 }
 0x7d8   : > { %v14103_v52 = vadd.f32 %v13994_v40, %v14010_v29  ;;  %v5267_v50 = vsub.f32 0.0, %v14085_v44  ;;  %11538 = vpow2.f32 %v5300_v43  ;;  %v5308_v27 = vmul.f32 1.442695, %v5263_v53 }
 0x7d9   : > { %v14106_v39 = vpop.eup %11520  ;;  %v14110_v12 = vadd.f32 %v13994_v40, %v14012_v26  ;;  %v5268_v59 = vsub.f32 0.0, %v14089_v31  ;;  %11540 = vpow2.f32 %v5302_v28  ;;  %v5310_v18 = vmul.f32 1.442695, %v5264_v2 }
 0x7da   : > { %v14113_v51 = vpop.eup %11522  ;;  %v14117_v29 = vadd.f32 %v13994_v40, %v14017_v8  ;;  %v5269_v9 = vsub.f32 0.0, %v14093_v23  ;;  %11542 = vpow2.f32 %v5304_v4  ;;  %v5312_v56 = vmul.f32 1.442695, %v5265_v16 }
 0x7db   : > { %v14120_v41 = vpop.eup %11524  ;;  %v14124_v26 = vadd.f32 %v13994_v40, %v14019_v34  ;;  %v5270_v21 = vsub.f32 0.0, %v14098_v37  ;;  %11544 = vpow2.f32 %v5306_v6  ;;  %v5314_v19 = vmul.f32 1.442695, %v5266_v54 }
 0x7dc   : > { %v14127_v11 = vpop.eup %11526  ;;  %v14131_v8 = vadd.f32 %v13994_v40, %v14027_v55  ;;  %v5271_v3 = vsub.f32 0.0, %v14103_v52  ;;  %11546 = vpow2.f32 %v5308_v27  ;;  %v5316_v30 = vmul.f32 1.442695, %v5267_v50 }
 0x7dd   : > { %v14134_v0 = vpop.eup %11528  ;;  %v14138_v34 = vadd.f32 %v13994_v40, %v14032_v15  ;;  %v5272_v35 = vsub.f32 0.0, %v14110_v12  ;;  %11548 = vpow2.f32 %v5310_v18  ;;  %v5318_v17 = vmul.f32 1.442695, %v5268_v59 }
 0x7de   : > { %v14141_v7 = vpop.eup %11530  ;;  %v14145_v55 = vadd.f32 %v13994_v40, %v14034_v5  ;;  %v5273_v1 = vsub.f32 0.0, %v14117_v29  ;;  %11550 = vpow2.f32 %v5312_v56  ;;  %v5320_v32 = vmul.f32 1.442695, %v5269_v9 }
 0x7df   : > { %v14148_v53 = vpop.eup %11532  ;;  %v14152_v15 = vadd.f32 %v13994_v40, %v14040_v62  ;;  %v5274_v43 = vsub.f32 0.0, %v14124_v26  ;;  %11552 = vpow2.f32 %v5314_v19  ;;  %v5322_v2 = vmul.f32 1.442695, %v5270_v21 }
 0x7e0   : > { %14949 = vst [vmem:[#allocation44_spill] sm:$0xff] %v14145_v55  ;;  %v14155_v28 = vpop.eup %11534  ;;  %v14159_v5 = vadd.f32 %v13994_v40, %v14042_v38  ;;  %v5275_v16 = vsub.f32 0.0, %v14131_v8  ;;  %11554 = vpow2.f32 %v5316_v30  ;;  %v5324_v4 = vmul.f32 1.442695, %v5271_v3 }
 0x7e1   : > { %14950 = vst [vmem:[#allocation45_spill] sm:$0xff] %v14152_v15  ;;  %v11537_v54 = vpop.eup %11536  ;;  %v14164_v6 = vadd.f32 %v13994_v40, %v14048_v20  ;;  %v5276_v62 = vsub.f32 0.0, %v14138_v34  ;;  %11556 = vpow2.f32 %v5318_v17  ;;  %v5326_v50 = vmul.f32 1.442695, %v5272_v35 }
 0x7e2   : > { %14951 = vst [vmem:[#allocation46_spill] sm:$0xff] %v14159_v5  ;;  %v11539_v27 = vpop.eup %11538  ;;  %v14169_v59 = vadd.f32 %v13994_v40, %v14058_v58  ;;  %v5277_v38 = vsub.f32 0.0, %v14145_v55  ;;  %11558 = vpow2.f32 %v5320_v32  ;;  %v5328_v18 = vmul.f32 1.442695, %v5273_v1 }
 0x7e3   : > { %14952 = vst [vmem:[#allocation47_spill] sm:$0xff] %v14164_v6  ;;  %v11541_v9 = vpop.eup %11540  ;;  %v5278_v56 = vsub.f32 0.0, %v14152_v15  ;;  %11560 = vpow2.f32 %v5322_v2  ;;  %v5330_v21 = vmul.f32 1.442695, %v5274_v43  ;;  %v5279_v19 = vsub.f32 0.0, %v14159_v5 }
 0x7e4   : > { %v11543_v20 = vpop.eup %11542  ;;  %11562 = vpow2.f32 %v5324_v4  ;;  %v5332_v3 = vmul.f32 1.442695, %v5275_v16  ;;  %v5280_v35 = vsub.f32 0.0, %v14164_v6  ;;  %v5334_v40 = vmul.f32 1.442695, %v5276_v62 }
 0x7e5   : > { %v11545_v30 = vpop.eup %11544  ;;  %11564 = vpow2.f32 %v5326_v50  ;;  %v5281_v17 = vsub.f32 0.0, %v14169_v59  ;;  %v5336_v1 = vmul.f32 1.442695, %v5277_v38  ;;  %v5338_v15 = vmul.f32 1.442695, %v5278_v56 }
 0x7e6   : > { %v11547_v58 = vpop.eup %11546  ;;  %11566 = vpow2.f32 %v5328_v18  ;;  %v5340_v43 = vmul.f32 1.442695, %v5279_v19  ;;  %v5342_v4 = vmul.f32 1.442695, %v5280_v35  ;;  %v5346_v62 = vadd.f32 1.0, %v14106_v39 }
 0x7e7   : > { %v11549_v32 = vpop.eup %11548  ;;  %11568 = vpow2.f32 %v5330_v21  ;;  %v5344_v5 = vmul.f32 1.442695, %v5281_v17  ;;  %v5347_v38 = vadd.f32 1.0, %v14113_v51  ;;  %v5348_v56 = vadd.f32 1.0, %v14120_v41 }
 0x7e8   : > { %v11551_v2 = vpop.eup %11550  ;;  %11570 = vpow2.f32 %v5332_v3  ;;  %v5349_v19 = vadd.f32 1.0, %v14127_v11  ;;  %v5350_v35 = vadd.f32 1.0, %v14134_v0  ;;  %v5351_v39 = vadd.f32 1.0, %v14141_v7 }
 0x7e9   : > { %v11553_v55 = vpop.eup %11552  ;;  %11572 = vpow2.f32 %v5334_v40  ;;  %v5352_v40 = vadd.f32 1.0, %v14148_v53  ;;  %v5354_v17 = vadd.f32 1.0, %v11537_v54  ;;  %v5357_v53 = vadd.f32 1.0, %v11543_v20 }
 0x7ea   : > { %v11555_v16 = vpop.eup %11554  ;;  %11574 = vpow2.f32 %v5336_v1  ;;  %v5355_v1 = vadd.f32 1.0, %v11539_v27  ;;  %v5359_v54 = vadd.f32 1.0, %v11547_v58 }
 0x7eb   : > { %v11557_v6 = vpop.eup %11556  ;;  %11576 = vpow2.f32 %v5338_v15 }
 0x7ec   : > { %v11559_v50 = vpop.eup %11558  ;;  %11578 = vpow2.f32 %v5340_v43  ;;  %v5356_v43 = vadd.f32 1.0, %v11541_v9 }
 0x7ed   : > { %v11561_v18 = vpop.eup %11560  ;;  %11580 = vpow2.f32 %v5342_v4 }
 0x7ee   : > { %v14179_v21 = vpop.eup %11562  ;;  %11582 = vpow2.f32 %v5344_v5  ;;  %v5353_v5 = vadd.f32 1.0, %v14155_v28  ;;  %v5358_v28 = vadd.f32 1.0, %v11545_v30  ;;  %v5363_v30 = vadd.f32 1.0, %v11555_v16 }
 0x7ef   : > { %v14182_v3 = vpop.eup %11564  ;;  %11584 = vrcp.f32 %v5346_v62  ;;  %v5366_v16 = vadd.f32 1.0, %v11561_v18 }
 0x7f0   : > { %v14185_v15 = vpop.eup %11566  ;;  %11586 = vrcp.f32 %v5347_v38 }
 0x7f1   : > { %v14188_v51 = vpop.eup %11568  ;;  %11588 = vrcp.f32 %v5348_v56 }
 0x7f2   : > { %v14191_v41 = vpop.eup %11570  ;;  %11590 = vrcp.f32 %v5349_v19  ;;  %v5360_v19 = vadd.f32 1.0, %v11549_v32  ;;  %v5364_v32 = vadd.f32 1.0, %v11557_v6 }
 0x7f3   : > { %v14194_v11 = vpop.eup %11572  ;;  %11592 = vrcp.f32 %v5350_v35  ;;  %v5361_v35 = vadd.f32 1.0, %v11551_v2 }
 0x7f4   : > { %v14196_v0 = vpop.eup %11574  ;;  %11594 = vrcp.f32 %v5351_v39 }
 0x7f5   : > { %v14198_v7 = vpop.eup %11576  ;;  %11596 = vrcp.f32 %v5352_v40  ;;  %v5362_v40 = vadd.f32 1.0, %v11553_v55 }
 0x7f6   : > { %v14200_v4 = vpop.eup %11578  ;;  %11598 = vrcp.f32 %v5353_v5 }
 0x7f7   : > { %v14202_v62 = vpop.eup %11580  ;;  %11600 = vrcp.f32 %v5354_v17 }
 0x7f8   : > { %v14204_v38 = vpop.eup %11582  ;;  %11602 = vrcp.f32 %v5355_v1  ;;  %v5365_v1 = vadd.f32 1.0, %v11559_v50 }
 0x7f9   : > { %v11585_v56 = vpop.eup %11584  ;;  %11604 = vrcp.f32 %v5356_v43  ;;  %v5367_v43 = vadd.f32 1.0, %v14179_v21 }
 0x7fa   : > { %v11587_v27 = vpop.eup %11586  ;;  %11606 = vrcp.f32 %v5357_v53  ;;  %v5410_v9 = vmul.f32 %v11585_v56, %v13997_v42  ;;  %v5371_v56 = vadd.f32 1.0, %v14191_v41  ;;  %v5373_v41 = vadd.f32 1.0, %v14196_v0 }
 0x7fb   : > { %v11589_v39 = vpop.eup %11588  ;;  %11608 = vrcp.f32 %v5358_v28  ;;  %v5411_v20 = vmul.f32 %v11587_v27, %v14000_v10  ;;  %v5372_v27 = vadd.f32 1.0, %v14194_v11  ;;  %v5374_v11 = vadd.f32 1.0, %v14198_v7 }
 0x7fc   : > { %v11591_v5 = vpop.eup %11590  ;;  %11610 = vrcp.f32 %v5359_v54  ;;  %v5412_v17 = vmul.f32 %v11589_v39, %v14003_v45  ;;  %5498 = vst.msk [vmem:[#allocation3 + $0x19] sm:$0xff] %vm4619_vm2, %v5410_v9  ;;  %v11353_v9 = vld [vmem:[#allocation6 + $0x8] sm:$0xff]  }
 0x7fd   : > { %v11593_v58 = vpop.eup %11592  ;;  %11612 = vrcp.f32 %v5360_v19  ;;  %v5413_v2 = vmul.f32 %v11591_v5, %v14006_v46  ;;  %5499 = vst.msk [vmem:[#allocation3 + $0x21] sm:$0xff] %vm4619_vm2, %v5411_v20 }
 0x7fe   : > { %v11595_v42 = vpop.eup %11594  ;;  %11614 = vrcp.f32 %v5361_v35  ;;  %v5414_v55 = vmul.f32 %v11593_v58, %v14015_v14  ;;  %5500 = vst.msk [vmem:[#allocation3 + $0x31] sm:$0xff] %vm4619_vm2, %v5412_v17  ;;  %v5368_v14 = vadd.f32 1.0, %v14182_v3 }
 0x7ff   : > { %v11597_v10 = vpop.eup %11596  ;;  %11616 = vrcp.f32 %v5362_v40  ;;  %v5415_v45 = vmul.f32 %v11595_v42, %v14022_v57  ;;  %5501 = vst.msk [vmem:[#allocation3 + $0x39] sm:$0xff] %vm4619_vm2, %v5413_v2  ;;  %v5369_v57 = vadd.f32 1.0, %v14185_v15 }
 0x800   : > { %v11599_v6 = vpop.eup %11598  ;;  %11618 = vrcp.f32 %v5363_v30  ;;  %v5416_v46 = vmul.f32 %v11597_v10, %v14025_v13  ;;  %5502 = vst.msk [vmem:[#allocation3 + $0x49] sm:$0xff] %vm4619_vm2, %v5414_v55  ;;  %v5370_v13 = vadd.f32 1.0, %v14188_v51  ;;  %v5375_v30 = vadd.f32 1.0, %v14200_v4  ;;  %v11354_v4 = vld [vmem:[#allocation6 + $0x10] sm:$0xff]  }
 0x801   : > { %v11601_v50 = vpop.eup %11600  ;;  %11620 = vrcp.f32 %v5364_v32  ;;  %v5417_v53 = vmul.f32 %v11599_v6, %v14037_v47  ;;  %5503 = vst.msk [vmem:[#allocation3 + $0x51] sm:$0xff] %vm4619_vm2, %v5415_v45 }
 0x802   : > { %v11603_v18 = vpop.eup %11602  ;;  %11622 = vrcp.f32 %v5365_v1  ;;  %v5418_v28 = vmul.f32 %v11601_v50, %v14045_v49  ;;  %5504 = vst.msk [vmem:[#allocation3 + $0x61] sm:$0xff] %vm4619_vm2, %v5416_v46 }
 0x803   : > { %v11605_v21 = vpop.eup %11604  ;;  %11624 = vrcp.f32 %v5366_v16  ;;  %v5419_v54 = vmul.f32 %v11603_v18, %v14051_v60  ;;  %5505 = vst.msk [vmem:[#allocation3 + $0x69] sm:$0xff] %vm4619_vm2, %v5417_v53  ;;  %v5588_v3 = vld [vmem:[#allocation3 + $0x19] sm:$0xff] }
 0x804   : > { %v11607_v47 = vpop.eup %11606  ;;  %11626 = vrcp.f32 %v5367_v43  ;;  %v5420_v15 = vmul.f32 %v11605_v21, %v14056_v63  ;;  %5506 = vst.msk [vmem:[#allocation3 + $0x79] sm:$0xff] %vm4619_vm2, %v5418_v28  ;;  %v5589_v49 = vld [vmem:[#allocation3 + $0x21] sm:$0xff] }
 0x805   : > { %v11609_v19 = vpop.eup %11608  ;;  %11628 = vrcp.f32 %v5368_v14  ;;  %v5421_v51 = vmul.f32 %v11607_v47, %v14061_v48  ;;  %5507 = vst.msk [vmem:[#allocation3 + $0x81] sm:$0xff] %vm4619_vm2, %v5419_v54  ;;  %v14234_v60 = vpack.c.bf16 %v5589_v49, %v5588_v3  ;;  %v5590_v35 = vld [vmem:[#allocation3 + $0x31] sm:$0xff]  ;;  %v14954_v49 = vld [vmem:[#allocation45_spill] sm:$0xff] }
 0x806   : > { %v11611_v39 = vpop.eup %11610  ;;  %11630 = vrcp.f32 %v5369_v57  ;;  %v5422_v63 = vmul.f32 %v11609_v19, %v14065_v24  ;;  %5508 = vst.msk [vmem:[#allocation3 + $0x91] sm:$0xff] %vm4619_vm2, %v5420_v15  ;;  %v5591_v40 = vld [vmem:[#allocation3 + $0x39] sm:$0xff] }
 0x807   : > { %v11613_v20 = vpop.eup %11612  ;;  %11632 = vrcp.f32 %v5370_v13  ;;  %v5423_v48 = vmul.f32 %v11611_v39, %v14069_v61  ;;  %5509 = vst.msk [vmem:[#allocation3 + $0x99] sm:$0xff] %vm4619_vm2, %v5421_v51  ;;  %10132 = vmatmul.mubr.msk.bf16.vlgmr.msra.gmra.mrb[32].mxu0 %vm4619_vm2, %v14234_v60  ;;  %v14244_v5 = vpack.c.bf16 %v5591_v40, %v5590_v35  ;;  %v5376_v61 = vadd.f32 1.0, %v14202_v62  ;;  %v14955_v51 = vld [vmem:[#allocation46_spill] sm:$0xff]  ;;  %v14956_v39 = vld [vmem:[#allocation47_spill] sm:$0xff] }
 0x808   : > { %v11615_v0 = vpop.eup %11614  ;;  %11634 = vrcp.f32 %v5371_v56  ;;  %v5424_v24 = vmul.f32 %v11613_v20, %v14073_v25  ;;  %5510 = vst.msk [vmem:[#allocation3 + $0xa9] sm:$0xff] %vm4619_vm2, %v5422_v63  ;;  %10164 = vmatpush3.bf16.msra.mxu0 %v13917_v22  ;;  %v5377_v25 = vadd.f32 1.0, %v14204_v38  ;;  %v5592_v22 = vld [vmem:[#allocation3 + $0x49] sm:$0xff]  ;;  %v5593_v62 = vld [vmem:[#allocation3 + $0x51] sm:$0xff] }
 0x809   : > { %v11617_v7 = vpop.eup %11616  ;;  %11636 = vrcp.f32 %v5372_v27  ;;  %v5425_v17 = vmul.f32 %v11615_v0, %v14077_v36  ;;  %5511 = vst.msk [vmem:[#allocation3 + $0xb1] sm:$0xff] %vm4619_vm2, %v5423_v48  ;;  %10135 = vmatprep.mubr.msk.bf16.mxu0 %vm4619_vm2, %v14244_v5  ;;  %10165 = vmatprep.subr.bf16.mxu0 %v11353_v9  ;;  %v5594_v42 = vld [vmem:[#allocation3 + $0x61] sm:$0xff]  ;;  %v14264_v16 = vpack.c.bf16 %v5593_v62, %v5592_v22  ;;  %v14953_v56 = vld [vmem:[#allocation44_spill] sm:$0xff] }
 0x80a   : > { %v11619_v58 = vpop.eup %11618  ;;  %11638 = vrcp.f32 %v5373_v41  ;;  %v5426_v32 = vmul.f32 %v11617_v7, %v14081_v33  ;;  %5512 = vst.msk [vmem:[#allocation3 + $0xc1] sm:$0xff] %vm4619_vm2, %v5424_v24  ;;  %v5595_v1 = vld [vmem:[#allocation3 + $0x69] sm:$0xff] }
 0x80b   : > { %v11621_v2 = vpop.eup %11620  ;;  %11640 = vrcp.f32 %v5374_v11  ;;  %v5427_v36 = vmul.f32 %v11619_v58, %v14085_v44  ;;  %5513 = vst.msk [vmem:[#allocation3 + $0xc9] sm:$0xff] %vm4619_vm2, %v5425_v17  ;;  %v11355_v44 = vld [vmem:[#allocation6 + $0x18] sm:$0xff]  }
 0x80c   : > { %v11623_v55 = vpop.eup %11622  ;;  %11642 = vrcp.f32 %v5375_v30  ;;  %v5428_v10 = vmul.f32 %v11621_v2, %v14089_v31  ;;  %5514 = vst.msk [vmem:[#allocation3 + $0xd9] sm:$0xff] %vm4619_vm2, %v5426_v32  ;;  %10166 = vmatpush3.bf16.msra.mxu0 %v11353_v9  ;;  %v14268_v31 = vpack.c.bf16 %v5595_v1, %v5594_v42  ;;  %v5597_v57 = vld [vmem:[#allocation3 + $0x81] sm:$0xff] }
 0x80d   : > { %v11625_v33 = vpop.eup %11624  ;;  %11644 = vrcp.f32 %v5376_v61  ;;  %v5429_v38 = vmul.f32 %v11623_v55, %v14093_v23  ;;  %5515 = vst.msk [vmem:[#allocation3 + $0xe1] sm:$0xff] %vm4619_vm2, %v5427_v36  ;;  %10167 = vmatprep.subr.bf16.mxu0 %v11354_v4  ;;  %v5598_v13 = vld [vmem:[#allocation3 + $0x91] sm:$0xff] }
 0x80e   : > { %v11627_v45 = vpop.eup %11626  ;;  %11646 = vrcp.f32 %v5377_v25  ;;  %v5430_v6 = vmul.f32 %v11625_v33, %v14098_v37  ;;  %5516 = vst.msk [vmem:[#allocation3 + $0xf1] sm:$0xff] %vm4619_vm2, %v5428_v10  ;;  %v5599_v54 = vld [vmem:[#allocation3 + $0x99] sm:$0xff] }
 0x80f   : > { %v11629_v43 = vpop.eup %11628  ;;  %v5431_v46 = vmul.f32 %v11627_v45, %v14103_v52  ;;  %5517 = vst.msk [vmem:[#allocation3 + $0xf9] sm:$0xff] %vm4619_vm2, %v5429_v38  ;;  %10136 = vmatmul.mubr.msk.bf16.gmra.mrb[36].mxu0 %vm4619_vm2, %v14264_v16  ;;  %v14280_v52 = vld [vmem:[#allocation6 + $0x40] sm:$0xff]   ;;  %v14295_v27 = vpack.c.bf16 %v5599_v54, %v5598_v13  ;;  %v5530_v38 = vld [vmem:[#allocation3] sm:$0xff]  ;;  %v5539_v54 = vld [vmem:[#allocation3 + $0x68] sm:$0xff] }
 0x810   : > { %v11631_v23 = vpop.eup %11630  ;;  %v5432_v50 = vmul.f32 %v11629_v43, %v14110_v12  ;;  %5518 = vst.msk [vmem:[#allocation3 + $0x109] sm:$0xff] %vm4619_vm2, %v5430_v6  ;;  %10139 = vmatprep.mubr.msk.bf16.mxu0 %vm4619_vm2, %v14268_v31  ;;  %10168 = vmatpush3.bf16.msra.mxu0 %v11354_v4  ;;  %v5596_v12 = vld [vmem:[#allocation3 + $0x79] sm:$0xff]  ;;  %v5600_v40 = vld [vmem:[#allocation3 + $0xa9] sm:$0xff]  ;;  %v5601_v20 = vld [vmem:[#allocation3 + $0xb1] sm:$0xff] }
 0x811   : > { %v11633_v37 = vpop.eup %11632  ;;  %v5433_v14 = vmul.f32 %v11631_v23, %v14117_v29  ;;  %5519 = vst.msk [vmem:[#allocation3 + $0x111] sm:$0xff] %vm4619_vm2, %v5431_v46  ;;  %10169 = vmatprep.subr.bf16.mxu0 %v11355_v44  ;;  %v14290_v15 = vpack.c.bf16 %v5597_v57, %v5596_v12  ;;  %v5602_v11 = vld [vmem:[#allocation3 + $0xc1] sm:$0xff]  ;;  %v14309_v0 = vpack.c.bf16 %v5601_v20, %v5600_v40  ;;  %v5532_v23 = vld [vmem:[#allocation3 + $0x18] sm:$0xff] }
 0x812   : > { %v11635_v53 = vpop.eup %11634  ;;  %v5434_v18 = vmul.f32 %v11633_v37, %v14124_v26  ;;  %5520 = vst.msk [vmem:[#allocation3 + $0x121] sm:$0xff] %vm4619_vm2, %v5432_v50  ;;  %v5603_v48 = vld [vmem:[#allocation3 + $0xc9] sm:$0xff]  ;;  %v5533_v50 = vld [vmem:[#allocation3 + $0x20] sm:$0xff] }
 0x813   : > { %v11637_v28 = vpop.eup %11636  ;;  %v5435_v21 = vmul.f32 %v11635_v53, %v14131_v8  ;;  %5521 = vst.msk [vmem:[#allocation3 + $0x129] sm:$0xff] %vm4619_vm2, %v5433_v14  ;;  %v14311_v30 = vpack.c.bf16 %v5603_v48, %v5602_v11  ;;  %v5534_v37 = vld [vmem:[#allocation3 + $0x30] sm:$0xff]  ;;  %v5535_v14 = vld [vmem:[#allocation3 + $0x38] sm:$0xff]  ;;  %v14346_v53 = vpack.c.bf16 %v5533_v50, %v5532_v23  ;;  %v11358_v57 = vld [vmem:[#allocation6 + $0x50] sm:$0xff]  }
 0x814   : > { %v11639_v29 = vpop.eup %11638  ;;  %v5436_v3 = vmul.f32 %v11637_v28, %v14138_v34  ;;  %5522 = vst.msk [vmem:[#allocation3 + $0x139] sm:$0xff] %vm4619_vm2, %v5434_v18  ;;  %10170 = vmatpush3.bf16.msra.mxu0 %v11355_v44  ;;  %v5605_v24 = vld [vmem:[#allocation3 + $0xe1] sm:$0xff]  ;;  %v11357_v18 = vld [vmem:[#allocation6 + $0x48] sm:$0xff]   ;;  %v14348_v12 = vpack.c.bf16 %v5535_v14, %v5534_v37 }
 0x815   : > { %v11641_v47 = vpop.eup %11640  ;;  %v5437_v26 = vmul.f32 %v11639_v29, %v14953_v56  ;;  %5523 = vst.msk [vmem:[#allocation3 + $0x141] sm:$0xff] %vm4619_vm2, %v5435_v21  ;;  %10203 = vmatprep.subr.bf16.mxu0 %v14280_v52  ;;  %v5606_v7 = vld [vmem:[#allocation3 + $0xf1] sm:$0xff]  ;;  %v5531_v44 = vld [vmem:[#allocation3 + $0x8] sm:$0xff]  ;;  %v5538_v13 = vld [vmem:[#allocation3 + $0x60] sm:$0xff] }
 0x816   : > { %v11643_v8 = vpop.eup %11642  ;;  %v5438_v19 = vmul.f32 %v11641_v47, %v14954_v49  ;;  %5524 = vst.msk [vmem:[#allocation3 + $0x151] sm:$0xff] %vm4619_vm2, %v5436_v3  ;;  %v5607_v61 = vld [vmem:[#allocation3 + $0xf9] sm:$0xff]  ;;  %v5562_v43 = vpack.c.bf16 %v5531_v44, %v5530_v38  ;;  %v5536_v28 = vld [vmem:[#allocation3 + $0x48] sm:$0xff]  ;;  %v5537_v21 = vld [vmem:[#allocation3 + $0x50] sm:$0xff]  ;;  %v14357_v47 = vpack.c.bf16 %v5539_v54, %v5538_v13 }
 0x817   : > { %v11645_v34 = vpop.eup %11644  ;;  %v5439_v35 = vmul.f32 %v11643_v8, %v14955_v51  ;;  %5525 = vst.msk [vmem:[#allocation3 + $0x159] sm:$0xff] %vm4619_vm2, %v5437_v26  ;;  %10140 = vmatmul.mubr.msk.bf16.gmra.mrb[40].mxu0 %vm4619_vm2, %v14290_v15  ;;  %v14319_v4 = vpack.c.bf16 %v5607_v61, %v5606_v7  ;;  %v5608_v58 = vld [vmem:[#allocation3 + $0x109] sm:$0xff]  ;;  %v14355_v29 = vpack.c.bf16 %v5537_v21, %v5536_v28  ;;  %v5540_v56 = vld [vmem:[#allocation3 + $0x78] sm:$0xff]  ;;  %v5541_v26 = vld [vmem:[#allocation3 + $0x80] sm:$0xff] }
 0x818   : > { %v11647_v9 = vpop.eup %11646  ;;  %v5440_v41 = vmul.f32 %v11645_v34, %v14956_v39  ;;  %5526 = vst.msk [vmem:[#allocation3 + $0x169] sm:$0xff] %vm4619_vm2, %v5438_v19  ;;  %10143 = vmatprep.mubr.msk.bf16.mxu0 %vm4619_vm2, %v14295_v27  ;;  %v5609_v25 = vld [vmem:[#allocation3 + $0x111] sm:$0xff]  ;;  %v11359_v3 = vld [vmem:[#allocation6 + $0x58] sm:$0xff]   ;;  %v14363_v19 = vpack.c.bf16 %v5541_v26, %v5540_v56  ;;  %v5549_v20 = vld [vmem:[#allocation3 + $0xe0] sm:$0xff] }
 0x819   : > { %v5441_v63 = vmul.f32 %v11647_v9, %v14169_v59  ;;  %5527 = vst.msk [vmem:[#allocation3 + $0x171] sm:$0xff] %vm4619_vm2, %v5439_v35  ;;  %v5604_v59 = vld [vmem:[#allocation3 + $0xd9] sm:$0xff]  ;;  %v5610_v32 = vld [vmem:[#allocation3 + $0x121] sm:$0xff]  ;;  %v14325_v62 = vpack.c.bf16 %v5609_v25, %v5608_v58  ;;  %v5542_v8 = vld [vmem:[#allocation3 + $0x90] sm:$0xff] }
 0x81a   : > { %5528 = vst.msk [vmem:[#allocation3 + $0x181] sm:$0xff] %vm4619_vm2, %v5440_v41  ;;  %v14317_v17 = vpack.c.bf16 %v5605_v24, %v5604_v59  ;;  %v5611_v22 = vld [vmem:[#allocation3 + $0x129] sm:$0xff]  ;;  %v5543_v49 = vld [vmem:[#allocation3 + $0x98] sm:$0xff]  ;;  %v5546_v9 = vld [vmem:[#allocation3 + $0xc0] sm:$0xff] }
 0x81b   : > { %5529 = vst.msk [vmem:[#allocation3 + $0x189] sm:$0xff] %vm4619_vm2, %v5441_v63  ;;  %v14327_v2 = vpack.c.bf16 %v5611_v22, %v5610_v32  ;;  %v5612_v36 = vld [vmem:[#allocation3 + $0x139] sm:$0xff]  ;;  %v14365_v34 = vpack.c.bf16 %v5543_v49, %v5542_v8  ;;  %v5544_v51 = vld [vmem:[#allocation3 + $0xa8] sm:$0xff]  ;;  %v5545_v35 = vld [vmem:[#allocation3 + $0xb0] sm:$0xff] }
 0x81c   : > { %v5613_v42 = vld [vmem:[#allocation3 + $0x141] sm:$0xff]  ;;  %v14371_v41 = vpack.c.bf16 %v5545_v35, %v5544_v51  ;;  %v5548_v40 = vld [vmem:[#allocation3 + $0xd8] sm:$0xff]  ;;  %v5550_v11 = vld [vmem:[#allocation3 + $0xf0] sm:$0xff] }
 0x81d   : > { %v5614_v1 = vld [vmem:[#allocation3 + $0x151] sm:$0xff]  ;;  %v14333_v10 = vpack.c.bf16 %v5613_v42, %v5612_v36  ;;  %v5547_v39 = vld [vmem:[#allocation3 + $0xc8] sm:$0xff]  ;;  %v14379_v59 = vpack.c.bf16 %v5549_v20, %v5548_v40  ;;  %v5554_v58 = vld [vmem:[#allocation3 + $0x120] sm:$0xff] }
 0x81e   : > { %v5615_v55 = vld [vmem:[#allocation3 + $0x159] sm:$0xff]  ;;  %v14373_v63 = vpack.c.bf16 %v5547_v39, %v5546_v9  ;;  %v5552_v7 = vld [vmem:[#allocation3 + $0x108] sm:$0xff]  ;;  %v5553_v61 = vld [vmem:[#allocation3 + $0x110] sm:$0xff] }
 0x81f   : > { %10144 = vmatmul.mubr.msk.bf16.gmra.mrb[44].mxu0 %vm4619_vm2, %v14309_v0  ;;  %v14335_v33 = vpack.c.bf16 %v5615_v55, %v5614_v1  ;;  %v5616_v45 = vld [vmem:[#allocation3 + $0x169] sm:$0xff]  ;;  %v5551_v48 = vld [vmem:[#allocation3 + $0xf8] sm:$0xff]  ;;  %v14387_v32 = vpack.c.bf16 %v5553_v61, %v5552_v7  ;;  %v5557_v42 = vld [vmem:[#allocation3 + $0x140] sm:$0xff] }
 0x820   : > { %10147 = vmatprep.mubr.msk.bf16.mxu0 %vm4619_vm2, %v14311_v30  ;;  %v5617_v6 = vld [vmem:[#allocation3 + $0x171] sm:$0xff]  ;;  %v14381_v24 = vpack.c.bf16 %v5551_v48, %v5550_v11  ;;  %v5555_v25 = vld [vmem:[#allocation3 + $0x128] sm:$0xff]  ;;  %v6111_v14 = vld [vmem:[#allocation3 + $0x1a] sm:$0xff] }
 0x821   : > { %v14341_v46 = vpack.c.bf16 %v5617_v6, %v5616_v45  ;;  %v14389_v22 = vpack.c.bf16 %v5555_v25, %v5554_v58  ;;  %v5556_v36 = vld [vmem:[#allocation3 + $0x138] sm:$0xff]  ;;  %v5558_v1 = vld [vmem:[#allocation3 + $0x150] sm:$0xff]  ;;  %v6109_v45 = vld [vmem:[#allocation3 + $0x2] sm:$0xff] }
 0x822   : > { %v5559_v55 = vld [vmem:[#allocation3 + $0x158] sm:$0xff]  ;;  %v14395_v38 = vpack.c.bf16 %v5557_v42, %v5556_v36  ;;  %v6110_v6 = vld [vmem:[#allocation3 + $0xa] sm:$0xff]  ;;  %v6117_v8 = vld [vmem:[#allocation3 + $0x62] sm:$0xff] }
 0x823   : > { %v14397_v44 = vpack.c.bf16 %v5559_v55, %v5558_v1  ;;  %v5561_v23 = vld [vmem:[#allocation3 + $0x170] sm:$0xff]  ;;  %v6141_v50 = vpack.c.bf16 %v6110_v6, %v6109_v45  ;;  %v6114_v28 = vld [vmem:[#allocation3 + $0x3a] sm:$0xff]  ;;  %v11363_v35 = vld [vmem:[#allocation6 + $0x78] sm:$0xff]  }
 0x824   : > { %v11361_v13 = vld [vmem:[#allocation6 + $0x68] sm:$0xff]   ;;  %v6115_v56 = vld [vmem:[#allocation3 + $0x4a] sm:$0xff]  ;;  %v6120_v40 = vld [vmem:[#allocation3 + $0x82] sm:$0xff] }
 0x825   : > { %v6116_v26 = vld [vmem:[#allocation3 + $0x52] sm:$0xff]  ;;  %v6118_v49 = vld [vmem:[#allocation3 + $0x6a] sm:$0xff]  ;;  %v6119_v39 = vld [vmem:[#allocation3 + $0x7a] sm:$0xff] }
 0x826   : > { %v14416_v51 = vpack.c.bf16 %v6116_v26, %v6115_v56  ;;  %v14418_v9 = vpack.c.bf16 %v6118_v49, %v6117_v8  ;;  %v6121_v20 = vld [vmem:[#allocation3 + $0x92] sm:$0xff]  ;;  %v6122_v11 = vld [vmem:[#allocation3 + $0x9a] sm:$0xff]  ;;  %v14424_v48 = vpack.c.bf16 %v6120_v40, %v6119_v39  ;;  %v6123_v61 = vld [vmem:[#allocation3 + $0xaa] sm:$0xff] }
 0x827   : > { %10148 = vmatmul.mubr.msk.bf16.gmra.mrb[48].mxu0 %vm4619_vm2, %v14317_v17  ;;  %v14426_v7 = vpack.c.bf16 %v6122_v11, %v6121_v20  ;;  %v6124_v58 = vld [vmem:[#allocation3 + $0xb2] sm:$0xff]  ;;  %v6125_v25 = vld [vmem:[#allocation3 + $0xc2] sm:$0xff]  ;;  %v6126_v36 = vld [vmem:[#allocation3 + $0xca] sm:$0xff] }
 0x828   : > { %10151 = vmatprep.mubr.msk.bf16.mxu0 %vm4619_vm2, %v14319_v4  ;;  %v14432_v42 = vpack.c.bf16 %v6124_v58, %v6123_v61  ;;  %v14434_v1 = vpack.c.bf16 %v6126_v36, %v6125_v25  ;;  %v6127_v55 = vld [vmem:[#allocation3 + $0xda] sm:$0xff]  ;;  %v6128_v45 = vld [vmem:[#allocation3 + $0xe2] sm:$0xff]  ;;  %v6129_v6 = vld [vmem:[#allocation3 + $0xf2] sm:$0xff] }
 0x829   : > { %v6135_v56 = vld [vmem:[#allocation3 + $0x13a] sm:$0xff]  ;;  %v6136_v26 = vld [vmem:[#allocation3 + $0x142] sm:$0xff]  ;;  %v6137_v8 = vld [vmem:[#allocation3 + $0x152] sm:$0xff] }
 0x82a   : > { %v6138_v49 = vld [vmem:[#allocation3 + $0x15a] sm:$0xff]  ;;  %v6139_v40 = vld [vmem:[#allocation3 + $0x16a] sm:$0xff]  ;;  %v6140_v20 = vld [vmem:[#allocation3 + $0x172] sm:$0xff] }
 0x82b   : > { %v14458_v39 = vpack.c.bf16 %v6138_v49, %v6137_v8  ;;  %v14464_v11 = vpack.c.bf16 %v6140_v20, %v6139_v40  ;;  %v11365_v61 = vld [vmem:[#allocation6 + $0x88] sm:$0xff]   ;;  %v11366_v58 = vld [vmem:[#allocation6 + $0x90] sm:$0xff]   ;;  %v11367_v25 = vld [vmem:[#allocation6 + $0x98] sm:$0xff]  }
 0x82c   : > { %v6462_v36 = vld [vmem:[#allocation3 + $0x188] sm:$0xff]  ;;  %v7731_v49 = vld [vmem:[#allocation3 + $0xb1] sm:$0xff] }
 0x82d   : > { %v7730_v8 = vld [vmem:[#allocation3 + $0xa9] sm:$0xff]  ;;  %v7732_v40 = vld [vmem:[#allocation3 + $0xc1] sm:$0xff] }
 0x82e   : > { %v7733_v20 = vld [vmem:[#allocation3 + $0xc9] sm:$0xff] }
 0x82f   : > { %10152 = vmatmul.mubr.msk.bf16.gmra.mrb[52].mxu0 %vm4619_vm2, %v14325_v62 }
 0x830   : > { %10155 = vmatprep.mubr.msk.bf16.mxu0 %vm4619_vm2, %v14327_v2 }
 0x837   : > { %10156 = vmatmul.mubr.msk.bf16.gmra.mrb[56].mxu0 %vm4619_vm2, %v14333_v10 }
 0x838   : > { %10159 = vmatprep.mubr.msk.bf16.mxu0 %vm4619_vm2, %v14335_v33 }
 0x83f   : > { %10160 = vmatmul.mubr.msk.bf16.gmra.mrb[60].mxu0 %vm4619_vm2, %v14341_v46 }
 0x840   : > { %10171 = vmatprep.mubr.msk.bf16.mxu0 %vm4619_vm2, %v5562_v43  ;;  %v5560_v43 = vld [vmem:[#allocation3 + $0x168] sm:$0xff] }
 0x841   : > { %v14403_v37 = vpack.c.bf16 %v5561_v23, %v5560_v43  ;;  %v6130_v43 = vld [vmem:[#allocation3 + $0xfa] sm:$0xff]  ;;  %v14440_v23 = vpack.c.bf16 %v6128_v45, %v6127_v55 }
 0x842   : > { %v11369_v45 = vld [vmem:[#allocation6 + $0xa8] sm:$0xff]  }
 0x847   : > { %10172 = vmatmul.mubr.msk.bf16.vlgmr.msra.gmra.mrb[32].mxu0 %vm4619_vm2, %v14346_v53 }
 0x848   : > { %10175 = vmatprep.mubr.msk.bf16.mxu0 %vm4619_vm2, %v14348_v12  ;;  %10204 = vmatpush3.bf16.msra.mxu0 %v14280_v52  ;;  %v11360_v52 = vld [vmem:[#allocation6 + $0x60] sm:$0xff]  }
 0x849   : > { %10205 = vmatprep.subr.bf16.mxu0 %v11357_v18 }
 0x84c   : > { %10206 = vmatpush3.bf16.msra.mxu0 %v11357_v18  ;;  %v6112_v18 = vld [vmem:[#allocation3 + $0x22] sm:$0xff] }
 0x84d   : > { %10207 = vmatprep.subr.bf16.mxu0 %v11358_v57  ;;  %v14408_v21 = vpack.c.bf16 %v6112_v18, %v6111_v14  ;;  %v6131_v14 = vld [vmem:[#allocation3 + $0x10a] sm:$0xff]  ;;  %v6132_v18 = vld [vmem:[#allocation3 + $0x112] sm:$0xff] }
 0x84f   : > { %10176 = vmatmul.mubr.msk.bf16.gmra.mrb[36].mxu0 %vm4619_vm2, %v14355_v29 }
 0x850   : > { %10179 = vmatprep.mubr.msk.bf16.mxu0 %vm4619_vm2, %v14357_v47  ;;  %10208 = vmatpush3.bf16.msra.mxu0 %v11358_v57  ;;  %v6113_v57 = vld [vmem:[#allocation3 + $0x32] sm:$0xff] }
 0x851   : > { %10209 = vmatprep.subr.bf16.mxu0 %v11359_v3  ;;  %v14410_v54 = vpack.c.bf16 %v6114_v28, %v6113_v57  ;;  %v6133_v57 = vld [vmem:[#allocation3 + $0x122] sm:$0xff]  ;;  %v6134_v28 = vld [vmem:[#allocation3 + $0x12a] sm:$0xff] }
 0x854   : > { %10210 = vmatpush3.bf16.msra.mxu0 %v11359_v3  ;;  %v11362_v3 = vld [vmem:[#allocation6 + $0x70] sm:$0xff]  }
 0x855   : > { %10243 = vmatprep.subr.bf16.mxu0 %v11360_v52 }
 0x857   : > { %10180 = vmatmul.mubr.msk.bf16.gmra.mrb[40].mxu0 %vm4619_vm2, %v14363_v19 }
 0x858   : > { %10183 = vmatprep.mubr.msk.bf16.mxu0 %vm4619_vm2, %v14365_v34 }
 0x85f   : > { %10184 = vmatmul.mubr.msk.bf16.gmra.mrb[44].mxu0 %vm4619_vm2, %v14371_v41 }
 0x860   : > { %10187 = vmatprep.mubr.msk.bf16.mxu0 %vm4619_vm2, %v14373_v63 }
 0x867   : > { %10188 = vmatmul.mubr.msk.bf16.gmra.mrb[48].mxu0 %vm4619_vm2, %v14379_v59 }
 0x868   : > { %10191 = vmatprep.mubr.msk.bf16.mxu0 %vm4619_vm2, %v14381_v24 }
 0x86f   : > { %10192 = vmatmul.mubr.msk.bf16.gmra.mrb[52].mxu0 %vm4619_vm2, %v14387_v32 }
 0x870   : > { %10195 = vmatprep.mubr.msk.bf16.mxu0 %vm4619_vm2, %v14389_v22 }
 0x877   : > { %10196 = vmatmul.mubr.msk.bf16.gmra.mrb[56].mxu0 %vm4619_vm2, %v14395_v38 }
 0x878   : > { %10199 = vmatprep.mubr.msk.bf16.mxu0 %vm4619_vm2, %v14397_v44 }
 0x87f   : > { %10200 = vmatmul.mubr.msk.bf16.gmra.mrb[60].mxu0 %vm4619_vm2, %v14403_v37 }
 0x880   : > { %10211 = vmatprep.mubr.msk.bf16.mxu0 %vm4619_vm2, %v6141_v50  ;;  %v14442_v50 = vpack.c.bf16 %v6130_v43, %v6129_v6  ;;  %v11370_v6 = vld [vmem:[#allocation6 + $0xb0] sm:$0xff]   ;;  %v11371_v43 = vld [vmem:[#allocation6 + $0xb8] sm:$0xff]  }
 0x887   : > { %10212 = vmatmul.mubr.msk.bf16.vlgmr.msra.gmra.mrb[32].mxu0 %vm4619_vm2, %v14408_v21 }
 0x888   : > { %10215 = vmatprep.mubr.msk.bf16.mxu0 %vm4619_vm2, %v14410_v54  ;;  %10244 = vmatpush3.bf16.msra.mxu0 %v11360_v52  ;;  %v11364_v52 = vld [vmem:[#allocation6 + $0x80] sm:$0xff]  }
 0x889   : > { %10245 = vmatprep.subr.bf16.mxu0 %v11361_v13 }
 0x88c   : > { %10246 = vmatpush3.bf16.msra.mxu0 %v11361_v13  ;;  %v14448_v13 = vpack.c.bf16 %v6132_v18, %v6131_v14  ;;  %v7727_v14 = vld [vmem:[#allocation3 + $0x81] sm:$0xff]  ;;  %v7728_v18 = vld [vmem:[#allocation3 + $0x91] sm:$0xff] }
 0x88d   : > { %10247 = vmatprep.subr.bf16.mxu0 %v11362_v3 }
 0x88f   : > { %10216 = vmatmul.mubr.msk.bf16.gmra.mrb[36].mxu0 %vm4619_vm2, %v14416_v51 }
 0x890   : > { %10219 = vmatprep.mubr.msk.bf16.mxu0 %vm4619_vm2, %v14418_v9  ;;  %10248 = vmatpush3.bf16.msra.mxu0 %v11362_v3  ;;  %v14450_v3 = vpack.c.bf16 %v6134_v28, %v6133_v57  ;;  %v7729_v57 = vld [vmem:[#allocation3 + $0x99] sm:$0xff] }
 0x891   : > { %10249 = vmatprep.subr.bf16.mxu0 %v11363_v35 }
 0x894   : > { %10250 = vmatpush3.bf16.msra.mxu0 %v11363_v35  ;;  %v14456_v35 = vpack.c.bf16 %v6136_v26, %v6135_v56  ;;  %v11383_v56 = vld [vmem:[#allocation6 + $0x118] sm:$0xff]   ;;  %v7756_v26 = vpack.c.bf16 %v7729_v57, %v7728_v18  ;;  %v14966_v57 = vld [vmem:[#allocation17_spill] sm:$0xff] }
 0x895   : > { %10283 = vmatprep.subr.bf16.mxu0 %v11364_v52 }
 0x897   : > { %10220 = vmatmul.mubr.msk.bf16.gmra.mrb[40].mxu0 %vm4619_vm2, %v14424_v48 }
 0x898   : > { %10223 = vmatprep.mubr.msk.bf16.mxu0 %vm4619_vm2, %v14426_v7 }
 0x89f   : > { %10224 = vmatmul.mubr.msk.bf16.gmra.mrb[44].mxu0 %vm4619_vm2, %v14432_v42 }
 0x8a0   : > { %10227 = vmatprep.mubr.msk.bf16.mxu0 %vm4619_vm2, %v14434_v1 }
 0x8a7   : > { %10228 = vmatmul.mubr.msk.bf16.gmra.mrb[48].mxu0 %vm4619_vm2, %v14440_v23 }
 0x8a8   : > { %10231 = vmatprep.mubr.msk.bf16.mxu0 %vm4619_vm2, %v14442_v50 }
 0x8af   : > { %10232 = vmatmul.mubr.msk.bf16.gmra.mrb[52].mxu0 %vm4619_vm2, %v14448_v13 }
 0x8b0   : > { %10235 = vmatprep.mubr.msk.bf16.mxu0 %vm4619_vm2, %v14450_v3 }
 0x8b7   : > { %10236 = vmatmul.mubr.msk.bf16.gmra.mrb[56].mxu0 %vm4619_vm2, %v14456_v35 }
 0x8b8   : > { %10239 = vmatprep.mubr.msk.bf16.mxu0 %vm4619_vm2, %v14458_v39 }
 0x8bf   : > { %10240 = vmatmul.mubr.msk.bf16.gmra.mrb[60].mxu0 %vm4619_vm2, %v14464_v11 }
 0x8c0   : > { %10251 = vmatprep.mubr.msk.bf16.mxu0 %vm4619_vm2, %v14346_v53  ;;  %v11368_v53 = vld [vmem:[#allocation6 + $0xa0] sm:$0xff]  }
 0x8c7   : > { %10252 = vmatmul.mubr.msk.bf16.vlgmr.msra.gmra.mrb[32].mxu0 %vm4619_vm2, %v14348_v12 }
 0x8c8   : > { %10255 = vmatprep.mubr.msk.bf16.mxu0 %vm4619_vm2, %v14355_v29  ;;  %10284 = vmatpush3.bf16.msra.mxu0 %v11364_v52  ;;  %v6461_v52 = vld [vmem:[#allocation3 + $0x180] sm:$0xff] }
 0x8c9   : > { %10285 = vmatprep.subr.bf16.mxu0 %v11365_v61  ;;  %v14498_v55 = vpack.c.bf16 %v6462_v36, %v6461_v52  ;;  %v7736_v52 = vld [vmem:[#allocation3 + $0xf1] sm:$0xff]  ;;  %v7737_v36 = vld [vmem:[#allocation3 + $0xf9] sm:$0xff] }
 0x8cc   : > { %10286 = vmatpush3.bf16.msra.mxu0 %v11365_v61  ;;  %v7757_v61 = vpack.c.bf16 %v7731_v49, %v7730_v8  ;;  %v14967_v8 = vld [vmem:[#allocation18_spill] sm:$0xff] }
 0x8cd   : > { %10287 = vmatprep.subr.bf16.mxu0 %v11366_v58 }
 0x8cf   : > { %10256 = vmatmul.mubr.msk.bf16.gmra.mrb[36].mxu0 %vm4619_vm2, %v14357_v47 }
 0x8d0   : > { %10259 = vmatprep.mubr.msk.bf16.mxu0 %vm4619_vm2, %v14363_v19  ;;  %10288 = vmatpush3.bf16.msra.mxu0 %v11366_v58  ;;  %v7758_v58 = vpack.c.bf16 %v7733_v20, %v7732_v40 }
 0x8d1   : > { %10289 = vmatprep.subr.bf16.mxu0 %v11367_v25 }
 0x8d4   : > { %10290 = vmatpush3.bf16.msra.mxu0 %v11367_v25  ;;  %v7734_v25 = vld [vmem:[#allocation3 + $0xd9] sm:$0xff] }
 0x8d5   : > { %10323 = vmatprep.subr.bf16.mxu0 %v11368_v53 }
 0x8d7   : > { %10260 = vmatmul.mubr.msk.bf16.gmra.mrb[40].mxu0 %vm4619_vm2, %v14365_v34 }
 0x8d8   : > { %10263 = vmatprep.mubr.msk.bf16.mxu0 %vm4619_vm2, %v14371_v41 }
 0x8df   : > { %10264 = vmatmul.mubr.msk.bf16.gmra.mrb[44].mxu0 %vm4619_vm2, %v14373_v63 }
 0x8e0   : > { %10267 = vmatprep.mubr.msk.bf16.mxu0 %vm4619_vm2, %v14379_v59 }
 0x8e7   : > { %10268 = vmatmul.mubr.msk.bf16.gmra.mrb[48].mxu0 %vm4619_vm2, %v14381_v24 }
 0x8e8   : > { %10271 = vmatprep.mubr.msk.bf16.mxu0 %vm4619_vm2, %v14387_v32 }
 0x8ef   : > { %10272 = vmatmul.mubr.msk.bf16.gmra.mrb[52].mxu0 %vm4619_vm2, %v14389_v22 }
 0x8f0   : > { %10275 = vmatprep.mubr.msk.bf16.mxu0 %vm4619_vm2, %v14395_v38 }
 0x8f7   : > { %10276 = vmatmul.mubr.msk.bf16.gmra.mrb[56].mxu0 %vm4619_vm2, %v14397_v44 }
 0x8f8   : > { %10279 = vmatprep.mubr.msk.bf16.mxu0 %vm4619_vm2, %v14403_v37 }
 0x8ff   : > { %10280 = vmatmul.mubr.msk.bf16.gmra.mrb[60].mxu0 %vm4619_vm2, %v14498_v55 }
 0x900   : > { %10291 = vmatprep.mubr.msk.bf16.mxu0 %vm4619_vm2, %v14234_v60  ;;  %v11372_v60 = vld [vmem:[#allocation6 + $0xc0] sm:$0xff]  }
 0x907   : > { %10292 = vmatmul.mubr.msk.bf16.vlgmr.msra.gmra.mrb[32].mxu0 %vm4619_vm2, %v14244_v5  ;;  %v6783_v5 = vld [vmem:[#allocation3 + $0x181] sm:$0xff] }
 0x908   : > { %10295 = vmatprep.mubr.msk.bf16.mxu0 %vm4619_vm2, %v14264_v16  ;;  %10324 = vmatpush3.bf16.msra.mxu0 %v11368_v53  ;;  %v6784_v16 = vld [vmem:[#allocation3 + $0x189] sm:$0xff]  ;;  %v7735_v53 = vld [vmem:[#allocation3 + $0xe1] sm:$0xff] }
 0x909   : > { %10325 = vmatprep.subr.bf16.mxu0 %v11369_v45 }
 0x90c   : > { %10326 = vmatpush3.bf16.msra.mxu0 %v11369_v45  ;;  %v7760_v45 = vpack.c.bf16 %v7737_v36, %v7736_v52 }
 0x90d   : > { %10327 = vmatprep.subr.bf16.mxu0 %v11370_v6 }
 0x90f   : > { %10296 = vmatmul.mubr.msk.bf16.gmra.mrb[36].mxu0 %vm4619_vm2, %v14268_v31  ;;  %v14532_v31 = vpack.c.bf16 %v6784_v16, %v6783_v5  ;;  %v7741_v5 = vld [vmem:[#allocation3 + $0x129] sm:$0xff] }
 0x910   : > { %10299 = vmatprep.mubr.msk.bf16.mxu0 %vm4619_vm2, %v14290_v15  ;;  %10328 = vmatpush3.bf16.msra.mxu0 %v11370_v6  ;;  %v11373_v15 = vld [vmem:[#allocation6 + $0xc8] sm:$0xff]   ;;  %v7738_v6 = vld [vmem:[#allocation3 + $0x109] sm:$0xff] }
 0x911   : > { %10329 = vmatprep.subr.bf16.mxu0 %v11371_v43 }
 0x914   : > { %10330 = vmatpush3.bf16.msra.mxu0 %v11371_v43  ;;  %v7739_v43 = vld [vmem:[#allocation3 + $0x111] sm:$0xff] }
 0x915   : > { %10363 = vmatprep.subr.bf16.mxu0 %v11372_v60  ;;  %v7761_v16 = vpack.c.bf16 %v7739_v43, %v7738_v6  ;;  %v14969_v43 = vld [vmem:[#allocation20_spill] sm:$0xff] }
 0x917   : > { %10300 = vmatmul.mubr.msk.bf16.gmra.mrb[40].mxu0 %vm4619_vm2, %v14295_v27  ;;  %v11374_v27 = vld [vmem:[#allocation6 + $0xd0] sm:$0xff]  }
 0x918   : > { %10303 = vmatprep.mubr.msk.bf16.mxu0 %vm4619_vm2, %v14309_v0  ;;  %v11375_v0 = vld [vmem:[#allocation6 + $0xd8] sm:$0xff]  }
 0x91f   : > { %10304 = vmatmul.mubr.msk.bf16.gmra.mrb[44].mxu0 %vm4619_vm2, %v14311_v30  ;;  %v11376_v30 = vld [vmem:[#allocation6 + $0xe0] sm:$0xff]  }
 0x920   : > { %10307 = vmatprep.mubr.msk.bf16.mxu0 %vm4619_vm2, %v14317_v17  ;;  %v7105_v17 = vld [vmem:[#allocation3 + $0x182] sm:$0xff] }
 0x927   : > { %10308 = vmatmul.mubr.msk.bf16.gmra.mrb[48].mxu0 %vm4619_vm2, %v14319_v4  ;;  %v7106_v4 = vld [vmem:[#allocation3 + $0x18a] sm:$0xff] }
 0x928   : > { %10311 = vmatprep.mubr.msk.bf16.mxu0 %vm4619_vm2, %v14325_v62  ;;  %v14566_v62 = vpack.c.bf16 %v7106_v4, %v7105_v17  ;;  %v7745_v17 = vld [vmem:[#allocation3 + $0x159] sm:$0xff] }
 0x92f   : > { %10312 = vmatmul.mubr.msk.bf16.gmra.mrb[52].mxu0 %vm4619_vm2, %v14327_v2  ;;  %v11377_v2 = vld [vmem:[#allocation6 + $0xe8] sm:$0xff]  }
 0x930   : > { %10315 = vmatprep.mubr.msk.bf16.mxu0 %vm4619_vm2, %v14333_v10  ;;  %v11378_v10 = vld [vmem:[#allocation6 + $0xf0] sm:$0xff]  }
 0x937   : > { %10316 = vmatmul.mubr.msk.bf16.gmra.mrb[56].mxu0 %vm4619_vm2, %v14335_v33  ;;  %v11379_v33 = vld [vmem:[#allocation6 + $0xf8] sm:$0xff]  }
 0x938   : > { %10319 = vmatprep.mubr.msk.bf16.mxu0 %vm4619_vm2, %v14341_v46  ;;  %v11380_v46 = vld [vmem:[#allocation6 + $0x100] sm:$0xff]  }
 0x93f   : > { %10320 = vmatmul.mubr.msk.bf16.gmra.mrb[60].mxu0 %vm4619_vm2, %v14532_v31 }
 0x940   : > { %10331 = vmatprep.mubr.msk.bf16.mxu0 %vm4619_vm2, %v14408_v21  ;;  %v7726_v21 = vld [vmem:[#allocation3 + $0x79] sm:$0xff] }
 0x941   : > { %v7755_v28 = vpack.c.bf16 %v7727_v14, %v7726_v21  ;;  %v14965_v21 = vld [vmem:[#allocation16_spill] sm:$0xff] }
 0x947   : > { %10332 = vmatmul.mubr.msk.bf16.vlgmr.msra.gmra.mrb[32].mxu0 %vm4619_vm2, %v14410_v54 }
 0x948   : > { %10335 = vmatprep.mubr.msk.bf16.mxu0 %vm4619_vm2, %v14416_v51  ;;  %10364 = vmatpush3.bf16.msra.mxu0 %v11372_v60  ;;  %v7740_v60 = vld [vmem:[#allocation3 + $0x121] sm:$0xff] }
 0x949   : > { %10365 = vmatprep.subr.bf16.mxu0 %v11373_v15 }
 0x94c   : > { %10366 = vmatpush3.bf16.msra.mxu0 %v11373_v15  ;;  %v7762_v15 = vpack.c.bf16 %v7741_v5, %v7740_v60 }
 0x94d   : > { %10367 = vmatprep.subr.bf16.mxu0 %v11374_v27 }
 0x94f   : > { %10336 = vmatmul.mubr.msk.bf16.gmra.mrb[36].mxu0 %vm4619_vm2, %v14418_v9 }
 0x950   : > { %10339 = vmatprep.mubr.msk.bf16.mxu0 %vm4619_vm2, %v14424_v48  ;;  %10368 = vmatpush3.bf16.msra.mxu0 %v11374_v27  ;;  %v7742_v27 = vld [vmem:[#allocation3 + $0x139] sm:$0xff] }
 0x951   : > { %10369 = vmatprep.subr.bf16.mxu0 %v11375_v0 }
 0x954   : > { %10370 = vmatpush3.bf16.msra.mxu0 %v11375_v0  ;;  %v7743_v0 = vld [vmem:[#allocation3 + $0x141] sm:$0xff] }
 0x955   : > { %10403 = vmatprep.subr.bf16.mxu0 %v11376_v30  ;;  %v7763_v4 = vpack.c.bf16 %v7743_v0, %v7742_v27 }
 0x957   : > { %10340 = vmatmul.mubr.msk.bf16.gmra.mrb[40].mxu0 %vm4619_vm2, %v14426_v7 }
 0x958   : > { %10343 = vmatprep.mubr.msk.bf16.mxu0 %vm4619_vm2, %v14432_v42 }
 0x95f   : > { %10344 = vmatmul.mubr.msk.bf16.gmra.mrb[44].mxu0 %vm4619_vm2, %v14434_v1 }
 0x960   : > { %10347 = vmatprep.mubr.msk.bf16.mxu0 %vm4619_vm2, %v14440_v23 }
 0x967   : > { %10348 = vmatmul.mubr.msk.bf16.gmra.mrb[48].mxu0 %vm4619_vm2, %v14442_v50 }
 0x968   : > { %10351 = vmatprep.mubr.msk.bf16.mxu0 %vm4619_vm2, %v14448_v13 }
 0x96f   : > { %10352 = vmatmul.mubr.msk.bf16.gmra.mrb[52].mxu0 %vm4619_vm2, %v14450_v3 }
 0x970   : > { %10355 = vmatprep.mubr.msk.bf16.mxu0 %vm4619_vm2, %v14456_v35 }
 0x977   : > { %10356 = vmatmul.mubr.msk.bf16.gmra.mrb[56].mxu0 %vm4619_vm2, %v14458_v39 }
 0x978   : > { %10359 = vmatprep.mubr.msk.bf16.mxu0 %vm4619_vm2, %v14464_v11 }
 0x97f   : > { %10360 = vmatmul.mubr.msk.bf16.gmra.mrb[60].mxu0 %vm4619_vm2, %v14566_v62 }
 0x980   : > { %10371 = vmatprep.mubr.msk.bf16.mxu0 %vm4619_vm2, %v14348_v12  ;;  %v7428_v12 = vld [vmem:[#allocation3 + $0x198] sm:$0xff] }
 0x987   : > { %10372 = vmatmul.mubr.msk.bf16.vlgmr.msra.gmra.mrb[32].mxu0 %vm4619_vm2, %v14355_v29  ;;  %v7429_v29 = vld [vmem:[#allocation3 + $0x1a0] sm:$0xff] }
 0x988   : > { %10375 = vmatprep.mubr.msk.bf16.mxu0 %vm4619_vm2, %v14357_v47  ;;  %10404 = vmatpush3.bf16.msra.mxu0 %v11376_v30  ;;  %v7445_v47 = vpack.c.bf16 %v7429_v29, %v7428_v12  ;;  %v7744_v30 = vld [vmem:[#allocation3 + $0x151] sm:$0xff]  ;;  %v7750_v12 = vld [vmem:[#allocation3 + $0x199] sm:$0xff]  ;;  %v7751_v29 = vld [vmem:[#allocation3 + $0x1a1] sm:$0xff] }
 0x989   : > { %10405 = vmatprep.subr.bf16.mxu0 %v11377_v2 }
 0x98c   : > { %10406 = vmatpush3.bf16.msra.mxu0 %v11377_v2  ;;  %v7764_v2 = vpack.c.bf16 %v7745_v17, %v7744_v30  ;;  %v14971_v30 = vld [vmem:[#allocation22_spill] sm:$0xff] }
 0x98d   : > { %10407 = vmatprep.subr.bf16.mxu0 %v11378_v10 }
 0x98f   : > { %10376 = vmatmul.mubr.msk.bf16.gmra.mrb[36].mxu0 %vm4619_vm2, %v14363_v19  ;;  %v7720_v19 = vld [vmem:[#allocation3 + $0x31] sm:$0xff] }
 0x990   : > { %10379 = vmatprep.mubr.msk.bf16.mxu0 %vm4619_vm2, %v14365_v34  ;;  %10408 = vmatpush3.bf16.msra.mxu0 %v11378_v10  ;;  %v7721_v34 = vld [vmem:[#allocation3 + $0x39] sm:$0xff]  ;;  %v7746_v10 = vld [vmem:[#allocation3 + $0x169] sm:$0xff] }
 0x991   : > { %10409 = vmatprep.subr.bf16.mxu0 %v11379_v33 }
 0x994   : > { %10410 = vmatpush3.bf16.msra.mxu0 %v11379_v33  ;;  %v7747_v33 = vld [vmem:[#allocation3 + $0x171] sm:$0xff] }
 0x995   : > { %10443 = vmatprep.subr.bf16.mxu0 %v11380_v46 }
 0x997   : > { %10380 = vmatmul.mubr.msk.bf16.gmra.mrb[40].mxu0 %vm4619_vm2, %v14371_v41  ;;  %v7752_v41 = vpack.c.bf16 %v7721_v34, %v7720_v19 }
 0x998   : > { %10383 = vmatprep.mubr.msk.bf16.mxu0 %vm4619_vm2, %v14373_v63  ;;  %v7722_v63 = vld [vmem:[#allocation3 + $0x49] sm:$0xff] }
 0x99f   : > { %10384 = vmatmul.mubr.msk.bf16.gmra.mrb[44].mxu0 %vm4619_vm2, %v14379_v59  ;;  %v7723_v59 = vld [vmem:[#allocation3 + $0x51] sm:$0xff] }
 0x9a0   : > { %10387 = vmatprep.mubr.msk.bf16.mxu0 %vm4619_vm2, %v14381_v24  ;;  %v7724_v24 = vld [vmem:[#allocation3 + $0x61] sm:$0xff] }
 0x9a7   : > { %10388 = vmatmul.mubr.msk.bf16.gmra.mrb[48].mxu0 %vm4619_vm2, %v14387_v32  ;;  %v7725_v32 = vld [vmem:[#allocation3 + $0x69] sm:$0xff] }
 0x9a8   : > { %10391 = vmatprep.mubr.msk.bf16.mxu0 %vm4619_vm2, %v14389_v22  ;;  %v7753_v22 = vpack.c.bf16 %v7723_v59, %v7722_v63 }
 0x9af   : > { %10392 = vmatmul.mubr.msk.bf16.gmra.mrb[52].mxu0 %vm4619_vm2, %v14395_v38  ;;  %v11381_v38 = vld [vmem:[#allocation6 + $0x108] sm:$0xff]  }
 0x9b0   : > { %10395 = vmatprep.mubr.msk.bf16.mxu0 %vm4619_vm2, %v14397_v44  ;;  %v7754_v44 = vpack.c.bf16 %v7725_v32, %v7724_v24 }
 0x9b7   : > { %10396 = vmatmul.mubr.msk.bf16.gmra.mrb[56].mxu0 %vm4619_vm2, %v14403_v37  ;;  %v11382_v37 = vld [vmem:[#allocation6 + $0x110] sm:$0xff]  }
 0x9b8   : > { %10399 = vmatprep.mubr.msk.bf16.mxu0 %vm4619_vm2, %v14498_v55  ;;  %v7759_v55 = vpack.c.bf16 %v7735_v53, %v7734_v25 }
 0x9bf   : > { %10400 = vmatmul.mubr.msk.bf16.gmra.mrb[60].mxu0 %vm4619_vm2, %v7445_v47  ;;  %v7767_v47 = vpack.c.bf16 %v7751_v29, %v7750_v12 }
 0x9c0   : > { %10411 = vmatprep.mubr.msk.bf16.mxu0 %vm4619_vm2, %v7752_v41 }
 0x9c7   : > { %10412 = vmatmul.mubr.msk.bf16.vlgmr.msra.gmra.mrb[32].mxu0 %vm4619_vm2, %v7753_v22 }
 0x9c8   : > { %10415 = vmatprep.mubr.msk.bf16.mxu0 %vm4619_vm2, %v7754_v44  ;;  %10444 = vmatpush3.bf16.msra.mxu0 %v11380_v46  ;;  %v7765_v46 = vpack.c.bf16 %v7747_v33, %v7746_v10  ;;  %v14964_v44 = vld [vmem:[#allocation15_spill] sm:$0xff] }
 0x9c9   : > { %10445 = vmatprep.subr.bf16.mxu0 %v11381_v38 }
 0x9cc   : > { %10446 = vmatpush3.bf16.msra.mxu0 %v11381_v38 }
 0x9cd   : > { %10447 = vmatprep.subr.bf16.mxu0 %v11382_v37 }
 0x9cf   : > { %10416 = vmatmul.mubr.msk.bf16.gmra.mrb[36].mxu0 %vm4619_vm2, %v7755_v28 }
 0x9d0   : > { %10419 = vmatprep.mubr.msk.bf16.mxu0 %vm4619_vm2, %v7756_v26  ;;  %10448 = vmatpush3.bf16.msra.mxu0 %v11382_v37 }
 0x9d1   : > { %10449 = vmatprep.subr.bf16.mxu0 %v11383_v56 }
 0x9d4   : > { %10450 = vmatpush3.bf16.msra.mxu0 %v11383_v56 }
 0x9d7   : > { %10420 = vmatmul.mubr.msk.bf16.gmra.mrb[40].mxu0 %vm4619_vm2, %v7757_v61 }
 0x9d8   : > { %10423 = vmatprep.mubr.msk.bf16.mxu0 %vm4619_vm2, %v7758_v58 }
 0x9df   : > { %10424 = vmatmul.mubr.msk.bf16.gmra.mrb[44].mxu0 %vm4619_vm2, %v7759_v55 }
 0x9e0   : > { %10427 = vmatprep.mubr.msk.bf16.mxu0 %vm4619_vm2, %v7760_v45  ;;  %v14968_v45 = vld [vmem:[#allocation19_spill] sm:$0xff] }
 0x9e7   : > { %10428 = vmatmul.mubr.msk.bf16.gmra.mrb[48].mxu0 %vm4619_vm2, %v7761_v16  ;;  %v14970_v16 = vld [vmem:[#allocation21_spill] sm:$0xff] }
 0x9e8   : > { %10431 = vmatprep.mubr.msk.bf16.mxu0 %vm4619_vm2, %v7762_v15 }
 0x9ef   : > { %10432 = vmatmul.mubr.msk.bf16.gmra.mrb[52].mxu0 %vm4619_vm2, %v7763_v4 }
 0x9f0   : > { %10435 = vmatprep.mubr.msk.bf16.mxu0 %vm4619_vm2, %v7764_v2 }
 0x9f7   : > { %10436 = vmatmul.mubr.msk.bf16.gmra.mrb[56].mxu0 %vm4619_vm2, %v7765_v46 }
 0x9f8   : > { %10439 = vmatprep.mubr.msk.bf16.mxu0 %vm4619_vm2, %v14532_v31  ;;  %v14962_v31 = vld [vmem:[#allocation14_spill] sm:$0xff] }
 0x9ff   : > { %10440 = vmatmul.mubr.msk.bf16.gmra.mrb[60].mxu0 %vm4619_vm2, %v7767_v47 }
 0xa00   : > { %10451 = vmatprep.mubr.msk.bf16.mxu0 %vm4619_vm2, %v14410_v54  ;;  %v8072_v54 = vld [vmem:[#allocation3 + $0x19a] sm:$0xff] }
 0xa07   : > { %10452 = vmatmul.mubr.msk.bf16.vlgmr.msra.gmra.mrb[32].mxu0 %vm4619_vm2, %v14416_v51  ;;  %v8073_v51 = vld [vmem:[#allocation3 + $0x1a2] sm:$0xff] }
 0xa08   : > { %10455 = vmatprep.mubr.msk.bf16.mxu0 %vm4619_vm2, %v14418_v9  ;;  %v8089_v9 = vpack.c.bf16 %v8073_v51, %v8072_v54  ;;  %v14972_v51 = vld [vmem:[#allocation23_spill] sm:$0xff] }
 0xa0f   : > { %10456 = vmatmul.mubr.msk.bf16.gmra.mrb[36].mxu0 %vm4619_vm2, %v14424_v48  ;;  %v14654_v48 = vld [vmem:[%s14957_s15] ss:$0 sm:$0xff] }
 0xa10   : > { %10459 = vmatprep.mubr.msk.bf16.mxu0 %vm4619_vm2, %v14426_v7  ;;  %v14958_v7 = vld [vmem:[#allocation11_spill] sm:$0xff]  ;;  %v790_v37 = vadd.f32 %v14964_v44, %v14654_v48  ;;  %v782_v14 = vadd.f32 %v14654_v48, %v14965_v21  ;;  %v793_v28 = vadd.f32 %v14966_v57, %v14654_v48  ;;  %v785_v49 = vadd.f32 %v14654_v48, %v14967_v8  ;;  %v14977_v44 = vld [vmem:[#allocation28_spill] sm:$0xff] }
 0xa11   : > { %v806_v6 = vadd.f32 %v14968_v45, %v14654_v48  ;;  %v798_v60 = vadd.f32 %v14654_v48, %v14969_v43  ;;  %v809_v15 = vadd.f32 %v14970_v16, %v14654_v48  ;;  %v801_v17 = vadd.f32 %v14654_v48, %v14971_v30  ;;  %v14981_v45 = vld [vmem:[#allocation32_spill] sm:$0xff] }
 0xa17   : > { %10460 = vmatmul.mubr.msk.bf16.gmra.mrb[40].mxu0 %vm4619_vm2, %v14432_v42  ;;  %v774_v42 = vadd.f32 %v14958_v7, %v14654_v48  ;;  %v14973_v7 = vld [vmem:[#allocation24_spill] sm:$0xff] }
 0xa18   : > { %10463 = vmatprep.mubr.msk.bf16.mxu0 %vm4619_vm2, %v14434_v1  ;;  %v14959_v1 = vld [vmem:[#allocation12_spill] sm:$0xff] }
 0xa1f   : > { %10464 = vmatmul.mubr.msk.bf16.gmra.mrb[44].mxu0 %vm4619_vm2, %v14440_v23  ;;  %v766_v23 = vadd.f32 %v14654_v48, %v14959_v1 }
 0xa20   : > { %10467 = vmatprep.mubr.msk.bf16.mxu0 %vm4619_vm2, %v14442_v50 }
 0xa27   : > { %10468 = vmatmul.mubr.msk.bf16.gmra.mrb[48].mxu0 %vm4619_vm2, %v14448_v13  ;;  %v14663_v13 = vld [vmem:[%s14960_s9] ss:$0 sm:$0xff] }
 0xa28   : > { %10471 = vmatprep.mubr.msk.bf16.mxu0 %vm4619_vm2, %v14450_v3  ;;  %v14961_v3 = vld [vmem:[#allocation13_spill] sm:$0xff] }
 0xa2f   : > { %10472 = vmatmul.mubr.msk.bf16.gmra.mrb[52].mxu0 %vm4619_vm2, %v14456_v35  ;;  %v777_v35 = vadd.f32 %v14961_v3, %v14654_v48 }
 0xa30   : > { %10475 = vmatprep.mubr.msk.bf16.mxu0 %vm4619_vm2, %v14458_v39 }
 0xa37   : > { %10476 = vmatmul.mubr.msk.bf16.gmra.mrb[56].mxu0 %vm4619_vm2, %v14464_v11 }
 0xa38   : > { %10479 = vmatprep.mubr.msk.bf16.mxu0 %vm4619_vm2, %v14566_v62  ;;  %v769_v62 = vadd.f32 %v14654_v48, %v14962_v31 }
 0xa3f   : > { %10480 = vmatmul.mubr.msk.bf16.gmra.mrb[60].mxu0 %vm4619_vm2, %v8089_v9  ;;  %v822_v9 = vadd.f32 %v14972_v51, %v14654_v48  ;;  %v14985_v51 = vld [vmem:[#allocation36_spill] sm:$0xff] }
 0xada   : > { %v10453_v50 = vpop.f32.mrb[32].mxu0 }
 0xadb   : > { %v10596_v39 = vadd.f32 %v10453_v50, %v774_v42  ;;  %v8205_v11 = vpop.f32.mrb[33].mxu0  ;;  %v814_v42 = vadd.f32 %v14654_v48, %v14973_v7 }
 0xadc   : > { %v10599_v19 = vadd.f32 %v8205_v11, %v766_v23  ;;  %v10454_v34 = vpop.f32.mrb[34].mxu0  ;;  %v14974_v23 = vld [vmem:[#allocation25_spill] sm:$0xff] }
 0xadd   : > { %v10597_v41 = vadd.f32 %v10596_v39, %v14663_v13  ;;  %v10602_v63 = vadd.f32 %v10454_v34, %v777_v35  ;;  %v8208_v59 = vpop.f32.mrb[35].mxu0  ;;  %v825_v50 = vadd.f32 %v14974_v23, %v14654_v48  ;;  %v14975_v39 = vld [vmem:[#allocation26_spill] sm:$0xff] }
 0xade   : > { %v10600_v24 = vadd.f32 %v10599_v19, %v14663_v13  ;;  %v10605_v32 = vadd.f32 %v8208_v59, %v769_v62  ;;  %v817_v11 = vadd.f32 %v14654_v48, %v14975_v39 }
 0xadf   : > { %8437 = vst.msk [vmem:[%s14672_s22 + $0x10] sm:$0xff] %vm4619_vm2, %v10597_v41  ;;  %v10603_v22 = vadd.f32 %v10602_v63, %v14663_v13 }
 0xae0   : > { %8435 = vst.msk [vmem:[%s14672_s22] sm:$0xff] %vm4619_vm2, %v10600_v24  ;;  %v10606_v38 = vadd.f32 %v10605_v32, %v14663_v13 }
 0xae1   : > { %8438 = vst.msk [vmem:[%s14672_s22 + $0x18] sm:$0xff] %vm4619_vm2, %v10603_v22  ;;  %v14976_v22 = vld [vmem:[#allocation27_spill] sm:$0xff] }
 0xae2   : > { %8436 = vst.msk [vmem:[%s14672_s22 + $0x8] sm:$0xff] %vm4619_vm2, %v10606_v38  ;;  %v10457_v18 = vpop.f32.mrb[36].mxu0  ;;  %v838_v38 = vadd.f32 %v14976_v22, %v14654_v48  ;;  %v14989_v22 = vld [vmem:[#allocation40_spill] sm:$0xff] }
 0xae3   : > { %v10608_v56 = vadd.f32 %v10457_v18, %v790_v37  ;;  %v8221_v26 = vpop.f32.mrb[37].mxu0  ;;  %v830_v37 = vadd.f32 %v14654_v48, %v14977_v44 }
 0xae4   : > { %v10611_v40 = vadd.f32 %v8221_v26, %v782_v14  ;;  %v10458_v20 = vpop.f32.mrb[38].mxu0  ;;  %v14978_v14 = vld [vmem:[#allocation29_spill] sm:$0xff] }
 0xae5   : > { %v10609_v61 = vadd.f32 %v10608_v56, %v14663_v13  ;;  %v10614_v58 = vadd.f32 %v10458_v20, %v793_v28  ;;  %v8224_v25 = vpop.f32.mrb[39].mxu0  ;;  %v841_v18 = vadd.f32 %v14978_v14, %v14654_v48  ;;  %v14979_v56 = vld [vmem:[#allocation30_spill] sm:$0xff] }
 0xae6   : > { %v10612_v53 = vadd.f32 %v10611_v40, %v14663_v13  ;;  %v10617_v52 = vadd.f32 %v8224_v25, %v785_v49  ;;  %v833_v26 = vadd.f32 %v14654_v48, %v14979_v56 }
 0xae7   : > { %8441 = vst.msk [vmem:[%s14672_s22 + $0x30] sm:$0xff] %vm4619_vm2, %v10609_v61  ;;  %v10615_v36 = vadd.f32 %v10614_v58, %v14663_v13 }
 0xae8   : > { %8439 = vst.msk [vmem:[%s14672_s22 + $0x20] sm:$0xff] %vm4619_vm2, %v10612_v53  ;;  %v10618_v55 = vadd.f32 %v10617_v52, %v14663_v13 }
 0xae9   : > { %8442 = vst.msk [vmem:[%s14672_s22 + $0x38] sm:$0xff] %vm4619_vm2, %v10615_v36  ;;  %v14980_v36 = vld [vmem:[#allocation31_spill] sm:$0xff] }
 0xaea   : > { %8440 = vst.msk [vmem:[%s14672_s22 + $0x28] sm:$0xff] %vm4619_vm2, %v10618_v55  ;;  %v10461_v5 = vpop.f32.mrb[40].mxu0  ;;  %v854_v55 = vadd.f32 %v14980_v36, %v14654_v48 }
 0xaeb   : > { %v10620_v27 = vadd.f32 %v10461_v5, %v806_v6  ;;  %v8237_v0 = vpop.f32.mrb[41].mxu0  ;;  %v846_v6 = vadd.f32 %v14654_v48, %v14981_v45 }
 0xaec   : > { %v10623_v4 = vadd.f32 %v8237_v0, %v798_v60  ;;  %v10462_v2 = vpop.f32.mrb[42].mxu0  ;;  %v14982_v60 = vld [vmem:[#allocation33_spill] sm:$0xff] }
 0xaed   : > { %v10621_v10 = vadd.f32 %v10620_v27, %v14663_v13  ;;  %v10626_v33 = vadd.f32 %v10462_v2, %v809_v15  ;;  %v8240_v46 = vpop.f32.mrb[43].mxu0  ;;  %v857_v5 = vadd.f32 %v14982_v60, %v14654_v48  ;;  %v14983_v27 = vld [vmem:[#allocation34_spill] sm:$0xff] }
 0xaee   : > { %v10624_v12 = vadd.f32 %v10623_v4, %v14663_v13  ;;  %v10629_v29 = vadd.f32 %v8240_v46, %v801_v17  ;;  %v849_v0 = vadd.f32 %v14654_v48, %v14983_v27 }
 0xaef   : > { %8445 = vst.msk [vmem:[%s14672_s22 + $0x50] sm:$0xff] %vm4619_vm2, %v10621_v10  ;;  %v10627_v47 = vadd.f32 %v10626_v33, %v14663_v13 }
 0xaf0   : > { %8443 = vst.msk [vmem:[%s14672_s22 + $0x40] sm:$0xff] %vm4619_vm2, %v10624_v12  ;;  %v10630_v54 = vadd.f32 %v10629_v29, %v14663_v13 }
 0xaf1   : > { %8446 = vst.msk [vmem:[%s14672_s22 + $0x58] sm:$0xff] %vm4619_vm2, %v10627_v47  ;;  %v14984_v47 = vld [vmem:[#allocation35_spill] sm:$0xff] }
 0xaf2   : > { %8444 = vst.msk [vmem:[%s14672_s22 + $0x48] sm:$0xff] %vm4619_vm2, %v10630_v54  ;;  %v10465_v1 = vpop.f32.mrb[44].mxu0  ;;  %v870_v54 = vadd.f32 %v14984_v47, %v14654_v48 }
 0xaf3   : > { %v10632_v3 = vadd.f32 %v10465_v1, %v822_v9  ;;  %v8253_v35 = vpop.f32.mrb[45].mxu0  ;;  %v862_v9 = vadd.f32 %v14654_v48, %v14985_v51 }
 0xaf4   : > { %v10635_v31 = vadd.f32 %v8253_v35, %v814_v42  ;;  %v10466_v62 = vpop.f32.mrb[46].mxu0  ;;  %v14986_v42 = vld [vmem:[#allocation37_spill] sm:$0xff] }
 0xaf5   : > { %v10633_v19 = vadd.f32 %v10632_v3, %v14663_v13  ;;  %v10638_v34 = vadd.f32 %v10466_v62, %v825_v50  ;;  %v8256_v41 = vpop.f32.mrb[47].mxu0  ;;  %v873_v1 = vadd.f32 %v14986_v42, %v14654_v48  ;;  %v14987_v3 = vld [vmem:[#allocation38_spill] sm:$0xff] }
 0xaf6   : > { %v10636_v63 = vadd.f32 %v10635_v31, %v14663_v13  ;;  %v10641_v59 = vadd.f32 %v8256_v41, %v817_v11  ;;  %v865_v35 = vadd.f32 %v14654_v48, %v14987_v3 }
 0xaf7   : > { %8449 = vst.msk [vmem:[%s14672_s22 + $0x70] sm:$0xff] %vm4619_vm2, %v10633_v19  ;;  %v10639_v24 = vadd.f32 %v10638_v34, %v14663_v13 }
 0xaf8   : > { %8447 = vst.msk [vmem:[%s14672_s22 + $0x60] sm:$0xff] %vm4619_vm2, %v10636_v63  ;;  %v10642_v32 = vadd.f32 %v10641_v59, %v14663_v13 }
 0xaf9   : > { %8450 = vst.msk [vmem:[%s14672_s22 + $0x78] sm:$0xff] %vm4619_vm2, %v10639_v24  ;;  %v14988_v24 = vld [vmem:[#allocation39_spill] sm:$0xff] }
 0xafa   : > { %8448 = vst.msk [vmem:[%s14672_s22 + $0x68] sm:$0xff] %vm4619_vm2, %v10642_v32  ;;  %v10469_v21 = vpop.f32.mrb[48].mxu0  ;;  %v886_v32 = vadd.f32 %v14988_v24, %v14654_v48 }
 0xafb   : > { %v10644_v57 = vadd.f32 %v10469_v21, %v838_v38  ;;  %v8269_v28 = vpop.f32.mrb[49].mxu0  ;;  %v878_v38 = vadd.f32 %v14654_v48, %v14989_v22 }
 0xafc   : > { %v10647_v8 = vadd.f32 %v8269_v28, %v830_v37  ;;  %v10470_v49 = vpop.f32.mrb[50].mxu0  ;;  %v14990_v37 = vld [vmem:[#allocation41_spill] sm:$0xff] }
 0xafd   : > { %v10645_v40 = vadd.f32 %v10644_v57, %v14663_v13  ;;  %v10650_v20 = vadd.f32 %v10470_v49, %v841_v18  ;;  %v8272_v61 = vpop.f32.mrb[51].mxu0  ;;  %v889_v21 = vadd.f32 %v14990_v37, %v14654_v48  ;;  %v14991_v57 = vld [vmem:[#allocation42_spill] sm:$0xff] }
 0xafe   : > { %v10648_v58 = vadd.f32 %v10647_v8, %v14663_v13  ;;  %v10653_v25 = vadd.f32 %v8272_v61, %v833_v26  ;;  %v881_v28 = vadd.f32 %v14654_v48, %v14991_v57 }
 0xaff   : > { %8453 = vst.msk [vmem:[%s14672_s22 + $0x90] sm:$0xff] %vm4619_vm2, %v10645_v40  ;;  %v10651_v53 = vadd.f32 %v10650_v20, %v14663_v13 }
 0xb00   : > { %8451 = vst.msk [vmem:[%s14672_s22 + $0x80] sm:$0xff] %vm4619_vm2, %v10648_v58  ;;  %v10654_v52 = vadd.f32 %v10653_v25, %v14663_v13 }
 0xb01   : > { %8454 = vst.msk [vmem:[%s14672_s22 + $0x98] sm:$0xff] %vm4619_vm2, %v10651_v53 }
 0xb02   : > { %8452 = vst.msk [vmem:[%s14672_s22 + $0x88] sm:$0xff] %vm4619_vm2, %v10654_v52  ;;  %v10473_v43 = vpop.f32.mrb[52].mxu0 }
 0xb03   : > { %v10656_v16 = vadd.f32 %v10473_v43, %v854_v55  ;;  %v8285_v15 = vpop.f32.mrb[53].mxu0 }
 0xb04   : > { %v10659_v30 = vadd.f32 %v8285_v15, %v846_v6  ;;  %v10474_v17 = vpop.f32.mrb[54].mxu0 }
 0xb05   : > { %v10657_v4 = vadd.f32 %v10656_v16, %v14663_v13  ;;  %v10662_v2 = vadd.f32 %v10474_v17, %v857_v5  ;;  %v8288_v10 = vpop.f32.mrb[55].mxu0 }
 0xb06   : > { %v10660_v33 = vadd.f32 %v10659_v30, %v14663_v13  ;;  %v10665_v46 = vadd.f32 %v8288_v10, %v849_v0 }
 0xb07   : > { %8457 = vst.msk [vmem:[%s14672_s22 + $0xb0] sm:$0xff] %vm4619_vm2, %v10657_v4  ;;  %v10663_v12 = vadd.f32 %v10662_v2, %v14663_v13 }
 0xb08   : > { %8455 = vst.msk [vmem:[%s14672_s22 + $0xa0] sm:$0xff] %vm4619_vm2, %v10660_v33  ;;  %v10666_v29 = vadd.f32 %v10665_v46, %v14663_v13 }
 0xb09   : > { %8458 = vst.msk [vmem:[%s14672_s22 + $0xb8] sm:$0xff] %vm4619_vm2, %v10663_v12 }
 0xb0a   : > { %8456 = vst.msk [vmem:[%s14672_s22 + $0xa8] sm:$0xff] %vm4619_vm2, %v10666_v29  ;;  %v10477_v7 = vpop.f32.mrb[56].mxu0 }
 0xb0b   : > { %v10668_v23 = vadd.f32 %v10477_v7, %v870_v54  ;;  %v8301_v50 = vpop.f32.mrb[57].mxu0 }
 0xb0c   : > { %v10671_v39 = vadd.f32 %v8301_v50, %v862_v9  ;;  %v10478_v11 = vpop.f32.mrb[58].mxu0 }
 0xb0d   : > { %v10669_v31 = vadd.f32 %v10668_v23, %v14663_v13  ;;  %v10674_v62 = vadd.f32 %v10478_v11, %v873_v1  ;;  %v8304_v19 = vpop.f32.mrb[59].mxu0 }
 0xb0e   : > { %v10672_v34 = vadd.f32 %v10671_v39, %v14663_v13  ;;  %v10677_v41 = vadd.f32 %v8304_v19, %v865_v35 }
 0xb0f   : > { %8461 = vst.msk [vmem:[%s14672_s22 + $0xd0] sm:$0xff] %vm4619_vm2, %v10669_v31  ;;  %v10675_v63 = vadd.f32 %v10674_v62, %v14663_v13 }
 0xb10   : > { %8459 = vst.msk [vmem:[%s14672_s22 + $0xc0] sm:$0xff] %vm4619_vm2, %v10672_v34  ;;  %v10678_v59 = vadd.f32 %v10677_v41, %v14663_v13 }
 0xb11   : > { %8462 = vst.msk [vmem:[%s14672_s22 + $0xd8] sm:$0xff] %vm4619_vm2, %v10675_v63 }
 0xb12   : > { %8460 = vst.msk [vmem:[%s14672_s22 + $0xc8] sm:$0xff] %vm4619_vm2, %v10678_v59  ;;  %v10481_v44 = vpop.f32.mrb[60].mxu0 }
 0xb13   : > { %v10680_v14 = vadd.f32 %v10481_v44, %v886_v32  ;;  %v8317_v18 = vpop.f32.mrb[61].mxu0 }
 0xb14   : > { %v10683_v56 = vadd.f32 %v8317_v18, %v878_v38  ;;  %v10482_v26 = vpop.f32.mrb[62].mxu0 }
 0xb15   : > { %v10681_v8 = vadd.f32 %v10680_v14, %v14663_v13  ;;  %v10686_v49 = vadd.f32 %v10482_v26, %v889_v21  ;;  %v8320_v40 = vpop.f32.mrb[63].mxu0 }
 0xb16   : > { %v10684_v20 = vadd.f32 %v10683_v56, %v14663_v13  ;;  %v10689_v61 = vadd.f32 %v8320_v40, %v881_v28 }
 0xb17   : > { %8465 = vst.msk [vmem:[%s14672_s22 + $0xf0] sm:$0xff] %vm4619_vm2, %v10681_v8  ;;  %v10687_v58 = vadd.f32 %v10686_v49, %v14663_v13 }
 0xb18   : > { %8463 = vst.msk [vmem:[%s14672_s22 + $0xe0] sm:$0xff] %vm4619_vm2, %v10684_v20  ;;  %v10690_v25 = vadd.f32 %v10689_v61, %v14663_v13 }
 0xb19   : > { %8466 = vst.msk [vmem:[%s14672_s22 + $0xf8] sm:$0xff] %vm4619_vm2, %v10687_v58 }
 0xb1a   : > { %8464 = vst.msk [vmem:[%s14672_s22 + $0xe8] sm:$0xff] %vm4619_vm2, %v10690_v25 }
 0xb1b PF: > { %s14992_s30 = sld [smem:[#allocation10_spill]]  ;;  %s14993_s27 = smov %s11763_s28 }
 0xb1c   : > { %s14994_s28 = smov %s11767_s29  ;;  %s14995_s29 = smov %s11947_s11 }
 0xb21   : > { %p29_p8 = scmp.ge.s32.totalorder %s14992_s30, 4  }
 0xb23   :  { %31 = sbr.rel (!%p29_p8) target bundleno = 15 (0xf), region = 157 }
 0xb2a   :  { %8488 = vsyncpa [#allocation5], 1 }
 0xb2b   :  { %8490 = vsyncpa [#allocation5 + $0x1], 1 }
 0xb2c   :  { %8491 = vsyncpa [#allocation7], 1 }

</bundles_post_ra>
